<compile_context>
chip_gen: v6e
topology: v6e:2x2x1
jax: 0.10.0
libtpu: 0.0.40
codegen_flags: <defaults>
</compile_context>

<pallas_src>
import functools

import numpy as np
import jax
import jax.numpy as jnp
from jax.experimental import pallas as pl
from jax.experimental.pallas import tpu as pltpu

J = 15        # num_J (real joints / graph nodes)
JP = 16       # padded joints (clean sublane multiple)
HID = 128     # hid_dim
EPS = 1e-5    # BatchNorm eps (folded at init time)


# ----------------------------- fused Pallas kernel ---------------------------

def _fused_kernel(x_ref, dh_ref, oh_ref, da_ref, oa_ref,
                  w_ref, sh_ref, wq_ref, wa_ref, out_ref, *, pairs):
    """One grid step == `pairs` input pairs.

    x_ref   : (2*P*JP, HID) f32   P pairs, joint-padded, stacked (pair, sample, joint)
    dh_ref  : (2*P*JP, 1)   f32   tiled diagonal of adj_hands softmax (adj_d is diagonal)
    oh_ref  : (2*P*JP, 2*P*JP) bf16  kron(I_{2P}, adj_hands_offdiag)
    da_ref  : (P*JP, 1)     f32   tiled diagonal of adj_ang softmax
    oa_ref  : (P*JP, P*JP)  bf16  kron(I_P, adj_ang_offdiag)
    w_ref   : (10, HID, 2*HID) bf16  concatenated [W0|W1], BN scale pre-folded
    sh_ref  : (10, 1, HID)  f32   folded shift (= bn_shift + bias*bn_scale)
    wq_ref  : (HID, 2*HID)  bf16  dec_quat final SemGraphConv (hid->4), zero padded
    wa_ref  : (HID, 2*HID)  bf16  dec_att SemGraphConv (hid->hid)
    out_ref : (P*JP, HID)   f32   cols 0..3 = normalized quat, col 4 = attention
    """
    P = pairs
    bf16 = jnp.bfloat16

    dh = dh_ref[...]
    oh = oh_ref[...]
    da = da_ref[...]
    oa = oa_ref[...]

    def sem_gconv(x, dvec, adj_o, wcat):
        # adj_diag is diagonal by construction -> per-row VPU scale;
        # only the off-diagonal mix hits the MXU.  bf16 operands / f32 acc.
        h = jnp.dot(x.astype(bf16), wcat,
                    preferred_element_type=jnp.float32)          # (R, 2*HID)
        h0 = h[:, :HID]
        h1 = h[:, HID:]
        mix = jnp.dot(adj_o, h1.astype(bf16),
                      preferred_element_type=jnp.float32)
        return dvec * h0 + mix

    def gconv_bn_relu(x, dvec, adj_o, li):
        # BN scale folded into w_ref[li]; bias folded into sh_ref[li].
        y = sem_gconv(x, dvec, adj_o, w_ref[li])
        return jnp.maximum(y + sh_ref[li], 0.0)

    x = x_ref[...]                                  # (2*P*JP, HID) f32

    # compare1 = _ResGraphConv, _GraphConv, _ResGraphConv   (adj_hands)
    y = gconv_bn_relu(x, dh, oh, 0)
    y = gconv_bn_relu(y, dh, oh, 1) + x
    y3 = gconv_bn_relu(y, dh, oh, 2)
    y = gconv_bn_relu(y3, dh, oh, 3)
    y = gconv_bn_relu(y, dh, oh, 4) + y3

    # x.view(-1, 2, 15, 128).swapaxes(1, 2).mean(2)  ==  per-pair mean.
    # Sublane-only reshape/slice (lane axis untouched) -> VPU only.
    y = y.reshape(P, 2 * JP, HID)
    z = (0.5 * (y[:, :JP, :] + y[:, JP:, :])).reshape(P * JP, HID)

    # compare2 = _GraphConv, _ResGraphConv, _GraphConv      (adj_ang)
    z1 = gconv_bn_relu(z, da, oa, 5)
    z2 = gconv_bn_relu(z1, da, oa, 6)
    z2 = gconv_bn_relu(z2, da, oa, 7) + z1
    z3 = gconv_bn_relu(z2, da, oa, 8)

    # dec_quat = _GraphConv -> SemGraphConv(hid->4, bias=False) -> L2 normalize
    u = gconv_bn_relu(z3, da, oa, 9)
    q = sem_gconv(u, da, oa, wq_ref[...])           # (P*JP, HID); cols >= 4 are 0
    ssq = jnp.sum(q * q, axis=-1, keepdims=True)    # padded cols contribute 0
    qn = q * jax.lax.rsqrt(ssq + 1e-12)             # eps avoids 0-div (EUP rsqrt)

    # dec_att = SemGraphConv(hid->hid, bias=False) -> sum(-1) -> softmax -> * J
    a = sem_gconv(z3, da, oa, wa_ref[...])          # (P*JP, HID)
    s = jnp.sum(a, axis=-1, keepdims=True)          # (P*JP, 1)
    s3 = s.reshape(P, JP, 1)                        # per-pair groups (sublane-only)
    jid = jax.lax.broadcasted_iota(jnp.int32, (P, JP, 1), 1)
    s3 = jnp.where(jid < J, s3, -1e30)              # mask padded joint
    m = jnp.max(s3, axis=1, keepdims=True)          # (P, 1, 1)
    e = jnp.where(jid < J, jnp.exp(s3 - m), 0.0)
    denom = jnp.sum(e, axis=1, keepdims=True)       # (P, 1, 1)
    p = (e / denom * float(J)).reshape(P * JP, 1)   # exact f32 divide

    # Merge both heads into one lane-dense output block: col 4 carries att.
    col = jax.lax.broadcasted_iota(jnp.int32, (P * JP, HID), 1)
    out_ref[...] = jnp.where(col == 4, p, qn)


# ----------------------------- forward wrapper --------------------------------

def hand_sim_net_forward(x, params, adj_exp, pairs_per_step=8):
    """x: (2*B, J, HID) float32 -> (quat (B, J, 4), att (B, J))."""
    P = pairs_per_step
    two_b, jn, cin = x.shape
    bpairs = two_b // 2
    grid_len = -(-bpairs // P)          # ceil
    bpad = grid_len * P
    dvec_h, adjO_h, dvec_a, adjO_a = adj_exp

    # pad pairs up to a multiple of P and joints 15->16; flatten to lane-dense rows
    xp = jnp.pad(x, ((0, 2 * (bpad - bpairs)), (0, JP - jn), (0, 0)))
    xp = xp.reshape(2 * bpad * JP, cin)

    out_full = pl.pallas_call(
        functools.partial(_fused_kernel, pairs=P),
        out_shape=jax.ShapeDtypeStruct((bpad * JP, HID), jnp.float32),
        grid=(grid_len,),
        in_specs=[
            pl.BlockSpec((2 * P * JP, HID), lambda b: (b, 0)),          # x (P pairs)
            pl.BlockSpec((2 * P * JP, 1), lambda b: (0, 0)),            # adj_hands diag vec
            pl.BlockSpec((2 * P * JP, 2 * P * JP), lambda b: (0, 0)),   # adj_hands offdiag (blkdiag)
            pl.BlockSpec((P * JP, 1), lambda b: (0, 0)),                # adj_ang diag vec
            pl.BlockSpec((P * JP, P * JP), lambda b: (0, 0)),           # adj_ang offdiag (blkdiag)
            pl.BlockSpec((10, HID, 2 * HID), lambda b: (0, 0, 0)),      # stacked [W0|W1] (bf16)
            pl.BlockSpec((10, 1, HID), lambda b: (0, 0, 0)),            # folded shift (f32)
            pl.BlockSpec((HID, 2 * HID), lambda b: (0, 0)),             # dec_quat W (bf16, padded)
            pl.BlockSpec((HID, 2 * HID), lambda b: (0, 0)),             # dec_att W (bf16)
        ],
        out_specs=pl.BlockSpec((P * JP, HID), lambda b: (b, 0)),
        compiler_params=pltpu.CompilerParams(
            dimension_semantics=("parallel",)),                          # >=2 steps -> both v7x TCs
    )(xp, dvec_h, adjO_h, dvec_a, adjO_a,
      params["W_all"], params["sh_all"], params["wq"], params["wa"])

    out = out_full.reshape(bpad, JP, HID)[:bpairs, :jn]
    quat = out[:, :, :4]
    att = out[:, :, 4]
    return quat, att


# ----------------------------- adjacency setup ---------------------------------

def build_adj_parts(n, n_pad, extra_edges=()):
    """Reproduce SemGraphConv's masked learned adjacency at init (e == 1):
    row-softmax over the mask, split into a diagonal VECTOR and the off-diagonal
    matrix, zero-padded to n_pad."""
    a = np.eye(n, dtype=np.float32)
    for i in range(n - 1):
        a[i, i + 1] = 1.0
        a[i + 1, i] = 1.0
    for (i, j) in extra_edges:
        a[i, j] = 1.0
        a[j, i] = 1.0
    mask = a > 0
    logits = np.full(a.shape, -9e15, dtype=np.float32)
    logits[mask] = 1.0                       # nn.init.constant_(self.e, 1)
    logits -= logits.max(axis=1, keepdims=True)
    ex = np.exp(logits)
    sm = ex / ex.sum(axis=1, keepdims=True)
    diag = np.zeros((n_pad,), np.float32)
    diag[:n] = np.diag(sm)
    off = np.zeros((n_pad, n_pad), np.float32)
    off[:n, :n] = sm * (1.0 - np.eye(n, dtype=np.float32))
    return diag, off


def expand_adj(diag, off, blocks):
    """Tile the diagonal vector and kron(I_blocks, offdiag) for pair batching."""
    dvec = jnp.asarray(np.tile(diag, blocks).reshape(-1, 1), jnp.float32)
    big = np.kron(np.eye(blocks, dtype=np.float32), off)
    adj_o = jnp.asarray(big, dtype=jnp.bfloat16)
    return dvec, adj_o


# ----------------------------- parameter setup ---------------------------------

def _init_std_layer(key, cin=HID, cout=HID):
    ks = jax.random.split(key, 6)
    w = jax.random.normal(ks[0], (2, cin, cout), jnp.float32) / np.sqrt(cin)
    bias = ((jax.random.uniform(ks[1], (cout,)) - 0.5) * 0.1).astype(jnp.float32)
    gamma = 1.0 + 0.1 * jax.random.normal(ks[2], (cout,))
    beta = 0.1 * jax.random.normal(ks[3], (cout,))
    mean = 0.1 * jax.random.normal(ks[4], (cout,))
    var = 1.0 + 0.1 * jnp.abs(jax.random.normal(ks[5], (cout,)))
    scale = gamma / jnp.sqrt(var + EPS)          # eval-mode BN scale
    shift = beta - mean * scale                  # eval-mode BN shift
    # Fold BN scale into the weights (column scaling commutes with the row mix)
    # and fold the SemGraphConv bias into the shift.
    wcat = jnp.concatenate([w[0] * scale[None, :], w[1] * scale[None, :]],
                           axis=1).astype(jnp.bfloat16)           # (cin, 2*cout)
    sh = (shift + bias * scale).reshape(1, cout).astype(jnp.float32)
    return wcat, sh


def init_hand_sim_params(key):
    ks = jax.random.split(key, 12)
    wcats, shs = [], []
    # layers 0-4: compare1 (adj_hands); 5-8: compare2 (adj_ang); 9: dec_quat[0]
    for i in range(10):
        wcat, sh = _init_std_layer(ks[i])
        wcats.append(wcat)
        shs.append(sh)
    p = {
        "W_all": jnp.stack(wcats),     # (10, 128, 256) bf16
        "sh_all": jnp.stack(shs),      # (10, 1, 128)   f32
    }
    # dec_quat[1]: SemGraphConv(hid -> 4, bias=False), zero-padded to lane width
    wq2 = jax.random.normal(ks[10], (2, HID, 4), jnp.float32) / np.sqrt(HID)
    wq = jnp.zeros((HID, 2 * HID), jnp.float32)
    wq = wq.at[:, 0:4].set(wq2[0]).at[:, HID:HID + 4].set(wq2[1])
    p["wq"] = wq.astype(jnp.bfloat16)
    # dec_att[0]: SemGraphConv(hid -> hid, bias=False)
    wa2 = jax.random.normal(ks[11], (2, HID, HID), jnp.float32) / np.sqrt(HID)
    p["wa"] = jnp.concatenate([wa2[0], wa2[1]], axis=1).astype(jnp.bfloat16)
    return p


# ----------------------------- main --------------------------------------------

if __name__ == "__main__":
    key = jax.random.PRNGKey(0)
    k_param, k_x = jax.random.split(key)

    P = 8      # pairs per grid step: compare1 M=256, compare2 M=128 (v5e 128-multiple)
    B = 16     # pairs -> conv batch dim is 2*B = 32; grid = 2 steps (both v7x TCs)

    diag_h, off_h = build_adj_parts(J, JP, extra_edges=[(0, 3), (0, 6), (0, 9), (0, 12)])
    diag_a, off_a = build_adj_parts(J, JP, extra_edges=[(0, 5), (0, 10)])
    dvec_h, adjO_h = expand_adj(diag_h, off_h, blocks=2 * P)
    dvec_a, adjO_a = expand_adj(diag_a, off_a, blocks=P)
    adj_exp = (dvec_h, adjO_h, dvec_a, adjO_a)

    params = init_hand_sim_params(k_param)
    x = jax.random.normal(k_x, (2 * B, J, HID), jnp.float32)

    fwd = jax.jit(functools.partial(hand_sim_net_forward, pairs_per_step=P))
    quat, att = fwd(x, params, adj_exp)
    quat = np.asarray(jax.block_until_ready(quat))
    att = np.asarray(jax.block_until_ready(att))

    assert quat.shape == (B, J, 4), quat.shape
    assert att.shape == (B, J), att.shape
    # self-consistency: quaternions unit-norm, attention rows sum to J
    assert np.all(np.isfinite(quat)) and np.all(np.isfinite(att))
    assert np.allclose(np.linalg.norm(quat, axis=-1), 1.0, atol=1e-3)
    assert np.allclose(att.sum(axis=-1), float(J), atol=1e-3)

    print("KERNEL_OK")
</pallas_src>

<mosaic_0001>
module attributes {stable_mosaic.version = 11 : i64} {
  func.func @_fused_kernel(%arg0: i32, %arg1: memref<256x128xf32, #tpu.memory_space<vmem>>, %arg2: memref<256x1xf32, #tpu.memory_space<vmem>>, %arg3: memref<256x256xbf16, #tpu.memory_space<vmem>>, %arg4: memref<128x1xf32, #tpu.memory_space<vmem>>, %arg5: memref<128x128xbf16, #tpu.memory_space<vmem>>, %arg6: memref<10x128x256xbf16, #tpu.memory_space<vmem>>, %arg7: memref<10x1x128xf32, #tpu.memory_space<vmem>>, %arg8: memref<128x256xbf16, #tpu.memory_space<vmem>>, %arg9: memref<128x256xbf16, #tpu.memory_space<vmem>>, %arg10: memref<128x128xf32, #tpu.memory_space<vmem>>) attributes {dimension_semantics = [#tpu.dimension_semantics<parallel>], iteration_bounds = array<i64: 2>, scalar_prefetch = 0 : i64, scratch_operands = 0 : i64, tpu.core_type = #tpu.core_type<tc>, window_params = [{transform_indices = @transform_0, window_bounds = array<i64: 256, 128>}, {pipeline_mode = #tpu.pipeline_mode<synchronous>, transform_indices = @transform_1, window_bounds = array<i64: 256, 1>}, {pipeline_mode = #tpu.pipeline_mode<synchronous>, transform_indices = @transform_2, window_bounds = array<i64: 256, 256>}, {pipeline_mode = #tpu.pipeline_mode<synchronous>, transform_indices = @transform_3, window_bounds = array<i64: 128, 1>}, {pipeline_mode = #tpu.pipeline_mode<synchronous>, transform_indices = @transform_4, window_bounds = array<i64: 128, 128>}, {pipeline_mode = #tpu.pipeline_mode<synchronous>, transform_indices = @transform_5, window_bounds = array<i64: 10, 128, 256>}, {pipeline_mode = #tpu.pipeline_mode<synchronous>, transform_indices = @transform_6, window_bounds = array<i64: 10, 1, 128>}, {pipeline_mode = #tpu.pipeline_mode<synchronous>, transform_indices = @transform_7, window_bounds = array<i64: 128, 256>}, {pipeline_mode = #tpu.pipeline_mode<synchronous>, transform_indices = @transform_8, window_bounds = array<i64: 128, 256>}, {transform_indices = @transform_9, window_bounds = array<i64: 128, 128>}]} {
    %c0 = arith.constant 0 : index
    %c0_0 = arith.constant 0 : index
    %0 = vector.load %arg2[%c0, %c0_0] : memref<256x1xf32, #tpu.memory_space<vmem>>, vector<256x1xf32>
    %c0_1 = arith.constant 0 : index
    %c0_2 = arith.constant 0 : index
    %1 = vector.load %arg3[%c0_1, %c0_2] : memref<256x256xbf16, #tpu.memory_space<vmem>>, vector<256x256xbf16>
    %c0_3 = arith.constant 0 : index
    %c0_4 = arith.constant 0 : index
    %2 = vector.load %arg4[%c0_3, %c0_4] : memref<128x1xf32, #tpu.memory_space<vmem>>, vector<128x1xf32>
    %c0_5 = arith.constant 0 : index
    %c0_6 = arith.constant 0 : index
    %3 = vector.load %arg5[%c0_5, %c0_6] : memref<128x128xbf16, #tpu.memory_space<vmem>>, vector<128x128xbf16>
    %c0_7 = arith.constant 0 : index
    %c0_8 = arith.constant 0 : index
    %4 = vector.load %arg1[%c0_7, %c0_8] : memref<256x128xf32, #tpu.memory_space<vmem>>, vector<256x128xf32>
    %c0_9 = arith.constant 0 : index
    %c0_10 = arith.constant 0 : index
    %c0_11 = arith.constant 0 : index
    %5 = vector.load %arg6[%c0_9, %c0_10, %c0_11] : memref<10x128x256xbf16, #tpu.memory_space<vmem>>, vector<1x128x256xbf16>
    %6 = vector.shape_cast %5 : vector<1x128x256xbf16> to vector<128x256xbf16>
    %7 = arith.truncf %4 : vector<256x128xf32> to vector<256x128xbf16>
    %cst = arith.constant dense<0.000000e+00> : vector<256x256xf32>
    %8 = tpu.matmul %7, %6, %cst {dimension_numbers = #tpu.dot_dimension_numbers<[1], [0], [0], [1], [0, 0, 1, 1], [], []>} : vector<256x128xbf16>, vector<128x256xbf16>, vector<256x256xf32> -> vector<256x256xf32>
    %9 = vector.extract_strided_slice %8 {offsets = [0, 0], sizes = [256, 128], strides = [1, 1]} : vector<256x256xf32> to vector<256x128xf32>
    %10 = vector.extract_strided_slice %8 {offsets = [0, 128], sizes = [256, 128], strides = [1, 1]} : vector<256x256xf32> to vector<256x128xf32>
    %11 = arith.truncf %10 : vector<256x128xf32> to vector<256x128xbf16>
    %cst_12 = arith.constant dense<0.000000e+00> : vector<256x128xf32>
    %12 = tpu.matmul %1, %11, %cst_12 {dimension_numbers = #tpu.dot_dimension_numbers<[1], [0], [0], [1], [0, 0, 1, 1], [], []>} : vector<256x256xbf16>, vector<256x128xbf16>, vector<256x128xf32> -> vector<256x128xf32>
    %13 = vector.broadcast %0 : vector<256x1xf32> to vector<256x128xf32>
    %14 = arith.mulf %13, %9 : vector<256x128xf32>
    %15 = arith.addf %14, %12 : vector<256x128xf32>
    %c0_13 = arith.constant 0 : index
    %c0_14 = arith.constant 0 : index
    %c0_15 = arith.constant 0 : index
    %16 = vector.load %arg7[%c0_13, %c0_14, %c0_15] : memref<10x1x128xf32, #tpu.memory_space<vmem>>, vector<1x1x128xf32>
    %17 = vector.shape_cast %16 : vector<1x1x128xf32> to vector<1x128xf32>
    %18 = vector.broadcast %17 : vector<1x128xf32> to vector<256x128xf32>
    %19 = arith.addf %15, %18 : vector<256x128xf32>
    %cst_16 = arith.constant 0.000000e+00 : f32
    %20 = vector.broadcast %cst_16 : f32 to vector<256x128xf32>
    %21 = arith.maximumf %19, %20 : vector<256x128xf32>
    %c1 = arith.constant 1 : index
    %c0_17 = arith.constant 0 : index
    %c0_18 = arith.constant 0 : index
    %22 = vector.load %arg6[%c1, %c0_17, %c0_18] : memref<10x128x256xbf16, #tpu.memory_space<vmem>>, vector<1x128x256xbf16>
    %23 = vector.shape_cast %22 : vector<1x128x256xbf16> to vector<128x256xbf16>
    %24 = arith.truncf %21 : vector<256x128xf32> to vector<256x128xbf16>
    %cst_19 = arith.constant dense<0.000000e+00> : vector<256x256xf32>
    %25 = tpu.matmul %24, %23, %cst_19 {dimension_numbers = #tpu.dot_dimension_numbers<[1], [0], [0], [1], [0, 0, 1, 1], [], []>} : vector<256x128xbf16>, vector<128x256xbf16>, vector<256x256xf32> -> vector<256x256xf32>
    %26 = vector.extract_strided_slice %25 {offsets = [0, 0], sizes = [256, 128], strides = [1, 1]} : vector<256x256xf32> to vector<256x128xf32>
    %27 = vector.extract_strided_slice %25 {offsets = [0, 128], sizes = [256, 128], strides = [1, 1]} : vector<256x256xf32> to vector<256x128xf32>
    %28 = arith.truncf %27 : vector<256x128xf32> to vector<256x128xbf16>
    %cst_20 = arith.constant dense<0.000000e+00> : vector<256x128xf32>
    %29 = tpu.matmul %1, %28, %cst_20 {dimension_numbers = #tpu.dot_dimension_numbers<[1], [0], [0], [1], [0, 0, 1, 1], [], []>} : vector<256x256xbf16>, vector<256x128xbf16>, vector<256x128xf32> -> vector<256x128xf32>
    %30 = vector.broadcast %0 : vector<256x1xf32> to vector<256x128xf32>
    %31 = arith.mulf %30, %26 : vector<256x128xf32>
    %32 = arith.addf %31, %29 : vector<256x128xf32>
    %c1_21 = arith.constant 1 : index
    %c0_22 = arith.constant 0 : index
    %c0_23 = arith.constant 0 : index
    %33 = vector.load %arg7[%c1_21, %c0_22, %c0_23] : memref<10x1x128xf32, #tpu.memory_space<vmem>>, vector<1x1x128xf32>
    %34 = vector.shape_cast %33 : vector<1x1x128xf32> to vector<1x128xf32>
    %35 = vector.broadcast %34 : vector<1x128xf32> to vector<256x128xf32>
    %36 = arith.addf %32, %35 : vector<256x128xf32>
    %cst_24 = arith.constant 0.000000e+00 : f32
    %37 = vector.broadcast %cst_24 : f32 to vector<256x128xf32>
    %38 = arith.maximumf %36, %37 : vector<256x128xf32>
    %39 = arith.addf %38, %4 : vector<256x128xf32>
    %c2 = arith.constant 2 : index
    %c0_25 = arith.constant 0 : index
    %c0_26 = arith.constant 0 : index
    %40 = vector.load %arg6[%c2, %c0_25, %c0_26] : memref<10x128x256xbf16, #tpu.memory_space<vmem>>, vector<1x128x256xbf16>
    %41 = vector.shape_cast %40 : vector<1x128x256xbf16> to vector<128x256xbf16>
    %42 = arith.truncf %39 : vector<256x128xf32> to vector<256x128xbf16>
    %cst_27 = arith.constant dense<0.000000e+00> : vector<256x256xf32>
    %43 = tpu.matmul %42, %41, %cst_27 {dimension_numbers = #tpu.dot_dimension_numbers<[1], [0], [0], [1], [0, 0, 1, 1], [], []>} : vector<256x128xbf16>, vector<128x256xbf16>, vector<256x256xf32> -> vector<256x256xf32>
    %44 = vector.extract_strided_slice %43 {offsets = [0, 0], sizes = [256, 128], strides = [1, 1]} : vector<256x256xf32> to vector<256x128xf32>
    %45 = vector.extract_strided_slice %43 {offsets = [0, 128], sizes = [256, 128], strides = [1, 1]} : vector<256x256xf32> to vector<256x128xf32>
    %46 = arith.truncf %45 : vector<256x128xf32> to vector<256x128xbf16>
    %cst_28 = arith.constant dense<0.000000e+00> : vector<256x128xf32>
    %47 = tpu.matmul %1, %46, %cst_28 {dimension_numbers = #tpu.dot_dimension_numbers<[1], [0], [0], [1], [0, 0, 1, 1], [], []>} : vector<256x256xbf16>, vector<256x128xbf16>, vector<256x128xf32> -> vector<256x128xf32>
    %48 = vector.broadcast %0 : vector<256x1xf32> to vector<256x128xf32>
    %49 = arith.mulf %48, %44 : vector<256x128xf32>
    %50 = arith.addf %49, %47 : vector<256x128xf32>
    %c2_29 = arith.constant 2 : index
    %c0_30 = arith.constant 0 : index
    %c0_31 = arith.constant 0 : index
    %51 = vector.load %arg7[%c2_29, %c0_30, %c0_31] : memref<10x1x128xf32, #tpu.memory_space<vmem>>, vector<1x1x128xf32>
    %52 = vector.shape_cast %51 : vector<1x1x128xf32> to vector<1x128xf32>
    %53 = vector.broadcast %52 : vector<1x128xf32> to vector<256x128xf32>
    %54 = arith.addf %50, %53 : vector<256x128xf32>
    %cst_32 = arith.constant 0.000000e+00 : f32
    %55 = vector.broadcast %cst_32 : f32 to vector<256x128xf32>
    %56 = arith.maximumf %54, %55 : vector<256x128xf32>
    %c3 = arith.constant 3 : index
    %c0_33 = arith.constant 0 : index
    %c0_34 = arith.constant 0 : index
    %57 = vector.load %arg6[%c3, %c0_33, %c0_34] : memref<10x128x256xbf16, #tpu.memory_space<vmem>>, vector<1x128x256xbf16>
    %58 = vector.shape_cast %57 : vector<1x128x256xbf16> to vector<128x256xbf16>
    %59 = arith.truncf %56 : vector<256x128xf32> to vector<256x128xbf16>
    %cst_35 = arith.constant dense<0.000000e+00> : vector<256x256xf32>
    %60 = tpu.matmul %59, %58, %cst_35 {dimension_numbers = #tpu.dot_dimension_numbers<[1], [0], [0], [1], [0, 0, 1, 1], [], []>} : vector<256x128xbf16>, vector<128x256xbf16>, vector<256x256xf32> -> vector<256x256xf32>
    %61 = vector.extract_strided_slice %60 {offsets = [0, 0], sizes = [256, 128], strides = [1, 1]} : vector<256x256xf32> to vector<256x128xf32>
    %62 = vector.extract_strided_slice %60 {offsets = [0, 128], sizes = [256, 128], strides = [1, 1]} : vector<256x256xf32> to vector<256x128xf32>
    %63 = arith.truncf %62 : vector<256x128xf32> to vector<256x128xbf16>
    %cst_36 = arith.constant dense<0.000000e+00> : vector<256x128xf32>
    %64 = tpu.matmul %1, %63, %cst_36 {dimension_numbers = #tpu.dot_dimension_numbers<[1], [0], [0], [1], [0, 0, 1, 1], [], []>} : vector<256x256xbf16>, vector<256x128xbf16>, vector<256x128xf32> -> vector<256x128xf32>
    %65 = vector.broadcast %0 : vector<256x1xf32> to vector<256x128xf32>
    %66 = arith.mulf %65, %61 : vector<256x128xf32>
    %67 = arith.addf %66, %64 : vector<256x128xf32>
    %c3_37 = arith.constant 3 : index
    %c0_38 = arith.constant 0 : index
    %c0_39 = arith.constant 0 : index
    %68 = vector.load %arg7[%c3_37, %c0_38, %c0_39] : memref<10x1x128xf32, #tpu.memory_space<vmem>>, vector<1x1x128xf32>
    %69 = vector.shape_cast %68 : vector<1x1x128xf32> to vector<1x128xf32>
    %70 = vector.broadcast %69 : vector<1x128xf32> to vector<256x128xf32>
    %71 = arith.addf %67, %70 : vector<256x128xf32>
    %cst_40 = arith.constant 0.000000e+00 : f32
    %72 = vector.broadcast %cst_40 : f32 to vector<256x128xf32>
    %73 = arith.maximumf %71, %72 : vector<256x128xf32>
    %c4 = arith.constant 4 : index
    %c0_41 = arith.constant 0 : index
    %c0_42 = arith.constant 0 : index
    %74 = vector.load %arg6[%c4, %c0_41, %c0_42] : memref<10x128x256xbf16, #tpu.memory_space<vmem>>, vector<1x128x256xbf16>
    %75 = vector.shape_cast %74 : vector<1x128x256xbf16> to vector<128x256xbf16>
    %76 = arith.truncf %73 : vector<256x128xf32> to vector<256x128xbf16>
    %cst_43 = arith.constant dense<0.000000e+00> : vector<256x256xf32>
    %77 = tpu.matmul %76, %75, %cst_43 {dimension_numbers = #tpu.dot_dimension_numbers<[1], [0], [0], [1], [0, 0, 1, 1], [], []>} : vector<256x128xbf16>, vector<128x256xbf16>, vector<256x256xf32> -> vector<256x256xf32>
    %78 = vector.extract_strided_slice %77 {offsets = [0, 0], sizes = [256, 128], strides = [1, 1]} : vector<256x256xf32> to vector<256x128xf32>
    %79 = vector.extract_strided_slice %77 {offsets = [0, 128], sizes = [256, 128], strides = [1, 1]} : vector<256x256xf32> to vector<256x128xf32>
    %80 = arith.truncf %79 : vector<256x128xf32> to vector<256x128xbf16>
    %cst_44 = arith.constant dense<0.000000e+00> : vector<256x128xf32>
    %81 = tpu.matmul %1, %80, %cst_44 {dimension_numbers = #tpu.dot_dimension_numbers<[1], [0], [0], [1], [0, 0, 1, 1], [], []>} : vector<256x256xbf16>, vector<256x128xbf16>, vector<256x128xf32> -> vector<256x128xf32>
    %82 = vector.broadcast %0 : vector<256x1xf32> to vector<256x128xf32>
    %83 = arith.mulf %82, %78 : vector<256x128xf32>
    %84 = arith.addf %83, %81 : vector<256x128xf32>
    %c4_45 = arith.constant 4 : index
    %c0_46 = arith.constant 0 : index
    %c0_47 = arith.constant 0 : index
    %85 = vector.load %arg7[%c4_45, %c0_46, %c0_47] : memref<10x1x128xf32, #tpu.memory_space<vmem>>, vector<1x1x128xf32>
    %86 = vector.shape_cast %85 : vector<1x1x128xf32> to vector<1x128xf32>
    %87 = vector.broadcast %86 : vector<1x128xf32> to vector<256x128xf32>
    %88 = arith.addf %84, %87 : vector<256x128xf32>
    %cst_48 = arith.constant 0.000000e+00 : f32
    %89 = vector.broadcast %cst_48 : f32 to vector<256x128xf32>
    %90 = arith.maximumf %88, %89 : vector<256x128xf32>
    %91 = arith.addf %90, %56 : vector<256x128xf32>
    %92 = vector.shape_cast %91 : vector<256x128xf32> to vector<8x32x128xf32>
    %93 = vector.extract_strided_slice %92 {offsets = [0, 0, 0], sizes = [8, 16, 128], strides = [1, 1, 1]} : vector<8x32x128xf32> to vector<8x16x128xf32>
    %94 = vector.extract_strided_slice %92 {offsets = [0, 16, 0], sizes = [8, 16, 128], strides = [1, 1, 1]} : vector<8x32x128xf32> to vector<8x16x128xf32>
    %95 = arith.addf %93, %94 : vector<8x16x128xf32>
    %cst_49 = arith.constant 5.000000e-01 : f32
    %96 = vector.broadcast %cst_49 : f32 to vector<8x16x128xf32>
    %97 = arith.mulf %96, %95 : vector<8x16x128xf32>
    %98 = vector.shape_cast %97 : vector<8x16x128xf32> to vector<128x128xf32>
    %c5 = arith.constant 5 : index
    %c0_50 = arith.constant 0 : index
    %c0_51 = arith.constant 0 : index
    %99 = vector.load %arg6[%c5, %c0_50, %c0_51] : memref<10x128x256xbf16, #tpu.memory_space<vmem>>, vector<1x128x256xbf16>
    %100 = vector.shape_cast %99 : vector<1x128x256xbf16> to vector<128x256xbf16>
    %101 = arith.truncf %98 : vector<128x128xf32> to vector<128x128xbf16>
    %cst_52 = arith.constant dense<0.000000e+00> : vector<128x256xf32>
    %102 = tpu.matmul %101, %100, %cst_52 {dimension_numbers = #tpu.dot_dimension_numbers<[1], [0], [0], [1], [0, 0, 1, 1], [], []>} : vector<128x128xbf16>, vector<128x256xbf16>, vector<128x256xf32> -> vector<128x256xf32>
    %103 = vector.extract_strided_slice %102 {offsets = [0, 0], sizes = [128, 128], strides = [1, 1]} : vector<128x256xf32> to vector<128x128xf32>
    %104 = vector.extract_strided_slice %102 {offsets = [0, 128], sizes = [128, 128], strides = [1, 1]} : vector<128x256xf32> to vector<128x128xf32>
    %105 = arith.truncf %104 : vector<128x128xf32> to vector<128x128xbf16>
    %cst_53 = arith.constant dense<0.000000e+00> : vector<128x128xf32>
    %106 = tpu.matmul %3, %105, %cst_53 {dimension_numbers = #tpu.dot_dimension_numbers<[1], [0], [0], [1], [0, 0, 1, 1], [], []>} : vector<128x128xbf16>, vector<128x128xbf16>, vector<128x128xf32> -> vector<128x128xf32>
    %107 = vector.broadcast %2 : vector<128x1xf32> to vector<128x128xf32>
    %108 = arith.mulf %107, %103 : vector<128x128xf32>
    %109 = arith.addf %108, %106 : vector<128x128xf32>
    %c5_54 = arith.constant 5 : index
    %c0_55 = arith.constant 0 : index
    %c0_56 = arith.constant 0 : index
    %110 = vector.load %arg7[%c5_54, %c0_55, %c0_56] : memref<10x1x128xf32, #tpu.memory_space<vmem>>, vector<1x1x128xf32>
    %111 = vector.shape_cast %110 : vector<1x1x128xf32> to vector<1x128xf32>
    %112 = vector.broadcast %111 : vector<1x128xf32> to vector<128x128xf32>
    %113 = arith.addf %109, %112 : vector<128x128xf32>
    %cst_57 = arith.constant 0.000000e+00 : f32
    %114 = vector.broadcast %cst_57 : f32 to vector<128x128xf32>
    %115 = arith.maximumf %113, %114 : vector<128x128xf32>
    %c6 = arith.constant 6 : index
    %c0_58 = arith.constant 0 : index
    %c0_59 = arith.constant 0 : index
    %116 = vector.load %arg6[%c6, %c0_58, %c0_59] : memref<10x128x256xbf16, #tpu.memory_space<vmem>>, vector<1x128x256xbf16>
    %117 = vector.shape_cast %116 : vector<1x128x256xbf16> to vector<128x256xbf16>
    %118 = arith.truncf %115 : vector<128x128xf32> to vector<128x128xbf16>
    %cst_60 = arith.constant dense<0.000000e+00> : vector<128x256xf32>
    %119 = tpu.matmul %118, %117, %cst_60 {dimension_numbers = #tpu.dot_dimension_numbers<[1], [0], [0], [1], [0, 0, 1, 1], [], []>} : vector<128x128xbf16>, vector<128x256xbf16>, vector<128x256xf32> -> vector<128x256xf32>
    %120 = vector.extract_strided_slice %119 {offsets = [0, 0], sizes = [128, 128], strides = [1, 1]} : vector<128x256xf32> to vector<128x128xf32>
    %121 = vector.extract_strided_slice %119 {offsets = [0, 128], sizes = [128, 128], strides = [1, 1]} : vector<128x256xf32> to vector<128x128xf32>
    %122 = arith.truncf %121 : vector<128x128xf32> to vector<128x128xbf16>
    %cst_61 = arith.constant dense<0.000000e+00> : vector<128x128xf32>
    %123 = tpu.matmul %3, %122, %cst_61 {dimension_numbers = #tpu.dot_dimension_numbers<[1], [0], [0], [1], [0, 0, 1, 1], [], []>} : vector<128x128xbf16>, vector<128x128xbf16>, vector<128x128xf32> -> vector<128x128xf32>
    %124 = vector.broadcast %2 : vector<128x1xf32> to vector<128x128xf32>
    %125 = arith.mulf %124, %120 : vector<128x128xf32>
    %126 = arith.addf %125, %123 : vector<128x128xf32>
    %c6_62 = arith.constant 6 : index
    %c0_63 = arith.constant 0 : index
    %c0_64 = arith.constant 0 : index
    %127 = vector.load %arg7[%c6_62, %c0_63, %c0_64] : memref<10x1x128xf32, #tpu.memory_space<vmem>>, vector<1x1x128xf32>
    %128 = vector.shape_cast %127 : vector<1x1x128xf32> to vector<1x128xf32>
    %129 = vector.broadcast %128 : vector<1x128xf32> to vector<128x128xf32>
    %130 = arith.addf %126, %129 : vector<128x128xf32>
    %cst_65 = arith.constant 0.000000e+00 : f32
    %131 = vector.broadcast %cst_65 : f32 to vector<128x128xf32>
    %132 = arith.maximumf %130, %131 : vector<128x128xf32>
    %c7 = arith.constant 7 : index
    %c0_66 = arith.constant 0 : index
    %c0_67 = arith.constant 0 : index
    %133 = vector.load %arg6[%c7, %c0_66, %c0_67] : memref<10x128x256xbf16, #tpu.memory_space<vmem>>, vector<1x128x256xbf16>
    %134 = vector.shape_cast %133 : vector<1x128x256xbf16> to vector<128x256xbf16>
    %135 = arith.truncf %132 : vector<128x128xf32> to vector<128x128xbf16>
    %cst_68 = arith.constant dense<0.000000e+00> : vector<128x256xf32>
    %136 = tpu.matmul %135, %134, %cst_68 {dimension_numbers = #tpu.dot_dimension_numbers<[1], [0], [0], [1], [0, 0, 1, 1], [], []>} : vector<128x128xbf16>, vector<128x256xbf16>, vector<128x256xf32> -> vector<128x256xf32>
    %137 = vector.extract_strided_slice %136 {offsets = [0, 0], sizes = [128, 128], strides = [1, 1]} : vector<128x256xf32> to vector<128x128xf32>
    %138 = vector.extract_strided_slice %136 {offsets = [0, 128], sizes = [128, 128], strides = [1, 1]} : vector<128x256xf32> to vector<128x128xf32>
    %139 = arith.truncf %138 : vector<128x128xf32> to vector<128x128xbf16>
    %cst_69 = arith.constant dense<0.000000e+00> : vector<128x128xf32>
    %140 = tpu.matmul %3, %139, %cst_69 {dimension_numbers = #tpu.dot_dimension_numbers<[1], [0], [0], [1], [0, 0, 1, 1], [], []>} : vector<128x128xbf16>, vector<128x128xbf16>, vector<128x128xf32> -> vector<128x128xf32>
    %141 = vector.broadcast %2 : vector<128x1xf32> to vector<128x128xf32>
    %142 = arith.mulf %141, %137 : vector<128x128xf32>
    %143 = arith.addf %142, %140 : vector<128x128xf32>
    %c7_70 = arith.constant 7 : index
    %c0_71 = arith.constant 0 : index
    %c0_72 = arith.constant 0 : index
    %144 = vector.load %arg7[%c7_70, %c0_71, %c0_72] : memref<10x1x128xf32, #tpu.memory_space<vmem>>, vector<1x1x128xf32>
    %145 = vector.shape_cast %144 : vector<1x1x128xf32> to vector<1x128xf32>
    %146 = vector.broadcast %145 : vector<1x128xf32> to vector<128x128xf32>
    %147 = arith.addf %143, %146 : vector<128x128xf32>
    %cst_73 = arith.constant 0.000000e+00 : f32
    %148 = vector.broadcast %cst_73 : f32 to vector<128x128xf32>
    %149 = arith.maximumf %147, %148 : vector<128x128xf32>
    %150 = arith.addf %149, %115 : vector<128x128xf32>
    %c8 = arith.constant 8 : index
    %c0_74 = arith.constant 0 : index
    %c0_75 = arith.constant 0 : index
    %151 = vector.load %arg6[%c8, %c0_74, %c0_75] : memref<10x128x256xbf16, #tpu.memory_space<vmem>>, vector<1x128x256xbf16>
    %152 = vector.shape_cast %151 : vector<1x128x256xbf16> to vector<128x256xbf16>
    %153 = arith.truncf %150 : vector<128x128xf32> to vector<128x128xbf16>
    %cst_76 = arith.constant dense<0.000000e+00> : vector<128x256xf32>
    %154 = tpu.matmul %153, %152, %cst_76 {dimension_numbers = #tpu.dot_dimension_numbers<[1], [0], [0], [1], [0, 0, 1, 1], [], []>} : vector<128x128xbf16>, vector<128x256xbf16>, vector<128x256xf32> -> vector<128x256xf32>
    %155 = vector.extract_strided_slice %154 {offsets = [0, 0], sizes = [128, 128], strides = [1, 1]} : vector<128x256xf32> to vector<128x128xf32>
    %156 = vector.extract_strided_slice %154 {offsets = [0, 128], sizes = [128, 128], strides = [1, 1]} : vector<128x256xf32> to vector<128x128xf32>
    %157 = arith.truncf %156 : vector<128x128xf32> to vector<128x128xbf16>
    %cst_77 = arith.constant dense<0.000000e+00> : vector<128x128xf32>
    %158 = tpu.matmul %3, %157, %cst_77 {dimension_numbers = #tpu.dot_dimension_numbers<[1], [0], [0], [1], [0, 0, 1, 1], [], []>} : vector<128x128xbf16>, vector<128x128xbf16>, vector<128x128xf32> -> vector<128x128xf32>
    %159 = vector.broadcast %2 : vector<128x1xf32> to vector<128x128xf32>
    %160 = arith.mulf %159, %155 : vector<128x128xf32>
    %161 = arith.addf %160, %158 : vector<128x128xf32>
    %c8_78 = arith.constant 8 : index
    %c0_79 = arith.constant 0 : index
    %c0_80 = arith.constant 0 : index
    %162 = vector.load %arg7[%c8_78, %c0_79, %c0_80] : memref<10x1x128xf32, #tpu.memory_space<vmem>>, vector<1x1x128xf32>
    %163 = vector.shape_cast %162 : vector<1x1x128xf32> to vector<1x128xf32>
    %164 = vector.broadcast %163 : vector<1x128xf32> to vector<128x128xf32>
    %165 = arith.addf %161, %164 : vector<128x128xf32>
    %cst_81 = arith.constant 0.000000e+00 : f32
    %166 = vector.broadcast %cst_81 : f32 to vector<128x128xf32>
    %167 = arith.maximumf %165, %166 : vector<128x128xf32>
    %c9 = arith.constant 9 : index
    %c0_82 = arith.constant 0 : index
    %c0_83 = arith.constant 0 : index
    %168 = vector.load %arg6[%c9, %c0_82, %c0_83] : memref<10x128x256xbf16, #tpu.memory_space<vmem>>, vector<1x128x256xbf16>
    %169 = vector.shape_cast %168 : vector<1x128x256xbf16> to vector<128x256xbf16>
    %170 = arith.truncf %167 : vector<128x128xf32> to vector<128x128xbf16>
    %cst_84 = arith.constant dense<0.000000e+00> : vector<128x256xf32>
    %171 = tpu.matmul %170, %169, %cst_84 {dimension_numbers = #tpu.dot_dimension_numbers<[1], [0], [0], [1], [0, 0, 1, 1], [], []>} : vector<128x128xbf16>, vector<128x256xbf16>, vector<128x256xf32> -> vector<128x256xf32>
    %172 = vector.extract_strided_slice %171 {offsets = [0, 0], sizes = [128, 128], strides = [1, 1]} : vector<128x256xf32> to vector<128x128xf32>
    %173 = vector.extract_strided_slice %171 {offsets = [0, 128], sizes = [128, 128], strides = [1, 1]} : vector<128x256xf32> to vector<128x128xf32>
    %174 = arith.truncf %173 : vector<128x128xf32> to vector<128x128xbf16>
    %cst_85 = arith.constant dense<0.000000e+00> : vector<128x128xf32>
    %175 = tpu.matmul %3, %174, %cst_85 {dimension_numbers = #tpu.dot_dimension_numbers<[1], [0], [0], [1], [0, 0, 1, 1], [], []>} : vector<128x128xbf16>, vector<128x128xbf16>, vector<128x128xf32> -> vector<128x128xf32>
    %176 = vector.broadcast %2 : vector<128x1xf32> to vector<128x128xf32>
    %177 = arith.mulf %176, %172 : vector<128x128xf32>
    %178 = arith.addf %177, %175 : vector<128x128xf32>
    %c9_86 = arith.constant 9 : index
    %c0_87 = arith.constant 0 : index
    %c0_88 = arith.constant 0 : index
    %179 = vector.load %arg7[%c9_86, %c0_87, %c0_88] : memref<10x1x128xf32, #tpu.memory_space<vmem>>, vector<1x1x128xf32>
    %180 = vector.shape_cast %179 : vector<1x1x128xf32> to vector<1x128xf32>
    %181 = vector.broadcast %180 : vector<1x128xf32> to vector<128x128xf32>
    %182 = arith.addf %178, %181 : vector<128x128xf32>
    %cst_89 = arith.constant 0.000000e+00 : f32
    %183 = vector.broadcast %cst_89 : f32 to vector<128x128xf32>
    %184 = arith.maximumf %182, %183 : vector<128x128xf32>
    %c0_90 = arith.constant 0 : index
    %c0_91 = arith.constant 0 : index
    %185 = vector.load %arg8[%c0_90, %c0_91] : memref<128x256xbf16, #tpu.memory_space<vmem>>, vector<128x256xbf16>
    %186 = arith.truncf %184 : vector<128x128xf32> to vector<128x128xbf16>
    %cst_92 = arith.constant dense<0.000000e+00> : vector<128x256xf32>
    %187 = tpu.matmul %186, %185, %cst_92 {dimension_numbers = #tpu.dot_dimension_numbers<[1], [0], [0], [1], [0, 0, 1, 1], [], []>} : vector<128x128xbf16>, vector<128x256xbf16>, vector<128x256xf32> -> vector<128x256xf32>
    %188 = vector.extract_strided_slice %187 {offsets = [0, 0], sizes = [128, 128], strides = [1, 1]} : vector<128x256xf32> to vector<128x128xf32>
    %189 = vector.extract_strided_slice %187 {offsets = [0, 128], sizes = [128, 128], strides = [1, 1]} : vector<128x256xf32> to vector<128x128xf32>
    %190 = arith.truncf %189 : vector<128x128xf32> to vector<128x128xbf16>
    %cst_93 = arith.constant dense<0.000000e+00> : vector<128x128xf32>
    %191 = tpu.matmul %3, %190, %cst_93 {dimension_numbers = #tpu.dot_dimension_numbers<[1], [0], [0], [1], [0, 0, 1, 1], [], []>} : vector<128x128xbf16>, vector<128x128xbf16>, vector<128x128xf32> -> vector<128x128xf32>
    %192 = vector.broadcast %2 : vector<128x1xf32> to vector<128x128xf32>
    %193 = arith.mulf %192, %188 : vector<128x128xf32>
    %194 = arith.addf %193, %191 : vector<128x128xf32>
    %195 = arith.mulf %194, %194 : vector<128x128xf32>
    %cst_94 = arith.constant dense<0.000000e+00> : vector<128xf32>
    %196 = vector.multi_reduction <add>, %195, %cst_94 [1] : vector<128x128xf32> to vector<128xf32>
    %197 = vector.shape_cast %196 : vector<128xf32> to vector<128x1xf32>
    %cst_95 = arith.constant 9.99999996E-13 : f32
    %198 = vector.broadcast %cst_95 : f32 to vector<128x1xf32>
    %199 = arith.addf %197, %198 : vector<128x1xf32>
    %200 = math.rsqrt %199 : vector<128x1xf32>
    %201 = vector.broadcast %200 : vector<128x1xf32> to vector<128x128xf32>
    %202 = arith.mulf %194, %201 : vector<128x128xf32>
    %c0_96 = arith.constant 0 : index
    %c0_97 = arith.constant 0 : index
    %203 = vector.load %arg9[%c0_96, %c0_97] : memref<128x256xbf16, #tpu.memory_space<vmem>>, vector<128x256xbf16>
    %204 = arith.truncf %167 : vector<128x128xf32> to vector<128x128xbf16>
    %cst_98 = arith.constant dense<0.000000e+00> : vector<128x256xf32>
    %205 = tpu.matmul %204, %203, %cst_98 {dimension_numbers = #tpu.dot_dimension_numbers<[1], [0], [0], [1], [0, 0, 1, 1], [], []>} : vector<128x128xbf16>, vector<128x256xbf16>, vector<128x256xf32> -> vector<128x256xf32>
    %206 = vector.extract_strided_slice %205 {offsets = [0, 0], sizes = [128, 128], strides = [1, 1]} : vector<128x256xf32> to vector<128x128xf32>
    %207 = vector.extract_strided_slice %205 {offsets = [0, 128], sizes = [128, 128], strides = [1, 1]} : vector<128x256xf32> to vector<128x128xf32>
    %208 = arith.truncf %207 : vector<128x128xf32> to vector<128x128xbf16>
    %cst_99 = arith.constant dense<0.000000e+00> : vector<128x128xf32>
    %209 = tpu.matmul %3, %208, %cst_99 {dimension_numbers = #tpu.dot_dimension_numbers<[1], [0], [0], [1], [0, 0, 1, 1], [], []>} : vector<128x128xbf16>, vector<128x128xbf16>, vector<128x128xf32> -> vector<128x128xf32>
    %210 = vector.broadcast %2 : vector<128x1xf32> to vector<128x128xf32>
    %211 = arith.mulf %210, %206 : vector<128x128xf32>
    %212 = arith.addf %211, %209 : vector<128x128xf32>
    %cst_100 = arith.constant dense<0.000000e+00> : vector<128xf32>
    %213 = vector.multi_reduction <add>, %212, %cst_100 [1] : vector<128x128xf32> to vector<128xf32>
    %214 = vector.shape_cast %213 : vector<128xf32> to vector<128x1xf32>
    %215 = vector.shape_cast %214 : vector<128x1xf32> to vector<8x16x1xf32>
    %216 = tpu.iota {dimensions = array<i32: 1>} : vector<8x16x1xi32>
    %c15_i32 = arith.constant 15 : i32
    %217 = vector.broadcast %c15_i32 : i32 to vector<8x16x1xi32>
    %218 = arith.cmpi slt, %216, %217 : vector<8x16x1xi32>
    %cst_101 = arith.constant -1.000000e+30 : f32
    %219 = vector.broadcast %cst_101 : f32 to vector<8x16x1xf32>
    %220 = arith.select %218, %215, %219 : vector<8x16x1xi1>, vector<8x16x1xf32>
    %cst_102 = arith.constant dense<0xFF800000> : vector<8x1xf32>
    %221 = vector.multi_reduction <maximumf>, %220, %cst_102 [1] : vector<8x16x1xf32> to vector<8x1xf32>
    %222 = vector.shape_cast %221 : vector<8x1xf32> to vector<8x1x1xf32>
    %c15_i32_103 = arith.constant 15 : i32
    %223 = vector.broadcast %c15_i32_103 : i32 to vector<8x16x1xi32>
    %224 = arith.cmpi slt, %216, %223 : vector<8x16x1xi32>
    %225 = vector.broadcast %222 : vector<8x1x1xf32> to vector<8x16x1xf32>
    %226 = arith.subf %220, %225 : vector<8x16x1xf32>
    %227 = math.exp %226 : vector<8x16x1xf32>
    %cst_104 = arith.constant 0.000000e+00 : f32
    %228 = vector.broadcast %cst_104 : f32 to vector<8x16x1xf32>
    %229 = arith.select %224, %227, %228 : vector<8x16x1xi1>, vector<8x16x1xf32>
    %cst_105 = arith.constant dense<0.000000e+00> : vector<8x1xf32>
    %230 = vector.multi_reduction <add>, %229, %cst_105 [1] : vector<8x16x1xf32> to vector<8x1xf32>
    %231 = vector.shape_cast %230 : vector<8x1xf32> to vector<8x1x1xf32>
    %232 = vector.broadcast %231 : vector<8x1x1xf32> to vector<8x16x1xf32>
    %233 = arith.divf %229, %232 : vector<8x16x1xf32>
    %cst_106 = arith.constant 1.500000e+01 : f32
    %234 = vector.broadcast %cst_106 : f32 to vector<8x16x1xf32>
    %235 = arith.mulf %233, %234 : vector<8x16x1xf32>
    %236 = vector.shape_cast %235 : vector<8x16x1xf32> to vector<128x1xf32>
    %237 = tpu.iota {dimensions = array<i32: 1>} : vector<128x128xi32>
    %c4_i32 = arith.constant 4 : i32
    %238 = vector.broadcast %c4_i32 : i32 to vector<128x128xi32>
    %239 = arith.cmpi eq, %237, %238 : vector<128x128xi32>
    %240 = vector.shape_cast %236 : vector<128x1xf32> to vector<128x1xf32>
    %241 = vector.broadcast %240 : vector<128x1xf32> to vector<128x128xf32>
    %242 = arith.select %239, %241, %202 : vector<128x128xi1>, vector<128x128xf32>
    %c0_107 = arith.constant 0 : index
    %c0_108 = arith.constant 0 : index
    %243 = vector.load %arg10[%c0_107, %c0_108] : memref<128x128xf32, #tpu.memory_space<vmem>>, vector<128x128xf32>
    tpu.vector_store %arg10[%c0_107, %c0_108], %242 {strides = array<i32>} : memref<128x128xf32, #tpu.memory_space<vmem>>, vector<128x128xf32>,
    return
  }
  func.func @transform_0(%arg0: i32) -> (i32, i32) {
    %c0_i32 = arith.constant 0 : i32
    %c0_i32_0 = arith.constant 0 : i32
    return %arg0, %c0_i32 : i32, i32
  }
  func.func @transform_1(%arg0: i32) -> (i32, i32) {
    %c0_i32 = arith.constant 0 : i32
    %c0_i32_0 = arith.constant 0 : i32
    %c0_i32_1 = arith.constant 0 : i32
    return %c0_i32, %c0_i32_0 : i32, i32
  }
  func.func @transform_2(%arg0: i32) -> (i32, i32) {
    %c0_i32 = arith.constant 0 : i32
    %c0_i32_0 = arith.constant 0 : i32
    %c0_i32_1 = arith.constant 0 : i32
    return %c0_i32, %c0_i32_0 : i32, i32
  }
  func.func @transform_3(%arg0: i32) -> (i32, i32) {
    %c0_i32 = arith.constant 0 : i32
    %c0_i32_0 = arith.constant 0 : i32
    %c0_i32_1 = arith.constant 0 : i32
    return %c0_i32, %c0_i32_0 : i32, i32
  }
  func.func @transform_4(%arg0: i32) -> (i32, i32) {
    %c0_i32 = arith.constant 0 : i32
    %c0_i32_0 = arith.constant 0 : i32
    %c0_i32_1 = arith.constant 0 : i32
    return %c0_i32, %c0_i32_0 : i32, i32
  }
  func.func @transform_5(%arg0: i32) -> (i32, i32, i32) {
    %c0_i32 = arith.constant 0 : i32
    %c0_i32_0 = arith.constant 0 : i32
    %c0_i32_1 = arith.constant 0 : i32
    %c0_i32_2 = arith.constant 0 : i32
    return %c0_i32, %c0_i32_0, %c0_i32_1 : i32, i32, i32
  }
  func.func @transform_6(%arg0: i32) -> (i32, i32, i32) {
    %c0_i32 = arith.constant 0 : i32
    %c0_i32_0 = arith.constant 0 : i32
    %c0_i32_1 = arith.constant 0 : i32
    %c0_i32_2 = arith.constant 0 : i32
    return %c0_i32, %c0_i32_0, %c0_i32_1 : i32, i32, i32
  }
  func.func @transform_7(%arg0: i32) -> (i32, i32) {
    %c0_i32 = arith.constant 0 : i32
    %c0_i32_0 = arith.constant 0 : i32
    %c0_i32_1 = arith.constant 0 : i32
    return %c0_i32, %c0_i32_0 : i32, i32
  }
  func.func @transform_8(%arg0: i32) -> (i32, i32) {
    %c0_i32 = arith.constant 0 : i32
    %c0_i32_0 = arith.constant 0 : i32
    %c0_i32_1 = arith.constant 0 : i32
    return %c0_i32, %c0_i32_0 : i32, i32
  }
  func.func @transform_9(%arg0: i32) -> (i32, i32) {
    %c0_i32 = arith.constant 0 : i32
    %c0_i32_0 = arith.constant 0 : i32
    return %arg0, %c0_i32 : i32, i32
  }
}

</mosaic_0001>

<bundles_post_ra>
// kernel: hand_sim_net_forward.1
= control target key start
LH: loop header
LB: loop body
LE: loop exit
PB: predicated region body
PF: predicated region fallthrough
CT: control target
= control target key end

     0   :  { %s9156_s30 = smov 0   ;;  %s13095_s0 = inlined_call_operand.vmem [shape: f32[512,128], index: 0, kind: input, shape index: {}]   ;;  %s13096_s1 = inlined_call_operand.vmem [shape: f32[256,1], index: 1, kind: input, shape index: {}]   ;;  %s13097_s2 = inlined_call_operand.vmem [shape: bf16[256,256], index: 2, kind: input, shape index: {}]   ;;  %s13098_s3 = inlined_call_operand.vmem [shape: f32[128,1], index: 3, kind: input, shape index: {}]   ;;  %s13099_s4 = inlined_call_operand.vmem [shape: bf16[128,128], index: 4, kind: input, shape index: {}]   ;;  %s13100_s5 = inlined_call_operand.vmem [shape: bf16[10,128,256], index: 5, kind: input, shape index: {}]   ;;  %s13101_s6 = inlined_call_operand.vmem [shape: f32[10,1,128], index: 6, kind: input, shape index: {}]   ;;  %s13102_s7 = inlined_call_operand.vmem [shape: bf16[128,256], index: 7, kind: input, shape index: {}]   ;;  %s13103_s8 = inlined_call_operand.vmem [shape: bf16[128,256], index: 8, kind: input, shape index: {}]   ;;  %s13104_s9 = inlined_call_operand.vmem [shape: f32[256,128], index: 9, kind: output, shape index: {}]  }
   0x1 LB: > { %s7249_s10 = sadd.s32 4294967295, %s9103_s30   ;;  %p7253_p0 = scmp.ge.s32.totalorder %s9103_s30, 1  ;;  %s9103_s30 = sphi %s9156_s30, %s19_s30  }
   0x2   : > { %p288_p1 = scmp.lt.s32.totalorder %s9103_s30, 3 }
   0x4   : > { %p289_p2 = pnand %p7253_p0, %p288_p1 }
   0x6   : > { %292 = sbr.rel (%p289_p2) target bundleno = 6458 (0x193a), region = 56 }
   0xb   : > { %v8562_v0 = vld [vmem:[%s13100_s5 + $0x74] ss:$8 sps:$4 sm:$0xff]   ;;  %v8564_v1 = vld [vmem:[%s13100_s5 + $0x70] ss:$8 sps:$4 sm:$0xff]   ;;  %v13105_v2 = vmov 0   ;;  %s7254_s25 = sshll.u32 %s7249_s10, 5 }
   0xc   : > { %609 = vmatprep.mubr.bf16.mxu0 %v13105_v2  ;;  %8560 = vset.pattern.permute.xlu0 %v13105_v2  ;;  %v8565_v3 = vld [vmem:[%s13100_s5 + $0x64] ss:$8 sps:$4 sm:$0xff]   ;;  %v8567_v4 = vld [vmem:[%s13100_s5 + $0x60] ss:$8 sps:$4 sm:$0xff]   ;;  %v8568_v5 = vld [vmem:[%s13100_s5 + $0x54] ss:$8 sps:$4 sm:$0xff]  }
   0xd   : > { %577 = vmatprep.subr.bf16.mxu0 %v8562_v0  ;;  %8561 = vset.pattern.permute.xlu1 %v13105_v2  ;;  %v8570_v6 = vld [vmem:[%s13100_s5 + $0x50] ss:$8 sps:$4 sm:$0xff]   ;;  %v8571_v7 = vld [vmem:[%s13100_s5 + $0x44] ss:$8 sps:$4 sm:$0xff]   ;;  %v8573_v8 = vld [vmem:[%s13100_s5 + $0x40] ss:$8 sps:$4 sm:$0xff]  }
   0xe   : > { %578 = vmatpush1.bf16.msra.mxu0 %v8564_v1  ;;  %v8574_v9 = vld [vmem:[%s13100_s5 + $0x34] ss:$8 sps:$4 sm:$0xff]   ;;  %p325_p3 = scmp.lt.s32.totalorder %s7254_s25, 63  ;;  %v8576_v10 = vld [vmem:[%s13100_s5 + $0x30] ss:$8 sps:$4 sm:$0xff]   ;;  %v337_v12 = vld [vmem:[%s13096_s1] sm:$0xff] }
   0xf   : > { %579 = vmatprep.subr.bf16.mxu0 %v8565_v3  ;;  %v8577_v11 = vld [vmem:[%s13100_s5 + $0x24] ss:$8 sps:$4 sm:$0xff]   ;;  %1109 = vperm.xlu0 %8560, %v337_v12   ;;  %v339_v14 = vld [vmem:[%s13096_s1 + $0x10] sm:$0xff]  ;;  %v8579_v15 = vld [vmem:[%s13100_s5 + $0x20] ss:$8 sps:$4 sm:$0xff]   ;;  %s12970_s24 = sshll.u32 %s7249_s10, 4 }
  0x10   : > { %s13873_s25 = smov (!%p325_p3, %s7254_s25), 63  ;;  %v338_v13 = vld [vmem:[%s13096_s1 + $0x8] sm:$0xff]  ;;  %1119 = vperm.xlu1 %8561, %v339_v14   ;;  %v8580_v16 = vld [vmem:[%s13100_s5 + $0x14] ss:$8 sps:$4 sm:$0xff]   ;;  %v341_v18 = vld [vmem:[%s13096_s1 + $0x20] sm:$0xff]  ;;  %p331_p4 = scmp.lt.s32.totalorder %s12970_s24, 31 }
  0x11   : > { %v340_v17 = vld [vmem:[%s13096_s1 + $0x18] sm:$0xff]  ;;  %s7255_s28 = sshll.u32 %s13873_s25, 3  ;;  %v8583_v20 = vld [vmem:[%s13100_s5 + $0x4] ss:$8 sps:$4 sm:$0xff]   ;;  %v343_v22 = vld [vmem:[%s13096_s1 + $0x30] sm:$0xff] }
  0x12   : > { %580 = vmatpush1.bf16.msra.mxu0 %v8567_v4  ;;  %v8582_v19 = vld [vmem:[%s13100_s5 + $0x10] ss:$8 sps:$4 sm:$0xff]   ;;  %s9232_s25 = scalar_lea.vmem %s13095_s0, %s7255_s28  ;;  %v342_v21 = vld [vmem:[%s13096_s1 + $0x28] sm:$0xff]  ;;  %v345_v28 = vld [vmem:[%s13096_s1 + $0x40] sm:$0xff]  ;;  %s13875_s24 = smov (!%p331_p4, %s12970_s24), 31 }
  0x13   : > { %581 = vmatprep.subr.bf16.mxu0 %v8568_v5  ;;  %1114 = vperm.xlu0 %8560, %v338_v13   ;;  %v8585_v23 = vld [vmem:[%s13100_s5] ss:$8 sps:$4 sm:$0xff]   ;;  %v344_v26 = vld [vmem:[%s13096_s1 + $0x38] sm:$0xff]  ;;  %v347_v30 = vld [vmem:[%s13096_s1 + $0x50] sm:$0xff]  ;;  %s7257_s10 = sshll.u32 %s13875_s24, 3 }
  0x14   : > { %1124 = vperm.xlu1 %8561, %v340_v17   ;;  %v433_v24 = vld [vmem:[%s9232_s25] sm:$0xff]  ;;  %v434_v25 = vld [vmem:[%s9232_s25 + $0x8] sm:$0xff]  ;;  %v435_v31 = vld [vmem:[%s9232_s25 + $0x10] sm:$0xff]  ;;  %s13016_s28 = scalar_lea.vmem %s13104_s9, %s7257_s10 }
  0x15   : > { %v481_v27 = vpack.c.bf16 %v434_v25, %v433_v24  ;;  %v346_v29 = vld [vmem:[%s13096_s1 + $0x48] sm:$0xff]  ;;  %v436_v32 = vld [vmem:[%s9232_s25 + $0x18] sm:$0xff]  ;;  %v349_v34 = vld [vmem:[%s13096_s1 + $0x60] sm:$0xff] }
  0x16   : > { %582 = vmatpush1.bf16.msra.mxu0 %v8570_v6  ;;  %v348_v33 = vld [vmem:[%s13096_s1 + $0x58] sm:$0xff]  ;;  %v482_v35 = vpack.c.bf16 %v436_v32, %v435_v31  ;;  %v350_v36 = vld [vmem:[%s13096_s1 + $0x68] sm:$0xff]  ;;  %v351_v37 = vld [vmem:[%s13096_s1 + $0x70] sm:$0xff] }
  0x17   : > { %583 = vmatprep.subr.bf16.mxu0 %v8571_v7  ;;  %1129 = vperm.xlu0 %8560, %v341_v18   ;;  %v437_v38 = vld [vmem:[%s9232_s25 + $0x20] sm:$0xff]  ;;  %v438_v39 = vld [vmem:[%s9232_s25 + $0x28] sm:$0xff]  ;;  %v352_v40 = vld [vmem:[%s13096_s1 + $0x78] sm:$0xff] }
  0x18   : > { %1134 = vperm.xlu1 %8561, %v342_v21   ;;  %v353_v41 = vld [vmem:[%s13096_s1 + $0x80] sm:$0xff]  ;;  %v483_v42 = vpack.c.bf16 %v438_v39, %v437_v38  ;;  %v354_v43 = vld [vmem:[%s13096_s1 + $0x88] sm:$0xff]  ;;  %v355_v44 = vld [vmem:[%s13096_s1 + $0x90] sm:$0xff] }
  0x19   : > { %v439_v45 = vld [vmem:[%s9232_s25 + $0x30] sm:$0xff]  ;;  %v440_v46 = vld [vmem:[%s9232_s25 + $0x38] sm:$0xff]  ;;  %v357_v48 = vld [vmem:[%s13096_s1 + $0xa0] sm:$0xff] }
  0x1a   : > { %584 = vmatpush1.bf16.msra.mxu0 %v8573_v8  ;;  %v356_v47 = vld [vmem:[%s13096_s1 + $0x98] sm:$0xff]  ;;  %v484_v49 = vpack.c.bf16 %v440_v46, %v439_v45  ;;  %v358_v50 = vld [vmem:[%s13096_s1 + $0xa8] sm:$0xff]  ;;  %v359_v51 = vld [vmem:[%s13096_s1 + $0xb0] sm:$0xff] }
  0x1b   : > { %585 = vmatprep.subr.bf16.mxu0 %v8574_v9  ;;  %1139 = vperm.xlu0 %8560, %v343_v22   ;;  %v441_v52 = vld [vmem:[%s9232_s25 + $0x40] sm:$0xff]  ;;  %v442_v53 = vld [vmem:[%s9232_s25 + $0x48] sm:$0xff]  ;;  %v360_v54 = vld [vmem:[%s13096_s1 + $0xb8] sm:$0xff] }
  0x1c   : > { %1144 = vperm.xlu1 %8561, %v344_v26   ;;  %v361_v55 = vld [vmem:[%s13096_s1 + $0xc0] sm:$0xff]  ;;  %v485_v56 = vpack.c.bf16 %v442_v53, %v441_v52  ;;  %v362_v57 = vld [vmem:[%s13096_s1 + $0xc8] sm:$0xff]  ;;  %v363_v58 = vld [vmem:[%s13096_s1 + $0xd0] sm:$0xff] }
  0x1d   : > { %v443_v59 = vld [vmem:[%s9232_s25 + $0x50] sm:$0xff]  ;;  %v444_v60 = vld [vmem:[%s9232_s25 + $0x58] sm:$0xff]  ;;  %v365_v62 = vld [vmem:[%s13096_s1 + $0xe0] sm:$0xff] }
  0x1e   : > { %586 = vmatpush1.bf16.msra.mxu0 %v8576_v10  ;;  %v364_v61 = vld [vmem:[%s13096_s1 + $0xd8] sm:$0xff]  ;;  %v486_v63 = vpack.c.bf16 %v444_v60, %v443_v59  ;;  %v366_v0 = vld [vmem:[%s13096_s1 + $0xe8] sm:$0xff]  ;;  %v367_v1 = vld [vmem:[%s13096_s1 + $0xf0] sm:$0xff] }
  0x1f   : > { %587 = vmatprep.subr.bf16.mxu0 %v8577_v11  ;;  %1149 = vperm.xlu0 %8560, %v345_v28   ;;  %v445_v3 = vld [vmem:[%s9232_s25 + $0x60] sm:$0xff]  ;;  %v446_v4 = vld [vmem:[%s9232_s25 + $0x68] sm:$0xff]  ;;  %v447_v6 = vld [vmem:[%s9232_s25 + $0x70] sm:$0xff] }
  0x20   : > { %1154 = vperm.xlu1 %8561, %v346_v29   ;;  %v487_v5 = vpack.c.bf16 %v446_v4, %v445_v3  ;;  %v448_v7 = vld [vmem:[%s9232_s25 + $0x78] sm:$0xff]  ;;  %v449_v9 = vld [vmem:[%s9232_s25 + $0x80] sm:$0xff]  ;;  %v450_v10 = vld [vmem:[%s9232_s25 + $0x88] sm:$0xff] }
  0x21   : > { %v488_v8 = vpack.c.bf16 %v448_v7, %v447_v6  ;;  %v489_v11 = vpack.c.bf16 %v450_v10, %v449_v9  ;;  %v451_v12 = vld [vmem:[%s9232_s25 + $0x90] sm:$0xff]  ;;  %v452_v13 = vld [vmem:[%s9232_s25 + $0x98] sm:$0xff]  ;;  %v454_v17 = vld [vmem:[%s9232_s25 + $0xa8] sm:$0xff] }
  0x22   : > { %588 = vmatpush1.bf16.msra.mxu0 %v8579_v15  ;;  %v368_v14 = vld [vmem:[%s13096_s1 + $0xf8] sm:$0xff]  ;;  %v490_v15 = vpack.c.bf16 %v452_v13, %v451_v12  ;;  %v457_v22 = vld [vmem:[%s9232_s25 + $0xc0] sm:$0xff]  ;;  %v459_v25 = vld [vmem:[%s9232_s25 + $0xd0] sm:$0xff] }
  0x23   : > { %589 = vmatprep.subr.bf16.mxu0 %v8580_v16  ;;  %1159 = vperm.xlu0 %8560, %v347_v30   ;;  %v453_v16 = vld [vmem:[%s9232_s25 + $0xa0] sm:$0xff]  ;;  %v460_v26 = vld [vmem:[%s9232_s25 + $0xd8] sm:$0xff]  ;;  %v462_v29 = vld [vmem:[%s9232_s25 + $0xe8] sm:$0xff] }
  0x24   : > { %1164 = vperm.xlu1 %8561, %v348_v33   ;;  %v491_v18 = vpack.c.bf16 %v454_v17, %v453_v16  ;;  %v461_v28 = vld [vmem:[%s9232_s25 + $0xe0] sm:$0xff]  ;;  %v463_v31 = vld [vmem:[%s9232_s25 + $0xf0] sm:$0xff]  ;;  %v464_v32 = vld [vmem:[%s9232_s25 + $0xf8] sm:$0xff] }
  0x25   : > { %v495_v30 = vpack.c.bf16 %v462_v29, %v461_v28  ;;  %v496_v33 = vpack.c.bf16 %v464_v32, %v463_v31  ;;  %v401_v9 = vld [vmem:[%s13098_s3] sm:$0xff]  ;;  %v410_v31 = vld [vmem:[%s13098_s3 + $0x48] sm:$0xff] }
  0x26   : > { %590 = vmatpush1.bf16.msra.mxu0 %v8582_v19  ;;  %v455_v19 = vld [vmem:[%s9232_s25 + $0xb0] sm:$0xff]  ;;  %v405_v16 = vld [vmem:[%s13098_s3 + $0x20] sm:$0xff] }
  0x27   : > { %591 = vmatprep.subr.bf16.mxu0 %v8583_v20  ;;  %1169 = vperm.xlu0 %8560, %v349_v34   ;;  %v456_v20 = vld [vmem:[%s9232_s25 + $0xb8] sm:$0xff]  ;;  %v413_v32 = vld [vmem:[%s13098_s3 + $0x60] sm:$0xff] }
  0x28   : > { %1174 = vperm.xlu1 %8561, %v350_v36   ;;  %v492_v21 = vpack.c.bf16 %v456_v20, %v455_v19  ;;  %v407_v19 = vld [vmem:[%s13098_s3 + $0x30] sm:$0xff] }
  0x2a   : > { %592 = vmatpush1.bf16.msra.mxu0 %v8585_v23  ;;  %v458_v23 = vld [vmem:[%s9232_s25 + $0xc8] sm:$0xff] }
  0x2b   : > { %1179 = vperm.xlu0 %8560, %v351_v37   ;;  %v493_v24 = vpack.c.bf16 %v458_v23, %v457_v22  ;;  %v406_v23 = vld [vmem:[%s13098_s3 + $0x28] sm:$0xff] }
  0x2c   : > { %1184 = vperm.xlu1 %8561, %v352_v40  }
  0x2d   : > { %610 = vmatmul.mubr.bf16.vlgmr.msra.gmra.mxu0 %v481_v27  ;;  %v494_v27 = vpack.c.bf16 %v460_v26, %v459_v25  ;;  %v408_v26 = vld [vmem:[%s13098_s3 + $0x38] sm:$0xff] }
  0x2e   : > { %619 = vmatprep.mubr.bf16.mxu0 %v13105_v2 }
  0x2f   : > { %1189 = vperm.xlu0 %8560, %v353_v41  }
  0x30   : > { %1194 = vperm.xlu1 %8561, %v354_v43  }
  0x33   : > { %1199 = vperm.xlu0 %8560, %v355_v44  }
  0x34   : > { %1204 = vperm.xlu1 %8561, %v356_v47  }
  0x35   : > { %620 = vmatmul.mubr.bf16.gmra.mxu0 %v482_v35 }
  0x36   : > { %629 = vmatprep.mubr.bf16.mxu0 %v13105_v2 }
  0x37   : > { %1209 = vperm.xlu0 %8560, %v357_v48  }
  0x38   : > { %1214 = vperm.xlu1 %8561, %v358_v50   ;;  %v9401_v50 = vld [vmem:[%s13097_s2 + $0x4] ss:$8 sps:$4 sm:$0xff]  }
  0x39   : > { %978 = vmatprep.mubr.bf16.mxu1 %v9401_v50 }
  0x3b   : > { %1219 = vperm.xlu0 %8560, %v359_v51  }
  0x3c   : > { %1224 = vperm.xlu1 %8561, %v360_v54  }
  0x3d   : > { %630 = vmatmul.mubr.bf16.gmra.mxu0 %v483_v42 }
  0x3e   : > { %639 = vmatprep.mubr.bf16.mxu0 %v13105_v2 }
  0x3f   : > { %1229 = vperm.xlu0 %8560, %v361_v55  }
  0x40   : > { %1234 = vperm.xlu1 %8561, %v362_v57  }
  0x43   : > { %1239 = vperm.xlu0 %8560, %v363_v58  }
  0x44   : > { %1244 = vperm.xlu1 %8561, %v364_v61  }
  0x45   : > { %640 = vmatmul.mubr.bf16.gmra.mxu0 %v484_v49 }
  0x46   : > { %649 = vmatprep.mubr.bf16.mxu0 %v13105_v2 }
  0x47   : > { %1249 = vperm.xlu0 %8560, %v365_v62  }
  0x48   : > { %1254 = vperm.xlu1 %8561, %v366_v0  }
  0x4b   : > { %1259 = vperm.xlu0 %8560, %v367_v1  }
  0x4c   : > { %1264 = vperm.xlu1 %8561, %v368_v14  }
  0x4d   : > { %650 = vmatmul.mubr.bf16.gmra.mxu0 %v485_v56 }
  0x4e   : > { %659 = vmatprep.mubr.bf16.mxu0 %v13105_v2 }
  0x4f   : > { %4347 = vperm.xlu0 %8560, %v401_v9   ;;  %v412_v9 = vld [vmem:[%s13098_s3 + $0x58] sm:$0xff] }
  0x55   : > { %660 = vmatmul.mubr.bf16.gmra.mxu0 %v486_v63 }
  0x56   : > { %669 = vmatprep.mubr.bf16.mxu0 %v13105_v2 }
  0x5d   : > { %670 = vmatmul.mubr.bf16.gmra.mxu0 %v487_v5 }
  0x5e   : > { %679 = vmatprep.mubr.bf16.mxu0 %v13105_v2 }
  0x65   : > { %680 = vmatmul.mubr.bf16.gmra.mxu0 %v488_v8 }
  0x66   : > { %689 = vmatprep.mubr.bf16.mxu0 %v13105_v2 }
  0x6d   : > { %690 = vmatmul.mubr.bf16.gmra.mxu0 %v489_v11  ;;  %v403_v11 = vld [vmem:[%s13098_s3 + $0x10] sm:$0xff] }
  0x6e   : > { %699 = vmatprep.mubr.bf16.mxu0 %v13105_v2  ;;  %4357 = vperm.xlu0 %8560, %v403_v11   ;;  %v415_v11 = vld [vmem:[%s13098_s3 + $0x70] sm:$0xff] }
  0x72   : > { %4367 = vperm.xlu0 %8560, %v405_v16  }
  0x75   : > { %700 = vmatmul.mubr.bf16.gmra.mxu0 %v490_v15  ;;  %v402_v15 = vld [vmem:[%s13098_s3 + $0x8] sm:$0xff] }
  0x76   : > { %709 = vmatprep.mubr.bf16.mxu0 %v13105_v2  ;;  %4352 = vperm.xlu1 %8561, %v402_v15  }
  0x77   : > { %4377 = vperm.xlu0 %8560, %v407_v19   ;;  %v414_v19 = vld [vmem:[%s13098_s3 + $0x68] sm:$0xff] }
  0x7d   : > { %710 = vmatmul.mubr.bf16.gmra.mxu0 %v491_v18  ;;  %v404_v18 = vld [vmem:[%s13098_s3 + $0x18] sm:$0xff] }
  0x7e   : > { %719 = vmatprep.mubr.bf16.mxu0 %v13105_v2  ;;  %4362 = vperm.xlu1 %8561, %v404_v18  }
  0x82   : > { %4372 = vperm.xlu1 %8561, %v406_v23  }
  0x85   : > { %720 = vmatmul.mubr.bf16.gmra.mxu0 %v492_v21 }
  0x86   : > { %729 = vmatprep.mubr.bf16.mxu0 %v13105_v2  ;;  %4382 = vperm.xlu1 %8561, %v408_v26  }
  0x8a   : > { %4392 = vperm.xlu1 %8561, %v410_v31  }
  0x8d   : > { %730 = vmatmul.mubr.bf16.gmra.mxu0 %v493_v24  ;;  %v409_v24 = vld [vmem:[%s13098_s3 + $0x40] sm:$0xff] }
  0x8e   : > { %739 = vmatprep.mubr.bf16.mxu0 %v13105_v2  ;;  %4387 = vperm.xlu0 %8560, %v409_v24   ;;  %v416_v24 = vld [vmem:[%s13098_s3 + $0x78] sm:$0xff] }
  0x8f   : > { %4402 = vperm.xlu1 %8561, %v412_v9  }
  0x93   : > { %4412 = vperm.xlu1 %8561, %v414_v19  }
  0x95   : > { %740 = vmatmul.mubr.bf16.gmra.mxu0 %v494_v27  ;;  %v411_v27 = vld [vmem:[%s13098_s3 + $0x50] sm:$0xff] }
  0x96   : > { %749 = vmatprep.mubr.bf16.mxu0 %v13105_v2  ;;  %4397 = vperm.xlu0 %8560, %v411_v27  }
  0x97   : > { %4422 = vperm.xlu1 %8561, %v416_v24  }
  0x9a   : > { %4407 = vperm.xlu0 %8560, %v413_v32  }
  0x9d   : > { %750 = vmatmul.mubr.bf16.gmra.mxu0 %v495_v30 }
  0x9e   : > { %759 = vmatprep.mubr.bf16.mxu0 %v13105_v2  ;;  %4417 = vperm.xlu0 %8560, %v415_v11  }
  0xa5   : > { %760 = vmatmul.mubr.bf16.gmra.mxu0 %v496_v33 }
  0xa6   : > { %1547 = vmatprep.mubr.bf16.mxu0 %v13105_v2 }
  0xed   : > { %v9366_v34 = vpop.f32.mrf.mxu0 }
  0xef   : > { %v9368_v35 = vpop.f32.mrf.mxu0 }
  0xf1   : > { %v9370_v36 = vpop.f32.mrf.mxu0 }
  0xf3   : > { %v9372_v37 = vpop.f32.mrf.mxu0 }
  0xf5   : > { %v9374_v38 = vpop.f32.mrf.mxu0 }
  0xf7   : > { %v9376_v39 = vpop.f32.mrf.mxu0 }
  0xf9   : > { %v9378_v40 = vpop.f32.mrf.mxu0 }
  0xfb   : > { %v9380_v41 = vpop.f32.mrf.mxu0 }
  0xfd   : > { %v9382_v42 = vpop.f32.mrf.mxu0 }
  0xff   : > { %v9384_v43 = vpop.f32.mrf.mxu0 }
 0x101   : > { %v9386_v44 = vpop.f32.mrf.mxu0 }
 0x103   : > { %v9388_v45 = vpop.f32.mrf.mxu0 }
 0x105   : > { %v9390_v46 = vpop.f32.mrf.mxu0 }
 0x107   : > { %v9392_v47 = vpop.f32.mrf.mxu0 }
 0x109   : > { %v9394_v48 = vpop.f32.mrf.mxu0 }
 0x10b   : > { %v9396_v49 = vpop.f32.mrf.mxu0 }
 0x10d   : > { %v9403_v51 = vpop.f32.mrf.mxu0 }
 0x10f   : > { %v9406_v52 = vpop.f32.mrf.mxu0 }
 0x111   : > { %v9408_v53 = vpop.f32.mrf.mxu0 }
 0x113   : > { %v9410_v54 = vpop.f32.mrf.mxu0 }
 0x115   : > { %v9412_v55 = vpop.f32.mrf.mxu0 }
 0x117   : > { %v9414_v56 = vpop.f32.mrf.mxu0 }
 0x119   : > { %v9416_v57 = vpop.f32.mrf.mxu0 }
 0x11b   : > { %v9418_v58 = vpop.f32.mrf.mxu0 }
 0x11d   : > { %v9420_v59 = vpop.f32.mrf.mxu0 }
 0x11f   : > { %v9422_v60 = vpop.f32.mrf.mxu0 }
 0x121   : > { %v9424_v61 = vpop.f32.mrf.mxu0 }
 0x123   : > { %v9426_v62 = vpop.f32.mrf.mxu0 }
 0x124   : > { %v776_v24 = vpack.c.bf16 %v9426_v62, %v9422_v60  ;;  %v8645_v62 = vld [vmem:[%s13100_s5 + $0xc4] ss:$8 sps:$4 sm:$0xff]  }
 0x125   : > { %v9428_v63 = vpop.f32.mrf.mxu0 }
 0x127   : > { %v9430_v0 = vpop.f32.mrf.mxu0 }
 0x129   : > { %v9432_v1 = vpop.f32.mrf.mxu0 }
 0x12b   : > { %v9434_v3 = vpop.f32.mrf.mxu0 }
 0x12d   : > { %v9436_v4 = vpop.f32.mrf.mxu0 }
 0x12f   : > { %v9438_v5 = vpop.f32.mrf.mxu0 }
 0x131   : > { %v9440_v6 = vpop.f32.mrf.mxu0 }
 0x133   : > { %v9442_v7 = vpop.f32.mrf.mxu0 }
 0x135   : > { %v9444_v8 = vpop.f32.mrf.mxu0 }
 0x137   : > { %v9449_v10 = vpop.f32.mrf.mxu0 }
 0x139   : > { %v9454_v12 = vpop.f32.mrf.mxu0 }
 0x13b   : > { %v9456_v13 = vpop.f32.mrf.mxu0 }
 0x13d   : > { %v9458_v14 = vpop.f32.mrf.mxu0 }
 0x13f   : > { %v9466_v17 = vpop.f32.mrf.mxu0 }
 0x141   : > { %v9474_v20 = vpop.f32.mrf.mxu0 }
 0x143   : > { %v9476_v21 = vpop.f32.mrf.mxu0 }
 0x144   : > { %v780_v60 = vpack.c.bf16 %v9476_v21, %v9466_v17  ;;  %v9606_v17 = vld [vmem:[%s13097_s2 + $0x34] ss:$8 sps:$4 sm:$0xff]   ;;  %v9613_v21 = vld [vmem:[%s13097_s2 + $0x30] ss:$8 sps:$4 sm:$0xff]  }
 0x145   : > { %v9478_v22 = vpop.f32.mrf.mxu0 }
 0x146   : > { %13307 = vst [vmem:[#allocation2_spill] sm:$0xff] %v9478_v22 }
 0x147   : > { %v723_v25 = vpop.f32.mrf.mxu0 }
 0x149   : > { %v9492_v28 = vpop.f32.mrf.mxu0 }
 0x14a   : > { %13308 = vst [vmem:[#allocation3_spill] sm:$0xff] %v9492_v28  ;;  %v777_v28 = vpack.c.bf16 %v9434_v3, %v9430_v0  ;;  %v773_v3 = vpack.c.bf16 %v9396_v49, %v9392_v47  ;;  %v8634_v47 = vld [vmem:[%s13100_s5 + $0xf0] ss:$8 sps:$4 sm:$0xff]   ;;  %v8636_v49 = vld [vmem:[%s13100_s5 + $0xf4] ss:$8 sps:$4 sm:$0xff]  }
 0x14b   : > { %v727_v29 = vpop.f32.mrf.mxu0  ;;  %1515 = vmatprep.subr.bf16.mxu0 %v8636_v49  ;;  %v9738_v49 = vld [vmem:[%s13097_s2 + $0xc4] ss:$8 sps:$4 sm:$0xff]  }
 0x14c   : > { %v781_v0 = vpack.c.bf16 %v727_v29, %v723_v25  ;;  %1516 = vmatpush1.bf16.msra.mxu0 %v8634_v47  ;;  %v9625_v25 = vld [vmem:[%s13097_s2 + $0x40] ss:$8 sps:$4 sm:$0xff]   ;;  %v9637_v29 = vld [vmem:[%s13097_s2 + $0x50] ss:$8 sps:$4 sm:$0xff]   ;;  %13318 = vst [vmem:[#allocation13_spill] sm:$0xff] %v9738_v49 }
 0x14d   : > { %v9494_v30 = vpop.f32.mrf.mxu0  ;;  %v9733_v47 = vld [vmem:[%s13097_s2 + $0xb0] ss:$8 sps:$4 sm:$0xff]  }
 0x14e   : > { %13309 = vst [vmem:[#allocation4_spill] sm:$0xff] %v9494_v30  ;;  %13317 = vst [vmem:[#allocation12_spill] sm:$0xff] %v9733_v47 }
 0x14f   : > { %v733_v33 = vpop.f32.mrf.mxu0 }
 0x151   : > { %v9508_v15 = vpop.f32.mrf.mxu0 }
 0x152   : > { %13310 = vst [vmem:[#allocation5_spill] sm:$0xff] %v9508_v15 }
 0x153   : > { %v737_v16 = vpop.f32.mrf.mxu0 }
 0x155   : > { %v9510_v18 = vpop.f32.mrf.mxu0 }
 0x156   : > { %13311 = vst [vmem:[#allocation6_spill] sm:$0xff] %v9510_v18 }
 0x157   : > { %v743_v23 = vpop.f32.mrf.mxu0 }
 0x159   : > { %v9518_v26 = vpop.f32.mrf.mxu0 }
 0x15b   : > { %v747_v27 = vpop.f32.mrf.mxu0 }
 0x15d   : > { %v9520_v31 = vpop.f32.mrf.mxu0 }
 0x15e   : > { %13312 = vst [vmem:[#allocation7_spill] sm:$0xff] %v9520_v31  ;;  %v783_v31 = vpack.c.bf16 %v747_v27, %v743_v23  ;;  %v9661_v23 = vld [vmem:[%s13097_s2 + $0x70] ss:$8 sps:$4 sm:$0xff]   ;;  %v9666_v27 = vld [vmem:[%s13097_s2 + $0x84] ss:$8 sps:$4 sm:$0xff]  }
 0x15f   : > { %v753_v32 = vpop.f32.mrf.mxu0 }
 0x161   : > { %v9522_v9 = vpop.f32.mrf.mxu0 }
 0x162   : > { %13313 = vst [vmem:[#allocation8_spill] sm:$0xff] %v9522_v9  ;;  %v782_v9 = vpack.c.bf16 %v737_v16, %v733_v33  ;;  %v9649_v33 = vld [vmem:[%s13097_s2 + $0x60] ss:$8 sps:$4 sm:$0xff]   ;;  %v9654_v16 = vld [vmem:[%s13097_s2 + $0x74] ss:$8 sps:$4 sm:$0xff]  }
 0x163   : > { %v757_v11 = vpop.f32.mrf.mxu0 }
 0x164   : > { %v784_v22 = vpack.c.bf16 %v757_v11, %v753_v32  ;;  %v9678_v32 = vld [vmem:[%s13097_s2 + $0x94] ss:$8 sps:$4 sm:$0xff]   ;;  %v8646_v11 = vld [vmem:[%s13100_s5 + $0xb0] ss:$8 sps:$4 sm:$0xff]  }
 0x165   : > { %v9524_v2 = vpop.f32.mrf.mxu0 }
 0x166   : > { %13314 = vst [vmem:[#allocation9_spill] sm:$0xff] %v9524_v2  ;;  %v775_v2 = vpack.c.bf16 %v9418_v58, %v9414_v56  ;;  %v772_v56 = vpack.c.bf16 %v9388_v45, %v9384_v43  ;;  %v8639_v43 = vld [vmem:[%s13100_s5 + $0xe4] ss:$8 sps:$4 sm:$0xff]   ;;  %v9565_v45 = vld [vmem:[%s13097_s2] ss:$8 sps:$4 sm:$0xff]  }
 0x167   : > { %v763_v18 = vpop.f32.mrf.mxu0  ;;  %1517 = vmatprep.subr.bf16.mxu0 %v8639_v43  ;;  %v8642_v58 = vld [vmem:[%s13100_s5 + $0xd4] ss:$8 sps:$4 sm:$0xff]   ;;  %v9745_v43 = vld [vmem:[%s13097_s2 + $0xc0] ss:$8 sps:$4 sm:$0xff]  }
 0x168   : > { %13319 = vst [vmem:[#allocation14_spill] sm:$0xff] %v9745_v43 }
 0x169   : > { %v9526_v15 = vpop.f32.mrf.mxu0 }
 0x16b   : > { %v767_v19 = vpop.f32.mrf.mxu0 }
 0x16c   : > { %v785_v30 = vpack.c.bf16 %v767_v19, %v763_v18  ;;  %v774_v18 = vpack.c.bf16 %v9410_v54, %v9406_v52  ;;  %v771_v52 = vpack.c.bf16 %v9380_v41, %v9376_v39  ;;  %v778_v54 = vpack.c.bf16 %v9442_v7, %v9438_v5  ;;  %v8637_v41 = vld [vmem:[%s13100_s5 + $0xe0] ss:$8 sps:$4 sm:$0xff]   ;;  %v9589_v7 = vld [vmem:[%s13097_s2 + $0x10] ss:$8 sps:$4 sm:$0xff]   ;;  %v8651_v19 = vld [vmem:[%s13100_s5 + $0xa4] ss:$8 sps:$4 sm:$0xff]  }
 0x16d   : > { %v770_v39 = vpack.c.bf16 %v9372_v37, %v9368_v35  ;;  %v9573_v35 = vld [vmem:[%s13097_s2 + $0x14] ss:$8 sps:$4 sm:$0xff]   ;;  %1518 = vmatpush1.bf16.msra.mxu0 %v8637_v41  ;;  %v8640_v37 = vld [vmem:[%s13100_s5 + $0xd0] ss:$8 sps:$4 sm:$0xff]   ;;  %v8643_v5 = vld [vmem:[%s13100_s5 + $0xc0] ss:$8 sps:$4 sm:$0xff]  }
 0x16e   : > { %7655 = vmatprep.subr.bf16.mxu1 %v785_v30  ;;  %1519 = vmatprep.subr.bf16.mxu0 %v8642_v58  ;;  %v9642_v30 = vld [vmem:[%s13097_s2 + $0x64] ss:$8 sps:$4 sm:$0xff]   ;;  %v9757_v41 = vld [vmem:[%s13097_s2 + $0xd0] ss:$8 sps:$4 sm:$0xff]  }
 0x16f   : > { %7656 = vmatpush3.bf16.msra.mxu1 %v777_v28  ;;  %v9630_v28 = vld [vmem:[%s13097_s2 + $0x54] ss:$8 sps:$4 sm:$0xff]   ;;  %13321 = vst [vmem:[#allocation16_spill] sm:$0xff] %v9757_v41  ;;  %v9762_v58 = vld [vmem:[%s13097_s2 + $0xe4] ss:$8 sps:$4 sm:$0xff]  }
 0x170   : > { %7657 = vmatprep.subr.bf16.mxu1 %v784_v22  ;;  %v9618_v22 = vld [vmem:[%s13097_s2 + $0x44] ss:$8 sps:$4 sm:$0xff]   ;;  %13322 = vst [vmem:[#allocation17_spill] sm:$0xff] %v9762_v58 }
 0x171   : > { %1520 = vmatpush1.bf16.msra.mxu0 %v8640_v37  ;;  %v9769_v37 = vld [vmem:[%s13097_s2 + $0xe0] ss:$8 sps:$4 sm:$0xff]  }
 0x172   : > { %1521 = vmatprep.subr.bf16.mxu0 %v8645_v62  ;;  %13323 = vst [vmem:[#allocation18_spill] sm:$0xff] %v9769_v37  ;;  %v9774_v62 = vld [vmem:[%s13097_s2 + $0xf4] ss:$8 sps:$4 sm:$0xff]  }
 0x173   : > { %7658 = vmatpush3.bf16.msra.mxu1 %v776_v24  ;;  %v9694_v24 = vld [vmem:[%s13097_s2 + $0x90] ss:$8 sps:$4 sm:$0xff]   ;;  %13324 = vst [vmem:[#allocation19_spill] sm:$0xff] %v9774_v62 }
 0x174   : > { %7659 = vmatprep.subr.bf16.mxu1 %v783_v31  ;;  %v9673_v31 = vld [vmem:[%s13097_s2 + $0x80] ss:$8 sps:$4 sm:$0xff]  }
 0x175   : > { %1522 = vmatpush1.bf16.msra.mxu0 %v8643_v5  ;;  %v9781_v5 = vld [vmem:[%s13097_s2 + $0xf0] ss:$8 sps:$4 sm:$0xff]  }
 0x176   : > { %13325 = vst [vmem:[#allocation20_spill] sm:$0xff] %v9781_v5 }
 0x177   : > { %7660 = vmatpush3.bf16.msra.mxu1 %v775_v2  ;;  %v779_v2 = vpack.c.bf16 %v9456_v13, %v9449_v10  ;;  %v9594_v10 = vld [vmem:[%s13097_s2 + $0x24] ss:$8 sps:$4 sm:$0xff]   ;;  %v9601_v13 = vld [vmem:[%s13097_s2 + $0x20] ss:$8 sps:$4 sm:$0xff]  }
 0x178   : > { %7661 = vmatprep.subr.bf16.mxu1 %v782_v9  ;;  %v8648_v9 = vld [vmem:[%s13100_s5 + $0xb4] ss:$8 sps:$4 sm:$0xff]  }
 0x179   : > { %1523 = vmatprep.subr.bf16.mxu0 %v8648_v9  ;;  %v9785_v9 = vpop.permute.xlu0 %1109 }
 0x17a   : > { %1524 = vmatpush1.bf16.msra.mxu0 %v8646_v11  ;;  %13326 = vst [vmem:[#allocation21_spill] sm:$0xff] %v9785_v9 }
 0x17b   : > { %7662 = vmatpush3.bf16.msra.mxu1 %v774_v18  ;;  %v8649_v18 = vld [vmem:[%s13100_s5 + $0xa0] ss:$8 sps:$4 sm:$0xff]   ;;  %1525 = vmatprep.subr.bf16.mxu0 %v8651_v19 }
 0x17c   : > { %7663 = vmatprep.subr.bf16.mxu1 %v781_v0  ;;  %v9702_v0 = vld [vmem:[%s13097_s2 + $0xa4] ss:$8 sps:$4 sm:$0xff]  }
 0x17e   : > { %1526 = vmatpush1.bf16.msra.mxu0 %v8649_v18  ;;  %v1267_v18 = vmul.f32 %v9785_v9, %v9366_v34 }
 0x17f   : > { %7664 = vmatpush3.bf16.msra.mxu1 %v773_v3  ;;  %v8654_v3 = vld [vmem:[%s13100_s5 + $0x94] ss:$8 sps:$4 sm:$0xff]  }
 0x180   : > { %7665 = vmatprep.subr.bf16.mxu1 %v780_v60  ;;  %v8652_v60 = vld [vmem:[%s13100_s5 + $0x90] ss:$8 sps:$4 sm:$0xff]   ;;  %1527 = vmatprep.subr.bf16.mxu0 %v8654_v3 }
 0x182   : > { %1528 = vmatpush1.bf16.msra.mxu0 %v8652_v60  ;;  %v9789_v60 = vpop.permute.xlu0 %1114 }
 0x183   : > { %7666 = vmatpush3.bf16.msra.mxu1 %v772_v56  ;;  %v8657_v56 = vld [vmem:[%s13100_s5 + $0x84] ss:$8 sps:$4 sm:$0xff]   ;;  %13327 = vst [vmem:[#allocation22_spill] sm:$0xff] %v9789_v60 }
 0x184   : > { %7667 = vmatprep.subr.bf16.mxu1 %v779_v2  ;;  %v9718_v2 = vld [vmem:[%s13097_s2 + $0xa0] ss:$8 sps:$4 sm:$0xff]   ;;  %1529 = vmatprep.subr.bf16.mxu0 %v8657_v56 }
 0x185   : > { %13315 = vst [vmem:[#allocation10_spill] sm:$0xff] %v9718_v2 }
 0x187   : > { %7668 = vmatpush3.bf16.msra.mxu1 %v771_v52  ;;  %v8655_v52 = vld [vmem:[%s13100_s5 + $0x80] ss:$8 sps:$4 sm:$0xff]  }
 0x188   : > { %7669 = vmatprep.subr.bf16.mxu1 %v778_v54  ;;  %v9726_v54 = vld [vmem:[%s13097_s2 + $0xb4] ss:$8 sps:$4 sm:$0xff]   ;;  %1530 = vmatpush1.bf16.msra.mxu0 %v8655_v52 }
 0x189   : > { %13316 = vst [vmem:[#allocation11_spill] sm:$0xff] %v9726_v54 }
 0x18b   : > { %7670 = vmatpush3.bf16.msra.mxu1 %v770_v39  ;;  %v9750_v39 = vld [vmem:[%s13097_s2 + $0xd4] ss:$8 sps:$4 sm:$0xff]  }
 0x18c   : > { %13320 = vst [vmem:[#allocation15_spill] sm:$0xff] %v9750_v39 }
 0x18e   : > { %979 = vmatmul.mubr.bf16.vlgmr.msra.gmra.mxu1 %v9565_v45 }
 0x18f   : > { %986 = vmatprep.mubr.bf16.mxu1 %v9573_v35 }
 0x196   : > { %987 = vmatmul.mubr.bf16.gmra.mxu1 %v9589_v7 }
 0x197   : > { %994 = vmatprep.mubr.bf16.mxu1 %v9594_v10 }
 0x19e   : > { %995 = vmatmul.mubr.bf16.gmra.mxu1 %v9601_v13 }
 0x19f   : > { %1002 = vmatprep.mubr.bf16.mxu1 %v9606_v17 }
 0x1a6   : > { %1003 = vmatmul.mubr.bf16.gmra.mxu1 %v9613_v21 }
 0x1a7   : > { %1010 = vmatprep.mubr.bf16.mxu1 %v9618_v22 }
 0x1ae   : > { %1011 = vmatmul.mubr.bf16.gmra.mxu1 %v9625_v25 }
 0x1af   : > { %1018 = vmatprep.mubr.bf16.mxu1 %v9630_v28 }
 0x1b6   : > { %1019 = vmatmul.mubr.bf16.gmra.mxu1 %v9637_v29 }
 0x1b7   : > { %1026 = vmatprep.mubr.bf16.mxu1 %v9642_v30 }
 0x1be   : > { %1027 = vmatmul.mubr.bf16.gmra.mxu1 %v9649_v33 }
 0x1bf   : > { %1034 = vmatprep.mubr.bf16.mxu1 %v9654_v16 }
 0x1c6   : > { %1035 = vmatmul.mubr.bf16.gmra.mxu1 %v9661_v23 }
 0x1c7   : > { %1042 = vmatprep.mubr.bf16.mxu1 %v9666_v27 }
 0x1ce   : > { %1043 = vmatmul.mubr.bf16.gmra.mxu1 %v9673_v31 }
 0x1cf   : > { %1050 = vmatprep.mubr.bf16.mxu1 %v9678_v32 }
 0x1d6   : > { %1051 = vmatmul.mubr.bf16.gmra.mxu1 %v9694_v24 }
 0x1d7   : > { %1058 = vmatprep.mubr.bf16.mxu1 %v9702_v0 }
 0x1de   : > { %1059 = vmatmul.mubr.bf16.gmra.mxu1 %v9718_v2 }
 0x1df   : > { %1066 = vmatprep.mubr.bf16.mxu1 %v9726_v54 }
 0x1e6   : > { %1067 = vmatmul.mubr.bf16.gmra.mxu1 %v9733_v47 }
 0x1e7   : > { %1074 = vmatprep.mubr.bf16.mxu1 %v9738_v49 }
 0x1ee   : > { %1075 = vmatmul.mubr.bf16.gmra.mxu1 %v9745_v43 }
 0x1ef   : > { %1082 = vmatprep.mubr.bf16.mxu1 %v9750_v39 }
 0x1f6   : > { %1083 = vmatmul.mubr.bf16.gmra.mxu1 %v9757_v41 }
 0x1f7   : > { %1090 = vmatprep.mubr.bf16.mxu1 %v9762_v58 }
 0x1fe   : > { %1091 = vmatmul.mubr.bf16.gmra.mxu1 %v9769_v37  ;;  %v1268_v37 = vmul.f32 %v9789_v60, %v9370_v36 }
 0x1ff   : > { %1098 = vmatprep.mubr.bf16.mxu1 %v9774_v62  ;;  %v9791_v62 = vpop.permute.xlu1 %1119 }
 0x200   : > { %13328 = vst [vmem:[#allocation23_spill] sm:$0xff] %v9791_v62 }
 0x203   : > { %v9804_v39 = vpop.permute.xlu1 %1124 }
 0x204   : > { %13329 = vst [vmem:[#allocation24_spill] sm:$0xff] %v9804_v39  ;;  %v1270_v36 = vmul.f32 %v9804_v39, %v9378_v40 }
 0x206   : > { %1099 = vmatmul.mubr.bf16.gmra.mxu1 %v9781_v5  ;;  %v9796_v5 = vld [vmem:[%s13101_s6] ss:$0 sm:$0xff] }
 0x207   : > { %1756 = vmatprep.mubr.bf16.mxu1 %v9401_v50 }
 0x24e   : > { %v7671_v11 = vpop.f32.mrf.mxu1 }
 0x250   : > { %v7672_v19 = vpop.f32.mrf.mxu1 }
 0x251   : > { %v7673_v3 = vadd.f32 %v7672_v19, %v7671_v11 }
 0x252   : > { %v7674_v56 = vpop.f32.mrf.mxu1 }
 0x253   : > { %v1299_v52 = vadd.f32 %v7673_v3, %v1267_v18  ;;  %v1269_v18 = vmul.f32 %v9791_v62, %v9374_v38 }
 0x254   : > { %v7675_v50 = vpop.f32.mrf.mxu1 }
 0x255   : > { %v7676_v58 = vadd.f32 %v7675_v50, %v7674_v56  ;;  %v1338_v34 = vadd.f32 %v9796_v5, %v1299_v52 }
 0x256   : > { %v7677_v41 = vpop.f32.mrf.mxu1 }
 0x257   : > { %v1300_v11 = vadd.f32 %v7676_v58, %v1268_v37  ;;  %v1370_v49 = vmax.f32 %v1338_v34, 0.0  ;;  %v9808_v58 = vpop.permute.xlu0 %1129 }
 0x258   : > { %v7678_v19 = vpop.f32.mrf.mxu1  ;;  %13330 = vst [vmem:[#allocation25_spill] sm:$0xff] %v9808_v58  ;;  %v1271_v34 = vmul.f32 %v9808_v58, %v9382_v42 }
 0x259   : > { %v1339_v3 = vadd.f32 %v9796_v5, %v1300_v11  ;;  %v7679_v9 = vadd.f32 %v7678_v19, %v7677_v41  ;;  %v13331_v11 = vmov 0  }
 0x25a   : > { %v7680_v43 = vpop.f32.mrf.mxu1 }
 0x25b   : > { %v1371_v47 = vmax.f32 %v1339_v3, 0.0  ;;  %v1301_v54 = vadd.f32 %v7679_v9, %v1269_v18  ;;  %v9815_v18 = vpop.permute.xlu1 %1134 }
 0x25c   : > { %v7681_v2 = vpop.f32.mrf.mxu1  ;;  %13332 = vst [vmem:[#allocation26_spill] sm:$0xff] %v9815_v18 }
 0x25d   : > { %v1419_v56 = vpack.c.bf16 %v1371_v47, %v1370_v49  ;;  %v7682_v52 = vadd.f32 %v7681_v2, %v7680_v43  ;;  %v1340_v38 = vadd.f32 %v9796_v5, %v1301_v54  ;;  %v1272_v54 = vmul.f32 %v9815_v18, %v9386_v44 }
 0x25e   : > { %v7683_v37 = vpop.f32.mrf.mxu1 }
 0x25f   : > { %v1302_v50 = vadd.f32 %v7682_v52, %v1270_v36  ;;  %1548 = vmatmul.mubr.bf16.vlgmr.msra.gmra.mxu0 %v1419_v56  ;;  %v1372_v2 = vmax.f32 %v1340_v38, 0.0  ;;  %v9819_v56 = vpop.permute.xlu0 %1139 }
 0x260   : > { %v7684_v41 = vpop.f32.mrf.mxu1  ;;  %1557 = vmatprep.mubr.bf16.mxu0 %v13331_v11  ;;  %13333 = vst [vmem:[#allocation27_spill] sm:$0xff] %v9819_v56  ;;  %v1273_v38 = vmul.f32 %v9819_v56, %v9390_v46 }
 0x261   : > { %v1341_v9 = vadd.f32 %v9796_v5, %v1302_v50  ;;  %v7685_v19 = vadd.f32 %v7684_v41, %v7683_v37 }
 0x262   : > { %v7686_v40 = vpop.f32.mrf.mxu1 }
 0x263   : > { %v1303_v47 = vadd.f32 %v7685_v19, %v1271_v34  ;;  %v1373_v49 = vmax.f32 %v1341_v9, 0.0  ;;  %v9826_v34 = vpop.permute.xlu1 %1144 }
 0x264   : > { %v7687_v43 = vpop.f32.mrf.mxu1  ;;  %13334 = vst [vmem:[#allocation28_spill] sm:$0xff] %v9826_v34 }
 0x265   : > { %v7688_v3 = vadd.f32 %v7687_v43, %v7686_v40  ;;  %v1420_v36 = vpack.c.bf16 %v1373_v49, %v1372_v2  ;;  %v1342_v42 = vadd.f32 %v9796_v5, %v1303_v47  ;;  %v1274_v47 = vmul.f32 %v9826_v34, %v9394_v48 }
 0x266   : > { %v7689_v52 = vpop.f32.mrf.mxu1 }
 0x267   : > { %v1304_v58 = vadd.f32 %v7688_v3, %v1272_v54  ;;  %1558 = vmatmul.mubr.bf16.gmra.mxu0 %v1420_v36  ;;  %v1374_v9 = vmax.f32 %v1342_v42, 0.0  ;;  %v9830_v54 = vpop.permute.xlu0 %1149 }
 0x268   : > { %v7690_v37 = vpop.f32.mrf.mxu1  ;;  %1567 = vmatprep.mubr.bf16.mxu0 %v13331_v11  ;;  %13335 = vst [vmem:[#allocation29_spill] sm:$0xff] %v9830_v54 }
 0x269   : > { %v1343_v50 = vadd.f32 %v9796_v5, %v1304_v58  ;;  %v7691_v41 = vadd.f32 %v7690_v37, %v7689_v52  ;;  %v1275_v52 = vmul.f32 %v9830_v54, %v9403_v51 }
 0x26a   : > { %v7692_v44 = vpop.f32.mrf.mxu1 }
 0x26b   : > { %v1305_v19 = vadd.f32 %v7691_v41, %v1273_v38  ;;  %v1375_v40 = vmax.f32 %v1343_v50, 0.0  ;;  %v9837_v38 = vpop.permute.xlu1 %1154 }
 0x26c   : > { %v7693_v2 = vpop.f32.mrf.mxu1  ;;  %13336 = vst [vmem:[#allocation30_spill] sm:$0xff] %v9837_v38 }
 0x26d   : > { %v7694_v49 = vadd.f32 %v7693_v2, %v7692_v44  ;;  %v1421_v43 = vpack.c.bf16 %v1375_v40, %v1374_v9  ;;  %v1344_v46 = vadd.f32 %v9796_v5, %v1305_v19  ;;  %v1276_v19 = vmul.f32 %v9837_v38, %v9408_v53 }
 0x26e   : > { %v7695_v3 = vpop.f32.mrf.mxu1 }
 0x26f   : > { %v1306_v36 = vadd.f32 %v7694_v49, %v1274_v47  ;;  %1568 = vmatmul.mubr.bf16.gmra.mxu0 %v1421_v43  ;;  %v1376_v50 = vmax.f32 %v1344_v46, 0.0  ;;  %v9841_v47 = vpop.permute.xlu0 %1159 }
 0x270   : > { %v7696_v58 = vpop.f32.mrf.mxu1  ;;  %1577 = vmatprep.mubr.bf16.mxu0 %v13331_v11  ;;  %13337 = vst [vmem:[#allocation31_spill] sm:$0xff] %v9841_v47  ;;  %v1277_v46 = vmul.f32 %v9841_v47, %v9412_v55 }
 0x271   : > { %v1345_v42 = vadd.f32 %v9796_v5, %v1306_v36  ;;  %v7697_v37 = vadd.f32 %v7696_v58, %v7695_v3 }
 0x272   : > { %v7698_v48 = vpop.f32.mrf.mxu1 }
 0x273   : > { %v1307_v41 = vadd.f32 %v7697_v37, %v1275_v52  ;;  %v1377_v44 = vmax.f32 %v1345_v42, 0.0  ;;  %v9848_v52 = vpop.permute.xlu1 %1164 }
 0x274   : > { %v7699_v9 = vpop.f32.mrf.mxu1  ;;  %13338 = vst [vmem:[#allocation32_spill] sm:$0xff] %v9848_v52 }
 0x275   : > { %v7700_v40 = vadd.f32 %v7699_v9, %v7698_v48  ;;  %v1422_v2 = vpack.c.bf16 %v1377_v44, %v1376_v50  ;;  %v1346_v51 = vadd.f32 %v9796_v5, %v1307_v41  ;;  %v1278_v41 = vmul.f32 %v9848_v52, %v9416_v57 }
 0x276   : > { %v7701_v49 = vpop.f32.mrf.mxu1 }
 0x277   : > { %v1308_v43 = vadd.f32 %v7700_v40, %v1276_v19  ;;  %1578 = vmatmul.mubr.bf16.gmra.mxu0 %v1422_v2  ;;  %v1378_v42 = vmax.f32 %v1346_v51, 0.0  ;;  %v9852_v19 = vpop.permute.xlu0 %1169 }
 0x278   : > { %v7702_v3 = vpop.f32.mrf.mxu1  ;;  %1587 = vmatprep.mubr.bf16.mxu0 %v13331_v11  ;;  %13339 = vst [vmem:[#allocation33_spill] sm:$0xff] %v9852_v19  ;;  %v1279_v51 = vmul.f32 %v9852_v19, %v9420_v59 }
 0x279   : > { %v1347_v36 = vadd.f32 %v9796_v5, %v1308_v43  ;;  %v7703_v58 = vadd.f32 %v7702_v3, %v7701_v49 }
 0x27a   : > { %v7704_v53 = vpop.f32.mrf.mxu1 }
 0x27b   : > { %v1309_v37 = vadd.f32 %v7703_v58, %v1277_v46  ;;  %v1379_v48 = vmax.f32 %v1347_v36, 0.0  ;;  %v9859_v46 = vpop.permute.xlu1 %1174 }
 0x27c   : > { %v7705_v50 = vpop.f32.mrf.mxu1  ;;  %13340 = vst [vmem:[#allocation34_spill] sm:$0xff] %v9859_v46 }
 0x27d   : > { %v7706_v44 = vadd.f32 %v7705_v50, %v7704_v53  ;;  %v1423_v9 = vpack.c.bf16 %v1379_v48, %v1378_v42  ;;  %v1348_v55 = vadd.f32 %v9796_v5, %v1309_v37  ;;  %v1280_v37 = vmul.f32 %v9859_v46, %v9424_v61 }
 0x27e   : > { %v7707_v40 = vpop.f32.mrf.mxu1 }
 0x27f   : > { %v1310_v2 = vadd.f32 %v7706_v44, %v1278_v41  ;;  %1588 = vmatmul.mubr.bf16.gmra.mxu0 %v1423_v9  ;;  %v1380_v36 = vmax.f32 %v1348_v55, 0.0  ;;  %v9863_v41 = vpop.permute.xlu0 %1179 }
 0x280   : > { %v7708_v49 = vpop.f32.mrf.mxu1  ;;  %1597 = vmatprep.mubr.bf16.mxu0 %v13331_v11  ;;  %13341 = vst [vmem:[#allocation35_spill] sm:$0xff] %v9863_v41  ;;  %v1281_v55 = vmul.f32 %v9863_v41, %v9428_v63 }
 0x281   : > { %v1349_v43 = vadd.f32 %v9796_v5, %v1310_v2  ;;  %v7709_v3 = vadd.f32 %v7708_v49, %v7707_v40 }
 0x282   : > { %v7710_v57 = vpop.f32.mrf.mxu1 }
 0x283   : > { %v1311_v58 = vadd.f32 %v7709_v3, %v1279_v51  ;;  %v1381_v53 = vmax.f32 %v1349_v43, 0.0  ;;  %v9870_v51 = vpop.permute.xlu1 %1184 }
 0x284   : > { %v7711_v42 = vpop.f32.mrf.mxu1  ;;  %13342 = vst [vmem:[#allocation36_spill] sm:$0xff] %v9870_v51 }
 0x285   : > { %v7712_v48 = vadd.f32 %v7711_v42, %v7710_v57  ;;  %v1424_v50 = vpack.c.bf16 %v1381_v53, %v1380_v36  ;;  %v1350_v59 = vadd.f32 %v9796_v5, %v1311_v58  ;;  %v1282_v58 = vmul.f32 %v9870_v51, %v9432_v1 }
 0x286   : > { %v7713_v44 = vpop.f32.mrf.mxu1 }
 0x287   : > { %v1312_v9 = vadd.f32 %v7712_v48, %v1280_v37  ;;  %1598 = vmatmul.mubr.bf16.gmra.mxu0 %v1424_v50  ;;  %v1382_v43 = vmax.f32 %v1350_v59, 0.0  ;;  %v9874_v37 = vpop.permute.xlu0 %1189 }
 0x288   : > { %v7714_v40 = vpop.f32.mrf.mxu1  ;;  %1607 = vmatprep.mubr.bf16.mxu0 %v13331_v11  ;;  %13343 = vst [vmem:[#allocation37_spill] sm:$0xff] %v9874_v37  ;;  %v1283_v59 = vmul.f32 %v9874_v37, %v9436_v4 }
 0x289   : > { %v1351_v2 = vadd.f32 %v9796_v5, %v1312_v9  ;;  %v7715_v49 = vadd.f32 %v7714_v40, %v7713_v44 }
 0x28a   : > { %v7716_v61 = vpop.f32.mrf.mxu1 }
 0x28b   : > { %v1313_v3 = vadd.f32 %v7715_v49, %v1281_v55  ;;  %v1383_v57 = vmax.f32 %v1351_v2, 0.0  ;;  %v9881_v55 = vpop.permute.xlu1 %1194 }
 0x28c   : > { %v7717_v36 = vpop.f32.mrf.mxu1  ;;  %13344 = vst [vmem:[#allocation38_spill] sm:$0xff] %v9881_v55 }
 0x28d   : > { %v7718_v53 = vadd.f32 %v7717_v36, %v7716_v61  ;;  %v1425_v42 = vpack.c.bf16 %v1383_v57, %v1382_v43  ;;  %v1352_v63 = vadd.f32 %v9796_v5, %v1313_v3  ;;  %v1284_v3 = vmul.f32 %v9881_v55, %v9440_v6 }
 0x28e   : > { %v7719_v48 = vpop.f32.mrf.mxu1 }
 0x28f   : > { %v1314_v50 = vadd.f32 %v7718_v53, %v1282_v58  ;;  %1608 = vmatmul.mubr.bf16.gmra.mxu0 %v1425_v42  ;;  %v1384_v2 = vmax.f32 %v1352_v63, 0.0  ;;  %v9885_v58 = vpop.permute.xlu0 %1199 }
 0x290   : > { %v7720_v44 = vpop.f32.mrf.mxu1  ;;  %1617 = vmatprep.mubr.bf16.mxu0 %v13331_v11  ;;  %13345 = vst [vmem:[#allocation39_spill] sm:$0xff] %v9885_v58  ;;  %v1285_v63 = vmul.f32 %v9885_v58, %v9444_v8 }
 0x291   : > { %v1353_v9 = vadd.f32 %v9796_v5, %v1314_v50  ;;  %v7721_v40 = vadd.f32 %v7720_v44, %v7719_v48 }
 0x292   : > { %v7722_v1 = vpop.f32.mrf.mxu1 }
 0x293   : > { %v1315_v49 = vadd.f32 %v7721_v40, %v1283_v59  ;;  %v1385_v61 = vmax.f32 %v1353_v9, 0.0  ;;  %v9892_v59 = vpop.permute.xlu1 %1204 }
 0x294   : > { %v7723_v43 = vpop.f32.mrf.mxu1  ;;  %13346 = vst [vmem:[#allocation40_spill] sm:$0xff] %v9892_v59 }
 0x295   : > { %v7724_v57 = vadd.f32 %v7723_v43, %v7722_v1  ;;  %v1426_v36 = vpack.c.bf16 %v1385_v61, %v1384_v2  ;;  %v1354_v4 = vadd.f32 %v9796_v5, %v1315_v49  ;;  %v1286_v49 = vmul.f32 %v9892_v59, %v9454_v12 }
 0x296   : > { %v7725_v53 = vpop.f32.mrf.mxu1 }
 0x297   : > { %v1316_v42 = vadd.f32 %v7724_v57, %v1284_v3  ;;  %1618 = vmatmul.mubr.bf16.gmra.mxu0 %v1426_v36  ;;  %v1386_v9 = vmax.f32 %v1354_v4, 0.0  ;;  %v9896_v3 = vpop.permute.xlu0 %1209 }
 0x298   : > { %v7726_v48 = vpop.f32.mrf.mxu1  ;;  %1627 = vmatprep.mubr.bf16.mxu0 %v13331_v11  ;;  %13347 = vst [vmem:[#allocation41_spill] sm:$0xff] %v9896_v3  ;;  %v1287_v4 = vmul.f32 %v9896_v3, %v9458_v14 }
 0x299   : > { %v1355_v50 = vadd.f32 %v9796_v5, %v1316_v42  ;;  %v7727_v44 = vadd.f32 %v7726_v48, %v7725_v53 }
 0x29a   : > { %v7728_v6 = vpop.f32.mrf.mxu1 }
 0x29b   : > { %v1317_v40 = vadd.f32 %v7727_v44, %v1285_v63  ;;  %v1387_v1 = vmax.f32 %v1355_v50, 0.0  ;;  %v9903_v63 = vpop.permute.xlu1 %1214 }
 0x29c   : > { %v7729_v2 = vpop.f32.mrf.mxu1  ;;  %13348 = vst [vmem:[#allocation42_spill] sm:$0xff] %v9903_v63 }
 0x29d   : > { %v7730_v61 = vadd.f32 %v7729_v2, %v7728_v6  ;;  %v1427_v43 = vpack.c.bf16 %v1387_v1, %v1386_v9  ;;  %v1356_v8 = vadd.f32 %v9796_v5, %v1317_v40  ;;  %v1288_v40 = vmul.f32 %v9903_v63, %v9474_v20 }
 0x29e   : > { %v7731_v57 = vpop.f32.mrf.mxu1 }
 0x29f   : > { %v1318_v36 = vadd.f32 %v7730_v61, %v1286_v49  ;;  %1628 = vmatmul.mubr.bf16.gmra.mxu0 %v1427_v43  ;;  %v1388_v50 = vmax.f32 %v1356_v8, 0.0  ;;  %v9907_v49 = vpop.permute.xlu0 %1219 }
 0x2a0   : > { %v7732_v53 = vpop.f32.mrf.mxu1  ;;  %1637 = vmatprep.mubr.bf16.mxu0 %v13331_v11  ;;  %13349 = vst [vmem:[#allocation43_spill] sm:$0xff] %v9907_v49 }
 0x2a1   : > { %v1357_v42 = vadd.f32 %v9796_v5, %v1318_v36  ;;  %v7733_v48 = vadd.f32 %v7732_v53, %v7731_v57  ;;  %v13350_v36 = vld [vmem:[#allocation2_spill] sm:$0xff] }
 0x2a2   : > { %v7734_v12 = vpop.f32.mrf.mxu1  ;;  %v1289_v8 = vmul.f32 %v9907_v49, %v13350_v36 }
 0x2a3   : > { %v1319_v44 = vadd.f32 %v7733_v48, %v1287_v4  ;;  %v1389_v6 = vmax.f32 %v1357_v42, 0.0  ;;  %v9914_v42 = vpop.permute.xlu1 %1224 }
 0x2a4   : > { %v7735_v9 = vpop.f32.mrf.mxu1  ;;  %13351 = vst [vmem:[#allocation2_spill] sm:$0xff] %v9914_v42 }
 0x2a5   : > { %v7736_v1 = vadd.f32 %v7735_v9, %v7734_v12  ;;  %v1428_v2 = vpack.c.bf16 %v1389_v6, %v1388_v50  ;;  %v1358_v14 = vadd.f32 %v9796_v5, %v1319_v44  ;;  %v13352_v9 = vld [vmem:[#allocation3_spill] sm:$0xff] }
 0x2a6   : > { %v7737_v61 = vpop.f32.mrf.mxu1  ;;  %v1290_v44 = vmul.f32 %v9914_v42, %v13352_v9  ;;  %v13356_v9 = vld [vmem:[#allocation5_spill] sm:$0xff] }
 0x2a7   : > { %v1320_v43 = vadd.f32 %v7736_v1, %v1288_v40  ;;  %1638 = vmatmul.mubr.bf16.gmra.mxu0 %v1428_v2  ;;  %v1390_v48 = vmax.f32 %v1358_v14, 0.0  ;;  %v9918_v2 = vpop.permute.xlu0 %1229 }
 0x2a8   : > { %v7738_v57 = vpop.f32.mrf.mxu1  ;;  %1647 = vmatprep.mubr.bf16.mxu0 %v13331_v11  ;;  %13353 = vst [vmem:[#allocation3_spill] sm:$0xff] %v9918_v2 }
 0x2a9   : > { %v1359_v53 = vadd.f32 %v9796_v5, %v1320_v43  ;;  %v7739_v4 = vadd.f32 %v7738_v57, %v7737_v61  ;;  %v13354_v43 = vld [vmem:[#allocation4_spill] sm:$0xff] }
 0x2aa   : > { %v7740_v20 = vpop.f32.mrf.mxu1  ;;  %v1291_v14 = vmul.f32 %v9918_v2, %v13354_v43 }
 0x2ab   : > { %v1321_v12 = vadd.f32 %v7739_v4, %v1289_v8  ;;  %v1391_v50 = vmax.f32 %v1359_v53, 0.0  ;;  %v9925_v53 = vpop.permute.xlu1 %1234 }
 0x2ac   : > { %v7741_v6 = vpop.f32.mrf.mxu1  ;;  %13355 = vst [vmem:[#allocation4_spill] sm:$0xff] %v9925_v53 }
 0x2ad   : > { %v7742_v40 = vadd.f32 %v7741_v6, %v7740_v20  ;;  %v1429_v1 = vpack.c.bf16 %v1391_v50, %v1390_v48  ;;  %v1360_v36 = vadd.f32 %v9796_v5, %v1321_v12  ;;  %v1292_v12 = vmul.f32 %v9925_v53, %v13356_v9 }
 0x2ae   : > { %v7743_v63 = vpop.f32.mrf.mxu1 }
 0x2af   : > { %v1322_v49 = vadd.f32 %v7742_v40, %v1290_v44  ;;  %1648 = vmatmul.mubr.bf16.gmra.mxu0 %v1429_v1  ;;  %v1392_v20 = vmax.f32 %v1360_v36, 0.0  ;;  %v9929_v1 = vpop.permute.xlu0 %1239 }
 0x2b0   : > { %v7744_v61 = vpop.f32.mrf.mxu1  ;;  %1657 = vmatprep.mubr.bf16.mxu0 %v13331_v11  ;;  %13357 = vst [vmem:[#allocation5_spill] sm:$0xff] %v9929_v1 }
 0x2b1   : > { %v1361_v57 = vadd.f32 %v9796_v5, %v1322_v49  ;;  %v7745_v8 = vadd.f32 %v7744_v61, %v7743_v63  ;;  %v13358_v49 = vld [vmem:[#allocation6_spill] sm:$0xff] }
 0x2b2   : > { %v7746_v4 = vpop.f32.mrf.mxu1  ;;  %v1293_v36 = vmul.f32 %v9929_v1, %v13358_v49 }
 0x2b3   : > { %v1323_v48 = vadd.f32 %v7745_v8, %v1291_v14  ;;  %v1393_v50 = vmax.f32 %v1361_v57, 0.0  ;;  %v9936_v57 = vpop.permute.xlu1 %1244 }
 0x2b4   : > { %v7747_v6 = vpop.f32.mrf.mxu1  ;;  %13359 = vst [vmem:[#allocation6_spill] sm:$0xff] %v9936_v57 }
 0x2b5   : > { %v7748_v44 = vadd.f32 %v7747_v6, %v7746_v4  ;;  %v1430_v40 = vpack.c.bf16 %v1393_v50, %v1392_v20  ;;  %v1362_v43 = vadd.f32 %v9796_v5, %v1323_v48  ;;  %v1294_v48 = vmul.f32 %v9936_v57, %v9518_v26 }
 0x2b6   : > { %v7749_v42 = vpop.f32.mrf.mxu1 }
 0x2b7   : > { %v1324_v2 = vadd.f32 %v7748_v44, %v1292_v12  ;;  %1658 = vmatmul.mubr.bf16.gmra.mxu0 %v1430_v40  ;;  %v1394_v4 = vmax.f32 %v1362_v43, 0.0  ;;  %v9940_v44 = vpop.permute.xlu0 %1249 }
 0x2b8   : > { %v7750_v63 = vpop.f32.mrf.mxu1  ;;  %1667 = vmatprep.mubr.bf16.mxu0 %v13331_v11  ;;  %13360 = vst [vmem:[#allocation44_spill] sm:$0xff] %v9940_v44 }
 0x2b9   : > { %v1363_v61 = vadd.f32 %v9796_v5, %v1324_v2  ;;  %v7751_v14 = vadd.f32 %v7750_v63, %v7749_v42  ;;  %v13361_v2 = vld [vmem:[#allocation7_spill] sm:$0xff] }
 0x2ba   : > { %v7752_v8 = vpop.f32.mrf.mxu1  ;;  %v1295_v43 = vmul.f32 %v9940_v44, %v13361_v2 }
 0x2bb   : > { %v1395_v20 = vmax.f32 %v1363_v61, 0.0  ;;  %v1325_v50 = vadd.f32 %v7751_v14, %v1293_v36  ;;  %v9947_v61 = vpop.permute.xlu1 %1254 }
 0x2bc   : > { %v7753_v6 = vpop.f32.mrf.mxu1  ;;  %13362 = vst [vmem:[#allocation7_spill] sm:$0xff] %v9947_v61 }
 0x2bd   : > { %v7754_v9 = vadd.f32 %v7753_v6, %v7752_v8  ;;  %v1431_v12 = vpack.c.bf16 %v1395_v20, %v1394_v4  ;;  %v1364_v49 = vadd.f32 %v9796_v5, %v1325_v50  ;;  %v13363_v6 = vld [vmem:[#allocation8_spill] sm:$0xff] }
 0x2be   : > { %v7755_v40 = vpop.f32.mrf.mxu1  ;;  %v1296_v50 = vmul.f32 %v9947_v61, %v13363_v6 }
 0x2bf   : > { %v1326_v1 = vadd.f32 %v7754_v9, %v1294_v48  ;;  %1668 = vmatmul.mubr.bf16.gmra.mxu0 %v1431_v12  ;;  %v1396_v14 = vmax.f32 %v1364_v49, 0.0  ;;  %v9951_v12 = vpop.permute.xlu0 %1259 }
 0x2c0   : > { %v7756_v42 = vpop.f32.mrf.mxu1  ;;  %1677 = vmatprep.mubr.bf16.mxu0 %v13331_v11  ;;  %13364 = vst [vmem:[#allocation8_spill] sm:$0xff] %v9951_v12 }
 0x2c1   : > { %v1365_v63 = vadd.f32 %v9796_v5, %v1326_v1  ;;  %v7757_v36 = vadd.f32 %v7756_v42, %v7755_v40  ;;  %v13365_v40 = vld [vmem:[#allocation9_spill] sm:$0xff] }
 0x2c2   : > { %v7758_v26 = vpop.f32.mrf.mxu1  ;;  %v1297_v49 = vmul.f32 %v9951_v12, %v13365_v40 }
 0x2c3   : > { %v1397_v8 = vmax.f32 %v1365_v63, 0.0  ;;  %v1327_v4 = vadd.f32 %v7757_v36, %v1295_v43  ;;  %v9958_v63 = vpop.permute.xlu1 %1264 }
 0x2c4   : > { %v7759_v20 = vpop.f32.mrf.mxu1  ;;  %13366 = vst [vmem:[#allocation9_spill] sm:$0xff] %v9958_v63 }
 0x2c5   : > { %v7760_v48 = vadd.f32 %v7759_v20, %v7758_v26  ;;  %v1432_v9 = vpack.c.bf16 %v1397_v8, %v1396_v14  ;;  %v1366_v2 = vadd.f32 %v9796_v5, %v1327_v4  ;;  %v1298_v4 = vmul.f32 %v9958_v63, %v9526_v15 }
 0x2c6   : > { %v7761_v57 = vpop.f32.mrf.mxu1 }
 0x2c7   : > { %v1328_v44 = vadd.f32 %v7760_v48, %v1296_v50  ;;  %1678 = vmatmul.mubr.bf16.gmra.mxu0 %v1432_v9  ;;  %v1398_v26 = vmax.f32 %v1366_v2, 0.0 }
 0x2c8   : > { %v7762_v1 = vpop.f32.mrf.mxu1  ;;  %1687 = vmatprep.mubr.bf16.mxu0 %v13331_v11 }
 0x2c9   : > { %v1367_v42 = vadd.f32 %v9796_v5, %v1328_v44  ;;  %v7763_v43 = vadd.f32 %v7762_v1, %v7761_v57 }
 0x2ca   : > { %v7764_v36 = vpop.f32.mrf.mxu1 }
 0x2cb   : > { %v1399_v14 = vmax.f32 %v1367_v42, 0.0  ;;  %v1329_v8 = vadd.f32 %v7763_v43, %v1297_v49 }
 0x2cc   : > { %v7765_v20 = vpop.f32.mrf.mxu1 }
 0x2cd   : > { %v7766_v6 = vadd.f32 %v7765_v20, %v7764_v36  ;;  %v1433_v50 = vpack.c.bf16 %v1399_v14, %v1398_v26  ;;  %v1368_v48 = vadd.f32 %v9796_v5, %v1329_v8 }
 0x2cf   : > { %v1330_v9 = vadd.f32 %v7766_v6, %v1298_v4  ;;  %1688 = vmatmul.mubr.bf16.gmra.mxu0 %v1433_v50  ;;  %v1400_v44 = vmax.f32 %v1368_v48, 0.0 }
 0x2d0   : > { %1697 = vmatprep.mubr.bf16.mxu0 %v13331_v11 }
 0x2d1   : > { %v1369_v57 = vadd.f32 %v9796_v5, %v1330_v9 }
 0x2d3   : > { %v1401_v1 = vmax.f32 %v1369_v57, 0.0 }
 0x2d5   : > { %v1434_v40 = vpack.c.bf16 %v1401_v1, %v1400_v44 }
 0x2d7   : > { %1698 = vmatmul.mubr.bf16.gmra.mxu0 %v1434_v40 }
 0x2d8   : > { %2198 = vmatprep.mubr.bf16.mxu0 %v13331_v11 }
 0x31f   : > { %v9966_v2 = vpop.f32.mrf.mxu0 }
 0x321   : > { %v9968_v49 = vpop.f32.mrf.mxu0 }
 0x323   : > { %v9970_v15 = vpop.f32.mrf.mxu0 }
 0x324   : > { %13367 = vst [vmem:[#allocation45_spill] sm:$0xff] %v9970_v15 }
 0x325   : > { %v9972_v42 = vpop.f32.mrf.mxu0 }
 0x327   : > { %v9974_v43 = vpop.f32.mrf.mxu0 }
 0x328   : > { %13368 = vst [vmem:[#allocation46_spill] sm:$0xff] %v9974_v43 }
 0x329   : > { %v9976_v36 = vpop.f32.mrf.mxu0 }
 0x32b   : > { %v9978_v26 = vpop.f32.mrf.mxu0 }
 0x32c   : > { %13369 = vst [vmem:[#allocation47_spill] sm:$0xff] %v9978_v26 }
 0x32d   : > { %v9980_v5 = vpop.f32.mrf.mxu0 }
 0x32f   : > { %v9982_v14 = vpop.f32.mrf.mxu0 }
 0x330   : > { %13370 = vst [vmem:[#allocation48_spill] sm:$0xff] %v9982_v14 }
 0x331   : > { %v9984_v8 = vpop.f32.mrf.mxu0 }
 0x333   : > { %v9986_v20 = vpop.f32.mrf.mxu0 }
 0x334   : > { %13371 = vst [vmem:[#allocation49_spill] sm:$0xff] %v9986_v20 }
 0x335   : > { %v9988_v4 = vpop.f32.mrf.mxu0 }
 0x337   : > { %v9990_v6 = vpop.f32.mrf.mxu0 }
 0x338   : > { %13372 = vst [vmem:[#allocation50_spill] sm:$0xff] %v9990_v6 }
 0x339   : > { %v9992_v50 = vpop.f32.mrf.mxu0 }
 0x33b   : > { %v9994_v48 = vpop.f32.mrf.mxu0 }
 0x33c   : > { %13373 = vst [vmem:[#allocation51_spill] sm:$0xff] %v9994_v48 }
 0x33d   : > { %v9996_v9 = vpop.f32.mrf.mxu0 }
 0x33f   : > { %v9998_v57 = vpop.f32.mrf.mxu0 }
 0x340   : > { %13374 = vst [vmem:[#allocation52_spill] sm:$0xff] %v9998_v57 }
 0x341   : > { %v10000_v44 = vpop.f32.mrf.mxu0 }
 0x343   : > { %v10002_v1 = vpop.f32.mrf.mxu0 }
 0x344   : > { %13375 = vst [vmem:[#allocation53_spill] sm:$0xff] %v10002_v1 }
 0x345   : > { %v1595_v40 = vpop.f32.mrf.mxu0 }
 0x347   : > { %v10004_v63 = vpop.f32.mrf.mxu0 }
 0x348   : > { %13376 = vst [vmem:[#allocation54_spill] sm:$0xff] %v10004_v63 }
 0x349   : > { %v1601_v12 = vpop.f32.mrf.mxu0 }
 0x34b   : > { %v10006_v61 = vpop.f32.mrf.mxu0 }
 0x34c   : > { %13377 = vst [vmem:[#allocation55_spill] sm:$0xff] %v10006_v61 }
 0x34d   : > { %v1605_v53 = vpop.f32.mrf.mxu0 }
 0x34f   : > { %v10008_v3 = vpop.f32.mrf.mxu0 }
 0x350   : > { %13378 = vst [vmem:[#allocation56_spill] sm:$0xff] %v10008_v3 }
 0x351   : > { %v1611_v59 = vpop.f32.mrf.mxu0 }
 0x353   : > { %v10010_v58 = vpop.f32.mrf.mxu0 }
 0x354   : > { %13379 = vst [vmem:[#allocation57_spill] sm:$0xff] %v10010_v58 }
 0x355   : > { %v1615_v55 = vpop.f32.mrf.mxu0 }
 0x357   : > { %v10012_v37 = vpop.f32.mrf.mxu0 }
 0x358   : > { %13380 = vst [vmem:[#allocation58_spill] sm:$0xff] %v10012_v37 }
 0x359   : > { %v1621_v51 = vpop.f32.mrf.mxu0 }
 0x35b   : > { %v10014_v41 = vpop.f32.mrf.mxu0 }
 0x35c   : > { %13381 = vst [vmem:[#allocation59_spill] sm:$0xff] %v10014_v41 }
 0x35d   : > { %v1625_v46 = vpop.f32.mrf.mxu0 }
 0x35e   : > { %v1715_v43 = vpack.c.bf16 %v1625_v46, %v1621_v51  ;;  %v8666_v46 = vld [vmem:[%s13100_s5 + $0x154] ss:$8 sps:$4 sm:$0xff]   ;;  %v8669_v51 = vld [vmem:[%s13100_s5 + $0x144] ss:$8 sps:$4 sm:$0xff]  }
 0x35f   : > { %v10016_v19 = vpop.f32.mrf.mxu0 }
 0x360   : > { %13382 = vst [vmem:[#allocation60_spill] sm:$0xff] %v10016_v19 }
 0x361   : > { %v10018_v52 = vpop.f32.mrf.mxu0 }
 0x363   : > { %v10020_v63 = vpop.f32.mrf.mxu0 }
 0x364   : > { %13383 = vst [vmem:[#allocation61_spill] sm:$0xff] %v10020_v63 }
 0x365   : > { %v1635_v61 = vpop.f32.mrf.mxu0 }
 0x367   : > { %v10022_v47 = vpop.f32.mrf.mxu0 }
 0x368   : > { %13384 = vst [vmem:[#allocation62_spill] sm:$0xff] %v10022_v47 }
 0x369   : > { %v1641_v3 = vpop.f32.mrf.mxu0 }
 0x36b   : > { %v10024_v1 = vpop.f32.mrf.mxu0 }
 0x36c   : > { %13385 = vst [vmem:[#allocation63_spill] sm:$0xff] %v10024_v1 }
 0x36d   : > { %v1645_v58 = vpop.f32.mrf.mxu0 }
 0x36f   : > { %v10026_v38 = vpop.f32.mrf.mxu0 }
 0x370   : > { %13386 = vst [vmem:[#allocation64_spill] sm:$0xff] %v10026_v38 }
 0x371   : > { %v1651_v37 = vpop.f32.mrf.mxu0 }
 0x373   : > { %v10028_v57 = vpop.f32.mrf.mxu0 }
 0x374   : > { %13387 = vst [vmem:[#allocation65_spill] sm:$0xff] %v10028_v57 }
 0x375   : > { %v1655_v41 = vpop.f32.mrf.mxu0 }
 0x377   : > { %v10030_v54 = vpop.f32.mrf.mxu0 }
 0x378   : > { %13388 = vst [vmem:[#allocation66_spill] sm:$0xff] %v10030_v54 }
 0x379   : > { %v1661_v19 = vpop.f32.mrf.mxu0 }
 0x37b   : > { %v10032_v48 = vpop.f32.mrf.mxu0 }
 0x37c   : > { %13389 = vst [vmem:[#allocation67_spill] sm:$0xff] %v10032_v48 }
 0x37d   : > { %v1665_v34 = vpop.f32.mrf.mxu0 }
 0x37f   : > { %v10034_v63 = vpop.f32.mrf.mxu0 }
 0x380   : > { %13390 = vst [vmem:[#allocation68_spill] sm:$0xff] %v10034_v63 }
 0x381   : > { %v1671_v6 = vpop.f32.mrf.mxu0 }
 0x383   : > { %v10036_v47 = vpop.f32.mrf.mxu0 }
 0x384   : > { %13391 = vst [vmem:[#allocation69_spill] sm:$0xff] %v10036_v47 }
 0x385   : > { %v1675_v56 = vpop.f32.mrf.mxu0 }
 0x386   : > { %v1720_v15 = vpack.c.bf16 %v1675_v56, %v1671_v6  ;;  %v1709_v56 = vpack.c.bf16 %v9980_v5, %v9976_v36 }
 0x387   : > { %v10038_v1 = vpop.f32.mrf.mxu0 }
 0x388   : > { %13392 = vst [vmem:[#allocation70_spill] sm:$0xff] %v10038_v1 }
 0x389   : > { %v1681_v20 = vpop.f32.mrf.mxu0 }
 0x38b   : > { %v10040_v38 = vpop.f32.mrf.mxu0 }
 0x38c   : > { %13393 = vst [vmem:[#allocation71_spill] sm:$0xff] %v10040_v38  ;;  %v1714_v38 = vpack.c.bf16 %v1615_v55, %v1611_v59  ;;  %v13408_v59 = vld [vmem:[#allocation21_spill] sm:$0xff] }
 0x38d   : > { %v1685_v18 = vpop.f32.mrf.mxu0 }
 0x38e   : > { %v1721_v1 = vpack.c.bf16 %v1685_v18, %v1681_v20  ;;  %v1717_v18 = vpack.c.bf16 %v1645_v58, %v1641_v3  ;;  %v1885_v3 = vmul.f32 %v9966_v2, %v13408_v59  ;;  %v13411_v20 = vld [vmem:[#allocation46_spill] sm:$0xff] }
 0x38f   : > { %v10042_v57 = vpop.f32.mrf.mxu0 }
 0x390   : > { %13394 = vst [vmem:[#allocation72_spill] sm:$0xff] %v10042_v57  ;;  %v1713_v57 = vpack.c.bf16 %v1605_v53, %v1601_v12 }
 0x391   : > { %v1691_v11 = vpop.f32.mrf.mxu0 }
 0x393   : > { %v10044_v54 = vpop.f32.mrf.mxu0 }
 0x394   : > { %13395 = vst [vmem:[#allocation73_spill] sm:$0xff] %v10044_v54  ;;  %v1719_v54 = vpack.c.bf16 %v1665_v34, %v1661_v19  ;;  %v8658_v34 = vld [vmem:[%s13100_s5 + $0x170] ss:$8 sps:$4 sm:$0xff]   ;;  %v1708_v19 = vpack.c.bf16 %v9972_v42, %v9968_v49 }
 0x395   : > { %v1695_v14 = vpop.f32.mrf.mxu0  ;;  %v13409_v42 = vld [vmem:[#allocation45_spill] sm:$0xff] }
 0x396   : > { %v1722_v62 = vpack.c.bf16 %v1695_v14, %v1691_v11  ;;  %v1718_v11 = vpack.c.bf16 %v1655_v41, %v1651_v37  ;;  %v8664_v41 = vld [vmem:[%s13100_s5 + $0x150] ss:$8 sps:$4 sm:$0xff]   ;;  %v8667_v37 = vld [vmem:[%s13100_s5 + $0x140] ss:$8 sps:$4 sm:$0xff]  }
 0x397   : > { %v10046_v48 = vpop.f32.mrf.mxu0 }
 0x398   : > { %13396 = vst [vmem:[#allocation74_spill] sm:$0xff] %v10046_v48  ;;  %v1712_v48 = vpack.c.bf16 %v1595_v40, %v10000_v44  ;;  %v13413_v40 = vld [vmem:[#allocation47_spill] sm:$0xff] }
 0x399   : > { %v1701_v26 = vpop.f32.mrf.mxu0 }
 0x39b   : > { %v10048_v63 = vpop.f32.mrf.mxu0 }
 0x39d   : > { %v1705_v39 = vpop.f32.mrf.mxu0 }
 0x39e   : > { %v1723_v47 = vpack.c.bf16 %v1705_v39, %v1701_v26  ;;  %v1711_v39 = vpack.c.bf16 %v9996_v9, %v9992_v50 }
 0x3a0   : > { %7767 = vmatprep.subr.bf16.mxu1 %v1723_v47  ;;  %v8663_v47 = vld [vmem:[%s13100_s5 + $0x164] ss:$8 sps:$4 sm:$0xff]  }
 0x3a1   : > { %7768 = vmatpush3.bf16.msra.mxu1 %v1715_v43  ;;  %v1886_v43 = vmul.f32 %v13409_v42, %v9789_v60 }
 0x3a2   : > { %7769 = vmatprep.subr.bf16.mxu1 %v1722_v62  ;;  %v1710_v62 = vpack.c.bf16 %v9988_v4, %v9984_v8  ;;  %v13410_v8 = vld [vmem:[#allocation23_spill] sm:$0xff] }
 0x3a3   : > { %v1887_v4 = vmul.f32 %v13411_v20, %v13410_v8 }
 0x3a5   : > { %7770 = vmatpush3.bf16.msra.mxu1 %v1714_v38  ;;  %v1716_v38 = vpack.c.bf16 %v1635_v61, %v10018_v52  ;;  %v8661_v52 = vld [vmem:[%s13100_s5 + $0x160] ss:$8 sps:$4 sm:$0xff]  }
 0x3a6   : > { %7771 = vmatprep.subr.bf16.mxu1 %v1721_v1  ;;  %v10150_v61 = vld [vmem:[%s13101_s6 + $0x1] ss:$0 sm:$0xff]  ;;  %v13412_v1 = vld [vmem:[#allocation24_spill] sm:$0xff] }
 0x3a9   : > { %7772 = vmatpush3.bf16.msra.mxu1 %v1713_v57 }
 0x3aa   : > { %7773 = vmatprep.subr.bf16.mxu1 %v1720_v15 }
 0x3ad   : > { %7774 = vmatpush3.bf16.msra.mxu1 %v1712_v48 }
 0x3ae   : > { %7775 = vmatprep.subr.bf16.mxu1 %v1719_v54  ;;  %v8660_v54 = vld [vmem:[%s13100_s5 + $0x174] ss:$8 sps:$4 sm:$0xff]  }
 0x3af   : > { %2166 = vmatprep.subr.bf16.mxu0 %v8660_v54 }
 0x3b0   : > { %2167 = vmatpush1.bf16.msra.mxu0 %v8658_v34 }
 0x3b1   : > { %7776 = vmatpush3.bf16.msra.mxu1 %v1711_v39  ;;  %2168 = vmatprep.subr.bf16.mxu0 %v8663_v47  ;;  %v1888_v39 = vmul.f32 %v13413_v40, %v13412_v1 }
 0x3b2   : > { %7777 = vmatprep.subr.bf16.mxu1 %v1718_v11 }
 0x3b4   : > { %2169 = vmatpush1.bf16.msra.mxu0 %v8661_v52 }
 0x3b5   : > { %7778 = vmatpush3.bf16.msra.mxu1 %v1710_v62  ;;  %2170 = vmatprep.subr.bf16.mxu0 %v8666_v46  ;;  %v8987_v62 = vld [vmem:[%s9232_s25] sm:$0xff] }
 0x3b6   : > { %7779 = vmatprep.subr.bf16.mxu1 %v1717_v18 }
 0x3b8   : > { %2171 = vmatpush1.bf16.msra.mxu0 %v8664_v41  ;;  %v13414_v41 = vld [vmem:[#allocation25_spill] sm:$0xff] }
 0x3b9   : > { %7780 = vmatpush3.bf16.msra.mxu1 %v1709_v56  ;;  %2172 = vmatprep.subr.bf16.mxu0 %v8669_v51  ;;  %v8988_v56 = vld [vmem:[%s9232_s25 + $0x8] sm:$0xff]  ;;  %v13415_v51 = vld [vmem:[#allocation48_spill] sm:$0xff] }
 0x3ba   : > { %7781 = vmatprep.subr.bf16.mxu1 %v1716_v38 }
 0x3bc   : > { %2173 = vmatpush1.bf16.msra.mxu0 %v8667_v37  ;;  %v1889_v37 = vmul.f32 %v13415_v51, %v13414_v41  ;;  %v13426_v51 = vld [vmem:[#allocation53_spill] sm:$0xff] }
 0x3bd   : > { %7782 = vmatpush3.bf16.msra.mxu1 %v1708_v19 }
 0x3c0   : > { %1757 = vmatmul.mubr.bf16.vlgmr.msra.gmra.mxu1 %v9565_v45  ;;  %v8672_v45 = vld [vmem:[%s13100_s5 + $0x134] ss:$8 sps:$4 sm:$0xff]  }
 0x3c1   : > { %1764 = vmatprep.mubr.bf16.mxu1 %v9573_v35  ;;  %v8670_v35 = vld [vmem:[%s13100_s5 + $0x130] ss:$8 sps:$4 sm:$0xff]   ;;  %2174 = vmatprep.subr.bf16.mxu0 %v8672_v45 }
 0x3c2   : > { %2175 = vmatpush1.bf16.msra.mxu0 %v8670_v35 }
 0x3c8   : > { %1765 = vmatmul.mubr.bf16.gmra.mxu1 %v9589_v7  ;;  %v8675_v7 = vld [vmem:[%s13100_s5 + $0x124] ss:$8 sps:$4 sm:$0xff]  }
 0x3c9   : > { %1772 = vmatprep.mubr.bf16.mxu1 %v9594_v10  ;;  %v8673_v10 = vld [vmem:[%s13100_s5 + $0x120] ss:$8 sps:$4 sm:$0xff]   ;;  %2176 = vmatprep.subr.bf16.mxu0 %v8675_v7 }
 0x3ca   : > { %2177 = vmatpush1.bf16.msra.mxu0 %v8673_v10 }
 0x3d0   : > { %1773 = vmatmul.mubr.bf16.gmra.mxu1 %v9601_v13  ;;  %v8678_v13 = vld [vmem:[%s13100_s5 + $0x114] ss:$8 sps:$4 sm:$0xff]  }
 0x3d1   : > { %1780 = vmatprep.mubr.bf16.mxu1 %v9606_v17  ;;  %v8676_v17 = vld [vmem:[%s13100_s5 + $0x110] ss:$8 sps:$4 sm:$0xff]   ;;  %2178 = vmatprep.subr.bf16.mxu0 %v8678_v13  ;;  %v13416_v13 = vmov 0  }
 0x3d2   : > { %2179 = vmatpush1.bf16.msra.mxu0 %v8676_v17 }
 0x3d8   : > { %1781 = vmatmul.mubr.bf16.gmra.mxu1 %v9613_v21  ;;  %v8681_v21 = vld [vmem:[%s13100_s5 + $0x104] ss:$8 sps:$4 sm:$0xff]  }
 0x3d9   : > { %1788 = vmatprep.mubr.bf16.mxu1 %v9618_v22  ;;  %v8679_v22 = vld [vmem:[%s13100_s5 + $0x100] ss:$8 sps:$4 sm:$0xff]   ;;  %2180 = vmatprep.subr.bf16.mxu0 %v8681_v21 }
 0x3da   : > { %2181 = vmatpush1.bf16.msra.mxu0 %v8679_v22  ;;  %v13417_v22 = vld [vmem:[#allocation26_spill] sm:$0xff] }
 0x3e0   : > { %1789 = vmatmul.mubr.bf16.gmra.mxu1 %v9625_v25  ;;  %v13397_v25 = vld [vmem:[#allocation10_spill] sm:$0xff] }
 0x3e1   : > { %1796 = vmatprep.mubr.bf16.mxu1 %v9630_v28  ;;  %v13398_v28 = vld [vmem:[#allocation11_spill] sm:$0xff] }
 0x3e8   : > { %1797 = vmatmul.mubr.bf16.gmra.mxu1 %v9637_v29  ;;  %v13399_v29 = vld [vmem:[#allocation12_spill] sm:$0xff] }
 0x3e9   : > { %1804 = vmatprep.mubr.bf16.mxu1 %v9642_v30  ;;  %v13400_v30 = vld [vmem:[#allocation13_spill] sm:$0xff] }
 0x3f0   : > { %1805 = vmatmul.mubr.bf16.gmra.mxu1 %v9649_v33  ;;  %v13401_v33 = vld [vmem:[#allocation14_spill] sm:$0xff] }
 0x3f1   : > { %1812 = vmatprep.mubr.bf16.mxu1 %v9654_v16  ;;  %v13402_v16 = vld [vmem:[#allocation15_spill] sm:$0xff] }
 0x3f8   : > { %1813 = vmatmul.mubr.bf16.gmra.mxu1 %v9661_v23  ;;  %v13403_v23 = vld [vmem:[#allocation16_spill] sm:$0xff] }
 0x3f9   : > { %1820 = vmatprep.mubr.bf16.mxu1 %v9666_v27  ;;  %v13404_v27 = vld [vmem:[#allocation17_spill] sm:$0xff] }
 0x400   : > { %1821 = vmatmul.mubr.bf16.gmra.mxu1 %v9673_v31  ;;  %v13405_v31 = vld [vmem:[#allocation18_spill] sm:$0xff] }
 0x401   : > { %1828 = vmatprep.mubr.bf16.mxu1 %v9678_v32  ;;  %v13406_v32 = vld [vmem:[#allocation19_spill] sm:$0xff] }
 0x408   : > { %1829 = vmatmul.mubr.bf16.gmra.mxu1 %v9694_v24  ;;  %v13407_v24 = vld [vmem:[#allocation20_spill] sm:$0xff] }
 0x409   : > { %1836 = vmatprep.mubr.bf16.mxu1 %v9702_v0  ;;  %v10142_v0 = vld [vmem:[%s13097_s2 + $0x4] ss:$8 sps:$4 sm:$0xff]  }
 0x410   : > { %1837 = vmatmul.mubr.bf16.gmra.mxu1 %v13397_v25  ;;  %v13418_v25 = vld [vmem:[#allocation49_spill] sm:$0xff] }
 0x411   : > { %1844 = vmatprep.mubr.bf16.mxu1 %v13398_v28  ;;  %v1890_v28 = vmul.f32 %v13418_v25, %v13417_v22 }
 0x418   : > { %1845 = vmatmul.mubr.bf16.gmra.mxu1 %v13399_v29 }
 0x419   : > { %1852 = vmatprep.mubr.bf16.mxu1 %v13400_v30  ;;  %v8989_v30 = vld [vmem:[%s9232_s25 + $0x10] sm:$0xff] }
 0x420   : > { %1853 = vmatmul.mubr.bf16.gmra.mxu1 %v13401_v33 }
 0x421   : > { %1860 = vmatprep.mubr.bf16.mxu1 %v13402_v16  ;;  %v8990_v16 = vld [vmem:[%s9232_s25 + $0x18] sm:$0xff] }
 0x428   : > { %1861 = vmatmul.mubr.bf16.gmra.mxu1 %v13403_v23 }
 0x429   : > { %1868 = vmatprep.mubr.bf16.mxu1 %v13404_v27 }
 0x430   : > { %1869 = vmatmul.mubr.bf16.gmra.mxu1 %v13405_v31 }
 0x431   : > { %1876 = vmatprep.mubr.bf16.mxu1 %v13406_v32 }
 0x438   : > { %1877 = vmatmul.mubr.bf16.gmra.mxu1 %v13407_v24 }
 0x439   : > { %2407 = vmatprep.mubr.bf16.mxu1 %v10142_v0 }
 0x480   : > { %v7783_v55 = vpop.f32.mrf.mxu1 }
 0x482   : > { %v7784_v58 = vpop.f32.mrf.mxu1 }
 0x483   : > { %v7785_v53 = vadd.f32 %v7784_v58, %v7783_v55 }
 0x484   : > { %v7786_v12 = vpop.f32.mrf.mxu1 }
 0x485   : > { %v1917_v49 = vadd.f32 %v7785_v53, %v1885_v3  ;;  %v13419_v3 = vld [vmem:[#allocation27_spill] sm:$0xff]  ;;  %v13420_v53 = vld [vmem:[#allocation50_spill] sm:$0xff] }
 0x486   : > { %v7787_v15 = vpop.f32.mrf.mxu1 }
 0x487   : > { %v1957_v36 = vadd.f32 %v10150_v61, %v1917_v49  ;;  %v7788_v26 = vadd.f32 %v7787_v15, %v7786_v12  ;;  %v1891_v12 = vmul.f32 %v13420_v53, %v13419_v3 }
 0x488   : > { %v7789_v5 = vpop.f32.mrf.mxu1 }
 0x489   : > { %v1918_v14 = vadd.f32 %v7788_v26, %v1886_v43  ;;  %v1989_v6 = vmax.f32 %v1957_v36, 0.0 }
 0x48a   : > { %v7790_v2 = vpop.f32.mrf.mxu1 }
 0x48b   : > { %v1958_v50 = vadd.f32 %v10150_v61, %v1918_v14  ;;  %v7791_v48 = vadd.f32 %v7790_v2, %v7789_v5  ;;  %v2021_v18 = vadd.f32 %v8987_v62, %v1989_v6  ;;  %v13421_v5 = vld [vmem:[#allocation28_spill] sm:$0xff]  ;;  %v13422_v14 = vld [vmem:[#allocation51_spill] sm:$0xff]  ;;  %v13423_v62 = vld [vmem:[#allocation29_spill] sm:$0xff] }
 0x48c   : > { %v7792_v9 = vpop.f32.mrf.mxu1  ;;  %v1892_v2 = vmul.f32 %v13422_v14, %v13421_v5 }
 0x48d   : > { %v1990_v57 = vmax.f32 %v1958_v50, 0.0  ;;  %v1919_v44 = vadd.f32 %v7791_v48, %v1887_v4  ;;  %v8991_v4 = vld [vmem:[%s9232_s25 + $0x20] sm:$0xff]  ;;  %v8992_v50 = vld [vmem:[%s9232_s25 + $0x28] sm:$0xff] }
 0x48e   : > { %v7793_v11 = vpop.f32.mrf.mxu1 }
 0x48f   : > { %v2022_v38 = vadd.f32 %v8988_v56, %v1990_v57  ;;  %v1959_v34 = vadd.f32 %v10150_v61, %v1919_v44  ;;  %v7794_v54 = vadd.f32 %v7793_v11, %v7792_v9 }
 0x490   : > { %v7795_v47 = vpop.f32.mrf.mxu1 }
 0x491   : > { %v2070_v19 = vpack.c.bf16 %v2022_v38, %v2021_v18  ;;  %v1920_v52 = vadd.f32 %v7794_v54, %v1888_v39  ;;  %v1991_v45 = vmax.f32 %v1959_v34, 0.0  ;;  %v13424_v18 = vld [vmem:[#allocation52_spill] sm:$0xff] }
 0x492   : > { %v7796_v46 = vpop.f32.mrf.mxu1  ;;  %v1893_v56 = vmul.f32 %v13424_v18, %v13423_v62 }
 0x493   : > { %v1960_v35 = vadd.f32 %v10150_v61, %v1920_v52  ;;  %v7797_v7 = vadd.f32 %v7796_v46, %v7795_v47  ;;  %2199 = vmatmul.mubr.bf16.vlgmr.msra.gmra.mxu0 %v2070_v19  ;;  %v2023_v33 = vadd.f32 %v8989_v30, %v1991_v45  ;;  %v13425_v46 = vld [vmem:[#allocation30_spill] sm:$0xff] }
 0x494   : > { %v7798_v10 = vpop.f32.mrf.mxu1  ;;  %2208 = vmatprep.mubr.bf16.mxu0 %v13416_v13 }
 0x495   : > { %v1992_v17 = vmax.f32 %v1960_v35, 0.0  ;;  %v1921_v21 = vadd.f32 %v7797_v7, %v1889_v37  ;;  %v1894_v37 = vmul.f32 %v13426_v51, %v13425_v46  ;;  %v8993_v35 = vld [vmem:[%s9232_s25 + $0x30] sm:$0xff] }
 0x496   : > { %v7799_v29 = vpop.f32.mrf.mxu1 }
 0x497   : > { %v2024_v23 = vadd.f32 %v8990_v16, %v1992_v17  ;;  %v1961_v27 = vadd.f32 %v10150_v61, %v1921_v21  ;;  %v7800_v31 = vadd.f32 %v7799_v29, %v7798_v10  ;;  %v8994_v10 = vld [vmem:[%s9232_s25 + $0x38] sm:$0xff]  ;;  %v13427_v16 = vld [vmem:[#allocation31_spill] sm:$0xff] }
 0x498   : > { %v7801_v32 = vpop.f32.mrf.mxu1 }
 0x499   : > { %v1922_v24 = vadd.f32 %v7800_v31, %v1890_v28  ;;  %v2071_v55 = vpack.c.bf16 %v2024_v23, %v2023_v33  ;;  %v1993_v49 = vmax.f32 %v1961_v27, 0.0  ;;  %v13428_v23 = vld [vmem:[#allocation54_spill] sm:$0xff] }
 0x49a   : > { %v7802_v58 = vpop.f32.mrf.mxu1  ;;  %v1895_v27 = vmul.f32 %v13428_v23, %v13427_v16 }
 0x49b   : > { %v1962_v15 = vadd.f32 %v10150_v61, %v1922_v24  ;;  %v7803_v42 = vadd.f32 %v7802_v58, %v7801_v32  ;;  %2209 = vmatmul.mubr.bf16.gmra.mxu0 %v2071_v55  ;;  %v2025_v6 = vadd.f32 %v8991_v4, %v1993_v49  ;;  %v13430_v49 = vld [vmem:[#allocation55_spill] sm:$0xff] }
 0x49c   : > { %v7804_v43 = vpop.f32.mrf.mxu1  ;;  %2218 = vmatprep.mubr.bf16.mxu0 %v13416_v13 }
 0x49d   : > { %v1994_v36 = vmax.f32 %v1962_v15, 0.0  ;;  %v1923_v26 = vadd.f32 %v7803_v42, %v1891_v12  ;;  %v13429_v12 = vld [vmem:[#allocation32_spill] sm:$0xff] }
 0x49e   : > { %v7805_v20 = vpop.f32.mrf.mxu1  ;;  %v1896_v15 = vmul.f32 %v13430_v49, %v13429_v12 }
 0x49f   : > { %v2026_v48 = vadd.f32 %v8992_v50, %v1994_v36  ;;  %v1963_v9 = vadd.f32 %v10150_v61, %v1923_v26  ;;  %v7806_v57 = vadd.f32 %v7805_v20, %v7804_v43  ;;  %v8995_v43 = vld [vmem:[%s9232_s25 + $0x40] sm:$0xff]  ;;  %v8996_v26 = vld [vmem:[%s9232_s25 + $0x48] sm:$0xff] }
 0x4a0   : > { %v7807_v44 = vpop.f32.mrf.mxu1 }
 0x4a1   : > { %v1924_v40 = vadd.f32 %v7806_v57, %v1892_v2  ;;  %v2072_v39 = vpack.c.bf16 %v2026_v48, %v2025_v6  ;;  %v1995_v38 = vmax.f32 %v1963_v9, 0.0  ;;  %v13431_v9 = vld [vmem:[#allocation33_spill] sm:$0xff]  ;;  %v13432_v57 = vld [vmem:[#allocation56_spill] sm:$0xff] }
 0x4a2   : > { %v7808_v11 = vpop.f32.mrf.mxu1 }
 0x4a3   : > { %v1964_v34 = vadd.f32 %v10150_v61, %v1924_v40  ;;  %v7809_v54 = vadd.f32 %v7808_v11, %v7807_v44  ;;  %2219 = vmatmul.mubr.bf16.gmra.mxu0 %v2072_v39  ;;  %v2027_v7 = vadd.f32 %v8993_v35, %v1995_v38  ;;  %v1897_v44 = vmul.f32 %v13432_v57, %v13431_v9 }
 0x4a4   : > { %v7810_v47 = vpop.f32.mrf.mxu1  ;;  %2228 = vmatprep.mubr.bf16.mxu0 %v13416_v13 }
 0x4a5   : > { %v1996_v19 = vmax.f32 %v1964_v34, 0.0  ;;  %v1925_v52 = vadd.f32 %v7809_v54, %v1893_v56  ;;  %v13433_v34 = vld [vmem:[#allocation34_spill] sm:$0xff]  ;;  %v13434_v54 = vld [vmem:[#allocation57_spill] sm:$0xff] }
 0x4a6   : > { %v7811_v45 = vpop.f32.mrf.mxu1 }
 0x4a7   : > { %v2028_v17 = vadd.f32 %v8994_v10, %v1996_v19  ;;  %v1965_v21 = vadd.f32 %v10150_v61, %v1925_v52  ;;  %v7812_v25 = vadd.f32 %v7811_v45, %v7810_v47  ;;  %v1898_v47 = vmul.f32 %v13434_v54, %v13433_v34  ;;  %v8997_v52 = vld [vmem:[%s9232_s25 + $0x50] sm:$0xff]  ;;  %v13442_v54 = vld [vmem:[#allocation61_spill] sm:$0xff] }
 0x4a8   : > { %v7813_v28 = vpop.f32.mrf.mxu1 }
 0x4a9   : > { %v1926_v29 = vadd.f32 %v7812_v25, %v1894_v37  ;;  %v2073_v30 = vpack.c.bf16 %v2028_v17, %v2027_v7  ;;  %v1997_v31 = vmax.f32 %v1965_v21, 0.0  ;;  %v8998_v37 = vld [vmem:[%s9232_s25 + $0x58] sm:$0xff] }
 0x4aa   : > { %v7814_v33 = vpop.f32.mrf.mxu1 }
 0x4ab   : > { %v1966_v32 = vadd.f32 %v10150_v61, %v1926_v29  ;;  %v7815_v24 = vadd.f32 %v7814_v33, %v7813_v28  ;;  %2229 = vmatmul.mubr.bf16.gmra.mxu0 %v2073_v30  ;;  %v2029_v36 = vadd.f32 %v8995_v43, %v1997_v31  ;;  %v13435_v28 = vld [vmem:[#allocation35_spill] sm:$0xff]  ;;  %v13436_v29 = vld [vmem:[#allocation58_spill] sm:$0xff] }
 0x4ac   : > { %v7816_v55 = vpop.f32.mrf.mxu1  ;;  %2238 = vmatprep.mubr.bf16.mxu0 %v13416_v13  ;;  %v1899_v30 = vmul.f32 %v13436_v29, %v13435_v28  ;;  %v9000_v43 = vld [vmem:[%s9232_s25 + $0x68] sm:$0xff] }
 0x4ad   : > { %v1998_v58 = vmax.f32 %v1966_v32, 0.0  ;;  %v1927_v53 = vadd.f32 %v7815_v24, %v1895_v27  ;;  %v13443_v29 = vld [vmem:[#allocation39_spill] sm:$0xff] }
 0x4ae   : > { %v7817_v42 = vpop.f32.mrf.mxu1 }
 0x4af   : > { %v2030_v14 = vadd.f32 %v8996_v26, %v1998_v58  ;;  %v1967_v2 = vadd.f32 %v10150_v61, %v1927_v53  ;;  %v7818_v20 = vadd.f32 %v7817_v42, %v7816_v55  ;;  %v13437_v55 = vld [vmem:[#allocation36_spill] sm:$0xff]  ;;  %v13438_v58 = vld [vmem:[#allocation59_spill] sm:$0xff] }
 0x4b0   : > { %v7819_v4 = vpop.f32.mrf.mxu1  ;;  %v1900_v53 = vmul.f32 %v13438_v58, %v13437_v55 }
 0x4b1   : > { %v1928_v6 = vadd.f32 %v7818_v20, %v1896_v15  ;;  %v2074_v50 = vpack.c.bf16 %v2030_v14, %v2029_v36  ;;  %v1999_v40 = vmax.f32 %v1967_v2, 0.0  ;;  %v8999_v15 = vld [vmem:[%s9232_s25 + $0x60] sm:$0xff] }
 0x4b2   : > { %v7820_v48 = vpop.f32.mrf.mxu1 }
 0x4b3   : > { %v1968_v39 = vadd.f32 %v10150_v61, %v1928_v6  ;;  %v7821_v11 = vadd.f32 %v7820_v48, %v7819_v4  ;;  %2239 = vmatmul.mubr.bf16.gmra.mxu0 %v2074_v50  ;;  %v2031_v51 = vadd.f32 %v8997_v52, %v1999_v40  ;;  %v13439_v50 = vld [vmem:[#allocation37_spill] sm:$0xff]  ;;  %v13440_v48 = vld [vmem:[#allocation60_spill] sm:$0xff] }
 0x4b4   : > { %v7822_v18 = vpop.f32.mrf.mxu1  ;;  %2248 = vmatprep.mubr.bf16.mxu0 %v13416_v13  ;;  %v1901_v57 = vmul.f32 %v13440_v48, %v13439_v50  ;;  %v9001_v52 = vld [vmem:[%s9232_s25 + $0x70] sm:$0xff] }
 0x4b5   : > { %v2000_v56 = vmax.f32 %v1968_v39, 0.0  ;;  %v1929_v38 = vadd.f32 %v7821_v11, %v1897_v44 }
 0x4b6   : > { %v7823_v19 = vpop.f32.mrf.mxu1 }
 0x4b7   : > { %v2032_v45 = vadd.f32 %v8998_v37, %v2000_v56  ;;  %v1969_v35 = vadd.f32 %v10150_v61, %v1929_v38  ;;  %v7824_v7 = vadd.f32 %v7823_v19, %v7822_v18  ;;  %v13441_v38 = vld [vmem:[#allocation38_spill] sm:$0xff]  ;;  %v9002_v37 = vld [vmem:[%s9232_s25 + $0x78] sm:$0xff] }
 0x4b8   : > { %v7825_v10 = vpop.f32.mrf.mxu1 }
 0x4b9   : > { %v1930_v17 = vadd.f32 %v7824_v7, %v1898_v47  ;;  %v2075_v21 = vpack.c.bf16 %v2032_v45, %v2031_v51  ;;  %v2001_v33 = vmax.f32 %v1969_v35, 0.0  ;;  %v1902_v47 = vmul.f32 %v13442_v54, %v13441_v38 }
 0x4ba   : > { %v7826_v25 = vpop.f32.mrf.mxu1 }
 0x4bb   : > { %v1970_v23 = vadd.f32 %v10150_v61, %v1930_v17  ;;  %v7827_v27 = vadd.f32 %v7826_v25, %v7825_v10  ;;  %2249 = vmatmul.mubr.bf16.gmra.mxu0 %v2075_v21  ;;  %v2033_v42 = vadd.f32 %v8999_v15, %v2001_v33 }
 0x4bc   : > { %v7828_v31 = vpop.f32.mrf.mxu1  ;;  %2258 = vmatprep.mubr.bf16.mxu0 %v13416_v13 }
 0x4bd   : > { %v2002_v32 = vmax.f32 %v1970_v23, 0.0  ;;  %v1931_v24 = vadd.f32 %v7827_v27, %v1899_v30  ;;  %v13444_v30 = vld [vmem:[#allocation62_spill] sm:$0xff] }
 0x4be   : > { %v7829_v49 = vpop.f32.mrf.mxu1  ;;  %v1903_v33 = vmul.f32 %v13444_v30, %v13443_v29 }
 0x4bf   : > { %v2034_v36 = vadd.f32 %v9000_v43, %v2002_v32  ;;  %v1971_v26 = vadd.f32 %v10150_v61, %v1931_v24  ;;  %v7830_v14 = vadd.f32 %v7829_v49, %v7828_v31  ;;  %v13446_v49 = vld [vmem:[#allocation63_spill] sm:$0xff]  ;;  %v9003_v43 = vld [vmem:[%s9232_s25 + $0x80] sm:$0xff] }
 0x4c0   : > { %v7831_v2 = vpop.f32.mrf.mxu1 }
 0x4c1   : > { %v1932_v20 = vadd.f32 %v7830_v14, %v1900_v53  ;;  %v2076_v4 = vpack.c.bf16 %v2034_v36, %v2033_v42  ;;  %v2003_v44 = vmax.f32 %v1971_v26, 0.0  ;;  %v13445_v53 = vld [vmem:[#allocation40_spill] sm:$0xff]  ;;  %v9004_v26 = vld [vmem:[%s9232_s25 + $0x88] sm:$0xff] }
 0x4c2   : > { %v7832_v6 = vpop.f32.mrf.mxu1  ;;  %v1904_v15 = vmul.f32 %v13446_v49, %v13445_v53 }
 0x4c3   : > { %v1972_v40 = vadd.f32 %v10150_v61, %v1932_v20  ;;  %v7833_v39 = vadd.f32 %v7832_v6, %v7831_v2  ;;  %2259 = vmatmul.mubr.bf16.gmra.mxu0 %v2076_v4  ;;  %v2035_v51 = vadd.f32 %v9001_v52, %v2003_v44  ;;  %v13447_v44 = vld [vmem:[#allocation41_spill] sm:$0xff]  ;;  %v13449_v52 = vld [vmem:[#allocation42_spill] sm:$0xff] }
 0x4c4   : > { %v7834_v11 = vpop.f32.mrf.mxu1  ;;  %2268 = vmatprep.mubr.bf16.mxu0 %v13416_v13 }
 0x4c5   : > { %v2004_v18 = vmax.f32 %v1972_v40, 0.0  ;;  %v1933_v56 = vadd.f32 %v7833_v39, %v1901_v57  ;;  %v13448_v40 = vld [vmem:[#allocation64_spill] sm:$0xff] }
 0x4c6   : > { %v7835_v19 = vpop.f32.mrf.mxu1  ;;  %v1905_v39 = vmul.f32 %v13448_v40, %v13447_v44 }
 0x4c7   : > { %v2036_v45 = vadd.f32 %v9002_v37, %v2004_v18  ;;  %v1973_v35 = vadd.f32 %v10150_v61, %v1933_v56  ;;  %v7836_v7 = vadd.f32 %v7835_v19, %v7834_v11 }
 0x4c8   : > { %v7837_v10 = vpop.f32.mrf.mxu1 }
 0x4c9   : > { %v1934_v17 = vadd.f32 %v7836_v7, %v1902_v47  ;;  %v2077_v21 = vpack.c.bf16 %v2036_v45, %v2035_v51  ;;  %v2005_v23 = vmax.f32 %v1973_v35, 0.0  ;;  %v13450_v51 = vld [vmem:[#allocation65_spill] sm:$0xff]  ;;  %v9005_v35 = vld [vmem:[%s9232_s25 + $0x90] sm:$0xff] }
 0x4ca   : > { %v7838_v25 = vpop.f32.mrf.mxu1  ;;  %v1906_v37 = vmul.f32 %v13450_v51, %v13449_v52 }
 0x4cb   : > { %v1974_v27 = vadd.f32 %v10150_v61, %v1934_v17  ;;  %v7839_v31 = vadd.f32 %v7838_v25, %v7837_v10  ;;  %2269 = vmatmul.mubr.bf16.gmra.mxu0 %v2077_v21  ;;  %v2037_v36 = vadd.f32 %v9003_v43, %v2005_v23  ;;  %v9006_v10 = vld [vmem:[%s9232_s25 + $0x98] sm:$0xff] }
 0x4cc   : > { %v7840_v32 = vpop.f32.mrf.mxu1  ;;  %2278 = vmatprep.mubr.bf16.mxu0 %v13416_v13 }
 0x4cd   : > { %v2006_v24 = vmax.f32 %v1974_v27, 0.0  ;;  %v1935_v58 = vadd.f32 %v7839_v31, %v1903_v33  ;;  %v13451_v31 = vld [vmem:[#allocation43_spill] sm:$0xff] }
 0x4ce   : > { %v7841_v42 = vpop.f32.mrf.mxu1 }
 0x4cf   : > { %v2038_v14 = vadd.f32 %v9004_v26, %v2006_v24  ;;  %v1975_v2 = vadd.f32 %v10150_v61, %v1935_v58  ;;  %v7842_v20 = vadd.f32 %v7841_v42, %v7840_v32  ;;  %v13452_v32 = vld [vmem:[#allocation66_spill] sm:$0xff] }
 0x4d0   : > { %v7843_v4 = vpop.f32.mrf.mxu1  ;;  %v1907_v24 = vmul.f32 %v13452_v32, %v13451_v31  ;;  %v13453_v26 = vld [vmem:[#allocation2_spill] sm:$0xff]  ;;  %v9010_v32 = vld [vmem:[%s9232_s25 + $0xb8] sm:$0xff] }
 0x4d1   : > { %v1936_v6 = vadd.f32 %v7842_v20, %v1904_v15  ;;  %v2078_v48 = vpack.c.bf16 %v2038_v14, %v2037_v36  ;;  %v2007_v11 = vmax.f32 %v1975_v2, 0.0  ;;  %v13454_v14 = vld [vmem:[#allocation67_spill] sm:$0xff] }
 0x4d2   : > { %v7844_v57 = vpop.f32.mrf.mxu1  ;;  %v1908_v2 = vmul.f32 %v13454_v14, %v13453_v26  ;;  %v13459_v14 = vld [vmem:[#allocation5_spill] sm:$0xff] }
 0x4d3   : > { %v1976_v18 = vadd.f32 %v10150_v61, %v1936_v6  ;;  %v7845_v56 = vadd.f32 %v7844_v57, %v7843_v4  ;;  %2279 = vmatmul.mubr.bf16.gmra.mxu0 %v2078_v48  ;;  %v2039_v7 = vadd.f32 %v9005_v35, %v2007_v11  ;;  %v9007_v4 = vld [vmem:[%s9232_s25 + $0xa0] sm:$0xff]  ;;  %v9008_v48 = vld [vmem:[%s9232_s25 + $0xa8] sm:$0xff] }
 0x4d4   : > { %v7846_v54 = vpop.f32.mrf.mxu1  ;;  %2288 = vmatprep.mubr.bf16.mxu0 %v13416_v13 }
 0x4d5   : > { %v2008_v47 = vmax.f32 %v1976_v18, 0.0  ;;  %v1937_v19 = vadd.f32 %v7845_v56, %v1905_v39 }
 0x4d6   : > { %v7847_v45 = vpop.f32.mrf.mxu1 }
 0x4d7   : > { %v2040_v17 = vadd.f32 %v9006_v10, %v2008_v47  ;;  %v1977_v21 = vadd.f32 %v10150_v61, %v1937_v19  ;;  %v7848_v25 = vadd.f32 %v7847_v45, %v7846_v54  ;;  %v13455_v47 = vld [vmem:[#allocation3_spill] sm:$0xff]  ;;  %v13456_v19 = vld [vmem:[#allocation68_spill] sm:$0xff] }
 0x4d8   : > { %v7849_v30 = vpop.f32.mrf.mxu1  ;;  %v1909_v51 = vmul.f32 %v13456_v19, %v13455_v47  ;;  %v9011_v19 = vld [vmem:[%s9232_s25 + $0xc0] sm:$0xff] }
 0x4d9   : > { %v1938_v33 = vadd.f32 %v7848_v25, %v1906_v37  ;;  %v2079_v23 = vpack.c.bf16 %v2040_v17, %v2039_v7  ;;  %v2009_v58 = vmax.f32 %v1977_v21, 0.0  ;;  %v13457_v21 = vld [vmem:[#allocation4_spill] sm:$0xff]  ;;  %v13458_v25 = vld [vmem:[#allocation69_spill] sm:$0xff] }
 0x4da   : > { %v7850_v27 = vpop.f32.mrf.mxu1 }
 0x4db   : > { %v1978_v49 = vadd.f32 %v10150_v61, %v1938_v33  ;;  %v7851_v15 = vadd.f32 %v7850_v27, %v7849_v30  ;;  %2289 = vmatmul.mubr.bf16.gmra.mxu0 %v2079_v23  ;;  %v2041_v6 = vadd.f32 %v9007_v4, %v2009_v58  ;;  %v1910_v30 = vmul.f32 %v13458_v25, %v13457_v21  ;;  %v9009_v23 = vld [vmem:[%s9232_s25 + $0xb0] sm:$0xff] }
 0x4dc   : > { %v7852_v42 = vpop.f32.mrf.mxu1  ;;  %2298 = vmatprep.mubr.bf16.mxu0 %v13416_v13 }
 0x4dd   : > { %v2010_v43 = vmax.f32 %v1978_v49, 0.0  ;;  %v1939_v36 = vadd.f32 %v7851_v15, %v1907_v24 }
 0x4de   : > { %v7853_v20 = vpop.f32.mrf.mxu1 }
 0x4df   : > { %v2042_v57 = vadd.f32 %v9008_v48, %v2010_v43  ;;  %v1979_v40 = vadd.f32 %v10150_v61, %v1939_v36  ;;  %v7854_v39 = vadd.f32 %v7853_v20, %v7852_v42 }
 0x4e0   : > { %v7855_v11 = vpop.f32.mrf.mxu1 }
 0x4e1   : > { %v1940_v18 = vadd.f32 %v7854_v39, %v1908_v2  ;;  %v2080_v56 = vpack.c.bf16 %v2042_v57, %v2041_v6  ;;  %v2011_v37 = vmax.f32 %v1979_v40, 0.0  ;;  %v13460_v2 = vld [vmem:[#allocation70_spill] sm:$0xff] }
 0x4e2   : > { %v7856_v54 = vpop.f32.mrf.mxu1  ;;  %v1911_v20 = vmul.f32 %v13460_v2, %v13459_v14 }
 0x4e3   : > { %v1980_v45 = vadd.f32 %v10150_v61, %v1940_v18  ;;  %v7857_v35 = vadd.f32 %v7856_v54, %v7855_v11  ;;  %2299 = vmatmul.mubr.bf16.gmra.mxu0 %v2080_v56  ;;  %v2043_v27 = vadd.f32 %v9009_v23, %v2011_v37  ;;  %v13461_v11 = vld [vmem:[#allocation6_spill] sm:$0xff]  ;;  %v13462_v18 = vld [vmem:[#allocation71_spill] sm:$0xff]  ;;  %v13464_v23 = vld [vmem:[#allocation72_spill] sm:$0xff] }
 0x4e4   : > { %v7858_v7 = vpop.f32.mrf.mxu1  ;;  %2308 = vmatprep.mubr.bf16.mxu0 %v13416_v13  ;;  %v1912_v56 = vmul.f32 %v13462_v18, %v13461_v11  ;;  %v9012_v37 = vld [vmem:[%s9232_s25 + $0xc8] sm:$0xff] }
 0x4e5   : > { %v2012_v10 = vmax.f32 %v1980_v45, 0.0  ;;  %v1941_v17 = vadd.f32 %v7857_v35, %v1909_v51 }
 0x4e6   : > { %v7859_v33 = vpop.f32.mrf.mxu1 }
 0x4e7   : > { %v2044_v24 = vadd.f32 %v9010_v32, %v2012_v10  ;;  %v1981_v58 = vadd.f32 %v10150_v61, %v1941_v17  ;;  %v7860_v49 = vadd.f32 %v7859_v33, %v7858_v7  ;;  %v13463_v33 = vld [vmem:[#allocation44_spill] sm:$0xff] }
 0x4e8   : > { %v7861_v15 = vpop.f32.mrf.mxu1 }
 0x4e9   : > { %v1942_v42 = vadd.f32 %v7860_v49, %v1910_v30  ;;  %v2081_v43 = vpack.c.bf16 %v2044_v24, %v2043_v27  ;;  %v2013_v4 = vmax.f32 %v1981_v58, 0.0  ;;  %v1913_v27 = vmul.f32 %v13464_v23, %v13463_v33  ;;  %v13469_v23 = vld [vmem:[#allocation9_spill] sm:$0xff] }
 0x4ea   : > { %v7862_v36 = vpop.f32.mrf.mxu1 }
 0x4eb   : > { %v1982_v6 = vadd.f32 %v10150_v61, %v1942_v42  ;;  %v7863_v48 = vadd.f32 %v7862_v36, %v7861_v15  ;;  %2309 = vmatmul.mubr.bf16.gmra.mxu0 %v2081_v43  ;;  %v2045_v51 = vadd.f32 %v9011_v19, %v2013_v4  ;;  %v13465_v43 = vld [vmem:[#allocation7_spill] sm:$0xff]  ;;  %v13466_v36 = vld [vmem:[#allocation73_spill] sm:$0xff]  ;;  %v9013_v4 = vld [vmem:[%s9232_s25 + $0xd0] sm:$0xff] }
 0x4ec   : > { %v7864_v57 = vpop.f32.mrf.mxu1  ;;  %2318 = vmatprep.mubr.bf16.mxu0 %v13416_v13  ;;  %v1914_v2 = vmul.f32 %v13466_v36, %v13465_v43 }
 0x4ed   : > { %v2014_v40 = vmax.f32 %v1982_v6, 0.0  ;;  %v1943_v39 = vadd.f32 %v7863_v48, %v1911_v20  ;;  %v9014_v48 = vld [vmem:[%s9232_s25 + $0xd8] sm:$0xff] }
 0x4ee   : > { %v7865_v54 = vpop.f32.mrf.mxu1 }
 0x4ef   : > { %v2046_v45 = vadd.f32 %v9012_v37, %v2014_v40  ;;  %v1983_v35 = vadd.f32 %v10150_v61, %v1943_v39  ;;  %v7866_v7 = vadd.f32 %v7865_v54, %v7864_v57  ;;  %v13468_v37 = vld [vmem:[#allocation74_spill] sm:$0xff] }
 0x4f0   : > { %v7867_v10 = vpop.f32.mrf.mxu1 }
 0x4f1   : > { %v1944_v17 = vadd.f32 %v7866_v7, %v1912_v56  ;;  %v2082_v25 = vpack.c.bf16 %v2046_v45, %v2045_v51  ;;  %v2015_v32 = vmax.f32 %v1983_v35, 0.0  ;;  %v13467_v51 = vld [vmem:[#allocation8_spill] sm:$0xff] }
 0x4f2   : > { %v7868_v30 = vpop.f32.mrf.mxu1  ;;  %v1915_v45 = vmul.f32 %v13468_v37, %v13467_v51 }
 0x4f3   : > { %v1984_v24 = vadd.f32 %v10150_v61, %v1944_v17  ;;  %v7869_v58 = vadd.f32 %v7868_v30, %v7867_v10  ;;  %2319 = vmatmul.mubr.bf16.gmra.mxu0 %v2082_v25  ;;  %v2047_v6 = vadd.f32 %v9013_v4, %v2015_v32 }
 0x4f4   : > { %v7870_v49 = vpop.f32.mrf.mxu1  ;;  %2328 = vmatprep.mubr.bf16.mxu0 %v13416_v13 }
 0x4f5   : > { %v2016_v15 = vmax.f32 %v1984_v24, 0.0  ;;  %v1945_v42 = vadd.f32 %v7869_v58, %v1913_v27  ;;  %v1916_v27 = vmul.f32 %v10048_v63, %v13469_v23  ;;  %v9015_v24 = vld [vmem:[%s9232_s25 + $0xe0] sm:$0xff] }
 0x4f6   : > { %v7871_v20 = vpop.f32.mrf.mxu1 }
 0x4f7   : > { %v2048_v57 = vadd.f32 %v9014_v48, %v2016_v15  ;;  %v1985_v40 = vadd.f32 %v10150_v61, %v1945_v42  ;;  %v7872_v39 = vadd.f32 %v7871_v20, %v7870_v49  ;;  %v9016_v49 = vld [vmem:[%s9232_s25 + $0xe8] sm:$0xff] }
 0x4f8   : > { %v7873_v18 = vpop.f32.mrf.mxu1 }
 0x4f9   : > { %v1946_v56 = vadd.f32 %v7872_v39, %v1914_v2  ;;  %v2083_v54 = vpack.c.bf16 %v2048_v57, %v2047_v6  ;;  %v2017_v35 = vmax.f32 %v1985_v40, 0.0  ;;  %v9017_v57 = vld [vmem:[%s9232_s25 + $0xf0] sm:$0xff]  ;;  %v9018_v40 = vld [vmem:[%s9232_s25 + $0xf8] sm:$0xff] }
 0x4fa   : > { %v7874_v19 = vpop.f32.mrf.mxu1 }
 0x4fb   : > { %v1986_v7 = vadd.f32 %v10150_v61, %v1946_v56  ;;  %v7875_v10 = vadd.f32 %v7874_v19, %v7873_v18  ;;  %2329 = vmatmul.mubr.bf16.gmra.mxu0 %v2083_v54  ;;  %v2049_v58 = vadd.f32 %v9015_v24, %v2017_v35 }
 0x4fc   : > { %v7876_v17 = vpop.f32.mrf.mxu1  ;;  %2338 = vmatprep.mubr.bf16.mxu0 %v13416_v13 }
 0x4fd   : > { %v2018_v25 = vmax.f32 %v1986_v7, 0.0  ;;  %v1947_v30 = vadd.f32 %v7875_v10, %v1915_v45 }
 0x4fe   : > { %v7877_v32 = vpop.f32.mrf.mxu1 }
 0x4ff   : > { %v2050_v15 = vadd.f32 %v9016_v49, %v2018_v25  ;;  %v1987_v42 = vadd.f32 %v10150_v61, %v1947_v30  ;;  %v7878_v36 = vadd.f32 %v7877_v32, %v7876_v17 }
 0x501   : > { %v1948_v2 = vadd.f32 %v7878_v36, %v1916_v27  ;;  %v2084_v20 = vpack.c.bf16 %v2050_v15, %v2049_v58  ;;  %v2019_v4 = vmax.f32 %v1987_v42, 0.0 }
 0x503   : > { %v1988_v6 = vadd.f32 %v10150_v61, %v1948_v2  ;;  %2339 = vmatmul.mubr.bf16.gmra.mxu0 %v2084_v20  ;;  %v2051_v63 = vadd.f32 %v9017_v57, %v2019_v4 }
 0x504   : > { %2348 = vmatprep.mubr.bf16.mxu0 %v13416_v13 }
 0x505   : > { %v2020_v48 = vmax.f32 %v1988_v6, 0.0 }
 0x507   : > { %v2052_v39 = vadd.f32 %v9018_v40, %v2020_v48 }
 0x509   : > { %v2085_v18 = vpack.c.bf16 %v2052_v39, %v2051_v63 }
 0x50b   : > { %2349 = vmatmul.mubr.bf16.gmra.mxu0 %v2085_v18 }
 0x50c   : > { %2817 = vmatprep.mubr.bf16.mxu0 %v13416_v13 }
 0x553   : > { %v10294_v56 = vpop.f32.mrf.mxu0 }
 0x555   : > { %v10296_v54 = vpop.f32.mrf.mxu0 }
 0x557   : > { %v10298_v19 = vpop.f32.mrf.mxu0 }
 0x559   : > { %v10300_v37 = vpop.f32.mrf.mxu0 }
 0x55b   : > { %v10302_v61 = vpop.f32.mrf.mxu0 }
 0x55d   : > { %v10304_v45 = vpop.f32.mrf.mxu0 }
 0x55f   : > { %v10306_v35 = vpop.f32.mrf.mxu0 }
 0x561   : > { %v10308_v7 = vpop.f32.mrf.mxu0 }
 0x563   : > { %v10310_v10 = vpop.f32.mrf.mxu0 }
 0x565   : > { %v10312_v17 = vpop.f32.mrf.mxu0 }
 0x567   : > { %v10314_v25 = vpop.f32.mrf.mxu0 }
 0x569   : > { %v10316_v30 = vpop.f32.mrf.mxu0 }
 0x56b   : > { %v10318_v27 = vpop.f32.mrf.mxu0 }
 0x56d   : > { %v10320_v32 = vpop.f32.mrf.mxu0 }
 0x56f   : > { %v10322_v24 = vpop.f32.mrf.mxu0 }
 0x571   : > { %v10324_v58 = vpop.f32.mrf.mxu0 }
 0x573   : > { %v10326_v49 = vpop.f32.mrf.mxu0 }
 0x575   : > { %v10328_v15 = vpop.f32.mrf.mxu0 }
 0x577   : > { %v10330_v42 = vpop.f32.mrf.mxu0 }
 0x579   : > { %v2246_v36 = vpop.f32.mrf.mxu0 }
 0x57b   : > { %v10332_v2 = vpop.f32.mrf.mxu0 }
 0x57c   : > { %13470 = vst [vmem:[#allocation10_spill] sm:$0xff] %v10332_v2 }
 0x57d   : > { %v2252_v20 = vpop.f32.mrf.mxu0 }
 0x57f   : > { %v10334_v4 = vpop.f32.mrf.mxu0 }
 0x580   : > { %13471 = vst [vmem:[#allocation11_spill] sm:$0xff] %v10334_v4 }
 0x581   : > { %v2256_v6 = vpop.f32.mrf.mxu0 }
 0x583   : > { %v10336_v48 = vpop.f32.mrf.mxu0 }
 0x584   : > { %13472 = vst [vmem:[#allocation12_spill] sm:$0xff] %v10336_v48 }
 0x585   : > { %v2262_v57 = vpop.f32.mrf.mxu0 }
 0x587   : > { %v10338_v63 = vpop.f32.mrf.mxu0 }
 0x588   : > { %13473 = vst [vmem:[#allocation13_spill] sm:$0xff] %v10338_v63 }
 0x589   : > { %v2266_v40 = vpop.f32.mrf.mxu0 }
 0x58b   : > { %v10340_v39 = vpop.f32.mrf.mxu0 }
 0x58c   : > { %13474 = vst [vmem:[#allocation14_spill] sm:$0xff] %v10340_v39 }
 0x58d   : > { %v2272_v18 = vpop.f32.mrf.mxu0 }
 0x58f   : > { %v10342_v23 = vpop.f32.mrf.mxu0 }
 0x590   : > { %13475 = vst [vmem:[#allocation15_spill] sm:$0xff] %v10342_v23 }
 0x591   : > { %v2276_v51 = vpop.f32.mrf.mxu0 }
 0x592   : > { %v2366_v12 = vpack.c.bf16 %v2276_v51, %v2272_v18  ;;  %v10439_v51 = vld [vmem:[%s13097_s2 + $0x20] ss:$8 sps:$4 sm:$0xff]   ;;  %v10547_v18 = vld [vmem:[%s13097_s2 + $0xa4] ss:$8 sps:$4 sm:$0xff]  }
 0x593   : > { %v10344_v43 = vpop.f32.mrf.mxu0 }
 0x594   : > { %13476 = vst [vmem:[#allocation16_spill] sm:$0xff] %v10344_v43 }
 0x595   : > { %v10346_v33 = vpop.f32.mrf.mxu0 }
 0x597   : > { %v10348_v11 = vpop.f32.mrf.mxu0 }
 0x598   : > { %13477 = vst [vmem:[#allocation17_spill] sm:$0xff] %v10348_v11 }
 0x599   : > { %v2286_v14 = vpop.f32.mrf.mxu0 }
 0x59b   : > { %v10350_v21 = vpop.f32.mrf.mxu0 }
 0x59c   : > { %13478 = vst [vmem:[#allocation18_spill] sm:$0xff] %v10350_v21 }
 0x59d   : > { %v2292_v47 = vpop.f32.mrf.mxu0 }
 0x59f   : > { %v10352_v26 = vpop.f32.mrf.mxu0 }
 0x5a0   : > { %13479 = vst [vmem:[#allocation19_spill] sm:$0xff] %v10352_v26 }
 0x5a1   : > { %v2296_v31 = vpop.f32.mrf.mxu0 }
 0x5a3   : > { %v10354_v52 = vpop.f32.mrf.mxu0 }
 0x5a4   : > { %13480 = vst [vmem:[#allocation20_spill] sm:$0xff] %v10354_v52 }
 0x5a5   : > { %v2302_v44 = vpop.f32.mrf.mxu0 }
 0x5a7   : > { %v10356_v53 = vpop.f32.mrf.mxu0 }
 0x5a8   : > { %13481 = vst [vmem:[#allocation45_spill] sm:$0xff] %v10356_v53 }
 0x5a9   : > { %v2306_v29 = vpop.f32.mrf.mxu0 }
 0x5ab   : > { %v10358_v38 = vpop.f32.mrf.mxu0 }
 0x5ac   : > { %13482 = vst [vmem:[#allocation46_spill] sm:$0xff] %v10358_v38 }
 0x5ad   : > { %v2312_v43 = vpop.f32.mrf.mxu0 }
 0x5af   : > { %v10360_v50 = vpop.f32.mrf.mxu0 }
 0x5b0   : > { %13483 = vst [vmem:[#allocation47_spill] sm:$0xff] %v10360_v50 }
 0x5b1   : > { %v2316_v23 = vpop.f32.mrf.mxu0 }
 0x5b3   : > { %v10362_v11 = vpop.f32.mrf.mxu0 }
 0x5b4   : > { %13484 = vst [vmem:[#allocation48_spill] sm:$0xff] %v10362_v11 }
 0x5b5   : > { %v2322_v55 = vpop.f32.mrf.mxu0 }
 0x5b7   : > { %v10364_v21 = vpop.f32.mrf.mxu0 }
 0x5b8   : > { %13485 = vst [vmem:[#allocation49_spill] sm:$0xff] %v10364_v21 }
 0x5b9   : > { %v2326_v39 = vpop.f32.mrf.mxu0 }
 0x5ba   : > { %v2371_v16 = vpack.c.bf16 %v2326_v39, %v2322_v55  ;;  %v2367_v55 = vpack.c.bf16 %v2286_v14, %v10346_v33  ;;  %v8691_v14 = vld [vmem:[%s13100_s5 + $0x1c0] ss:$8 sps:$4 sm:$0xff]   ;;  %v10427_v33 = vld [vmem:[%s13097_s2 + $0x10] ss:$8 sps:$4 sm:$0xff]  }
 0x5bb   : > { %v10366_v26 = vpop.f32.mrf.mxu0  ;;  %v8700_v39 = vld [vmem:[%s13100_s5 + $0x190] ss:$8 sps:$4 sm:$0xff]  }
 0x5bc   : > { %13486 = vst [vmem:[#allocation50_spill] sm:$0xff] %v10366_v26 }
 0x5bd   : > { %v2332_v28 = vpop.f32.mrf.mxu0 }
 0x5bf   : > { %v10368_v52 = vpop.f32.mrf.mxu0 }
 0x5c0   : > { %13487 = vst [vmem:[#allocation51_spill] sm:$0xff] %v10368_v52  ;;  %v2365_v52 = vpack.c.bf16 %v2266_v40, %v2262_v57  ;;  %v8697_v57 = vld [vmem:[%s13100_s5 + $0x1a0] ss:$8 sps:$4 sm:$0xff]   ;;  %v10538_v40 = vld [vmem:[%s13097_s2 + $0x90] ss:$8 sps:$4 sm:$0xff]  }
 0x5c1   : > { %v2336_v63 = vpop.f32.mrf.mxu0 }
 0x5c2   : > { %v2372_v26 = vpack.c.bf16 %v2336_v63, %v2332_v28  ;;  %v2368_v28 = vpack.c.bf16 %v2296_v31, %v2292_v47  ;;  %v8688_v31 = vld [vmem:[%s13100_s5 + $0x1d0] ss:$8 sps:$4 sm:$0xff]   ;;  %v8693_v47 = vld [vmem:[%s13100_s5 + $0x1c4] ss:$8 sps:$4 sm:$0xff]   ;;  %v8702_v63 = vld [vmem:[%s13100_s5 + $0x194] ss:$8 sps:$4 sm:$0xff]  }
 0x5c3   : > { %v10370_v53 = vpop.f32.mrf.mxu0 }
 0x5c4   : > { %13488 = vst [vmem:[#allocation52_spill] sm:$0xff] %v10370_v53  ;;  %v2364_v53 = vpack.c.bf16 %v2256_v6, %v2252_v20  ;;  %v10514_v20 = vld [vmem:[%s13097_s2 + $0x80] ss:$8 sps:$4 sm:$0xff]   ;;  %v10523_v6 = vld [vmem:[%s13097_s2 + $0x94] ss:$8 sps:$4 sm:$0xff]  }
 0x5c5   : > { %v2342_v34 = vpop.f32.mrf.mxu0 }
 0x5c7   : > { %v10372_v38 = vpop.f32.mrf.mxu0 }
 0x5c8   : > { %13489 = vst [vmem:[#allocation53_spill] sm:$0xff] %v10372_v38  ;;  %v2370_v38 = vpack.c.bf16 %v2316_v23, %v2312_v43  ;;  %v10433_v43 = vld [vmem:[%s13097_s2 + $0x24] ss:$8 sps:$4 sm:$0xff]   ;;  %v10445_v23 = vld [vmem:[%s13097_s2 + $0x34] ss:$8 sps:$4 sm:$0xff]  }
 0x5c9   : > { %v2346_v48 = vpop.f32.mrf.mxu0 }
 0x5ca   : > { %v2373_v2 = vpack.c.bf16 %v2346_v48, %v2342_v34  ;;  %v2369_v34 = vpack.c.bf16 %v2306_v29, %v2302_v44  ;;  %v8687_v29 = vld [vmem:[%s13100_s5 + $0x1e4] ss:$8 sps:$4 sm:$0xff]   ;;  %v8685_v44 = vld [vmem:[%s13100_s5 + $0x1e0] ss:$8 sps:$4 sm:$0xff]  }
 0x5cb   : > { %v10374_v50 = vpop.f32.mrf.mxu0  ;;  %v8699_v48 = vld [vmem:[%s13100_s5 + $0x1a4] ss:$8 sps:$4 sm:$0xff]  }
 0x5cc   : > { %13490 = vst [vmem:[#allocation54_spill] sm:$0xff] %v10374_v50  ;;  %v2363_v50 = vpack.c.bf16 %v2246_v36, %v10328_v15  ;;  %v10499_v15 = vld [vmem:[%s13097_s2 + $0x70] ss:$8 sps:$4 sm:$0xff]   ;;  %v10505_v36 = vld [vmem:[%s13097_s2 + $0x84] ss:$8 sps:$4 sm:$0xff]  }
 0x5cd   : > { %v2352_v9 = vpop.f32.mrf.mxu0 }
 0x5cf   : > { %v10376_v11 = vpop.f32.mrf.mxu0 }
 0x5d1   : > { %v2356_v4 = vpop.f32.mrf.mxu0 }
 0x5d2   : > { %v2374_v21 = vpack.c.bf16 %v2356_v4, %v2352_v9  ;;  %v2362_v9 = vpack.c.bf16 %v10324_v58, %v10320_v32  ;;  %v10487_v32 = vld [vmem:[%s13097_s2 + $0x60] ss:$8 sps:$4 sm:$0xff]   ;;  %v10493_v58 = vld [vmem:[%s13097_s2 + $0x74] ss:$8 sps:$4 sm:$0xff]   ;;  %v8694_v4 = vld [vmem:[%s13100_s5 + $0x1b0] ss:$8 sps:$4 sm:$0xff]  }
 0x5d4   : > { %7879 = vmatprep.subr.bf16.mxu1 %v2374_v21  ;;  %v10418_v21 = vld [vmem:[%s13097_s2 + $0x14] ss:$8 sps:$4 sm:$0xff]  }
 0x5d5   : > { %7880 = vmatpush3.bf16.msra.mxu1 %v2366_v12  ;;  %v2361_v12 = vpack.c.bf16 %v10316_v30, %v10312_v17  ;;  %v10475_v17 = vld [vmem:[%s13097_s2 + $0x50] ss:$8 sps:$4 sm:$0xff]   ;;  %v10481_v30 = vld [vmem:[%s13097_s2 + $0x64] ss:$8 sps:$4 sm:$0xff]  }
 0x5d6   : > { %7881 = vmatprep.subr.bf16.mxu1 %v2373_v2  ;;  %v8696_v2 = vld [vmem:[%s13100_s5 + $0x1b4] ss:$8 sps:$4 sm:$0xff]  }
 0x5d9   : > { %7882 = vmatpush3.bf16.msra.mxu1 %v2365_v52  ;;  %v8690_v52 = vld [vmem:[%s13100_s5 + $0x1d4] ss:$8 sps:$4 sm:$0xff]  }
 0x5da   : > { %7883 = vmatprep.subr.bf16.mxu1 %v2372_v26  ;;  %v10409_v26 = vld [vmem:[%s13097_s2] ss:$8 sps:$4 sm:$0xff]  }
 0x5dd   : > { %7884 = vmatpush3.bf16.msra.mxu1 %v2364_v53  ;;  %v2359_v53 = vpack.c.bf16 %v10300_v37, %v10296_v54  ;;  %v10451_v54 = vld [vmem:[%s13097_s2 + $0x30] ss:$8 sps:$4 sm:$0xff]   ;;  %v10457_v37 = vld [vmem:[%s13097_s2 + $0x44] ss:$8 sps:$4 sm:$0xff]  }
 0x5de   : > { %7885 = vmatprep.subr.bf16.mxu1 %v2371_v16  ;;  %v2360_v16 = vpack.c.bf16 %v10308_v7, %v10304_v45  ;;  %v10463_v45 = vld [vmem:[%s13097_s2 + $0x40] ss:$8 sps:$4 sm:$0xff]   ;;  %v10469_v7 = vld [vmem:[%s13097_s2 + $0x54] ss:$8 sps:$4 sm:$0xff]  }
 0x5e1   : > { %7886 = vmatpush3.bf16.msra.mxu1 %v2363_v50  ;;  %v8682_v50 = vld [vmem:[%s13100_s5 + $0x1f0] ss:$8 sps:$4 sm:$0xff]  }
 0x5e2   : > { %7887 = vmatprep.subr.bf16.mxu1 %v2370_v38  ;;  %v8684_v38 = vld [vmem:[%s13100_s5 + $0x1f4] ss:$8 sps:$4 sm:$0xff]  }
 0x5e3   : > { %2785 = vmatprep.subr.bf16.mxu0 %v8684_v38  ;;  %v10589_v38 = vld [vmem:[%s13097_s2 + $0xd4] ss:$8 sps:$4 sm:$0xff]  }
 0x5e4   : > { %2786 = vmatpush1.bf16.msra.mxu0 %v8682_v50  ;;  %v10583_v50 = vld [vmem:[%s13097_s2 + $0xc0] ss:$8 sps:$4 sm:$0xff]   ;;  %13494 = vst [vmem:[#allocation58_spill] sm:$0xff] %v10589_v38 }
 0x5e5   : > { %7888 = vmatpush3.bf16.msra.mxu1 %v2362_v9  ;;  %2787 = vmatprep.subr.bf16.mxu0 %v8687_v29  ;;  %v8705_v9 = vld [vmem:[%s13100_s5 + $0x184] ss:$8 sps:$4 sm:$0xff]   ;;  %13493 = vst [vmem:[#allocation57_spill] sm:$0xff] %v10583_v50  ;;  %v10595_v29 = vld [vmem:[%s13097_s2 + $0xd0] ss:$8 sps:$4 sm:$0xff]  }
 0x5e6   : > { %7889 = vmatprep.subr.bf16.mxu1 %v2369_v34  ;;  %v8703_v34 = vld [vmem:[%s13100_s5 + $0x180] ss:$8 sps:$4 sm:$0xff]   ;;  %13495 = vst [vmem:[#allocation59_spill] sm:$0xff] %v10595_v29 }
 0x5e8   : > { %2788 = vmatpush1.bf16.msra.mxu0 %v8685_v44  ;;  %v10607_v44 = vld [vmem:[%s13097_s2 + $0xe0] ss:$8 sps:$4 sm:$0xff]  }
 0x5e9   : > { %7890 = vmatpush3.bf16.msra.mxu1 %v2361_v12  ;;  %2789 = vmatprep.subr.bf16.mxu0 %v8690_v52  ;;  %v10559_v12 = vld [vmem:[%s13097_s2 + $0xa0] ss:$8 sps:$4 sm:$0xff]   ;;  %13497 = vst [vmem:[#allocation61_spill] sm:$0xff] %v10607_v44  ;;  %v10613_v52 = vld [vmem:[%s13097_s2 + $0xf4] ss:$8 sps:$4 sm:$0xff]  }
 0x5ea   : > { %7891 = vmatprep.subr.bf16.mxu1 %v2368_v28  ;;  %v10565_v28 = vld [vmem:[%s13097_s2 + $0xb4] ss:$8 sps:$4 sm:$0xff]   ;;  %13498 = vst [vmem:[#allocation62_spill] sm:$0xff] %v10613_v52 }
 0x5ec   : > { %2790 = vmatpush1.bf16.msra.mxu0 %v8688_v31  ;;  %v10619_v31 = vld [vmem:[%s13097_s2 + $0xf0] ss:$8 sps:$4 sm:$0xff]  }
 0x5ed   : > { %7892 = vmatpush3.bf16.msra.mxu1 %v2360_v16  ;;  %2791 = vmatprep.subr.bf16.mxu0 %v8693_v47  ;;  %v10571_v16 = vld [vmem:[%s13097_s2 + $0xb0] ss:$8 sps:$4 sm:$0xff]   ;;  %13499 = vst [vmem:[#allocation63_spill] sm:$0xff] %v10619_v31 }
 0x5ee   : > { %7893 = vmatprep.subr.bf16.mxu1 %v2367_v55  ;;  %13491 = vst [vmem:[#allocation55_spill] sm:$0xff] %v10571_v16  ;;  %v10577_v55 = vld [vmem:[%s13097_s2 + $0xc4] ss:$8 sps:$4 sm:$0xff]  }
 0x5ef   : > { %13492 = vst [vmem:[#allocation56_spill] sm:$0xff] %v10577_v55 }
 0x5f0   : > { %2792 = vmatpush1.bf16.msra.mxu0 %v8691_v14 }
 0x5f1   : > { %7894 = vmatpush3.bf16.msra.mxu1 %v2359_v53  ;;  %2793 = vmatprep.subr.bf16.mxu0 %v8696_v2  ;;  %v10601_v53 = vld [vmem:[%s13097_s2 + $0xe4] ss:$8 sps:$4 sm:$0xff]   ;;  %v2536_v2 = vmul.f32 %v10294_v56, %v13408_v59  ;;  %v2538_v56 = vmul.f32 %v10302_v61, %v13410_v8 }
 0x5f2   : > { %13496 = vst [vmem:[#allocation60_spill] sm:$0xff] %v10601_v53 }
 0x5f4   : > { %2408 = vmatmul.mubr.bf16.vlgmr.msra.gmra.mxu1 %v10409_v26  ;;  %2794 = vmatpush1.bf16.msra.mxu0 %v8694_v4 }
 0x5f5   : > { %2415 = vmatprep.mubr.bf16.mxu1 %v10418_v21  ;;  %2795 = vmatprep.subr.bf16.mxu0 %v8699_v48 }
 0x5f8   : > { %2796 = vmatpush1.bf16.msra.mxu0 %v8697_v57 }
 0x5f9   : > { %2797 = vmatprep.subr.bf16.mxu0 %v8702_v63  ;;  %v10628_v63 = vld [vmem:[%s13101_s6 + $0x2] ss:$0 sm:$0xff] }
 0x5fc   : > { %2416 = vmatmul.mubr.bf16.gmra.mxu1 %v10427_v33  ;;  %2798 = vmatpush1.bf16.msra.mxu0 %v8700_v39 }
 0x5fd   : > { %2423 = vmatprep.mubr.bf16.mxu1 %v10433_v43  ;;  %2799 = vmatprep.subr.bf16.mxu0 %v8705_v9  ;;  %v2537_v9 = vmul.f32 %v10298_v19, %v9789_v60 }
 0x600   : > { %2800 = vmatpush1.bf16.msra.mxu0 %v8703_v34 }
 0x604   : > { %2424 = vmatmul.mubr.bf16.gmra.mxu1 %v10439_v51 }
 0x605   : > { %2431 = vmatprep.mubr.bf16.mxu1 %v10445_v23 }
 0x60c   : > { %2432 = vmatmul.mubr.bf16.gmra.mxu1 %v10451_v54 }
 0x60d   : > { %2439 = vmatprep.mubr.bf16.mxu1 %v10457_v37 }
 0x614   : > { %2440 = vmatmul.mubr.bf16.gmra.mxu1 %v10463_v45 }
 0x615   : > { %2447 = vmatprep.mubr.bf16.mxu1 %v10469_v7 }
 0x61c   : > { %2448 = vmatmul.mubr.bf16.gmra.mxu1 %v10475_v17 }
 0x61d   : > { %2455 = vmatprep.mubr.bf16.mxu1 %v10481_v30 }
 0x624   : > { %2456 = vmatmul.mubr.bf16.gmra.mxu1 %v10487_v32 }
 0x625   : > { %2463 = vmatprep.mubr.bf16.mxu1 %v10493_v58 }
 0x62c   : > { %2464 = vmatmul.mubr.bf16.gmra.mxu1 %v10499_v15 }
 0x62d   : > { %2471 = vmatprep.mubr.bf16.mxu1 %v10505_v36 }
 0x634   : > { %2472 = vmatmul.mubr.bf16.gmra.mxu1 %v10514_v20 }
 0x635   : > { %2479 = vmatprep.mubr.bf16.mxu1 %v10523_v6 }
 0x63c   : > { %2480 = vmatmul.mubr.bf16.gmra.mxu1 %v10538_v40 }
 0x63d   : > { %2487 = vmatprep.mubr.bf16.mxu1 %v10547_v18 }
 0x644   : > { %2488 = vmatmul.mubr.bf16.gmra.mxu1 %v10559_v12 }
 0x645   : > { %2495 = vmatprep.mubr.bf16.mxu1 %v10565_v28 }
 0x64c   : > { %2496 = vmatmul.mubr.bf16.gmra.mxu1 %v10571_v16 }
 0x64d   : > { %2503 = vmatprep.mubr.bf16.mxu1 %v10577_v55 }
 0x654   : > { %2504 = vmatmul.mubr.bf16.gmra.mxu1 %v10583_v50 }
 0x655   : > { %2511 = vmatprep.mubr.bf16.mxu1 %v10589_v38 }
 0x65c   : > { %2512 = vmatmul.mubr.bf16.gmra.mxu1 %v10595_v29 }
 0x65d   : > { %2519 = vmatprep.mubr.bf16.mxu1 %v10601_v53 }
 0x664   : > { %2520 = vmatmul.mubr.bf16.gmra.mxu1 %v10607_v44 }
 0x665   : > { %2527 = vmatprep.mubr.bf16.mxu1 %v10613_v52 }
 0x66c   : > { %2528 = vmatmul.mubr.bf16.gmra.mxu1 %v10619_v31 }
 0x66d   : > { %3026 = vmatprep.mubr.bf16.mxu1 %v10142_v0 }
 0x6b4   : > { %v7895_v47 = vpop.f32.mrf.mxu1 }
 0x6b6   : > { %v7896_v14 = vpop.f32.mrf.mxu1 }
 0x6b7   : > { %v7897_v4 = vadd.f32 %v7896_v14, %v7895_v47 }
 0x6b8   : > { %v7898_v48 = vpop.f32.mrf.mxu1 }
 0x6b9   : > { %v2568_v57 = vadd.f32 %v7897_v4, %v2536_v2 }
 0x6ba   : > { %v7899_v39 = vpop.f32.mrf.mxu1 }
 0x6bb   : > { %v7900_v34 = vadd.f32 %v7899_v39, %v7898_v48  ;;  %v10633_v0 = vadd.f32 %v10628_v63, %v2568_v57  ;;  %v2539_v57 = vmul.f32 %v10306_v35, %v13412_v1 }
 0x6bc   : > { %v7901_v31 = vpop.f32.mrf.mxu1 }
 0x6bd   : > { %13500 = vst [vmem:[#allocation64_spill] sm:$0xff] %v10633_v0  ;;  %v2569_v52 = vadd.f32 %v7900_v34, %v2537_v9  ;;  %v13190_v4 = vmax.f32 %v10633_v0, 0.0  ;;  %v2540_v34 = vmul.f32 %v10310_v10, %v13414_v41 }
 0x6be   : > { %v7902_v44 = vpop.f32.mrf.mxu1 }
 0x6bf   : > { %v10638_v47 = vadd.f32 %v10628_v63, %v2569_v52  ;;  %v7903_v14 = vadd.f32 %v7902_v44, %v7901_v31 }
 0x6c0   : > { %v7904_v2 = vpop.f32.mrf.mxu1 }
 0x6c1   : > { %13501 = vst [vmem:[#allocation65_spill] sm:$0xff] %v10638_v47  ;;  %v13185_v59 = vmax.f32 %v10638_v47, 0.0  ;;  %v2570_v19 = vadd.f32 %v7903_v14, %v2538_v56 }
 0x6c2   : > { %v7905_v48 = vpop.f32.mrf.mxu1 }
 0x6c3   : > { %v2689_v39 = vpack.c.bf16 %v13185_v59, %v13190_v4  ;;  %v7906_v61 = vadd.f32 %v7905_v48, %v7904_v2  ;;  %v10649_v52 = vadd.f32 %v10628_v63, %v2570_v19 }
 0x6c4   : > { %v7907_v9 = vpop.f32.mrf.mxu1 }
 0x6c5   : > { %13502 = vst [vmem:[#allocation66_spill] sm:$0xff] %v10649_v52  ;;  %v2571_v44 = vadd.f32 %v7906_v61, %v2539_v57  ;;  %2818 = vmatmul.mubr.bf16.vlgmr.msra.gmra.mxu0 %v2689_v39  ;;  %v13187_v59 = vmax.f32 %v10649_v52, 0.0  ;;  %v2541_v57 = vmul.f32 %v10314_v25, %v13417_v22 }
 0x6c6   : > { %v7908_v31 = vpop.f32.mrf.mxu1  ;;  %2827 = vmatprep.mubr.bf16.mxu0 %v13416_v13 }
 0x6c7   : > { %v10655_v35 = vadd.f32 %v10628_v63, %v2571_v44  ;;  %v7909_v56 = vadd.f32 %v7908_v31, %v7907_v9 }
 0x6c8   : > { %v7910_v14 = vpop.f32.mrf.mxu1 }
 0x6c9   : > { %13503 = vst [vmem:[#allocation67_spill] sm:$0xff] %v10655_v35  ;;  %v13186_v2 = vmax.f32 %v10655_v35, 0.0  ;;  %v2572_v48 = vadd.f32 %v7909_v56, %v2540_v34  ;;  %v2542_v34 = vmul.f32 %v10318_v27, %v13419_v3 }
 0x6ca   : > { %v7911_v19 = vpop.f32.mrf.mxu1 }
 0x6cb   : > { %v7912_v39 = vadd.f32 %v7911_v19, %v7910_v14  ;;  %v2690_v10 = vpack.c.bf16 %v13186_v2, %v13187_v59  ;;  %v10666_v44 = vadd.f32 %v10628_v63, %v2572_v48 }
 0x6cc   : > { %v7913_v61 = vpop.f32.mrf.mxu1 }
 0x6cd   : > { %13504 = vst [vmem:[#allocation68_spill] sm:$0xff] %v10666_v44  ;;  %v2573_v9 = vadd.f32 %v7912_v39, %v2541_v57  ;;  %2828 = vmatmul.mubr.bf16.gmra.mxu0 %v2690_v10  ;;  %v13189_v19 = vmax.f32 %v10666_v44, 0.0  ;;  %v2543_v57 = vmul.f32 %v10322_v24, %v13421_v5 }
 0x6ce   : > { %v7914_v31 = vpop.f32.mrf.mxu1  ;;  %2837 = vmatprep.mubr.bf16.mxu0 %v13416_v13 }
 0x6cf   : > { %v10672_v25 = vadd.f32 %v10628_v63, %v2573_v9  ;;  %v7915_v56 = vadd.f32 %v7914_v31, %v7913_v61 }
 0x6d0   : > { %v7916_v14 = vpop.f32.mrf.mxu1 }
 0x6d1   : > { %13505 = vst [vmem:[#allocation69_spill] sm:$0xff] %v10672_v25  ;;  %v13188_v2 = vmax.f32 %v10672_v25, 0.0  ;;  %v2574_v59 = vadd.f32 %v7915_v56, %v2542_v34  ;;  %v2544_v34 = vmul.f32 %v10326_v49, %v13423_v62  ;;  %v13512_v25 = vld [vmem:[#allocation32_spill] sm:$0xff] }
 0x6d2   : > { %v7917_v48 = vpop.f32.mrf.mxu1 }
 0x6d3   : > { %v7918_v39 = vadd.f32 %v7917_v48, %v7916_v14  ;;  %v2691_v27 = vpack.c.bf16 %v13188_v2, %v13189_v19  ;;  %v10683_v9 = vadd.f32 %v10628_v63, %v2574_v59 }
 0x6d4   : > { %v7919_v10 = vpop.f32.mrf.mxu1 }
 0x6d5   : > { %13506 = vst [vmem:[#allocation70_spill] sm:$0xff] %v10683_v9  ;;  %v2575_v61 = vadd.f32 %v7918_v39, %v2543_v57  ;;  %2838 = vmatmul.mubr.bf16.gmra.mxu0 %v2691_v27  ;;  %v13193_v48 = vmax.f32 %v10683_v9, 0.0  ;;  %v2545_v57 = vmul.f32 %v10330_v42, %v13425_v46 }
 0x6d6   : > { %v7920_v31 = vpop.f32.mrf.mxu1  ;;  %2847 = vmatprep.mubr.bf16.mxu0 %v13416_v13 }
 0x6d7   : > { %v10689_v24 = vadd.f32 %v10628_v63, %v2575_v61  ;;  %v7921_v56 = vadd.f32 %v7920_v31, %v7919_v10 }
 0x6d8   : > { %v7922_v14 = vpop.f32.mrf.mxu1 }
 0x6d9   : > { %13507 = vst [vmem:[#allocation71_spill] sm:$0xff] %v10689_v24  ;;  %v13192_v2 = vmax.f32 %v10689_v24, 0.0  ;;  %v2576_v19 = vadd.f32 %v7921_v56, %v2544_v34  ;;  %v13509_v34 = vld [vmem:[#allocation31_spill] sm:$0xff]  ;;  %v13510_v56 = vld [vmem:[#allocation10_spill] sm:$0xff] }
 0x6da   : > { %v7923_v59 = vpop.f32.mrf.mxu1  ;;  %v2546_v4 = vmul.f32 %v13510_v56, %v13509_v34 }
 0x6db   : > { %v7924_v39 = vadd.f32 %v7923_v59, %v7922_v14  ;;  %v2692_v49 = vpack.c.bf16 %v13192_v2, %v13193_v48  ;;  %v10700_v61 = vadd.f32 %v10628_v63, %v2576_v19 }
 0x6dc   : > { %v7925_v27 = vpop.f32.mrf.mxu1 }
 0x6dd   : > { %13508 = vst [vmem:[#allocation72_spill] sm:$0xff] %v10700_v61  ;;  %v2577_v10 = vadd.f32 %v7924_v39, %v2545_v57  ;;  %2848 = vmatmul.mubr.bf16.gmra.mxu0 %v2692_v49  ;;  %v13199_v24 = vmax.f32 %v10700_v61, 0.0  ;;  %v13513_v57 = vld [vmem:[#allocation11_spill] sm:$0xff]  ;;  %v13518_v61 = vld [vmem:[#allocation34_spill] sm:$0xff] }
 0x6de   : > { %v7926_v31 = vpop.f32.mrf.mxu1  ;;  %2857 = vmatprep.mubr.bf16.mxu0 %v13416_v13  ;;  %v2547_v39 = vmul.f32 %v13513_v57, %v13512_v25 }
 0x6df   : > { %v10706_v42 = vadd.f32 %v10628_v63, %v2577_v10  ;;  %v7927_v14 = vadd.f32 %v7926_v31, %v7925_v27 }
 0x6e0   : > { %v7928_v59 = vpop.f32.mrf.mxu1 }
 0x6e1   : > { %13511 = vst [vmem:[#allocation73_spill] sm:$0xff] %v10706_v42  ;;  %v13198_v2 = vmax.f32 %v10706_v42, 0.0  ;;  %v2578_v48 = vadd.f32 %v7927_v14, %v2546_v4  ;;  %v13515_v4 = vld [vmem:[#allocation33_spill] sm:$0xff]  ;;  %v13516_v14 = vld [vmem:[#allocation12_spill] sm:$0xff] }
 0x6e2   : > { %v7929_v19 = vpop.f32.mrf.mxu1  ;;  %v2548_v44 = vmul.f32 %v13516_v14, %v13515_v4 }
 0x6e3   : > { %v7930_v49 = vadd.f32 %v7929_v19, %v7928_v59  ;;  %v2693_v56 = vpack.c.bf16 %v13198_v2, %v13199_v24  ;;  %v10717_v10 = vadd.f32 %v10628_v63, %v2578_v48 }
 0x6e4   : > { %v7931_v9 = vpop.f32.mrf.mxu1 }
 0x6e5   : > { %13514 = vst [vmem:[#allocation74_spill] sm:$0xff] %v10717_v10  ;;  %v2579_v27 = vadd.f32 %v7930_v49, %v2547_v39  ;;  %2858 = vmatmul.mubr.bf16.gmra.mxu0 %v2693_v56  ;;  %v13205_v42 = vmax.f32 %v10717_v10, 0.0  ;;  %v13519_v39 = vld [vmem:[#allocation13_spill] sm:$0xff]  ;;  %v13524_v10 = vld [vmem:[#allocation36_spill] sm:$0xff] }
 0x6e6   : > { %v7932_v31 = vpop.f32.mrf.mxu1  ;;  %2867 = vmatprep.mubr.bf16.mxu0 %v13416_v13  ;;  %v2549_v49 = vmul.f32 %v13519_v39, %v13518_v61 }
 0x6e7   : > { %v10723_v57 = vadd.f32 %v10628_v63, %v2579_v27  ;;  %v7933_v59 = vadd.f32 %v7932_v31, %v7931_v9 }
 0x6e8   : > { %v7934_v19 = vpop.f32.mrf.mxu1 }
 0x6e9   : > { %13517 = vst [vmem:[#allocation10_spill] sm:$0xff] %v10723_v57  ;;  %v13204_v2 = vmax.f32 %v10723_v57, 0.0  ;;  %v2580_v24 = vadd.f32 %v7933_v59, %v2548_v44  ;;  %v13521_v44 = vld [vmem:[#allocation35_spill] sm:$0xff]  ;;  %v13522_v59 = vld [vmem:[#allocation14_spill] sm:$0xff] }
 0x6ea   : > { %v7935_v48 = vpop.f32.mrf.mxu1  ;;  %v2550_v47 = vmul.f32 %v13522_v59, %v13521_v44 }
 0x6eb   : > { %v7936_v56 = vadd.f32 %v7935_v48, %v7934_v19  ;;  %v2694_v14 = vpack.c.bf16 %v13204_v2, %v13205_v42  ;;  %v10734_v27 = vadd.f32 %v10628_v63, %v2580_v24 }
 0x6ec   : > { %v7937_v35 = vpop.f32.mrf.mxu1 }
 0x6ed   : > { %13520 = vst [vmem:[#allocation11_spill] sm:$0xff] %v10734_v27  ;;  %v2581_v9 = vadd.f32 %v7936_v56, %v2549_v49  ;;  %2868 = vmatmul.mubr.bf16.gmra.mxu0 %v2694_v14  ;;  %v13211_v57 = vmax.f32 %v10734_v27, 0.0  ;;  %v13525_v49 = vld [vmem:[#allocation15_spill] sm:$0xff]  ;;  %v13530_v27 = vld [vmem:[#allocation38_spill] sm:$0xff] }
 0x6ee   : > { %v7938_v31 = vpop.f32.mrf.mxu1  ;;  %2877 = vmatprep.mubr.bf16.mxu0 %v13416_v13  ;;  %v2551_v56 = vmul.f32 %v13525_v49, %v13524_v10 }
 0x6ef   : > { %v10740_v39 = vadd.f32 %v10628_v63, %v2581_v9  ;;  %v7939_v19 = vadd.f32 %v7938_v31, %v7937_v35 }
 0x6f0   : > { %v7940_v48 = vpop.f32.mrf.mxu1 }
 0x6f1   : > { %13523 = vst [vmem:[#allocation12_spill] sm:$0xff] %v10740_v39  ;;  %v13210_v2 = vmax.f32 %v10740_v39, 0.0  ;;  %v2582_v42 = vadd.f32 %v7939_v19, %v2550_v47  ;;  %v13527_v47 = vld [vmem:[#allocation37_spill] sm:$0xff]  ;;  %v13528_v19 = vld [vmem:[#allocation16_spill] sm:$0xff] }
 0x6f2   : > { %v7941_v24 = vpop.f32.mrf.mxu1  ;;  %v2552_v0 = vmul.f32 %v13528_v19, %v13527_v47 }
 0x6f3   : > { %v7942_v14 = vadd.f32 %v7941_v24, %v7940_v48  ;;  %v2695_v59 = vpack.c.bf16 %v13210_v2, %v13211_v57  ;;  %v10751_v9 = vadd.f32 %v10628_v63, %v2582_v42 }
 0x6f4   : > { %v7943_v52 = vpop.f32.mrf.mxu1 }
 0x6f5   : > { %13526 = vst [vmem:[#allocation13_spill] sm:$0xff] %v10751_v9  ;;  %v2583_v35 = vadd.f32 %v7942_v14, %v2551_v56  ;;  %2878 = vmatmul.mubr.bf16.gmra.mxu0 %v2695_v59  ;;  %v13215_v39 = vmax.f32 %v10751_v9, 0.0  ;;  %v13531_v56 = vld [vmem:[#allocation17_spill] sm:$0xff]  ;;  %v13536_v9 = vld [vmem:[#allocation40_spill] sm:$0xff] }
 0x6f6   : > { %v7944_v31 = vpop.f32.mrf.mxu1  ;;  %2887 = vmatprep.mubr.bf16.mxu0 %v13416_v13  ;;  %v2553_v14 = vmul.f32 %v13531_v56, %v13530_v27 }
 0x6f7   : > { %v10757_v49 = vadd.f32 %v10628_v63, %v2583_v35  ;;  %v7945_v48 = vadd.f32 %v7944_v31, %v7943_v52 }
 0x6f8   : > { %v7946_v24 = vpop.f32.mrf.mxu1 }
 0x6f9   : > { %13529 = vst [vmem:[#allocation14_spill] sm:$0xff] %v10757_v49  ;;  %v13214_v2 = vmax.f32 %v10757_v49, 0.0  ;;  %v2584_v57 = vadd.f32 %v7945_v48, %v2552_v0  ;;  %v13533_v0 = vld [vmem:[#allocation39_spill] sm:$0xff]  ;;  %v13534_v48 = vld [vmem:[#allocation18_spill] sm:$0xff] }
 0x6fa   : > { %v7947_v42 = vpop.f32.mrf.mxu1  ;;  %v2554_v10 = vmul.f32 %v13534_v48, %v13533_v0 }
 0x6fb   : > { %v7948_v59 = vadd.f32 %v7947_v42, %v7946_v24  ;;  %v2696_v19 = vpack.c.bf16 %v13214_v2, %v13215_v39  ;;  %v10768_v35 = vadd.f32 %v10628_v63, %v2584_v57 }
 0x6fc   : > { %v7949_v47 = vpop.f32.mrf.mxu1 }
 0x6fd   : > { %13532 = vst [vmem:[#allocation15_spill] sm:$0xff] %v10768_v35  ;;  %v2585_v52 = vadd.f32 %v7948_v59, %v2553_v14  ;;  %2888 = vmatmul.mubr.bf16.gmra.mxu0 %v2696_v19  ;;  %v13219_v49 = vmax.f32 %v10768_v35, 0.0  ;;  %v13537_v14 = vld [vmem:[#allocation19_spill] sm:$0xff]  ;;  %v13542_v35 = vld [vmem:[#allocation42_spill] sm:$0xff] }
 0x6fe   : > { %v7950_v31 = vpop.f32.mrf.mxu1  ;;  %2897 = vmatprep.mubr.bf16.mxu0 %v13416_v13  ;;  %v2555_v59 = vmul.f32 %v13537_v14, %v13536_v9 }
 0x6ff   : > { %v10774_v56 = vadd.f32 %v10628_v63, %v2585_v52  ;;  %v7951_v24 = vadd.f32 %v7950_v31, %v7949_v47 }
 0x700   : > { %v7952_v42 = vpop.f32.mrf.mxu1 }
 0x701   : > { %13535 = vst [vmem:[#allocation16_spill] sm:$0xff] %v10774_v56  ;;  %v13218_v2 = vmax.f32 %v10774_v56, 0.0  ;;  %v2586_v39 = vadd.f32 %v7951_v24, %v2554_v10  ;;  %v13539_v10 = vld [vmem:[#allocation41_spill] sm:$0xff]  ;;  %v13540_v24 = vld [vmem:[#allocation20_spill] sm:$0xff] }
 0x702   : > { %v7953_v57 = vpop.f32.mrf.mxu1  ;;  %v2556_v27 = vmul.f32 %v13540_v24, %v13539_v10 }
 0x703   : > { %v7954_v19 = vadd.f32 %v7953_v57, %v7952_v42  ;;  %v2697_v48 = vpack.c.bf16 %v13218_v2, %v13219_v49  ;;  %v10785_v52 = vadd.f32 %v10628_v63, %v2586_v39 }
 0x704   : > { %v7955_v0 = vpop.f32.mrf.mxu1 }
 0x705   : > { %13538 = vst [vmem:[#allocation17_spill] sm:$0xff] %v10785_v52  ;;  %v2587_v47 = vadd.f32 %v7954_v19, %v2555_v59  ;;  %2898 = vmatmul.mubr.bf16.gmra.mxu0 %v2697_v48  ;;  %v13223_v56 = vmax.f32 %v10785_v52, 0.0  ;;  %v13543_v59 = vld [vmem:[#allocation45_spill] sm:$0xff]  ;;  %v13548_v52 = vld [vmem:[#allocation2_spill] sm:$0xff] }
 0x706   : > { %v7956_v31 = vpop.f32.mrf.mxu1  ;;  %2907 = vmatprep.mubr.bf16.mxu0 %v13416_v13  ;;  %v2557_v19 = vmul.f32 %v13543_v59, %v13542_v35 }
 0x707   : > { %v10791_v14 = vadd.f32 %v10628_v63, %v2587_v47  ;;  %v7957_v42 = vadd.f32 %v7956_v31, %v7955_v0 }
 0x708   : > { %v7958_v57 = vpop.f32.mrf.mxu1 }
 0x709   : > { %13541 = vst [vmem:[#allocation18_spill] sm:$0xff] %v10791_v14  ;;  %v13222_v2 = vmax.f32 %v10791_v14, 0.0  ;;  %v2588_v49 = vadd.f32 %v7957_v42, %v2556_v27  ;;  %v13545_v27 = vld [vmem:[#allocation43_spill] sm:$0xff]  ;;  %v13546_v42 = vld [vmem:[#allocation46_spill] sm:$0xff] }
 0x70a   : > { %v7959_v39 = vpop.f32.mrf.mxu1  ;;  %v2558_v9 = vmul.f32 %v13546_v42, %v13545_v27 }
 0x70b   : > { %v7960_v48 = vadd.f32 %v7959_v39, %v7958_v57  ;;  %v2698_v24 = vpack.c.bf16 %v13222_v2, %v13223_v56  ;;  %v10802_v47 = vadd.f32 %v10628_v63, %v2588_v49 }
 0x70c   : > { %v7961_v10 = vpop.f32.mrf.mxu1 }
 0x70d   : > { %13544 = vst [vmem:[#allocation19_spill] sm:$0xff] %v10802_v47  ;;  %v2589_v0 = vadd.f32 %v7960_v48, %v2557_v19  ;;  %2908 = vmatmul.mubr.bf16.gmra.mxu0 %v2698_v24  ;;  %v13227_v14 = vmax.f32 %v10802_v47, 0.0  ;;  %v13549_v19 = vld [vmem:[#allocation47_spill] sm:$0xff]  ;;  %v13554_v47 = vld [vmem:[#allocation4_spill] sm:$0xff] }
 0x70e   : > { %v7962_v31 = vpop.f32.mrf.mxu1  ;;  %2917 = vmatprep.mubr.bf16.mxu0 %v13416_v13  ;;  %v2559_v48 = vmul.f32 %v13549_v19, %v13548_v52 }
 0x70f   : > { %v10808_v59 = vadd.f32 %v10628_v63, %v2589_v0  ;;  %v7963_v57 = vadd.f32 %v7962_v31, %v7961_v10 }
 0x710   : > { %v7964_v39 = vpop.f32.mrf.mxu1 }
 0x711   : > { %13547 = vst [vmem:[#allocation20_spill] sm:$0xff] %v10808_v59  ;;  %v13226_v2 = vmax.f32 %v10808_v59, 0.0  ;;  %v2590_v56 = vadd.f32 %v7963_v57, %v2558_v9  ;;  %v13551_v9 = vld [vmem:[#allocation3_spill] sm:$0xff]  ;;  %v13552_v57 = vld [vmem:[#allocation48_spill] sm:$0xff] }
 0x712   : > { %v7965_v49 = vpop.f32.mrf.mxu1  ;;  %v2560_v35 = vmul.f32 %v13552_v57, %v13551_v9 }
 0x713   : > { %v7966_v24 = vadd.f32 %v7965_v49, %v7964_v39  ;;  %v2699_v42 = vpack.c.bf16 %v13226_v2, %v13227_v14  ;;  %v10819_v0 = vadd.f32 %v10628_v63, %v2590_v56 }
 0x714   : > { %v7967_v27 = vpop.f32.mrf.mxu1 }
 0x715   : > { %13550 = vst [vmem:[#allocation45_spill] sm:$0xff] %v10819_v0  ;;  %v2591_v10 = vadd.f32 %v7966_v24, %v2559_v48  ;;  %2918 = vmatmul.mubr.bf16.gmra.mxu0 %v2699_v42  ;;  %v13231_v59 = vmax.f32 %v10819_v0, 0.0  ;;  %v13555_v48 = vld [vmem:[#allocation49_spill] sm:$0xff]  ;;  %v13560_v0 = vld [vmem:[#allocation6_spill] sm:$0xff] }
 0x716   : > { %v7968_v31 = vpop.f32.mrf.mxu1  ;;  %2927 = vmatprep.mubr.bf16.mxu0 %v13416_v13  ;;  %v2561_v24 = vmul.f32 %v13555_v48, %v13554_v47 }
 0x717   : > { %v10825_v19 = vadd.f32 %v10628_v63, %v2591_v10  ;;  %v7969_v39 = vadd.f32 %v7968_v31, %v7967_v27 }
 0x718   : > { %v7970_v49 = vpop.f32.mrf.mxu1 }
 0x719   : > { %13553 = vst [vmem:[#allocation46_spill] sm:$0xff] %v10825_v19  ;;  %v13230_v2 = vmax.f32 %v10825_v19, 0.0  ;;  %v2592_v14 = vadd.f32 %v7969_v39, %v2560_v35  ;;  %v13557_v35 = vld [vmem:[#allocation5_spill] sm:$0xff]  ;;  %v13558_v39 = vld [vmem:[#allocation50_spill] sm:$0xff] }
 0x71a   : > { %v7971_v56 = vpop.f32.mrf.mxu1  ;;  %v2562_v52 = vmul.f32 %v13558_v39, %v13557_v35 }
 0x71b   : > { %v7972_v42 = vadd.f32 %v7971_v56, %v7970_v49  ;;  %v2700_v57 = vpack.c.bf16 %v13230_v2, %v13231_v59  ;;  %v10836_v10 = vadd.f32 %v10628_v63, %v2592_v14 }
 0x71c   : > { %v7973_v9 = vpop.f32.mrf.mxu1 }
 0x71d   : > { %13556 = vst [vmem:[#allocation47_spill] sm:$0xff] %v10836_v10  ;;  %v2593_v27 = vadd.f32 %v7972_v42, %v2561_v24  ;;  %2928 = vmatmul.mubr.bf16.gmra.mxu0 %v2700_v57  ;;  %v13235_v19 = vmax.f32 %v10836_v10, 0.0  ;;  %v13561_v24 = vld [vmem:[#allocation51_spill] sm:$0xff] }
 0x71e   : > { %v7974_v31 = vpop.f32.mrf.mxu1  ;;  %2937 = vmatprep.mubr.bf16.mxu0 %v13416_v13  ;;  %v2563_v42 = vmul.f32 %v13561_v24, %v13560_v0  ;;  %v13566_v10 = vld [vmem:[#allocation7_spill] sm:$0xff] }
 0x71f   : > { %v10842_v48 = vadd.f32 %v10628_v63, %v2593_v27  ;;  %v7975_v49 = vadd.f32 %v7974_v31, %v7973_v9 }
 0x720   : > { %v7976_v56 = vpop.f32.mrf.mxu1 }
 0x721   : > { %13559 = vst [vmem:[#allocation48_spill] sm:$0xff] %v10842_v48  ;;  %v13234_v2 = vmax.f32 %v10842_v48, 0.0  ;;  %v2594_v59 = vadd.f32 %v7975_v49, %v2562_v52  ;;  %v13563_v52 = vld [vmem:[#allocation44_spill] sm:$0xff] }
 0x722   : > { %v7977_v14 = vpop.f32.mrf.mxu1  ;;  %v13564_v49 = vld [vmem:[#allocation52_spill] sm:$0xff] }
 0x723   : > { %v7978_v57 = vadd.f32 %v7977_v14, %v7976_v56  ;;  %v2701_v39 = vpack.c.bf16 %v13234_v2, %v13235_v19  ;;  %v10853_v27 = vadd.f32 %v10628_v63, %v2594_v59  ;;  %v2564_v47 = vmul.f32 %v13564_v49, %v13563_v52 }
 0x724   : > { %v7979_v35 = vpop.f32.mrf.mxu1 }
 0x725   : > { %13562 = vst [vmem:[#allocation49_spill] sm:$0xff] %v10853_v27  ;;  %v2595_v9 = vadd.f32 %v7978_v57, %v2563_v42  ;;  %2938 = vmatmul.mubr.bf16.gmra.mxu0 %v2701_v39  ;;  %v13239_v48 = vmax.f32 %v10853_v27, 0.0  ;;  %v13567_v42 = vld [vmem:[#allocation53_spill] sm:$0xff] }
 0x726   : > { %v7980_v31 = vpop.f32.mrf.mxu1  ;;  %2947 = vmatprep.mubr.bf16.mxu0 %v13416_v13  ;;  %v2565_v57 = vmul.f32 %v13567_v42, %v13566_v10  ;;  %v13572_v27 = vld [vmem:[#allocation9_spill] sm:$0xff] }
 0x727   : > { %v10859_v24 = vadd.f32 %v10628_v63, %v2595_v9  ;;  %v7981_v56 = vadd.f32 %v7980_v31, %v7979_v35 }
 0x728   : > { %v7982_v14 = vpop.f32.mrf.mxu1 }
 0x729   : > { %13565 = vst [vmem:[#allocation50_spill] sm:$0xff] %v10859_v24  ;;  %v13238_v2 = vmax.f32 %v10859_v24, 0.0  ;;  %v2596_v19 = vadd.f32 %v7981_v56, %v2564_v47  ;;  %v13569_v47 = vld [vmem:[#allocation8_spill] sm:$0xff]  ;;  %v13570_v56 = vld [vmem:[#allocation54_spill] sm:$0xff] }
 0x72a   : > { %v7983_v59 = vpop.f32.mrf.mxu1  ;;  %v2566_v0 = vmul.f32 %v13570_v56, %v13569_v47 }
 0x72b   : > { %v7984_v39 = vadd.f32 %v7983_v59, %v7982_v14  ;;  %v2702_v49 = vpack.c.bf16 %v13238_v2, %v13239_v48  ;;  %v10870_v9 = vadd.f32 %v10628_v63, %v2596_v19 }
 0x72c   : > { %v7985_v52 = vpop.f32.mrf.mxu1 }
 0x72d   : > { %13568 = vst [vmem:[#allocation51_spill] sm:$0xff] %v10870_v9  ;;  %v2597_v35 = vadd.f32 %v7984_v39, %v2565_v57  ;;  %2948 = vmatmul.mubr.bf16.gmra.mxu0 %v2702_v49  ;;  %v13244_v24 = vmax.f32 %v10870_v9, 0.0  ;;  %v2567_v57 = vmul.f32 %v10376_v11, %v13572_v27 }
 0x72e   : > { %v7986_v31 = vpop.f32.mrf.mxu1  ;;  %2957 = vmatprep.mubr.bf16.mxu0 %v13416_v13 }
 0x72f   : > { %v10876_v42 = vadd.f32 %v10628_v63, %v2597_v35  ;;  %v7987_v14 = vadd.f32 %v7986_v31, %v7985_v52 }
 0x730   : > { %v7988_v59 = vpop.f32.mrf.mxu1 }
 0x731   : > { %13571 = vst [vmem:[#allocation52_spill] sm:$0xff] %v10876_v42  ;;  %v13242_v2 = vmax.f32 %v10876_v42, 0.0  ;;  %v2598_v48 = vadd.f32 %v7987_v14, %v2566_v0 }
 0x732   : > { %v7989_v19 = vpop.f32.mrf.mxu1 }
 0x733   : > { %v7990_v39 = vadd.f32 %v7989_v19, %v7988_v59  ;;  %v2703_v49 = vpack.c.bf16 %v13242_v2, %v13244_v24  ;;  %v10887_v35 = vadd.f32 %v10628_v63, %v2598_v48 }
 0x735   : > { %13573 = vst [vmem:[#allocation53_spill] sm:$0xff] %v10887_v35  ;;  %v2599_v52 = vadd.f32 %v7990_v39, %v2567_v57  ;;  %2958 = vmatmul.mubr.bf16.gmra.mxu0 %v2703_v49  ;;  %v13243_v0 = vmax.f32 %v10887_v35, 0.0 }
 0x736   : > { %2967 = vmatprep.mubr.bf16.mxu0 %v13416_v13 }
 0x737   : > { %v10891_v31 = vadd.f32 %v10628_v63, %v2599_v52 }
 0x739   : > { %13574 = vst [vmem:[#allocation54_spill] sm:$0xff] %v10891_v31  ;;  %v13241_v11 = vmax.f32 %v10891_v31, 0.0 }
 0x73b   : > { %v2704_v56 = vpack.c.bf16 %v13241_v11, %v13243_v0 }
 0x73d   : > { %2968 = vmatmul.mubr.bf16.gmra.mxu0 %v2704_v56 }
 0x73e   : > { %3436 = vmatprep.mubr.bf16.mxu0 %v13416_v13 }
 0x785   : > { %v10900_v48 = vpop.f32.mrf.mxu0 }
 0x786   : > { %13575 = vst [vmem:[#allocation75_spill] sm:$0xff] %v10900_v48 }
 0x787   : > { %v10902_v14 = vpop.f32.mrf.mxu0 }
 0x789   : > { %v10904_v59 = vpop.f32.mrf.mxu0 }
 0x78a   : > { %13576 = vst [vmem:[#allocation76_spill] sm:$0xff] %v10904_v59 }
 0x78b   : > { %v10906_v63 = vpop.f32.mrf.mxu0 }
 0x78d   : > { %v10908_v19 = vpop.f32.mrf.mxu0 }
 0x78e   : > { %13577 = vst [vmem:[#allocation77_spill] sm:$0xff] %v10908_v19 }
 0x78f   : > { %v10910_v57 = vpop.f32.mrf.mxu0 }
 0x791   : > { %v10912_v39 = vpop.f32.mrf.mxu0 }
 0x792   : > { %13578 = vst [vmem:[#allocation78_spill] sm:$0xff] %v10912_v39 }
 0x793   : > { %v10914_v49 = vpop.f32.mrf.mxu0 }
 0x795   : > { %v10916_v52 = vpop.f32.mrf.mxu0 }
 0x796   : > { %13579 = vst [vmem:[#allocation79_spill] sm:$0xff] %v10916_v52 }
 0x797   : > { %v10918_v56 = vpop.f32.mrf.mxu0 }
 0x799   : > { %v10920_v11 = vpop.f32.mrf.mxu0 }
 0x79a   : > { %13580 = vst [vmem:[#allocation80_spill] sm:$0xff] %v10920_v11 }
 0x79b   : > { %v10922_v2 = vpop.f32.mrf.mxu0 }
 0x79d   : > { %v10924_v0 = vpop.f32.mrf.mxu0 }
 0x79e   : > { %13581 = vst [vmem:[#allocation81_spill] sm:$0xff] %v10924_v0 }
 0x79f   : > { %v10926_v24 = vpop.f32.mrf.mxu0 }
 0x7a1   : > { %v10928_v31 = vpop.f32.mrf.mxu0 }
 0x7a2   : > { %13582 = vst [vmem:[#allocation82_spill] sm:$0xff] %v10928_v31 }
 0x7a3   : > { %v10930_v42 = vpop.f32.mrf.mxu0 }
 0x7a5   : > { %v10932_v35 = vpop.f32.mrf.mxu0 }
 0x7a6   : > { %13583 = vst [vmem:[#allocation83_spill] sm:$0xff] %v10932_v35 }
 0x7a7   : > { %v10934_v9 = vpop.f32.mrf.mxu0 }
 0x7a9   : > { %v10936_v27 = vpop.f32.mrf.mxu0 }
 0x7aa   : > { %13584 = vst [vmem:[#allocation84_spill] sm:$0xff] %v10936_v27 }
 0x7ab   : > { %v2865_v47 = vpop.f32.mrf.mxu0 }
 0x7ad   : > { %v10938_v10 = vpop.f32.mrf.mxu0 }
 0x7ae   : > { %13585 = vst [vmem:[#allocation85_spill] sm:$0xff] %v10938_v10 }
 0x7af   : > { %v2871_v44 = vpop.f32.mrf.mxu0 }
 0x7b1   : > { %v10940_v61 = vpop.f32.mrf.mxu0 }
 0x7b2   : > { %13586 = vst [vmem:[#allocation86_spill] sm:$0xff] %v10940_v61 }
 0x7b3   : > { %v2875_v4 = vpop.f32.mrf.mxu0 }
 0x7b5   : > { %v10942_v25 = vpop.f32.mrf.mxu0 }
 0x7b6   : > { %13587 = vst [vmem:[#allocation87_spill] sm:$0xff] %v10942_v25 }
 0x7b7   : > { %v2881_v34 = vpop.f32.mrf.mxu0 }
 0x7b9   : > { %v10944_v46 = vpop.f32.mrf.mxu0 }
 0x7ba   : > { %13588 = vst [vmem:[#allocation88_spill] sm:$0xff] %v10944_v46 }
 0x7bb   : > { %v2885_v62 = vpop.f32.mrf.mxu0 }
 0x7bd   : > { %v10946_v31 = vpop.f32.mrf.mxu0 }
 0x7be   : > { %13589 = vst [vmem:[#allocation89_spill] sm:$0xff] %v10946_v31 }
 0x7bf   : > { %v2891_v35 = vpop.f32.mrf.mxu0 }
 0x7c1   : > { %v10948_v5 = vpop.f32.mrf.mxu0 }
 0x7c2   : > { %13590 = vst [vmem:[#allocation90_spill] sm:$0xff] %v10948_v5 }
 0x7c3   : > { %v2895_v0 = vpop.f32.mrf.mxu0 }
 0x7c4   : > { %v2985_v50 = vpack.c.bf16 %v2895_v0, %v2891_v35  ;;  %v13619_v0 = vld [vmem:[#allocation23_spill] sm:$0xff] }
 0x7c5   : > { %v10950_v27 = vpop.f32.mrf.mxu0 }
 0x7c6   : > { %13591 = vst [vmem:[#allocation91_spill] sm:$0xff] %v10950_v27 }
 0x7c7   : > { %v10952_v3 = vpop.f32.mrf.mxu0 }
 0x7c9   : > { %v10954_v10 = vpop.f32.mrf.mxu0 }
 0x7ca   : > { %13592 = vst [vmem:[#allocation92_spill] sm:$0xff] %v10954_v10 }
 0x7cb   : > { %v2905_v61 = vpop.f32.mrf.mxu0 }
 0x7cd   : > { %v10956_v11 = vpop.f32.mrf.mxu0 }
 0x7ce   : > { %13593 = vst [vmem:[#allocation93_spill] sm:$0xff] %v10956_v11 }
 0x7cf   : > { %v2911_v25 = vpop.f32.mrf.mxu0 }
 0x7d1   : > { %v10958_v22 = vpop.f32.mrf.mxu0 }
 0x7d2   : > { %13594 = vst [vmem:[#allocation94_spill] sm:$0xff] %v10958_v22 }
 0x7d3   : > { %v2915_v46 = vpop.f32.mrf.mxu0 }
 0x7d5   : > { %v10960_v52 = vpop.f32.mrf.mxu0 }
 0x7d6   : > { %13595 = vst [vmem:[#allocation95_spill] sm:$0xff] %v10960_v52 }
 0x7d7   : > { %v2921_v31 = vpop.f32.mrf.mxu0 }
 0x7d9   : > { %v10962_v41 = vpop.f32.mrf.mxu0 }
 0x7da   : > { %13596 = vst [vmem:[#allocation96_spill] sm:$0xff] %v10962_v41 }
 0x7db   : > { %v2925_v5 = vpop.f32.mrf.mxu0 }
 0x7dd   : > { %v10964_v13 = vpop.f32.mrf.mxu0 }
 0x7de   : > { %13597 = vst [vmem:[#allocation97_spill] sm:$0xff] %v10964_v13 }
 0x7df   : > { %v2931_v27 = vpop.f32.mrf.mxu0 }
 0x7e1   : > { %v10966_v39 = vpop.f32.mrf.mxu0 }
 0x7e2   : > { %13598 = vst [vmem:[#allocation98_spill] sm:$0xff] %v10966_v39 }
 0x7e3   : > { %v2935_v1 = vpop.f32.mrf.mxu0 }
 0x7e5   : > { %v10968_v10 = vpop.f32.mrf.mxu0 }
 0x7e6   : > { %13599 = vst [vmem:[#allocation99_spill] sm:$0xff] %v10968_v10 }
 0x7e7   : > { %v2941_v19 = vpop.f32.mrf.mxu0 }
 0x7e9   : > { %v10970_v11 = vpop.f32.mrf.mxu0 }
 0x7ea   : > { %13600 = vst [vmem:[#allocation100_spill] sm:$0xff] %v10970_v11 }
 0x7eb   : > { %v2945_v8 = vpop.f32.mrf.mxu0 }
 0x7ec   : > { %v2990_v16 = vpack.c.bf16 %v2945_v8, %v2941_v19  ;;  %v2979_v8 = vpack.c.bf16 %v10914_v49, %v10910_v57 }
 0x7ed   : > { %v10972_v22 = vpop.f32.mrf.mxu0 }
 0x7ee   : > { %13601 = vst [vmem:[#allocation101_spill] sm:$0xff] %v10972_v22 }
 0x7ef   : > { %v2951_v59 = vpop.f32.mrf.mxu0 }
 0x7f1   : > { %v10974_v52 = vpop.f32.mrf.mxu0 }
 0x7f2   : > { %13602 = vst [vmem:[#allocation102_spill] sm:$0xff] %v10974_v52  ;;  %v2984_v52 = vpack.c.bf16 %v2885_v62, %v2881_v34  ;;  %v2987_v62 = vpack.c.bf16 %v2915_v46, %v2911_v25  ;;  %v8714_v46 = vld [vmem:[%s13100_s5 + $0x254] ss:$8 sps:$4 sm:$0xff]   ;;  %v11081_v34 = vld [vmem:[%s13101_s6 + $0x3] ss:$0 sm:$0xff] }
 0x7f3   : > { %v2955_v60 = vpop.f32.mrf.mxu0 }
 0x7f4   : > { %v2991_v22 = vpack.c.bf16 %v2955_v60, %v2951_v59  ;;  %v2980_v60 = vpack.c.bf16 %v10922_v2, %v10918_v56  ;;  %v13622_v56 = vld [vmem:[#allocation78_spill] sm:$0xff] }
 0x7f5   : > { %v10976_v41 = vpop.f32.mrf.mxu0 }
 0x7f6   : > { %13603 = vst [vmem:[#allocation103_spill] sm:$0xff] %v10976_v41  ;;  %v2983_v41 = vpack.c.bf16 %v2875_v4, %v2871_v44  ;;  %v13617_v44 = vld [vmem:[#allocation22_spill] sm:$0xff] }
 0x7f7   : > { %v2961_v48 = vpop.f32.mrf.mxu0 }
 0x7f9   : > { %v10978_v13 = vpop.f32.mrf.mxu0 }
 0x7fa   : > { %13604 = vst [vmem:[#allocation104_spill] sm:$0xff] %v10978_v13  ;;  %v2989_v13 = vpack.c.bf16 %v2935_v1, %v2931_v27  ;;  %v8706_v1 = vld [vmem:[%s13100_s5 + $0x270] ss:$8 sps:$4 sm:$0xff]  }
 0x7fb   : > { %v2965_v53 = vpop.f32.mrf.mxu0  ;;  %v13618_v27 = vld [vmem:[#allocation76_spill] sm:$0xff] }
 0x7fc   : > { %v2992_v55 = vpack.c.bf16 %v2965_v53, %v2961_v48 }
 0x7fd   : > { %v10980_v39 = vpop.f32.mrf.mxu0 }
 0x7fe   : > { %13605 = vst [vmem:[#allocation105_spill] sm:$0xff] %v10980_v39  ;;  %v2982_v39 = vpack.c.bf16 %v2865_v47, %v10934_v9 }
 0x7ff   : > { %v2971_v29 = vpop.f32.mrf.mxu0 }
 0x801   : > { %v10982_v10 = vpop.f32.mrf.mxu0 }
 0x803   : > { %v2975_v38 = vpop.f32.mrf.mxu0 }
 0x804   : > { %v2993_v11 = vpack.c.bf16 %v2975_v38, %v2971_v29  ;;  %v2981_v38 = vpack.c.bf16 %v10930_v42, %v10926_v24  ;;  %v2988_v29 = vpack.c.bf16 %v2925_v5, %v2921_v31  ;;  %v2978_v5 = vpack.c.bf16 %v10906_v63, %v10902_v14 }
 0x805   : > { %v3156_v24 = vmul.f32 %v13618_v27, %v13617_v44 }
 0x806   : > { %7991 = vmatprep.subr.bf16.mxu1 %v2993_v11  ;;  %v13620_v11 = vld [vmem:[#allocation77_spill] sm:$0xff] }
 0x807   : > { %7992 = vmatpush3.bf16.msra.mxu1 %v2985_v50  ;;  %v8715_v50 = vld [vmem:[%s13100_s5 + $0x240] ss:$8 sps:$4 sm:$0xff]   ;;  %v3157_v48 = vmul.f32 %v13620_v11, %v13619_v0 }
 0x808   : > { %7993 = vmatprep.subr.bf16.mxu1 %v2992_v55  ;;  %v8717_v55 = vld [vmem:[%s13100_s5 + $0x244] ss:$8 sps:$4 sm:$0xff]  }
 0x80b   : > { %7994 = vmatpush3.bf16.msra.mxu1 %v2984_v52  ;;  %v13621_v52 = vld [vmem:[#allocation24_spill] sm:$0xff] }
 0x80c   : > { %7995 = vmatprep.subr.bf16.mxu1 %v2991_v22  ;;  %v8711_v22 = vld [vmem:[%s13100_s5 + $0x264] ss:$8 sps:$4 sm:$0xff]  }
 0x80f   : > { %7996 = vmatpush3.bf16.msra.mxu1 %v2983_v41  ;;  %v2986_v41 = vpack.c.bf16 %v2905_v61, %v10952_v3  ;;  %v8709_v3 = vld [vmem:[%s13100_s5 + $0x260] ss:$8 sps:$4 sm:$0xff]  }
 0x810   : > { %7997 = vmatprep.subr.bf16.mxu1 %v2990_v16  ;;  %v8712_v16 = vld [vmem:[%s13100_s5 + $0x250] ss:$8 sps:$4 sm:$0xff]  }
 0x813   : > { %7998 = vmatpush3.bf16.msra.mxu1 %v2982_v39 }
 0x814   : > { %7999 = vmatprep.subr.bf16.mxu1 %v2989_v13  ;;  %v8708_v13 = vld [vmem:[%s13100_s5 + $0x274] ss:$8 sps:$4 sm:$0xff]  }
 0x815   : > { %3404 = vmatprep.subr.bf16.mxu0 %v8708_v13  ;;  %v13623_v13 = vmov 0  }
 0x816   : > { %3405 = vmatpush1.bf16.msra.mxu0 %v8706_v1 }
 0x817   : > { %8000 = vmatpush3.bf16.msra.mxu1 %v2981_v38  ;;  %3406 = vmatprep.subr.bf16.mxu0 %v8711_v22  ;;  %v3158_v38 = vmul.f32 %v13622_v56, %v13621_v52  ;;  %v13624_v22 = vld [vmem:[#allocation25_spill] sm:$0xff]  ;;  %v13635_v56 = vld [vmem:[#allocation84_spill] sm:$0xff] }
 0x818   : > { %8001 = vmatprep.subr.bf16.mxu1 %v2988_v29 }
 0x81a   : > { %3407 = vmatpush1.bf16.msra.mxu0 %v8709_v3 }
 0x81b   : > { %8002 = vmatpush3.bf16.msra.mxu1 %v2980_v60  ;;  %3408 = vmatprep.subr.bf16.mxu0 %v8714_v46 }
 0x81c   : > { %8003 = vmatprep.subr.bf16.mxu1 %v2987_v62 }
 0x81e   : > { %3409 = vmatpush1.bf16.msra.mxu0 %v8712_v16 }
 0x81f   : > { %8004 = vmatpush3.bf16.msra.mxu1 %v2979_v8  ;;  %3410 = vmatprep.subr.bf16.mxu0 %v8717_v55 }
 0x820   : > { %8005 = vmatprep.subr.bf16.mxu1 %v2986_v41 }
 0x822   : > { %3411 = vmatpush1.bf16.msra.mxu0 %v8715_v50 }
 0x823   : > { %8006 = vmatpush3.bf16.msra.mxu1 %v2978_v5  ;;  %v13625_v5 = vld [vmem:[#allocation79_spill] sm:$0xff] }
 0x824   : > { %v3159_v3 = vmul.f32 %v13625_v5, %v13624_v22  ;;  %v13636_v5 = vld [vmem:[#allocation31_spill] sm:$0xff] }
 0x826   : > { %3027 = vmatmul.mubr.bf16.vlgmr.msra.gmra.mxu1 %v10409_v26  ;;  %v8720_v26 = vld [vmem:[%s13100_s5 + $0x234] ss:$8 sps:$4 sm:$0xff]  }
 0x827   : > { %3034 = vmatprep.mubr.bf16.mxu1 %v10418_v21  ;;  %v8718_v21 = vld [vmem:[%s13100_s5 + $0x230] ss:$8 sps:$4 sm:$0xff]   ;;  %3412 = vmatprep.subr.bf16.mxu0 %v8720_v26 }
 0x828   : > { %3413 = vmatpush1.bf16.msra.mxu0 %v8718_v21 }
 0x82e   : > { %3035 = vmatmul.mubr.bf16.gmra.mxu1 %v10427_v33  ;;  %v8723_v33 = vld [vmem:[%s13100_s5 + $0x224] ss:$8 sps:$4 sm:$0xff]  }
 0x82f   : > { %3042 = vmatprep.mubr.bf16.mxu1 %v10433_v43  ;;  %v8721_v43 = vld [vmem:[%s13100_s5 + $0x220] ss:$8 sps:$4 sm:$0xff]   ;;  %3414 = vmatprep.subr.bf16.mxu0 %v8723_v33 }
 0x830   : > { %3415 = vmatpush1.bf16.msra.mxu0 %v8721_v43  ;;  %v13626_v43 = vld [vmem:[#allocation26_spill] sm:$0xff] }
 0x836   : > { %3043 = vmatmul.mubr.bf16.gmra.mxu1 %v10439_v51  ;;  %v8726_v51 = vld [vmem:[%s13100_s5 + $0x214] ss:$8 sps:$4 sm:$0xff]  }
 0x837   : > { %3050 = vmatprep.mubr.bf16.mxu1 %v10445_v23  ;;  %v8724_v23 = vld [vmem:[%s13100_s5 + $0x210] ss:$8 sps:$4 sm:$0xff]   ;;  %3416 = vmatprep.subr.bf16.mxu0 %v8726_v51 }
 0x838   : > { %3417 = vmatpush1.bf16.msra.mxu0 %v8724_v23  ;;  %v13627_v51 = vld [vmem:[#allocation80_spill] sm:$0xff] }
 0x839   : > { %v3160_v23 = vmul.f32 %v13627_v51, %v13626_v43 }
 0x83e   : > { %3051 = vmatmul.mubr.bf16.gmra.mxu1 %v10451_v54  ;;  %v8729_v54 = vld [vmem:[%s13100_s5 + $0x204] ss:$8 sps:$4 sm:$0xff]  }
 0x83f   : > { %3058 = vmatprep.mubr.bf16.mxu1 %v10457_v37  ;;  %v8727_v37 = vld [vmem:[%s13100_s5 + $0x200] ss:$8 sps:$4 sm:$0xff]   ;;  %3418 = vmatprep.subr.bf16.mxu0 %v8729_v54 }
 0x840   : > { %3419 = vmatpush1.bf16.msra.mxu0 %v8727_v37 }
 0x846   : > { %3059 = vmatmul.mubr.bf16.gmra.mxu1 %v10463_v45  ;;  %v13606_v45 = vld [vmem:[#allocation55_spill] sm:$0xff] }
 0x847   : > { %3066 = vmatprep.mubr.bf16.mxu1 %v10469_v7  ;;  %v13607_v7 = vld [vmem:[#allocation56_spill] sm:$0xff] }
 0x84e   : > { %3067 = vmatmul.mubr.bf16.gmra.mxu1 %v10475_v17  ;;  %v13608_v17 = vld [vmem:[#allocation57_spill] sm:$0xff] }
 0x84f   : > { %3074 = vmatprep.mubr.bf16.mxu1 %v10481_v30  ;;  %v13609_v30 = vld [vmem:[#allocation58_spill] sm:$0xff] }
 0x856   : > { %3075 = vmatmul.mubr.bf16.gmra.mxu1 %v10487_v32  ;;  %v13610_v32 = vld [vmem:[#allocation59_spill] sm:$0xff] }
 0x857   : > { %3082 = vmatprep.mubr.bf16.mxu1 %v10493_v58  ;;  %v13611_v58 = vld [vmem:[#allocation60_spill] sm:$0xff] }
 0x85e   : > { %3083 = vmatmul.mubr.bf16.gmra.mxu1 %v10499_v15  ;;  %v13612_v15 = vld [vmem:[#allocation61_spill] sm:$0xff] }
 0x85f   : > { %3090 = vmatprep.mubr.bf16.mxu1 %v10505_v36  ;;  %v13613_v36 = vld [vmem:[#allocation62_spill] sm:$0xff] }
 0x866   : > { %3091 = vmatmul.mubr.bf16.gmra.mxu1 %v10514_v20  ;;  %v13614_v20 = vld [vmem:[#allocation63_spill] sm:$0xff] }
 0x867   : > { %3098 = vmatprep.mubr.bf16.mxu1 %v10523_v6  ;;  %v9050_v6 = vld [vmem:[%s13097_s2 + $0x4] ss:$8 sps:$4 sm:$0xff]  }
 0x86e   : > { %3099 = vmatmul.mubr.bf16.gmra.mxu1 %v10538_v40 }
 0x86f   : > { %3106 = vmatprep.mubr.bf16.mxu1 %v10547_v18 }
 0x876   : > { %3107 = vmatmul.mubr.bf16.gmra.mxu1 %v10559_v12  ;;  %v13615_v12 = vld [vmem:[#allocation21_spill] sm:$0xff] }
 0x877   : > { %3114 = vmatprep.mubr.bf16.mxu1 %v10565_v28  ;;  %v13616_v28 = vld [vmem:[#allocation75_spill] sm:$0xff] }
 0x878   : > { %v3155_v53 = vmul.f32 %v13616_v28, %v13615_v12 }
 0x87e   : > { %3115 = vmatmul.mubr.bf16.gmra.mxu1 %v13606_v45 }
 0x87f   : > { %3122 = vmatprep.mubr.bf16.mxu1 %v13607_v7 }
 0x886   : > { %3123 = vmatmul.mubr.bf16.gmra.mxu1 %v13608_v17 }
 0x887   : > { %3130 = vmatprep.mubr.bf16.mxu1 %v13609_v30 }
 0x88e   : > { %3131 = vmatmul.mubr.bf16.gmra.mxu1 %v13610_v32  ;;  %v13628_v32 = vld [vmem:[#allocation27_spill] sm:$0xff] }
 0x88f   : > { %3138 = vmatprep.mubr.bf16.mxu1 %v13611_v58  ;;  %v13629_v58 = vld [vmem:[#allocation81_spill] sm:$0xff] }
 0x896   : > { %3139 = vmatmul.mubr.bf16.gmra.mxu1 %v13612_v15  ;;  %v3161_v15 = vmul.f32 %v13629_v58, %v13628_v32 }
 0x897   : > { %3146 = vmatprep.mubr.bf16.mxu1 %v13613_v36 }
 0x89e   : > { %3147 = vmatmul.mubr.bf16.gmra.mxu1 %v13614_v20 }
 0x89f   : > { %3645 = vmatprep.mubr.bf16.mxu1 %v9050_v6 }
 0x8e6   : > { %v8007_v40 = vpop.f32.mrf.mxu1 }
 0x8e8   : > { %v8008_v18 = vpop.f32.mrf.mxu1 }
 0x8e9   : > { %v8009_v2 = vadd.f32 %v8008_v18, %v8007_v40 }
 0x8ea   : > { %v8010_v25 = vpop.f32.mrf.mxu1 }
 0x8eb   : > { %v3187_v61 = vadd.f32 %v8009_v2, %v3155_v53  ;;  %v13630_v2 = vld [vmem:[#allocation28_spill] sm:$0xff] }
 0x8ec   : > { %v8011_v4 = vpop.f32.mrf.mxu1 }
 0x8ed   : > { %v8012_v9 = vadd.f32 %v8011_v4, %v8010_v25  ;;  %v3227_v42 = vadd.f32 %v11081_v34, %v3187_v61  ;;  %v13631_v25 = vld [vmem:[#allocation82_spill] sm:$0xff] }
 0x8ee   : > { %v8013_v47 = vpop.f32.mrf.mxu1  ;;  %v3162_v61 = vmul.f32 %v13631_v25, %v13630_v2 }
 0x8ef   : > { %v3188_v35 = vadd.f32 %v8012_v9, %v3156_v24  ;;  %v3259_v19 = vmax.f32 %v3227_v42, 0.0 }
 0x8f0   : > { %v8014_v31 = vpop.f32.mrf.mxu1 }
 0x8f1   : > { %v3228_v14 = vadd.f32 %v11081_v34, %v3188_v35  ;;  %v8015_v59 = vadd.f32 %v8014_v31, %v8013_v47  ;;  %v13632_v35 = vld [vmem:[#allocation29_spill] sm:$0xff]  ;;  %v13633_v31 = vld [vmem:[#allocation83_spill] sm:$0xff] }
 0x8f2   : > { %v8016_v63 = vpop.f32.mrf.mxu1  ;;  %v3163_v11 = vmul.f32 %v13633_v31, %v13632_v35 }
 0x8f3   : > { %v3260_v57 = vmax.f32 %v3228_v14, 0.0  ;;  %v3189_v39 = vadd.f32 %v8015_v59, %v3157_v48 }
 0x8f4   : > { %v8017_v49 = vpop.f32.mrf.mxu1 }
 0x8f5   : > { %v3308_v29 = vpack.c.bf16 %v3260_v57, %v3259_v19  ;;  %v8018_v60 = vadd.f32 %v8017_v49, %v8016_v63  ;;  %v3229_v8 = vadd.f32 %v11081_v34, %v3189_v39  ;;  %v13634_v49 = vld [vmem:[#allocation30_spill] sm:$0xff] }
 0x8f6   : > { %v8019_v62 = vpop.f32.mrf.mxu1 }
 0x8f7   : > { %v3190_v41 = vadd.f32 %v8018_v60, %v3158_v38  ;;  %3437 = vmatmul.mubr.bf16.vlgmr.msra.gmra.mxu0 %v3308_v29  ;;  %v3261_v50 = vmax.f32 %v3229_v8, 0.0  ;;  %v3164_v38 = vmul.f32 %v13635_v56, %v13634_v49 }
 0x8f8   : > { %v8020_v1 = vpop.f32.mrf.mxu1  ;;  %3446 = vmatprep.mubr.bf16.mxu0 %v13623_v13 }
 0x8f9   : > { %v3230_v46 = vadd.f32 %v11081_v34, %v3190_v41  ;;  %v8021_v16 = vadd.f32 %v8020_v1, %v8019_v62 }
 0x8fa   : > { %v8022_v55 = vpop.f32.mrf.mxu1 }
 0x8fb   : > { %v3262_v26 = vmax.f32 %v3230_v46, 0.0  ;;  %v3191_v21 = vadd.f32 %v8021_v16, %v3159_v3  ;;  %v13637_v3 = vld [vmem:[#allocation85_spill] sm:$0xff] }
 0x8fc   : > { %v8023_v33 = vpop.f32.mrf.mxu1  ;;  %v3165_v46 = vmul.f32 %v13637_v3, %v13636_v5 }
 0x8fd   : > { %v8024_v54 = vadd.f32 %v8023_v33, %v8022_v55  ;;  %v3309_v37 = vpack.c.bf16 %v3262_v26, %v3261_v50  ;;  %v3231_v7 = vadd.f32 %v11081_v34, %v3191_v21 }
 0x8fe   : > { %v8025_v45 = vpop.f32.mrf.mxu1 }
 0x8ff   : > { %v3192_v17 = vadd.f32 %v8024_v54, %v3160_v23  ;;  %3447 = vmatmul.mubr.bf16.gmra.mxu0 %v3309_v37  ;;  %v3263_v40 = vmax.f32 %v3231_v7, 0.0  ;;  %v13638_v23 = vld [vmem:[#allocation32_spill] sm:$0xff]  ;;  %v13639_v54 = vld [vmem:[#allocation86_spill] sm:$0xff] }
 0x900   : > { %v8026_v30 = vpop.f32.mrf.mxu1  ;;  %3456 = vmatprep.mubr.bf16.mxu0 %v13623_v13  ;;  %v3166_v37 = vmul.f32 %v13639_v54, %v13638_v23 }
 0x901   : > { %v3232_v36 = vadd.f32 %v11081_v34, %v3192_v17  ;;  %v8027_v20 = vadd.f32 %v8026_v30, %v8025_v45 }
 0x902   : > { %v8028_v6 = vpop.f32.mrf.mxu1 }
 0x903   : > { %v3264_v18 = vmax.f32 %v3232_v36, 0.0  ;;  %v3193_v28 = vadd.f32 %v8027_v20, %v3161_v15  ;;  %v13640_v36 = vld [vmem:[#allocation33_spill] sm:$0xff]  ;;  %v13641_v20 = vld [vmem:[#allocation87_spill] sm:$0xff] }
 0x904   : > { %v8029_v53 = vpop.f32.mrf.mxu1 }
 0x905   : > { %v8030_v4 = vadd.f32 %v8029_v53, %v8028_v6  ;;  %v3310_v27 = vpack.c.bf16 %v3264_v18, %v3263_v40  ;;  %v3233_v9 = vadd.f32 %v11081_v34, %v3193_v28  ;;  %v3167_v6 = vmul.f32 %v13641_v20, %v13640_v36  ;;  %v13651_v20 = vld [vmem:[#allocation92_spill] sm:$0xff] }
 0x906   : > { %v8031_v24 = vpop.f32.mrf.mxu1 }
 0x907   : > { %v3194_v47 = vadd.f32 %v8030_v4, %v3162_v61  ;;  %3457 = vmatmul.mubr.bf16.gmra.mxu0 %v3310_v27  ;;  %v3265_v63 = vmax.f32 %v3233_v9, 0.0  ;;  %v13642_v27 = vld [vmem:[#allocation34_spill] sm:$0xff] }
 0x908   : > { %v8032_v42 = vpop.f32.mrf.mxu1  ;;  %3466 = vmatprep.mubr.bf16.mxu0 %v13623_v13 }
 0x909   : > { %v3234_v48 = vadd.f32 %v11081_v34, %v3194_v47  ;;  %v8033_v14 = vadd.f32 %v8032_v42, %v8031_v24  ;;  %v13643_v24 = vld [vmem:[#allocation88_spill] sm:$0xff] }
 0x90a   : > { %v8034_v59 = vpop.f32.mrf.mxu1  ;;  %v3168_v9 = vmul.f32 %v13643_v24, %v13642_v27  ;;  %v13653_v24 = vld [vmem:[#allocation93_spill] sm:$0xff] }
 0x90b   : > { %v3266_v19 = vmax.f32 %v3234_v48, 0.0  ;;  %v3195_v57 = vadd.f32 %v8033_v14, %v3163_v11 }
 0x90c   : > { %v8035_v39 = vpop.f32.mrf.mxu1 }
 0x90d   : > { %v8036_v29 = vadd.f32 %v8035_v39, %v8034_v59  ;;  %v3311_v60 = vpack.c.bf16 %v3266_v19, %v3265_v63  ;;  %v3235_v8 = vadd.f32 %v11081_v34, %v3195_v57  ;;  %v13644_v59 = vld [vmem:[#allocation35_spill] sm:$0xff]  ;;  %v13645_v63 = vld [vmem:[#allocation89_spill] sm:$0xff] }
 0x90e   : > { %v8037_v62 = vpop.f32.mrf.mxu1  ;;  %v3169_v19 = vmul.f32 %v13645_v63, %v13644_v59 }
 0x90f   : > { %v3196_v41 = vadd.f32 %v8036_v29, %v3164_v38  ;;  %3467 = vmatmul.mubr.bf16.gmra.mxu0 %v3311_v60  ;;  %v3267_v26 = vmax.f32 %v3235_v8, 0.0  ;;  %v13646_v8 = vld [vmem:[#allocation36_spill] sm:$0xff] }
 0x910   : > { %v8038_v1 = vpop.f32.mrf.mxu1  ;;  %3476 = vmatprep.mubr.bf16.mxu0 %v13623_v13 }
 0x911   : > { %v3236_v16 = vadd.f32 %v11081_v34, %v3196_v41  ;;  %v8039_v55 = vadd.f32 %v8038_v1, %v8037_v62  ;;  %v13647_v41 = vld [vmem:[#allocation90_spill] sm:$0xff] }
 0x912   : > { %v8040_v50 = vpop.f32.mrf.mxu1  ;;  %v3170_v1 = vmul.f32 %v13647_v41, %v13646_v8 }
 0x913   : > { %v3268_v21 = vmax.f32 %v3236_v16, 0.0  ;;  %v3197_v33 = vadd.f32 %v8039_v55, %v3165_v46 }
 0x914   : > { %v8041_v51 = vpop.f32.mrf.mxu1 }
 0x915   : > { %v8042_v45 = vadd.f32 %v8041_v51, %v8040_v50  ;;  %v3312_v7 = vpack.c.bf16 %v3268_v21, %v3267_v26  ;;  %v3237_v30 = vadd.f32 %v11081_v34, %v3197_v33  ;;  %v13648_v21 = vld [vmem:[#allocation37_spill] sm:$0xff]  ;;  %v13649_v33 = vld [vmem:[#allocation91_spill] sm:$0xff] }
 0x916   : > { %v8043_v17 = vpop.f32.mrf.mxu1  ;;  %v3171_v51 = vmul.f32 %v13649_v33, %v13648_v21 }
 0x917   : > { %v3198_v58 = vadd.f32 %v8042_v45, %v3166_v37  ;;  %3477 = vmatmul.mubr.bf16.gmra.mxu0 %v3312_v7  ;;  %v3269_v53 = vmax.f32 %v3237_v30, 0.0 }
 0x918   : > { %v8044_v15 = vpop.f32.mrf.mxu1  ;;  %3486 = vmatprep.mubr.bf16.mxu0 %v13623_v13 }
 0x919   : > { %v3238_v40 = vadd.f32 %v11081_v34, %v3198_v58  ;;  %v8045_v18 = vadd.f32 %v8044_v15, %v8043_v17  ;;  %v13650_v15 = vld [vmem:[#allocation38_spill] sm:$0xff] }
 0x91a   : > { %v8046_v28 = vpop.f32.mrf.mxu1 }
 0x91b   : > { %v3270_v25 = vmax.f32 %v3238_v40, 0.0  ;;  %v3199_v61 = vadd.f32 %v8045_v18, %v3167_v6  ;;  %v3172_v6 = vmul.f32 %v13651_v20, %v13650_v15 }
 0x91c   : > { %v8047_v4 = vpop.f32.mrf.mxu1 }
 0x91d   : > { %v8048_v47 = vadd.f32 %v8047_v4, %v8046_v28  ;;  %v3313_v42 = vpack.c.bf16 %v3270_v25, %v3269_v53  ;;  %v3239_v11 = vadd.f32 %v11081_v34, %v3199_v61  ;;  %v13652_v4 = vld [vmem:[#allocation39_spill] sm:$0xff] }
 0x91e   : > { %v8049_v31 = vpop.f32.mrf.mxu1 }
 0x91f   : > { %v3200_v48 = vadd.f32 %v8048_v47, %v3168_v9  ;;  %3487 = vmatmul.mubr.bf16.gmra.mxu0 %v3313_v42  ;;  %v3271_v38 = vmax.f32 %v3239_v11, 0.0  ;;  %v3173_v9 = vmul.f32 %v13653_v24, %v13652_v4 }
 0x920   : > { %v8050_v14 = vpop.f32.mrf.mxu1  ;;  %3496 = vmatprep.mubr.bf16.mxu0 %v13623_v13 }
 0x921   : > { %v3240_v57 = vadd.f32 %v11081_v34, %v3200_v48  ;;  %v8051_v39 = vadd.f32 %v8050_v14, %v8049_v31 }
 0x922   : > { %v8052_v56 = vpop.f32.mrf.mxu1 }
 0x923   : > { %v3272_v29 = vmax.f32 %v3240_v57, 0.0  ;;  %v3201_v60 = vadd.f32 %v8051_v39, %v3169_v19  ;;  %v13654_v19 = vld [vmem:[#allocation40_spill] sm:$0xff]  ;;  %v13655_v57 = vld [vmem:[#allocation94_spill] sm:$0xff] }
 0x924   : > { %v8053_v62 = vpop.f32.mrf.mxu1  ;;  %v3174_v39 = vmul.f32 %v13655_v57, %v13654_v19 }
 0x925   : > { %v8054_v3 = vadd.f32 %v8053_v62, %v8052_v56  ;;  %v3314_v46 = vpack.c.bf16 %v3272_v29, %v3271_v38  ;;  %v3241_v55 = vadd.f32 %v11081_v34, %v3201_v60 }
 0x926   : > { %v8055_v16 = vpop.f32.mrf.mxu1 }
 0x927   : > { %v3202_v50 = vadd.f32 %v8054_v3, %v3170_v1  ;;  %3497 = vmatmul.mubr.bf16.gmra.mxu0 %v3314_v46  ;;  %v3273_v7 = vmax.f32 %v3241_v55, 0.0  ;;  %v13656_v1 = vld [vmem:[#allocation41_spill] sm:$0xff]  ;;  %v13657_v3 = vld [vmem:[#allocation95_spill] sm:$0xff] }
 0x928   : > { %v8056_v26 = vpop.f32.mrf.mxu1  ;;  %3506 = vmatprep.mubr.bf16.mxu0 %v13623_v13  ;;  %v3175_v46 = vmul.f32 %v13657_v3, %v13656_v1 }
 0x929   : > { %v3242_v54 = vadd.f32 %v11081_v34, %v3202_v50  ;;  %v8057_v37 = vadd.f32 %v8056_v26, %v8055_v16 }
 0x92a   : > { %v8058_v45 = vpop.f32.mrf.mxu1 }
 0x92b   : > { %v3274_v17 = vmax.f32 %v3242_v54, 0.0  ;;  %v3203_v30 = vadd.f32 %v8057_v37, %v3171_v51  ;;  %v13658_v37 = vld [vmem:[#allocation42_spill] sm:$0xff] }
 0x92c   : > { %v8059_v58 = vpop.f32.mrf.mxu1 }
 0x92d   : > { %v8060_v40 = vadd.f32 %v8059_v58, %v8058_v45  ;;  %v3315_v18 = vpack.c.bf16 %v3274_v17, %v3273_v7  ;;  %v3243_v53 = vadd.f32 %v11081_v34, %v3203_v30  ;;  %v13659_v45 = vld [vmem:[#allocation96_spill] sm:$0xff] }
 0x92e   : > { %v8061_v28 = vpop.f32.mrf.mxu1  ;;  %v3176_v7 = vmul.f32 %v13659_v45, %v13658_v37 }
 0x92f   : > { %v3204_v25 = vadd.f32 %v8060_v40, %v3172_v6  ;;  %3507 = vmatmul.mubr.bf16.gmra.mxu0 %v3315_v18  ;;  %v3275_v11 = vmax.f32 %v3243_v53, 0.0  ;;  %v13660_v18 = vld [vmem:[#allocation43_spill] sm:$0xff] }
 0x930   : > { %v8062_v61 = vpop.f32.mrf.mxu1  ;;  %3516 = vmatprep.mubr.bf16.mxu0 %v13623_v13 }
 0x931   : > { %v3244_v47 = vadd.f32 %v11081_v34, %v3204_v25  ;;  %v8063_v42 = vadd.f32 %v8062_v61, %v8061_v28  ;;  %v13661_v28 = vld [vmem:[#allocation97_spill] sm:$0xff] }
 0x932   : > { %v8064_v31 = vpop.f32.mrf.mxu1  ;;  %v3177_v53 = vmul.f32 %v13661_v28, %v13660_v18  ;;  %v13669_v28 = vld [vmem:[#allocation101_spill] sm:$0xff] }
 0x933   : > { %v3276_v48 = vmax.f32 %v3244_v47, 0.0  ;;  %v3205_v14 = vadd.f32 %v8063_v42, %v3173_v9 }
 0x934   : > { %v8065_v63 = vpop.f32.mrf.mxu1 }
 0x935   : > { %v8066_v56 = vadd.f32 %v8065_v63, %v8064_v31  ;;  %v3316_v38 = vpack.c.bf16 %v3276_v48, %v3275_v11  ;;  %v3245_v60 = vadd.f32 %v11081_v34, %v3205_v14  ;;  %v13662_v11 = vld [vmem:[#allocation2_spill] sm:$0xff] }
 0x936   : > { %v8067_v29 = vpop.f32.mrf.mxu1  ;;  %v13663_v48 = vld [vmem:[#allocation98_spill] sm:$0xff] }
 0x937   : > { %v3206_v62 = vadd.f32 %v8066_v56, %v3174_v39  ;;  %3517 = vmatmul.mubr.bf16.gmra.mxu0 %v3316_v38  ;;  %v3277_v26 = vmax.f32 %v3245_v60, 0.0  ;;  %v3178_v14 = vmul.f32 %v13663_v48, %v13662_v11  ;;  %v13664_v60 = vld [vmem:[#allocation3_spill] sm:$0xff]  ;;  %v13670_v48 = vld [vmem:[#allocation6_spill] sm:$0xff] }
 0x938   : > { %v8068_v41 = vpop.f32.mrf.mxu1  ;;  %3526 = vmatprep.mubr.bf16.mxu0 %v13623_v13 }
 0x939   : > { %v3246_v16 = vadd.f32 %v11081_v34, %v3206_v62  ;;  %v8069_v55 = vadd.f32 %v8068_v41, %v8067_v29  ;;  %v13665_v62 = vld [vmem:[#allocation99_spill] sm:$0xff] }
 0x93a   : > { %v8070_v50 = vpop.f32.mrf.mxu1  ;;  %v3179_v41 = vmul.f32 %v13665_v62, %v13664_v60 }
 0x93b   : > { %v3278_v33 = vmax.f32 %v3246_v16, 0.0  ;;  %v3207_v51 = vadd.f32 %v8069_v55, %v3175_v46 }
 0x93c   : > { %v8071_v54 = vpop.f32.mrf.mxu1 }
 0x93d   : > { %v8072_v17 = vadd.f32 %v8071_v54, %v8070_v50  ;;  %v3317_v30 = vpack.c.bf16 %v3278_v33, %v3277_v26  ;;  %v3247_v20 = vadd.f32 %v11081_v34, %v3207_v51  ;;  %v13666_v51 = vld [vmem:[#allocation4_spill] sm:$0xff] }
 0x93e   : > { %v8073_v58 = vpop.f32.mrf.mxu1  ;;  %v13667_v54 = vld [vmem:[#allocation100_spill] sm:$0xff] }
 0x93f   : > { %v3208_v6 = vadd.f32 %v8072_v17, %v3176_v7  ;;  %3527 = vmatmul.mubr.bf16.gmra.mxu0 %v3317_v30  ;;  %v3279_v9 = vmax.f32 %v3247_v20, 0.0  ;;  %v3180_v45 = vmul.f32 %v13667_v54, %v13666_v51 }
 0x940   : > { %v8074_v40 = vpop.f32.mrf.mxu1  ;;  %3536 = vmatprep.mubr.bf16.mxu0 %v13623_v13 }
 0x941   : > { %v3248_v25 = vadd.f32 %v11081_v34, %v3208_v6  ;;  %v8075_v61 = vadd.f32 %v8074_v40, %v8073_v58  ;;  %v13668_v40 = vld [vmem:[#allocation5_spill] sm:$0xff] }
 0x942   : > { %v8076_v24 = vpop.f32.mrf.mxu1 }
 0x943   : > { %v3280_v47 = vmax.f32 %v3248_v25, 0.0  ;;  %v3209_v42 = vadd.f32 %v8075_v61, %v3177_v53  ;;  %v3181_v53 = vmul.f32 %v13669_v28, %v13668_v40 }
 0x944   : > { %v8077_v31 = vpop.f32.mrf.mxu1 }
 0x945   : > { %v8078_v63 = vadd.f32 %v8077_v31, %v8076_v24  ;;  %v3318_v57 = vpack.c.bf16 %v3280_v47, %v3279_v9  ;;  %v3249_v56 = vadd.f32 %v11081_v34, %v3209_v42 }
 0x946   : > { %v8079_v39 = vpop.f32.mrf.mxu1 }
 0x947   : > { %v3210_v38 = vadd.f32 %v8078_v63, %v3178_v14  ;;  %3537 = vmatmul.mubr.bf16.gmra.mxu0 %v3318_v57  ;;  %v3281_v55 = vmax.f32 %v3249_v56, 0.0  ;;  %v13671_v14 = vld [vmem:[#allocation102_spill] sm:$0xff] }
 0x948   : > { %v8080_v29 = vpop.f32.mrf.mxu1  ;;  %3546 = vmatprep.mubr.bf16.mxu0 %v13623_v13  ;;  %v3182_v63 = vmul.f32 %v13671_v14, %v13670_v48 }
 0x949   : > { %v3250_v3 = vadd.f32 %v11081_v34, %v3210_v38  ;;  %v8081_v46 = vadd.f32 %v8080_v29, %v8079_v39 }
 0x94a   : > { %v8082_v16 = vpop.f32.mrf.mxu1 }
 0x94b   : > { %v3282_v50 = vmax.f32 %v3250_v3, 0.0  ;;  %v3211_v26 = vadd.f32 %v8081_v46, %v3179_v41  ;;  %v13672_v41 = vld [vmem:[#allocation44_spill] sm:$0xff]  ;;  %v13673_v3 = vld [vmem:[#allocation103_spill] sm:$0xff] }
 0x94c   : > { %v8083_v33 = vpop.f32.mrf.mxu1  ;;  %v3183_v46 = vmul.f32 %v13673_v3, %v13672_v41 }
 0x94d   : > { %v8084_v7 = vadd.f32 %v8083_v33, %v8082_v16  ;;  %v3319_v17 = vpack.c.bf16 %v3282_v50, %v3281_v55  ;;  %v3251_v58 = vadd.f32 %v11081_v34, %v3211_v26 }
 0x94e   : > { %v8085_v30 = vpop.f32.mrf.mxu1 }
 0x94f   : > { %v3212_v20 = vadd.f32 %v8084_v7, %v3180_v45  ;;  %3547 = vmatmul.mubr.bf16.gmra.mxu0 %v3319_v17  ;;  %v3283_v9 = vmax.f32 %v3251_v58, 0.0  ;;  %v13674_v7 = vld [vmem:[#allocation7_spill] sm:$0xff]  ;;  %v13675_v17 = vld [vmem:[#allocation104_spill] sm:$0xff] }
 0x950   : > { %v8086_v6 = vpop.f32.mrf.mxu1  ;;  %3556 = vmatprep.mubr.bf16.mxu0 %v13623_v13 }
 0x951   : > { %v3252_v25 = vadd.f32 %v11081_v34, %v3212_v20  ;;  %v8087_v61 = vadd.f32 %v8086_v6, %v8085_v30  ;;  %v3184_v30 = vmul.f32 %v13675_v17, %v13674_v7 }
 0x952   : > { %v8088_v24 = vpop.f32.mrf.mxu1 }
 0x953   : > { %v3284_v47 = vmax.f32 %v3252_v25, 0.0  ;;  %v3213_v42 = vadd.f32 %v8087_v61, %v3181_v53  ;;  %v13676_v61 = vld [vmem:[#allocation8_spill] sm:$0xff] }
 0x954   : > { %v8089_v31 = vpop.f32.mrf.mxu1 }
 0x955   : > { %v8090_v57 = vadd.f32 %v8089_v31, %v8088_v24  ;;  %v3320_v39 = vpack.c.bf16 %v3284_v47, %v3283_v9  ;;  %v3253_v38 = vadd.f32 %v11081_v34, %v3213_v42  ;;  %v13677_v24 = vld [vmem:[#allocation105_spill] sm:$0xff] }
 0x956   : > { %v8091_v56 = vpop.f32.mrf.mxu1  ;;  %v3185_v9 = vmul.f32 %v13677_v24, %v13676_v61 }
 0x957   : > { %v3214_v29 = vadd.f32 %v8090_v57, %v3182_v63  ;;  %3557 = vmatmul.mubr.bf16.gmra.mxu0 %v3320_v39  ;;  %v3285_v26 = vmax.f32 %v3253_v38, 0.0 }
 0x958   : > { %v8092_v62 = vpop.f32.mrf.mxu1  ;;  %3566 = vmatprep.mubr.bf16.mxu0 %v13623_v13 }
 0x959   : > { %v3254_v16 = vadd.f32 %v11081_v34, %v3214_v29  ;;  %v8093_v55 = vadd.f32 %v8092_v62, %v8091_v56  ;;  %v13678_v56 = vld [vmem:[#allocation9_spill] sm:$0xff] }
 0x95a   : > { %v8094_v50 = vpop.f32.mrf.mxu1  ;;  %v3186_v38 = vmul.f32 %v10982_v10, %v13678_v56 }
 0x95b   : > { %v3286_v33 = vmax.f32 %v3254_v16, 0.0  ;;  %v3215_v54 = vadd.f32 %v8093_v55, %v3183_v46 }
 0x95c   : > { %v8095_v45 = vpop.f32.mrf.mxu1 }
 0x95d   : > { %v8096_v58 = vadd.f32 %v8095_v45, %v8094_v50  ;;  %v3321_v20 = vpack.c.bf16 %v3286_v33, %v3285_v26  ;;  %v3255_v28 = vadd.f32 %v11081_v34, %v3215_v54 }
 0x95e   : > { %v8097_v6 = vpop.f32.mrf.mxu1 }
 0x95f   : > { %v3216_v53 = vadd.f32 %v8096_v58, %v3184_v30  ;;  %3567 = vmatmul.mubr.bf16.gmra.mxu0 %v3321_v20  ;;  %v3287_v14 = vmax.f32 %v3255_v28, 0.0 }
 0x960   : > { %v8098_v25 = vpop.f32.mrf.mxu1  ;;  %3576 = vmatprep.mubr.bf16.mxu0 %v13623_v13 }
 0x961   : > { %v3256_v47 = vadd.f32 %v11081_v34, %v3216_v53  ;;  %v8099_v42 = vadd.f32 %v8098_v25, %v8097_v6 }
 0x962   : > { %v8100_v31 = vpop.f32.mrf.mxu1 }
 0x963   : > { %v3288_v63 = vmax.f32 %v3256_v47, 0.0  ;;  %v3217_v57 = vadd.f32 %v8099_v42, %v3185_v9 }
 0x964   : > { %v8101_v39 = vpop.f32.mrf.mxu1 }
 0x965   : > { %v8102_v29 = vadd.f32 %v8101_v39, %v8100_v31  ;;  %v3322_v62 = vpack.c.bf16 %v3288_v63, %v3287_v14  ;;  %v3257_v3 = vadd.f32 %v11081_v34, %v3217_v57 }
 0x967   : > { %v3218_v46 = vadd.f32 %v8102_v29, %v3186_v38  ;;  %3577 = vmatmul.mubr.bf16.gmra.mxu0 %v3322_v62  ;;  %v3289_v55 = vmax.f32 %v3257_v3, 0.0 }
 0x968   : > { %3586 = vmatprep.mubr.bf16.mxu0 %v13623_v13 }
 0x969   : > { %v3258_v16 = vadd.f32 %v11081_v34, %v3218_v46 }
 0x96b   : > { %v3290_v50 = vmax.f32 %v3258_v16, 0.0 }
 0x96d   : > { %v3323_v26 = vpack.c.bf16 %v3290_v50, %v3289_v55 }
 0x96f   : > { %3587 = vmatmul.mubr.bf16.gmra.mxu0 %v3323_v26 }
 0x970   : > { %4111 = vmatprep.mubr.bf16.mxu0 %v13623_v13 }
 0x9b7   : > { %v11193_v33 = vpop.f32.mrf.mxu0 }
 0x9b9   : > { %v11195_v54 = vpop.f32.mrf.mxu0 }
 0x9bb   : > { %v11197_v10 = vpop.f32.mrf.mxu0 }
 0x9bd   : > { %v11199_v45 = vpop.f32.mrf.mxu0 }
 0x9bf   : > { %v11201_v17 = vpop.f32.mrf.mxu0 }
 0x9c1   : > { %v11203_v30 = vpop.f32.mrf.mxu0 }
 0x9c3   : > { %v11205_v58 = vpop.f32.mrf.mxu0 }
 0x9c5   : > { %v11207_v34 = vpop.f32.mrf.mxu0 }
 0x9c7   : > { %v11209_v20 = vpop.f32.mrf.mxu0 }
 0x9c9   : > { %v11211_v6 = vpop.f32.mrf.mxu0 }
 0x9cb   : > { %v11213_v28 = vpop.f32.mrf.mxu0 }
 0x9cd   : > { %v11215_v53 = vpop.f32.mrf.mxu0 }
 0x9cf   : > { %v11217_v25 = vpop.f32.mrf.mxu0 }
 0x9d1   : > { %v11219_v24 = vpop.f32.mrf.mxu0 }
 0x9d3   : > { %v11221_v9 = vpop.f32.mrf.mxu0 }
 0x9d5   : > { %v11223_v47 = vpop.f32.mrf.mxu0 }
 0x9d7   : > { %v11225_v42 = vpop.f32.mrf.mxu0 }
 0x9d9   : > { %v11227_v31 = vpop.f32.mrf.mxu0 }
 0x9db   : > { %v11229_v14 = vpop.f32.mrf.mxu0 }
 0x9dd   : > { %v3484_v63 = vpop.f32.mrf.mxu0 }
 0x9df   : > { %v11231_v57 = vpop.f32.mrf.mxu0 }
 0x9e0   : > { %13679 = vst [vmem:[#allocation55_spill] sm:$0xff] %v11231_v57 }
 0x9e1   : > { %v3490_v39 = vpop.f32.mrf.mxu0 }
 0x9e3   : > { %v11233_v38 = vpop.f32.mrf.mxu0 }
 0x9e4   : > { %13680 = vst [vmem:[#allocation56_spill] sm:$0xff] %v11233_v38 }
 0x9e5   : > { %v3494_v29 = vpop.f32.mrf.mxu0 }
 0x9e7   : > { %v11235_v62 = vpop.f32.mrf.mxu0 }
 0x9e8   : > { %13681 = vst [vmem:[#allocation57_spill] sm:$0xff] %v11235_v62 }
 0x9e9   : > { %v3500_v3 = vpop.f32.mrf.mxu0 }
 0x9eb   : > { %v11237_v46 = vpop.f32.mrf.mxu0 }
 0x9ec   : > { %13682 = vst [vmem:[#allocation58_spill] sm:$0xff] %v11237_v46 }
 0x9ed   : > { %v3504_v16 = vpop.f32.mrf.mxu0 }
 0x9ef   : > { %v11239_v55 = vpop.f32.mrf.mxu0 }
 0x9f0   : > { %13683 = vst [vmem:[#allocation59_spill] sm:$0xff] %v11239_v55 }
 0x9f1   : > { %v3510_v50 = vpop.f32.mrf.mxu0 }
 0x9f3   : > { %v11241_v26 = vpop.f32.mrf.mxu0 }
 0x9f4   : > { %13684 = vst [vmem:[#allocation60_spill] sm:$0xff] %v11241_v26 }
 0x9f5   : > { %v3514_v56 = vpop.f32.mrf.mxu0 }
 0x9f6   : > { %v3604_v38 = vpack.c.bf16 %v3514_v56, %v3510_v50  ;;  %v9061_v56 = vld [vmem:[%s13097_s2 + $0x50] ss:$8 sps:$4 sm:$0xff]   ;;  %v8747_v50 = vld [vmem:[%s13100_s5 + $0x2a4] ss:$8 sps:$4 sm:$0xff]  }
 0x9f7   : > { %v11243_v61 = vpop.f32.mrf.mxu0 }
 0x9f8   : > { %13685 = vst [vmem:[#allocation61_spill] sm:$0xff] %v11243_v61 }
 0x9f9   : > { %v3520_v7 = vpop.f32.mrf.mxu0 }
 0x9fb   : > { %v11245_v41 = vpop.f32.mrf.mxu0 }
 0x9fc   : > { %13686 = vst [vmem:[#allocation62_spill] sm:$0xff] %v11245_v41 }
 0x9fd   : > { %v3524_v48 = vpop.f32.mrf.mxu0 }
 0x9ff   : > { %v11247_v40 = vpop.f32.mrf.mxu0 }
 0xa00   : > { %13687 = vst [vmem:[#allocation63_spill] sm:$0xff] %v11247_v40 }
 0xa01   : > { %v3530_v51 = vpop.f32.mrf.mxu0 }
 0xa03   : > { %v11249_v60 = vpop.f32.mrf.mxu0 }
 0xa04   : > { %13688 = vst [vmem:[#allocation21_spill] sm:$0xff] %v11249_v60 }
 0xa05   : > { %v3534_v11 = vpop.f32.mrf.mxu0 }
 0xa07   : > { %v11251_v18 = vpop.f32.mrf.mxu0 }
 0xa08   : > { %13689 = vst [vmem:[#allocation75_spill] sm:$0xff] %v11251_v18 }
 0xa09   : > { %v3540_v37 = vpop.f32.mrf.mxu0 }
 0xa0b   : > { %v11253_v1 = vpop.f32.mrf.mxu0 }
 0xa0c   : > { %13690 = vst [vmem:[#allocation22_spill] sm:$0xff] %v11253_v1 }
 0xa0d   : > { %v3544_v19 = vpop.f32.mrf.mxu0 }
 0xa0f   : > { %v11255_v4 = vpop.f32.mrf.mxu0 }
 0xa10   : > { %13691 = vst [vmem:[#allocation76_spill] sm:$0xff] %v11255_v4 }
 0xa11   : > { %v3550_v15 = vpop.f32.mrf.mxu0 }
 0xa13   : > { %v11257_v61 = vpop.f32.mrf.mxu0 }
 0xa14   : > { %13692 = vst [vmem:[#allocation23_spill] sm:$0xff] %v11257_v61 }
 0xa15   : > { %v3554_v21 = vpop.f32.mrf.mxu0 }
 0xa17   : > { %v11259_v41 = vpop.f32.mrf.mxu0 }
 0xa18   : > { %13693 = vst [vmem:[#allocation77_spill] sm:$0xff] %v11259_v41 }
 0xa19   : > { %v3560_v26 = vpop.f32.mrf.mxu0 }
 0xa1b   : > { %v11261_v40 = vpop.f32.mrf.mxu0 }
 0xa1c   : > { %13694 = vst [vmem:[#allocation24_spill] sm:$0xff] %v11261_v40 }
 0xa1d   : > { %v3564_v8 = vpop.f32.mrf.mxu0 }
 0xa1e   : > { %v3609_v57 = vpack.c.bf16 %v3564_v8, %v3560_v26  ;;  %v3598_v8 = vpack.c.bf16 %v11207_v34, %v11203_v30  ;;  %v9064_v30 = vld [vmem:[%s13097_s2 + $0x74] ss:$8 sps:$4 sm:$0xff]   ;;  %v9065_v34 = vld [vmem:[%s13097_s2 + $0x70] ss:$8 sps:$4 sm:$0xff]   ;;  %v8745_v26 = vld [vmem:[%s13100_s5 + $0x2a0] ss:$8 sps:$4 sm:$0xff]  }
 0xa1f   : > { %v11263_v60 = vpop.f32.mrf.mxu0 }
 0xa20   : > { %13695 = vst [vmem:[#allocation78_spill] sm:$0xff] %v11263_v60 }
 0xa21   : > { %v3570_v55 = vpop.f32.mrf.mxu0 }
 0xa23   : > { %v11265_v18 = vpop.f32.mrf.mxu0 }
 0xa24   : > { %13696 = vst [vmem:[#allocation25_spill] sm:$0xff] %v11265_v18  ;;  %v3603_v18 = vpack.c.bf16 %v3504_v16, %v3500_v3  ;;  %v8744_v3 = vld [vmem:[%s13100_s5 + $0x2b4] ss:$8 sps:$4 sm:$0xff]   ;;  %v9071_v16 = vld [vmem:[%s13097_s2 + $0xa0] ss:$8 sps:$4 sm:$0xff]  }
 0xa25   : > { %v3574_v59 = vpop.f32.mrf.mxu0 }
 0xa26   : > { %v3610_v60 = vpack.c.bf16 %v3574_v59, %v3570_v55  ;;  %v3606_v59 = vpack.c.bf16 %v3534_v11, %v3530_v51  ;;  %v9054_v11 = vld [vmem:[%s13097_s2 + $0x24] ss:$8 sps:$4 sm:$0xff]   ;;  %v9056_v51 = vld [vmem:[%s13097_s2 + $0x34] ss:$8 sps:$4 sm:$0xff]  }
 0xa27   : > { %v11267_v1 = vpop.f32.mrf.mxu0  ;;  %v9072_v55 = vld [vmem:[%s13097_s2 + $0xb4] ss:$8 sps:$4 sm:$0xff]  }
 0xa28   : > { %13697 = vst [vmem:[#allocation79_spill] sm:$0xff] %v11267_v1  ;;  %v3602_v1 = vpack.c.bf16 %v3494_v29, %v3490_v39  ;;  %v9069_v39 = vld [vmem:[%s13097_s2 + $0x90] ss:$8 sps:$4 sm:$0xff]   ;;  %v8741_v29 = vld [vmem:[%s13100_s5 + $0x2c4] ss:$8 sps:$4 sm:$0xff]  }
 0xa29   : > { %v3580_v46 = vpop.f32.mrf.mxu0 }
 0xa2b   : > { %v11269_v4 = vpop.f32.mrf.mxu0 }
 0xa2c   : > { %13698 = vst [vmem:[#allocation26_spill] sm:$0xff] %v11269_v4  ;;  %v3608_v4 = vpack.c.bf16 %v3554_v21, %v3550_v15  ;;  %v8730_v21 = vld [vmem:[%s13100_s5 + $0x2f0] ss:$8 sps:$4 sm:$0xff]   ;;  %v8732_v15 = vld [vmem:[%s13100_s5 + $0x2f4] ss:$8 sps:$4 sm:$0xff]  }
 0xa2d   : > { %v3584_v27 = vpop.f32.mrf.mxu0  ;;  %4079 = vmatprep.subr.bf16.mxu0 %v8732_v15  ;;  %v9076_v15 = vld [vmem:[%s13097_s2 + $0xd4] ss:$8 sps:$4 sm:$0xff]  }
 0xa2e   : > { %v3611_v23 = vpack.c.bf16 %v3584_v27, %v3580_v46  ;;  %v3607_v27 = vpack.c.bf16 %v3544_v19, %v3540_v37  ;;  %4080 = vmatpush1.bf16.msra.mxu0 %v8730_v21  ;;  %v9051_v19 = vld [vmem:[%s13097_s2] ss:$8 sps:$4 sm:$0xff]   ;;  %v9052_v37 = vld [vmem:[%s13097_s2 + $0x14] ss:$8 sps:$4 sm:$0xff]   ;;  %v8742_v46 = vld [vmem:[%s13100_s5 + $0x2b0] ss:$8 sps:$4 sm:$0xff]  }
 0xa2f   : > { %v11271_v61 = vpop.f32.mrf.mxu0  ;;  %v9075_v21 = vld [vmem:[%s13097_s2 + $0xc0] ss:$8 sps:$4 sm:$0xff]  }
 0xa30   : > { %13699 = vst [vmem:[#allocation80_spill] sm:$0xff] %v11271_v61  ;;  %v3601_v61 = vpack.c.bf16 %v3484_v63, %v11227_v31  ;;  %v8733_v31 = vld [vmem:[%s13100_s5 + $0x2e0] ss:$8 sps:$4 sm:$0xff]   ;;  %v8738_v63 = vld [vmem:[%s13100_s5 + $0x2d4] ss:$8 sps:$4 sm:$0xff]  }
 0xa31   : > { %v3590_v62 = vpop.f32.mrf.mxu0 }
 0xa33   : > { %v11273_v41 = vpop.f32.mrf.mxu0 }
 0xa35   : > { %v3594_v36 = vpop.f32.mrf.mxu0 }
 0xa36   : > { %v3612_v40 = vpack.c.bf16 %v3594_v36, %v3590_v62  ;;  %v3600_v36 = vpack.c.bf16 %v11223_v47, %v11219_v24  ;;  %v9068_v24 = vld [vmem:[%s13097_s2 + $0x94] ss:$8 sps:$4 sm:$0xff]   ;;  %v8735_v47 = vld [vmem:[%s13100_s5 + $0x2e4] ss:$8 sps:$4 sm:$0xff]   ;;  %v8739_v62 = vld [vmem:[%s13100_s5 + $0x2c0] ss:$8 sps:$4 sm:$0xff]  }
 0xa37   : > { %4081 = vmatprep.subr.bf16.mxu0 %v8735_v47 }
 0xa38   : > { %8103 = vmatprep.subr.bf16.mxu1 %v3612_v40  ;;  %v9057_v40 = vld [vmem:[%s13097_s2 + $0x30] ss:$8 sps:$4 sm:$0xff]   ;;  %4082 = vmatpush1.bf16.msra.mxu0 %v8733_v31 }
 0xa39   : > { %8104 = vmatpush3.bf16.msra.mxu1 %v3604_v38  ;;  %4083 = vmatprep.subr.bf16.mxu0 %v8738_v63  ;;  %v9070_v38 = vld [vmem:[%s13097_s2 + $0xa4] ss:$8 sps:$4 sm:$0xff]  }
 0xa3a   : > { %8105 = vmatprep.subr.bf16.mxu1 %v3611_v23  ;;  %v3599_v23 = vpack.c.bf16 %v11215_v53, %v11211_v6  ;;  %v9066_v6 = vld [vmem:[%s13097_s2 + $0x84] ss:$8 sps:$4 sm:$0xff]   ;;  %v9067_v53 = vld [vmem:[%s13097_s2 + $0x80] ss:$8 sps:$4 sm:$0xff]  }
 0xa3d   : > { %8106 = vmatpush3.bf16.msra.mxu1 %v3603_v18  ;;  %v9053_v18 = vld [vmem:[%s13097_s2 + $0x10] ss:$8 sps:$4 sm:$0xff]  }
 0xa3e   : > { %8107 = vmatprep.subr.bf16.mxu1 %v3610_v60  ;;  %v9055_v60 = vld [vmem:[%s13097_s2 + $0x20] ss:$8 sps:$4 sm:$0xff]  }
 0xa41   : > { %8108 = vmatpush3.bf16.msra.mxu1 %v3602_v1  ;;  %v3605_v1 = vpack.c.bf16 %v3524_v48, %v3520_v7  ;;  %v9058_v48 = vld [vmem:[%s13097_s2 + $0x44] ss:$8 sps:$4 sm:$0xff]   ;;  %v9059_v7 = vld [vmem:[%s13097_s2 + $0x40] ss:$8 sps:$4 sm:$0xff]  }
 0xa42   : > { %8109 = vmatprep.subr.bf16.mxu1 %v3609_v57  ;;  %v8736_v57 = vld [vmem:[%s13100_s5 + $0x2d0] ss:$8 sps:$4 sm:$0xff]  }
 0xa43   : > { %4084 = vmatpush1.bf16.msra.mxu0 %v8736_v57 }
 0xa44   : > { %4085 = vmatprep.subr.bf16.mxu0 %v8741_v29 }
 0xa45   : > { %8110 = vmatpush3.bf16.msra.mxu1 %v3601_v61  ;;  %v9060_v61 = vld [vmem:[%s13097_s2 + $0x54] ss:$8 sps:$4 sm:$0xff]  }
 0xa46   : > { %8111 = vmatprep.subr.bf16.mxu1 %v3608_v4  ;;  %v3597_v4 = vpack.c.bf16 %v11199_v45, %v11195_v54  ;;  %v9062_v54 = vld [vmem:[%s13097_s2 + $0x64] ss:$8 sps:$4 sm:$0xff]   ;;  %v9063_v45 = vld [vmem:[%s13097_s2 + $0x60] ss:$8 sps:$4 sm:$0xff]  }
 0xa47   : > { %4086 = vmatpush1.bf16.msra.mxu0 %v8739_v62 }
 0xa48   : > { %4087 = vmatprep.subr.bf16.mxu0 %v8744_v3 }
 0xa49   : > { %8112 = vmatpush3.bf16.msra.mxu1 %v3600_v36  ;;  %v8750_v36 = vld [vmem:[%s13100_s5 + $0x294] ss:$8 sps:$4 sm:$0xff]  }
 0xa4a   : > { %8113 = vmatprep.subr.bf16.mxu1 %v3607_v27  ;;  %v8748_v27 = vld [vmem:[%s13100_s5 + $0x290] ss:$8 sps:$4 sm:$0xff]  }
 0xa4b   : > { %4088 = vmatpush1.bf16.msra.mxu0 %v8742_v46  ;;  %v13700_v46 = vld [vmem:[#allocation64_spill] sm:$0xff] }
 0xa4c   : > { %4089 = vmatprep.subr.bf16.mxu0 %v8747_v50  ;;  %v13702_v50 = vld [vmem:[#allocation66_spill] sm:$0xff] }
 0xa4d   : > { %8114 = vmatpush3.bf16.msra.mxu1 %v3599_v23  ;;  %v9073_v23 = vld [vmem:[%s13097_s2 + $0xb0] ss:$8 sps:$4 sm:$0xff]  }
 0xa4e   : > { %8115 = vmatprep.subr.bf16.mxu1 %v3606_v59  ;;  %v9074_v59 = vld [vmem:[%s13097_s2 + $0xc4] ss:$8 sps:$4 sm:$0xff]  }
 0xa4f   : > { %4090 = vmatpush1.bf16.msra.mxu0 %v8745_v26  ;;  %v13703_v26 = vmax.f32 %v13702_v50, 0.0  ;;  %v13712_v50 = vld [vmem:[#allocation69_spill] sm:$0xff] }
 0xa50   : > { %4091 = vmatprep.subr.bf16.mxu0 %v8750_v36 }
 0xa51   : > { %8116 = vmatpush3.bf16.msra.mxu1 %v3598_v8  ;;  %v8753_v8 = vld [vmem:[%s13100_s5 + $0x284] ss:$8 sps:$4 sm:$0xff]  }
 0xa52   : > { %8117 = vmatprep.subr.bf16.mxu1 %v3605_v1  ;;  %v8751_v1 = vld [vmem:[%s13100_s5 + $0x280] ss:$8 sps:$4 sm:$0xff]  }
 0xa53   : > { %4092 = vmatpush1.bf16.msra.mxu0 %v8748_v27 }
 0xa54   : > { %4093 = vmatprep.subr.bf16.mxu0 %v8753_v8 }
 0xa55   : > { %8118 = vmatpush3.bf16.msra.mxu1 %v3597_v4  ;;  %v9077_v4 = vld [vmem:[%s13097_s2 + $0xd0] ss:$8 sps:$4 sm:$0xff]  }
 0xa57   : > { %4094 = vmatpush1.bf16.msra.mxu0 %v8751_v1 }
 0xa58   : > { %3646 = vmatmul.mubr.bf16.vlgmr.msra.gmra.mxu1 %v9051_v19  ;;  %v9078_v19 = vld [vmem:[%s13097_s2 + $0xe4] ss:$8 sps:$4 sm:$0xff]  }
 0xa59   : > { %3653 = vmatprep.mubr.bf16.mxu1 %v9052_v37  ;;  %v9079_v37 = vld [vmem:[%s13097_s2 + $0xe0] ss:$8 sps:$4 sm:$0xff]  }
 0xa60   : > { %3654 = vmatmul.mubr.bf16.gmra.mxu1 %v9053_v18  ;;  %v9080_v18 = vld [vmem:[%s13097_s2 + $0xf4] ss:$8 sps:$4 sm:$0xff]  }
 0xa61   : > { %3661 = vmatprep.mubr.bf16.mxu1 %v9054_v11  ;;  %v9081_v11 = vld [vmem:[%s13097_s2 + $0xf0] ss:$8 sps:$4 sm:$0xff]  }
 0xa68   : > { %3662 = vmatmul.mubr.bf16.gmra.mxu1 %v9055_v60 }
 0xa69   : > { %3669 = vmatprep.mubr.bf16.mxu1 %v9056_v51 }
 0xa70   : > { %3670 = vmatmul.mubr.bf16.gmra.mxu1 %v9057_v40 }
 0xa71   : > { %3677 = vmatprep.mubr.bf16.mxu1 %v9058_v48  ;;  %v3774_v48 = vmul.f32 %v11193_v33, %v13615_v12 }
 0xa78   : > { %3678 = vmatmul.mubr.bf16.gmra.mxu1 %v9059_v7 }
 0xa79   : > { %3685 = vmatprep.mubr.bf16.mxu1 %v9060_v61 }
 0xa80   : > { %3686 = vmatmul.mubr.bf16.gmra.mxu1 %v9061_v56 }
 0xa81   : > { %3693 = vmatprep.mubr.bf16.mxu1 %v9062_v54  ;;  %v11430_v54 = vld [vmem:[%s13101_s6 + $0x4] ss:$0 sm:$0xff] }
 0xa88   : > { %3694 = vmatmul.mubr.bf16.gmra.mxu1 %v9063_v45 }
 0xa89   : > { %3701 = vmatprep.mubr.bf16.mxu1 %v9064_v30 }
 0xa90   : > { %3702 = vmatmul.mubr.bf16.gmra.mxu1 %v9065_v34  ;;  %v3775_v34 = vmul.f32 %v11197_v10, %v13617_v44 }
 0xa91   : > { %3709 = vmatprep.mubr.bf16.mxu1 %v9066_v6 }
 0xa98   : > { %3710 = vmatmul.mubr.bf16.gmra.mxu1 %v9067_v53 }
 0xa99   : > { %3717 = vmatprep.mubr.bf16.mxu1 %v9068_v24  ;;  %v3776_v24 = vmul.f32 %v11201_v17, %v13619_v0 }
 0xaa0   : > { %3718 = vmatmul.mubr.bf16.gmra.mxu1 %v9069_v39  ;;  %v3777_v39 = vmul.f32 %v11205_v58, %v13621_v52  ;;  %v3778_v52 = vmul.f32 %v11209_v20, %v13624_v22  ;;  %v3780_v22 = vmul.f32 %v11217_v25, %v13628_v32 }
 0xaa1   : > { %3725 = vmatprep.mubr.bf16.mxu1 %v9070_v38 }
 0xaa8   : > { %3726 = vmatmul.mubr.bf16.gmra.mxu1 %v9071_v16  ;;  %v13701_v16 = vmax.f32 %v13700_v46, 0.0 }
 0xaa9   : > { %3733 = vmatprep.mubr.bf16.mxu1 %v9072_v55 }
 0xab0   : > { %3734 = vmatmul.mubr.bf16.gmra.mxu1 %v9073_v23 }
 0xab1   : > { %3741 = vmatprep.mubr.bf16.mxu1 %v9074_v59 }
 0xab8   : > { %3742 = vmatmul.mubr.bf16.gmra.mxu1 %v9075_v21 }
 0xab9   : > { %3749 = vmatprep.mubr.bf16.mxu1 %v9076_v15  ;;  %v13704_v15 = vld [vmem:[#allocation65_spill] sm:$0xff] }
 0xac0   : > { %3750 = vmatmul.mubr.bf16.gmra.mxu1 %v9077_v4  ;;  %v13705_v4 = vmax.f32 %v13704_v15, 0.0 }
 0xac1   : > { %3757 = vmatprep.mubr.bf16.mxu1 %v9078_v19 }
 0xac8   : > { %3758 = vmatmul.mubr.bf16.gmra.mxu1 %v9079_v37  ;;  %v13706_v37 = vld [vmem:[#allocation67_spill] sm:$0xff] }
 0xac9   : > { %3765 = vmatprep.mubr.bf16.mxu1 %v9080_v18  ;;  %v13707_v18 = vmax.f32 %v13706_v37, 0.0 }
 0xad0   : > { %3766 = vmatmul.mubr.bf16.gmra.mxu1 %v9081_v11 }
 0xb18   : > { %v8119_v60 = vpop.f32.mrf.mxu1 }
 0xb1a   : > { %v8120_v51 = vpop.f32.mrf.mxu1 }
 0xb1b   : > { %v8121_v40 = vadd.f32 %v8120_v51, %v8119_v60 }
 0xb1c   : > { %v8122_v7 = vpop.f32.mrf.mxu1 }
 0xb1d   : > { %v3806_v61 = vadd.f32 %v8121_v40, %v3774_v48  ;;  %v3779_v40 = vmul.f32 %v11213_v28, %v13626_v43 }
 0xb1e   : > { %v8123_v56 = vpop.f32.mrf.mxu1 }
 0xb1f   : > { %v8124_v45 = vadd.f32 %v8123_v56, %v8122_v7  ;;  %v3846_v6 = vadd.f32 %v11430_v54, %v3806_v61 }
 0xb20   : > { %v8125_v30 = vpop.f32.mrf.mxu1 }
 0xb21   : > { %v3807_v12 = vadd.f32 %v8124_v45, %v3775_v34  ;;  %v3878_v63 = vmax.f32 %v3846_v6, 0.0 }
 0xb22   : > { %v8126_v53 = vpop.f32.mrf.mxu1 }
 0xb23   : > { %v8127_v33 = vadd.f32 %v8126_v53, %v8125_v30  ;;  %v3847_v38 = vadd.f32 %v11430_v54, %v3807_v12  ;;  %v3910_v0 = vadd.f32 %v3878_v63, %v13701_v16  ;;  %v13708_v63 = vld [vmem:[#allocation68_spill] sm:$0xff] }
 0xb24   : > { %v8128_v47 = vpop.f32.mrf.mxu1 }
 0xb25   : > { %v3808_v31 = vadd.f32 %v8127_v33, %v3776_v24  ;;  %v3879_v55 = vmax.f32 %v3847_v38, 0.0  ;;  %v3781_v33 = vmul.f32 %v11221_v9, %v13630_v2 }
 0xb26   : > { %v8129_v57 = vpop.f32.mrf.mxu1 }
 0xb27   : > { %v3848_v29 = vadd.f32 %v11430_v54, %v3808_v31  ;;  %v8130_v44 = vadd.f32 %v8129_v57, %v8128_v47  ;;  %v3911_v19 = vadd.f32 %v3879_v55, %v13705_v4  ;;  %v13709_v57 = vmax.f32 %v13708_v63, 0.0 }
 0xb28   : > { %v8131_v10 = vpop.f32.mrf.mxu1 }
 0xb29   : > { %v3880_v62 = vmax.f32 %v3848_v29, 0.0  ;;  %v3809_v3 = vadd.f32 %v8130_v44, %v3777_v39  ;;  %v13710_v44 = vld [vmem:[#allocation70_spill] sm:$0xff] }
 0xb2a   : > { %v8132_v17 = vpop.f32.mrf.mxu1 }
 0xb2b   : > { %v3912_v36 = vadd.f32 %v3880_v62, %v13703_v26  ;;  %v3849_v27 = vadd.f32 %v11430_v54, %v3809_v3  ;;  %v8133_v23 = vadd.f32 %v8132_v17, %v8131_v10  ;;  %v13711_v10 = vmax.f32 %v13710_v44, 0.0  ;;  %v13725_v44 = vld [vmem:[#allocation73_spill] sm:$0xff] }
 0xb2c   : > { %v8134_v58 = vpop.f32.mrf.mxu1  ;;  %v3782_v3 = vmul.f32 %v11225_v42, %v13632_v35  ;;  %v13713_v26 = vmax.f32 %v13712_v50, 0.0 }
 0xb2d   : > { %v3942_v59 = vadd.f32 %v3912_v36, %v3910_v0  ;;  %v3881_v8 = vmax.f32 %v3849_v27, 0.0  ;;  %v3810_v1 = vadd.f32 %v8133_v23, %v3778_v52  ;;  %v13714_v27 = vld [vmem:[#allocation71_spill] sm:$0xff] }
 0xb2e   : > { %v8135_v21 = vpop.f32.mrf.mxu1  ;;  %v13715_v23 = vmax.f32 %v13714_v27, 0.0 }
 0xb2f   : > { %v3913_v11 = vadd.f32 %v3881_v8, %v13707_v18  ;;  %v8136_v60 = vadd.f32 %v8135_v21, %v8134_v58  ;;  %v3850_v20 = vadd.f32 %v11430_v54, %v3810_v1  ;;  %v3958_v61 = vmul.f32 0.5, %v3942_v59  ;;  %v13716_v21 = vld [vmem:[#allocation55_spill] sm:$0xff] }
 0xb30   : > { %v8137_v51 = vpop.f32.mrf.mxu1  ;;  %v3783_v8 = vmul.f32 %v11229_v14, %v13634_v49  ;;  %v3784_v35 = vmul.f32 %v13716_v21, %v13636_v5 }
 0xb31   : > { %v3943_v48 = vadd.f32 %v3913_v11, %v3911_v19  ;;  %v3811_v45 = vadd.f32 %v8136_v60, %v3779_v40  ;;  %v3882_v24 = vmax.f32 %v3850_v20, 0.0  ;;  %v13718_v20 = vld [vmem:[#allocation56_spill] sm:$0xff] }
 0xb32   : > { %v8138_v7 = vpop.f32.mrf.mxu1 }
 0xb33   : > { %v3959_v56 = vmul.f32 0.5, %v3943_v48  ;;  %v8139_v30 = vadd.f32 %v8138_v7, %v8137_v51  ;;  %v3851_v43 = vadd.f32 %v11430_v54, %v3811_v45  ;;  %v3914_v39 = vadd.f32 %v3882_v24, %v13709_v57 }
 0xb34   : > { %v8140_v34 = vpop.f32.mrf.mxu1 }
 0xb35   : > { %v3991_v6 = vpack.c.bf16 %v3959_v56, %v3958_v61  ;;  %v3812_v53 = vadd.f32 %v8139_v30, %v3780_v22  ;;  %v3883_v29 = vmax.f32 %v3851_v43, 0.0  ;;  %v13717_v22 = vld [vmem:[#allocation32_spill] sm:$0xff] }
 0xb36   : > { %v8141_v12 = vpop.f32.mrf.mxu1  ;;  %v3785_v7 = vmul.f32 %v13718_v20, %v13717_v22  ;;  %v13719_v30 = vld [vmem:[#allocation72_spill] sm:$0xff]  ;;  %v13735_v20 = vld [vmem:[#allocation11_spill] sm:$0xff] }
 0xb37   : > { %v3852_v28 = vadd.f32 %v11430_v54, %v3812_v53  ;;  %v8142_v32 = vadd.f32 %v8141_v12, %v8140_v34  ;;  %4112 = vmatmul.mubr.bf16.vlgmr.msra.gmra.mxu0 %v3991_v6  ;;  %v3915_v36 = vadd.f32 %v3883_v29, %v13713_v26  ;;  %v13720_v34 = vmax.f32 %v13719_v30, 0.0  ;;  %v13721_v12 = vld [vmem:[#allocation74_spill] sm:$0xff]  ;;  %v13731_v26 = vld [vmem:[#allocation35_spill] sm:$0xff] }
 0xb38   : > { %v8143_v25 = vpop.f32.mrf.mxu1  ;;  %4121 = vmatprep.mubr.bf16.mxu0 %v13623_v13 }
 0xb39   : > { %v3884_v47 = vmax.f32 %v3852_v28, 0.0  ;;  %v3813_v31 = vadd.f32 %v8142_v32, %v3781_v33  ;;  %v13722_v33 = vmax.f32 %v13721_v12, 0.0 }
 0xb3a   : > { %v8144_v38 = vpop.f32.mrf.mxu1 }
 0xb3b   : > { %v3916_v62 = vadd.f32 %v3884_v47, %v13711_v10  ;;  %v3853_v2 = vadd.f32 %v11430_v54, %v3813_v31  ;;  %v8145_v9 = vadd.f32 %v8144_v38, %v8143_v25  ;;  %v13723_v25 = vld [vmem:[#allocation33_spill] sm:$0xff]  ;;  %v13726_v10 = vmax.f32 %v13725_v44, 0.0  ;;  %v13745_v44 = vld [vmem:[#allocation38_spill] sm:$0xff] }
 0xb3c   : > { %v8146_v46 = vpop.f32.mrf.mxu1  ;;  %v13724_v47 = vld [vmem:[#allocation57_spill] sm:$0xff] }
 0xb3d   : > { %v3944_v16 = vadd.f32 %v3916_v62, %v3914_v39  ;;  %v3885_v0 = vmax.f32 %v3853_v2, 0.0  ;;  %v3814_v17 = vadd.f32 %v8145_v9, %v3782_v3  ;;  %v3786_v31 = vmul.f32 %v13724_v47, %v13723_v25  ;;  %v13727_v2 = vld [vmem:[#allocation10_spill] sm:$0xff]  ;;  %v13741_v25 = vld [vmem:[#allocation12_spill] sm:$0xff] }
 0xb3e   : > { %v8147_v55 = vpop.f32.mrf.mxu1  ;;  %v13728_v9 = vmax.f32 %v13727_v2, 0.0  ;;  %v13742_v47 = vmax.f32 %v13741_v25, 0.0  ;;  %v13761_v25 = vld [vmem:[#allocation42_spill] sm:$0xff] }
 0xb3f   : > { %v3917_v52 = vadd.f32 %v3885_v0, %v13715_v23  ;;  %v8148_v58 = vadd.f32 %v8147_v55, %v8146_v46  ;;  %v3854_v42 = vadd.f32 %v11430_v54, %v3814_v17  ;;  %v3960_v37 = vmul.f32 0.5, %v3944_v16  ;;  %v13729_v0 = vld [vmem:[#allocation34_spill] sm:$0xff] }
 0xb40   : > { %v8149_v59 = vpop.f32.mrf.mxu1  ;;  %v13730_v17 = vld [vmem:[#allocation58_spill] sm:$0xff] }
 0xb41   : > { %v3945_v1 = vadd.f32 %v3917_v52, %v3915_v36  ;;  %v3815_v4 = vadd.f32 %v8148_v58, %v3783_v8  ;;  %v3886_v40 = vmax.f32 %v3854_v42, 0.0  ;;  %v3787_v55 = vmul.f32 %v13730_v17, %v13729_v0  ;;  %v13732_v36 = vld [vmem:[#allocation59_spill] sm:$0xff] }
 0xb42   : > { %v8150_v15 = vpop.f32.mrf.mxu1  ;;  %v3788_v27 = vmul.f32 %v13732_v36, %v13731_v26 }
 0xb43   : > { %v8151_v19 = vadd.f32 %v8150_v15, %v8149_v59  ;;  %v3961_v18 = vmul.f32 0.5, %v3945_v1  ;;  %v3855_v49 = vadd.f32 %v11430_v54, %v3815_v4  ;;  %v3918_v6 = vadd.f32 %v3886_v40, %v13720_v34 }
 0xb44   : > { %v8152_v11 = vpop.f32.mrf.mxu1 }
 0xb45   : > { %v3816_v60 = vadd.f32 %v8151_v19, %v3784_v35  ;;  %v3992_v51 = vpack.c.bf16 %v3961_v18, %v3960_v37  ;;  %v3887_v24 = vmax.f32 %v3855_v49, 0.0  ;;  %v13733_v19 = vld [vmem:[#allocation36_spill] sm:$0xff] }
 0xb46   : > { %v8153_v48 = vpop.f32.mrf.mxu1  ;;  %v13734_v37 = vld [vmem:[#allocation60_spill] sm:$0xff] }
 0xb47   : > { %v3856_v14 = vadd.f32 %v11430_v54, %v3816_v60  ;;  %v8154_v5 = vadd.f32 %v8153_v48, %v8152_v11  ;;  %4122 = vmatmul.mubr.bf16.gmra.mxu0 %v3992_v51  ;;  %v3919_v62 = vadd.f32 %v3887_v24, %v13726_v10  ;;  %v3789_v18 = vmul.f32 %v13734_v37, %v13733_v19  ;;  %v13746_v10 = vld [vmem:[#allocation62_spill] sm:$0xff]  ;;  %v13751_v37 = vld [vmem:[#allocation15_spill] sm:$0xff] }
 0xb48   : > { %v8155_v61 = vpop.f32.mrf.mxu1  ;;  %4131 = vmatprep.mubr.bf16.mxu0 %v13623_v13 }
 0xb49   : > { %v3888_v56 = vmax.f32 %v3856_v14, 0.0  ;;  %v3817_v45 = vadd.f32 %v8154_v5, %v3785_v7  ;;  %v13736_v7 = vmax.f32 %v13735_v20, 0.0 }
 0xb4a   : > { %v8156_v53 = vpop.f32.mrf.mxu1 }
 0xb4b   : > { %v3920_v43 = vadd.f32 %v3888_v56, %v13722_v33  ;;  %v3857_v28 = vadd.f32 %v11430_v54, %v3817_v45  ;;  %v8157_v32 = vadd.f32 %v8156_v53, %v8155_v61  ;;  %v13737_v61 = vld [vmem:[#allocation13_spill] sm:$0xff] }
 0xb4c   : > { %v8158_v63 = vpop.f32.mrf.mxu1  ;;  %v13738_v56 = vmax.f32 %v13737_v61, 0.0  ;;  %v13740_v53 = vld [vmem:[#allocation61_spill] sm:$0xff] }
 0xb4d   : > { %v3946_v57 = vadd.f32 %v3920_v43, %v3918_v6  ;;  %v3889_v39 = vmax.f32 %v3857_v28, 0.0  ;;  %v3818_v38 = vadd.f32 %v8157_v32, %v3786_v31  ;;  %v13739_v6 = vld [vmem:[#allocation37_spill] sm:$0xff] }
 0xb4e   : > { %v8159_v29 = vpop.f32.mrf.mxu1  ;;  %v3790_v24 = vmul.f32 %v13740_v53, %v13739_v6  ;;  %v13757_v6 = vld [vmem:[#allocation16_spill] sm:$0xff] }
 0xb4f   : > { %v3921_v3 = vadd.f32 %v3889_v39, %v13728_v9  ;;  %v8160_v46 = vadd.f32 %v8159_v29, %v8158_v63  ;;  %v3858_v23 = vadd.f32 %v11430_v54, %v3818_v38  ;;  %v3962_v8 = vmul.f32 0.5, %v3946_v57  ;;  %v13743_v63 = vld [vmem:[#allocation14_spill] sm:$0xff]  ;;  %v13747_v9 = vld [vmem:[#allocation39_spill] sm:$0xff] }
 0xb50   : > { %v8161_v16 = vpop.f32.mrf.mxu1  ;;  %v13744_v57 = vmax.f32 %v13743_v63, 0.0  ;;  %v13758_v53 = vmax.f32 %v13757_v6, 0.0  ;;  %v13777_v6 = vld [vmem:[#allocation4_spill] sm:$0xff] }
 0xb51   : > { %v3947_v50 = vadd.f32 %v3921_v3, %v3919_v62  ;;  %v3819_v58 = vadd.f32 %v8160_v46, %v3787_v55  ;;  %v3890_v15 = vmax.f32 %v3858_v23, 0.0  ;;  %v3791_v62 = vmul.f32 %v13746_v10, %v13745_v44  ;;  %v13748_v3 = vld [vmem:[#allocation63_spill] sm:$0xff] }
 0xb52   : > { %v8162_v52 = vpop.f32.mrf.mxu1  ;;  %v3792_v46 = vmul.f32 %v13748_v3, %v13747_v9 }
 0xb53   : > { %v8163_v59 = vadd.f32 %v8162_v52, %v8161_v16  ;;  %v3963_v1 = vmul.f32 0.5, %v3947_v50  ;;  %v3859_v11 = vadd.f32 %v11430_v54, %v3819_v58  ;;  %v3922_v49 = vadd.f32 %v3890_v15, %v13736_v7 }
 0xb54   : > { %v8164_v21 = vpop.f32.mrf.mxu1 }
 0xb55   : > { %v3820_v35 = vadd.f32 %v8163_v59, %v3788_v27  ;;  %v3993_v42 = vpack.c.bf16 %v3963_v1, %v3962_v8  ;;  %v3891_v5 = vmax.f32 %v3859_v11, 0.0  ;;  %v13749_v59 = vld [vmem:[#allocation40_spill] sm:$0xff]  ;;  %v13750_v8 = vld [vmem:[#allocation21_spill] sm:$0xff] }
 0xb56   : > { %v8165_v4 = vpop.f32.mrf.mxu1  ;;  %v3793_v1 = vmul.f32 %v13750_v8, %v13749_v59  ;;  %v13767_v8 = vld [vmem:[#allocation19_spill] sm:$0xff] }
 0xb57   : > { %v3860_v60 = vadd.f32 %v11430_v54, %v3820_v35  ;;  %v8166_v51 = vadd.f32 %v8165_v4, %v8164_v21  ;;  %4132 = vmatmul.mubr.bf16.gmra.mxu0 %v3993_v42  ;;  %v3923_v31 = vadd.f32 %v3891_v5, %v13742_v47  ;;  %v13762_v47 = vld [vmem:[#allocation22_spill] sm:$0xff] }
 0xb58   : > { %v8167_v40 = vpop.f32.mrf.mxu1  ;;  %4141 = vmatprep.mubr.bf16.mxu0 %v13623_v13 }
 0xb59   : > { %v3892_v48 = vmax.f32 %v3860_v60, 0.0  ;;  %v3821_v22 = vadd.f32 %v8166_v51, %v3789_v18  ;;  %v13752_v18 = vmax.f32 %v13751_v37, 0.0 }
 0xb5a   : > { %v8168_v14 = vpop.f32.mrf.mxu1 }
 0xb5b   : > { %v3924_v45 = vadd.f32 %v3892_v48, %v13738_v56  ;;  %v3861_v30 = vadd.f32 %v11430_v54, %v3821_v22  ;;  %v8169_v34 = vadd.f32 %v8168_v14, %v8167_v40  ;;  %v13753_v40 = vld [vmem:[#allocation17_spill] sm:$0xff]  ;;  %v13756_v14 = vld [vmem:[#allocation75_spill] sm:$0xff] }
 0xb5c   : > { %v8170_v12 = vpop.f32.mrf.mxu1  ;;  %v13754_v48 = vmax.f32 %v13753_v40, 0.0 }
 0xb5d   : > { %v3948_v33 = vadd.f32 %v3924_v45, %v3922_v49  ;;  %v3893_v43 = vmax.f32 %v3861_v30, 0.0  ;;  %v3822_v28 = vadd.f32 %v8169_v34, %v3790_v24  ;;  %v13755_v49 = vld [vmem:[#allocation41_spill] sm:$0xff] }
 0xb5e   : > { %v8171_v32 = vpop.f32.mrf.mxu1  ;;  %v3794_v5 = vmul.f32 %v13756_v14, %v13755_v49  ;;  %v13773_v49 = vld [vmem:[#allocation20_spill] sm:$0xff] }
 0xb5f   : > { %v3925_v39 = vadd.f32 %v3893_v43, %v13744_v57  ;;  %v8172_v38 = vadd.f32 %v8171_v32, %v8170_v12  ;;  %v3862_v16 = vadd.f32 %v11430_v54, %v3822_v28  ;;  %v3964_v50 = vmul.f32 0.5, %v3948_v33  ;;  %v13759_v12 = vld [vmem:[#allocation18_spill] sm:$0xff]  ;;  %v13763_v57 = vld [vmem:[#allocation43_spill] sm:$0xff] }
 0xb60   : > { %v8173_v29 = vpop.f32.mrf.mxu1  ;;  %v13760_v33 = vmax.f32 %v13759_v12, 0.0  ;;  %v13774_v14 = vmax.f32 %v13773_v49, 0.0  ;;  %v13793_v49 = vld [vmem:[#allocation7_spill] sm:$0xff] }
 0xb61   : > { %v3949_v2 = vadd.f32 %v3925_v39, %v3923_v31  ;;  %v3823_v17 = vadd.f32 %v8172_v38, %v3791_v62  ;;  %v3894_v52 = vmax.f32 %v3862_v16, 0.0  ;;  %v3795_v31 = vmul.f32 %v13762_v47, %v13761_v25  ;;  %v13764_v39 = vld [vmem:[#allocation76_spill] sm:$0xff] }
 0xb62   : > { %v8174_v0 = vpop.f32.mrf.mxu1  ;;  %v3796_v38 = vmul.f32 %v13764_v39, %v13763_v57 }
 0xb63   : > { %v8175_v55 = vadd.f32 %v8174_v0, %v8173_v29  ;;  %v3965_v26 = vmul.f32 0.5, %v3949_v2  ;;  %v3863_v21 = vadd.f32 %v11430_v54, %v3823_v17  ;;  %v3926_v11 = vadd.f32 %v3894_v52, %v13752_v18 }
 0xb64   : > { %v8176_v36 = vpop.f32.mrf.mxu1 }
 0xb65   : > { %v3824_v27 = vadd.f32 %v8175_v55, %v3792_v46  ;;  %v3994_v23 = vpack.c.bf16 %v3965_v26, %v3964_v50  ;;  %v3895_v51 = vmax.f32 %v3863_v21, 0.0  ;;  %v13765_v55 = vld [vmem:[#allocation2_spill] sm:$0xff]  ;;  %v13766_v50 = vld [vmem:[#allocation23_spill] sm:$0xff] }
 0xb66   : > { %v8177_v58 = vpop.f32.mrf.mxu1  ;;  %v3797_v26 = vmul.f32 %v13766_v50, %v13765_v55  ;;  %v13783_v50 = vld [vmem:[#allocation47_spill] sm:$0xff] }
 0xb67   : > { %v3864_v35 = vadd.f32 %v11430_v54, %v3824_v27  ;;  %v8178_v42 = vadd.f32 %v8177_v58, %v8176_v36  ;;  %4142 = vmatmul.mubr.bf16.gmra.mxu0 %v3994_v23  ;;  %v3927_v24 = vadd.f32 %v3895_v51, %v13758_v53  ;;  %v13778_v53 = vld [vmem:[#allocation24_spill] sm:$0xff] }
 0xb68   : > { %v8179_v15 = vpop.f32.mrf.mxu1  ;;  %4151 = vmatprep.mubr.bf16.mxu0 %v13623_v13 }
 0xb69   : > { %v3896_v4 = vmax.f32 %v3864_v35, 0.0  ;;  %v3825_v19 = vadd.f32 %v8178_v42, %v3793_v1  ;;  %v13768_v1 = vmax.f32 %v13767_v8, 0.0 }
 0xb6a   : > { %v8180_v60 = vpop.f32.mrf.mxu1 }
 0xb6b   : > { %v3928_v22 = vadd.f32 %v3896_v4, %v13754_v48  ;;  %v3865_v20 = vadd.f32 %v11430_v54, %v3825_v19  ;;  %v8181_v7 = vadd.f32 %v8180_v60, %v8179_v15  ;;  %v13769_v15 = vld [vmem:[#allocation45_spill] sm:$0xff] }
 0xb6c   : > { %v8182_v61 = vpop.f32.mrf.mxu1  ;;  %v13770_v4 = vmax.f32 %v13769_v15, 0.0  ;;  %v13772_v60 = vld [vmem:[#allocation77_spill] sm:$0xff] }
 0xb6d   : > { %v3950_v56 = vadd.f32 %v3928_v22, %v3926_v11  ;;  %v3897_v45 = vmax.f32 %v3865_v20, 0.0  ;;  %v3826_v30 = vadd.f32 %v8181_v7, %v3794_v5  ;;  %v13771_v11 = vld [vmem:[#allocation3_spill] sm:$0xff] }
 0xb6e   : > { %v8183_v34 = vpop.f32.mrf.mxu1  ;;  %v3798_v51 = vmul.f32 %v13772_v60, %v13771_v11  ;;  %v13789_v11 = vld [vmem:[#allocation48_spill] sm:$0xff] }
 0xb6f   : > { %v3929_v43 = vadd.f32 %v3897_v45, %v13760_v33  ;;  %v8184_v28 = vadd.f32 %v8183_v34, %v8182_v61  ;;  %v3866_v29 = vadd.f32 %v11430_v54, %v3826_v30  ;;  %v3966_v2 = vmul.f32 0.5, %v3950_v56  ;;  %v13775_v61 = vld [vmem:[#allocation46_spill] sm:$0xff]  ;;  %v13779_v33 = vld [vmem:[#allocation5_spill] sm:$0xff] }
 0xb70   : > { %v8185_v32 = vpop.f32.mrf.mxu1  ;;  %v13776_v56 = vmax.f32 %v13775_v61, 0.0  ;;  %v13790_v60 = vmax.f32 %v13789_v11, 0.0 }
 0xb71   : > { %v3951_v63 = vadd.f32 %v3929_v43, %v3927_v24  ;;  %v3827_v10 = vadd.f32 %v8184_v28, %v3795_v31  ;;  %v3898_v0 = vmax.f32 %v3866_v29, 0.0  ;;  %v3799_v24 = vmul.f32 %v13778_v53, %v13777_v6  ;;  %v13780_v43 = vld [vmem:[#allocation78_spill] sm:$0xff] }
 0xb72   : > { %v8186_v44 = vpop.f32.mrf.mxu1  ;;  %v3800_v28 = vmul.f32 %v13780_v43, %v13779_v33 }
 0xb73   : > { %v8187_v62 = vadd.f32 %v8186_v44, %v8185_v32  ;;  %v3967_v9 = vmul.f32 0.5, %v3951_v63  ;;  %v3867_v36 = vadd.f32 %v11430_v54, %v3827_v10  ;;  %v3930_v21 = vadd.f32 %v3898_v0, %v13768_v1 }
 0xb74   : > { %v8188_v3 = vpop.f32.mrf.mxu1 }
 0xb75   : > { %v3828_v46 = vadd.f32 %v8187_v62, %v3796_v38  ;;  %v3995_v16 = vpack.c.bf16 %v3967_v9, %v3966_v2  ;;  %v3899_v42 = vmax.f32 %v3867_v36, 0.0  ;;  %v13781_v62 = vld [vmem:[#allocation6_spill] sm:$0xff]  ;;  %v13782_v2 = vld [vmem:[#allocation25_spill] sm:$0xff] }
 0xb76   : > { %v8189_v17 = vpop.f32.mrf.mxu1  ;;  %v3801_v9 = vmul.f32 %v13782_v2, %v13781_v62 }
 0xb77   : > { %v3868_v27 = vadd.f32 %v11430_v54, %v3828_v46  ;;  %v8190_v23 = vadd.f32 %v8189_v17, %v8188_v3  ;;  %4152 = vmatmul.mubr.bf16.gmra.mxu0 %v3995_v16  ;;  %v3931_v5 = vadd.f32 %v3899_v42, %v13774_v14  ;;  %v13794_v14 = vld [vmem:[#allocation26_spill] sm:$0xff] }
 0xb78   : > { %v8191_v52 = vpop.f32.mrf.mxu1  ;;  %4161 = vmatprep.mubr.bf16.mxu0 %v13623_v13 }
 0xb79   : > { %v3900_v58 = vmax.f32 %v3868_v27, 0.0  ;;  %v3829_v59 = vadd.f32 %v8190_v23, %v3797_v26  ;;  %v13784_v26 = vmax.f32 %v13783_v50, 0.0 }
 0xb7a   : > { %v8192_v35 = vpop.f32.mrf.mxu1 }
 0xb7b   : > { %v3932_v19 = vadd.f32 %v3900_v58, %v13770_v4  ;;  %v3869_v37 = vadd.f32 %v11430_v54, %v3829_v59  ;;  %v8193_v18 = vadd.f32 %v8192_v35, %v8191_v52  ;;  %v13785_v52 = vld [vmem:[#allocation49_spill] sm:$0xff]  ;;  %v13788_v35 = vld [vmem:[#allocation79_spill] sm:$0xff] }
 0xb7c   : > { %v8194_v40 = vpop.f32.mrf.mxu1  ;;  %v13786_v58 = vmax.f32 %v13785_v52, 0.0 }
 0xb7d   : > { %v3952_v48 = vadd.f32 %v3932_v19, %v3930_v21  ;;  %v3901_v22 = vmax.f32 %v3869_v37, 0.0  ;;  %v3830_v20 = vadd.f32 %v8193_v18, %v3798_v51  ;;  %v13787_v21 = vld [vmem:[#allocation44_spill] sm:$0xff] }
 0xb7e   : > { %v8195_v7 = vpop.f32.mrf.mxu1  ;;  %v3802_v42 = vmul.f32 %v13788_v35, %v13787_v21 }
 0xb7f   : > { %v3933_v45 = vadd.f32 %v3901_v22, %v13776_v56  ;;  %v8196_v30 = vadd.f32 %v8195_v7, %v8194_v40  ;;  %v3870_v32 = vadd.f32 %v11430_v54, %v3830_v20  ;;  %v3968_v63 = vmul.f32 0.5, %v3952_v48  ;;  %v13791_v40 = vld [vmem:[#allocation50_spill] sm:$0xff]  ;;  %v13795_v56 = vld [vmem:[#allocation8_spill] sm:$0xff] }
 0xb80   : > { %v8197_v34 = vpop.f32.mrf.mxu1  ;;  %v13792_v48 = vmax.f32 %v13791_v40, 0.0 }
 0xb81   : > { %v3953_v12 = vadd.f32 %v3933_v45, %v3931_v5  ;;  %v3831_v47 = vadd.f32 %v8196_v30, %v3799_v24  ;;  %v3902_v44 = vmax.f32 %v3870_v32, 0.0  ;;  %v3803_v5 = vmul.f32 %v13794_v14, %v13793_v49  ;;  %v13796_v45 = vld [vmem:[#allocation80_spill] sm:$0xff] }
 0xb82   : > { %v8198_v25 = vpop.f32.mrf.mxu1  ;;  %v3804_v30 = vmul.f32 %v13796_v45, %v13795_v56 }
 0xb83   : > { %v8199_v31 = vadd.f32 %v8198_v25, %v8197_v34  ;;  %v3969_v57 = vmul.f32 0.5, %v3953_v12  ;;  %v3871_v3 = vadd.f32 %v11430_v54, %v3831_v47  ;;  %v3934_v36 = vadd.f32 %v3902_v44, %v13784_v26  ;;  %v13797_v25 = vld [vmem:[#allocation9_spill] sm:$0xff] }
 0xb84   : > { %v8200_v39 = vpop.f32.mrf.mxu1  ;;  %v3805_v47 = vmul.f32 %v11273_v41, %v13797_v25 }
 0xb85   : > { %v3832_v38 = vadd.f32 %v8199_v31, %v3800_v28  ;;  %v3996_v29 = vpack.c.bf16 %v3969_v57, %v3968_v63  ;;  %v3903_v23 = vmax.f32 %v3871_v3, 0.0  ;;  %v13800_v3 = vld [vmem:[#allocation53_spill] sm:$0xff] }
 0xb86   : > { %v8201_v10 = vpop.f32.mrf.mxu1 }
 0xb87   : > { %v3872_v46 = vadd.f32 %v11430_v54, %v3832_v38  ;;  %v8202_v16 = vadd.f32 %v8201_v10, %v8200_v39  ;;  %4162 = vmatmul.mubr.bf16.gmra.mxu0 %v3996_v29  ;;  %v3935_v51 = vadd.f32 %v3903_v23, %v13790_v60  ;;  %v13798_v10 = vld [vmem:[#allocation51_spill] sm:$0xff] }
 0xb88   : > { %v8203_v0 = vpop.f32.mrf.mxu1  ;;  %4171 = vmatprep.mubr.bf16.mxu0 %v13623_v13  ;;  %v13799_v62 = vmax.f32 %v13798_v10, 0.0  ;;  %v11647_v10 = vld [vmem:[%s13099_s4 + $0x10] sm:$0xff]  }
 0xb89   : > { %v3904_v17 = vmax.f32 %v3872_v46, 0.0  ;;  %v3833_v55 = vadd.f32 %v8202_v16, %v3801_v9  ;;  %v13801_v46 = vmax.f32 %v13800_v3, 0.0  ;;  %v8770_v3 = vld [vmem:[%s13100_s5 + $0x354] ss:$8 sps:$4 sm:$0xff]  }
 0xb8a   : > { %v8204_v27 = vpop.f32.mrf.mxu1 }
 0xb8b   : > { %v3936_v59 = vadd.f32 %v3904_v17, %v13786_v58  ;;  %v3873_v8 = vadd.f32 %v11430_v54, %v3833_v55  ;;  %v8205_v1 = vadd.f32 %v8204_v27, %v8203_v0  ;;  %v13802_v55 = vld [vmem:[#allocation52_spill] sm:$0xff] }
 0xb8c   : > { %v8206_v15 = vpop.f32.mrf.mxu1  ;;  %v13803_v50 = vmax.f32 %v13802_v55, 0.0  ;;  %v8776_v55 = vld [vmem:[%s13100_s5 + $0x334] ss:$8 sps:$4 sm:$0xff]  }
 0xb8d   : > { %v3954_v4 = vadd.f32 %v3936_v59, %v3934_v36  ;;  %v3905_v19 = vmax.f32 %v3873_v8, 0.0  ;;  %v3834_v37 = vadd.f32 %v8205_v1, %v3802_v42  ;;  %v13804_v36 = vld [vmem:[#allocation54_spill] sm:$0xff] }
 0xb8e   : > { %v8207_v18 = vpop.f32.mrf.mxu1  ;;  %v13805_v27 = vmax.f32 %v13804_v36, 0.0  ;;  %v8774_v36 = vld [vmem:[%s13100_s5 + $0x330] ss:$8 sps:$4 sm:$0xff]  }
 0xb8f   : > { %v3937_v22 = vadd.f32 %v3905_v19, %v13792_v48  ;;  %v8208_v20 = vadd.f32 %v8207_v18, %v8206_v15  ;;  %v3874_v34 = vadd.f32 %v11430_v54, %v3834_v37  ;;  %v3970_v12 = vmul.f32 0.5, %v3954_v4 }
 0xb90   : > { %v8209_v7 = vpop.f32.mrf.mxu1 }
 0xb91   : > { %v3955_v61 = vadd.f32 %v3937_v22, %v3935_v51  ;;  %v3835_v53 = vadd.f32 %v8208_v20, %v3803_v5  ;;  %v3906_v63 = vmax.f32 %v3874_v34, 0.0 }
 0xb92   : > { %v8210_v6 = vpop.f32.mrf.mxu1 }
 0xb93   : > { %v8211_v24 = vadd.f32 %v8210_v6, %v8209_v7  ;;  %v3971_v33 = vmul.f32 0.5, %v3955_v61  ;;  %v3875_v57 = vadd.f32 %v11430_v54, %v3835_v53  ;;  %v3938_v2 = vadd.f32 %v3906_v63, %v13799_v62  ;;  %v8762_v62 = vld [vmem:[%s13100_s5 + $0x370] ss:$8 sps:$4 sm:$0xff]  }
 0xb94   : > { %v8212_v43 = vpop.f32.mrf.mxu1 }
 0xb95   : > { %v3836_v28 = vadd.f32 %v8211_v24, %v3804_v30  ;;  %v3997_v32 = vpack.c.bf16 %v3971_v33, %v3970_v12  ;;  %v3907_v9 = vmax.f32 %v3875_v57, 0.0 }
 0xb96   : > { %v8213_v31 = vpop.f32.mrf.mxu1 }
 0xb97   : > { %v3876_v39 = vadd.f32 %v11430_v54, %v3836_v28  ;;  %v8214_v38 = vadd.f32 %v8213_v31, %v8212_v43  ;;  %4172 = vmatmul.mubr.bf16.gmra.mxu0 %v3997_v32  ;;  %v3939_v26 = vadd.f32 %v3907_v9, %v13803_v50  ;;  %v8765_v9 = vld [vmem:[%s13100_s5 + $0x360] ss:$8 sps:$4 sm:$0xff]  }
 0xb98   : > { %4181 = vmatprep.mubr.bf16.mxu0 %v13623_v13  ;;  %v11690_v50 = vld [vmem:[%s13099_s4 + $0x28] sm:$0xff]  }
 0xb99   : > { %v3908_v29 = vmax.f32 %v3876_v39, 0.0  ;;  %v3837_v44 = vadd.f32 %v8214_v38, %v3805_v47 }
 0xb9b   : > { %v3940_v16 = vadd.f32 %v3908_v29, %v13801_v46  ;;  %v3877_v41 = vadd.f32 %v11430_v54, %v3837_v44  ;;  %v11604_v54 = vld [vmem:[%s13099_s4] sm:$0xff]   ;;  %v8764_v29 = vld [vmem:[%s13100_s5 + $0x374] ss:$8 sps:$4 sm:$0xff]   ;;  %v11642_v44 = vld [vmem:[%s13099_s4 + $0x8] sm:$0xff]  }
 0xb9c   : > { %8343 = vmatprep.mubr.bf16.mxu1 %v11604_v54  ;;  %v11666_v46 = vld [vmem:[%s13099_s4 + $0x18] sm:$0xff]  }
 0xb9d   : > { %v3956_v0 = vadd.f32 %v3940_v16, %v3938_v2  ;;  %v3909_v17 = vmax.f32 %v3877_v41, 0.0  ;;  %v8767_v2 = vld [vmem:[%s13100_s5 + $0x364] ss:$8 sps:$4 sm:$0xff]   ;;  %v8768_v41 = vld [vmem:[%s13100_s5 + $0x350] ss:$8 sps:$4 sm:$0xff]  }
 0xb9e   : > { %v11671_v16 = vld [vmem:[%s13099_s4 + $0x20] sm:$0xff]  }
 0xb9f   : > { %v3941_v23 = vadd.f32 %v3909_v17, %v13805_v27  ;;  %v3972_v58 = vmul.f32 0.5, %v3956_v0  ;;  %v8773_v0 = vld [vmem:[%s13100_s5 + $0x344] ss:$8 sps:$4 sm:$0xff]   ;;  %v8771_v17 = vld [vmem:[%s13100_s5 + $0x340] ss:$8 sps:$4 sm:$0xff]   ;;  %v11705_v27 = vld [vmem:[%s13099_s4 + $0x38] sm:$0xff]  }
 0xba1   : > { %v3957_v52 = vadd.f32 %v3941_v23, %v3939_v26  ;;  %v11695_v26 = vld [vmem:[%s13099_s4 + $0x30] sm:$0xff]   ;;  %v8779_v23 = vld [vmem:[%s13100_s5 + $0x324] ss:$8 sps:$4 sm:$0xff]  }
 0xba3   : > { %v3973_v59 = vmul.f32 0.5, %v3957_v52  ;;  %v8777_v52 = vld [vmem:[%s13100_s5 + $0x320] ss:$8 sps:$4 sm:$0xff]  }
 0xba5   : > { %v3998_v8 = vpack.c.bf16 %v3973_v59, %v3972_v58  ;;  %v8782_v58 = vld [vmem:[%s13100_s5 + $0x314] ss:$8 sps:$4 sm:$0xff]   ;;  %v8780_v59 = vld [vmem:[%s13100_s5 + $0x310] ss:$8 sps:$4 sm:$0xff]  }
 0xba7   : > { %4182 = vmatmul.mubr.bf16.gmra.mxu0 %v3998_v8  ;;  %v8785_v8 = vld [vmem:[%s13100_s5 + $0x304] ss:$8 sps:$4 sm:$0xff]  }
 0xba8   : > { %8375 = vmatprep.mubr.bf16.mxu0 %v11604_v54 }
 0xbf7   : > { %v11597_v1 = vpop.f32.mrf.mxu0 }
 0xbf9   : > { %v4115_v21 = vpop.f32.mrf.mxu0 }
 0xbfb   : > { %v11599_v35 = vpop.f32.mrf.mxu0 }
 0xbfd   : > { %v4119_v42 = vpop.f32.mrf.mxu0 }
 0xbfe   : > { %v4192_v38 = vpack.c.bf16 %v4119_v42, %v4115_v21  ;;  %v8783_v21 = vld [vmem:[%s13100_s5 + $0x300] ss:$8 sps:$4 sm:$0xff]   ;;  %v11727_v42 = vpop.permute.xlu0 %4347 }
 0xc07   : > { %v11608_v15 = vpop.f32.mrf.mxu0 }
 0xc09   : > { %v4125_v4 = vpop.f32.mrf.mxu0 }
 0xc0b   : > { %v11610_v19 = vpop.f32.mrf.mxu0 }
 0xc0d   : > { %v4129_v37 = vpop.f32.mrf.mxu0 }
 0xc0e   : > { %v4193_v39 = vpack.c.bf16 %v4129_v37, %v4125_v4  ;;  %v11729_v4 = vpop.permute.xlu1 %4352 }
 0xc17   : > { %v11612_v18 = vpop.f32.mrf.mxu0 }
 0xc19   : > { %v4135_v11 = vpop.f32.mrf.mxu0 }
 0xc1b   : > { %v11614_v60 = vpop.f32.mrf.mxu0 }
 0xc1d   : > { %v4139_v51 = vpop.f32.mrf.mxu0 }
 0xc1e   : > { %v4194_v57 = vpack.c.bf16 %v4139_v51, %v4135_v11  ;;  %v4425_v11 = vmul.f32 %v11727_v42, %v11597_v1 }
 0xc27   : > { %v11616_v40 = vpop.f32.mrf.mxu0 }
 0xc29   : > { %v4145_v48 = vpop.f32.mrf.mxu0 }
 0xc2b   : > { %v11618_v22 = vpop.f32.mrf.mxu0 }
 0xc2d   : > { %v4149_v20 = vpop.f32.mrf.mxu0 }
 0xc2e   : > { %v4195_v63 = vpack.c.bf16 %v4149_v20, %v4145_v48 }
 0xc37   : > { %v11620_v7 = vpop.f32.mrf.mxu0 }
 0xc39   : > { %v4155_v49 = vpop.f32.mrf.mxu0 }
 0xc3b   : > { %v11622_v14 = vpop.f32.mrf.mxu0 }
 0xc3d   : > { %v4159_v5 = vpop.f32.mrf.mxu0 }
 0xc3e   : > { %v4196_v31 = vpack.c.bf16 %v4159_v5, %v4155_v49  ;;  %v4426_v49 = vmul.f32 %v11729_v4, %v11599_v35  ;;  %v11735_v5 = vpop.permute.xlu1 %4362 }
 0xc47   : > { %v11624_v61 = vpop.f32.mrf.mxu0 }
 0xc49   : > { %v4165_v56 = vpop.f32.mrf.mxu0 }
 0xc4b   : > { %v11626_v45 = vpop.f32.mrf.mxu0 }
 0xc4d   : > { %v4169_v30 = vpop.f32.mrf.mxu0 }
 0xc4e   : > { %v4197_v47 = vpack.c.bf16 %v4169_v30, %v4165_v56  ;;  %v11740_v56 = vld [vmem:[%s13101_s6 + $0x5] ss:$0 sm:$0xff] }
 0xc57   : > { %v11628_v34 = vpop.f32.mrf.mxu0 }
 0xc59   : > { %v4175_v6 = vpop.f32.mrf.mxu0 }
 0xc5b   : > { %v11630_v53 = vpop.f32.mrf.mxu0 }
 0xc5d   : > { %v4179_v24 = vpop.f32.mrf.mxu0 }
 0xc5e   : > { %v4198_v25 = vpack.c.bf16 %v4179_v24, %v4175_v6  ;;  %v4428_v6 = vmul.f32 %v11735_v5, %v11610_v19 }
 0xc67   : > { %v11632_v12 = vpop.f32.mrf.mxu0 }
 0xc69   : > { %v4185_v33 = vpop.f32.mrf.mxu0 }
 0xc6b   : > { %v11634_v43 = vpop.f32.mrf.mxu0 }
 0xc6d   : > { %v4189_v28 = vpop.f32.mrf.mxu0 }
 0xc6e   : > { %v4199_v32 = vpack.c.bf16 %v4189_v28, %v4185_v33  ;;  %v11747_v33 = vpop.permute.xlu0 %4357 }
 0xc6f   : > { %v4427_v35 = vmul.f32 %v11747_v33, %v11608_v15  ;;  %v11763_v15 = vpop.permute.xlu1 %4372 }
 0xc70   : > { %8327 = vmatprep.subr.bf16.mxu1 %v4199_v32 }
 0xc71   : > { %8328 = vmatpush3.bf16.msra.mxu1 %v4199_v32 }
 0xc72   : > { %8329 = vmatprep.subr.bf16.mxu1 %v4198_v25 }
 0xc75   : > { %8330 = vmatpush3.bf16.msra.mxu1 %v4198_v25 }
 0xc76   : > { %8331 = vmatprep.subr.bf16.mxu1 %v4197_v47 }
 0xc79   : > { %8332 = vmatpush3.bf16.msra.mxu1 %v4197_v47 }
 0xc7a   : > { %8333 = vmatprep.subr.bf16.mxu1 %v4196_v31 }
 0xc7d   : > { %8334 = vmatpush3.bf16.msra.mxu1 %v4196_v31 }
 0xc7e   : > { %8335 = vmatprep.subr.bf16.mxu1 %v4195_v63 }
 0xc81   : > { %8336 = vmatpush3.bf16.msra.mxu1 %v4195_v63 }
 0xc82   : > { %8337 = vmatprep.subr.bf16.mxu1 %v4194_v57 }
 0xc85   : > { %8338 = vmatpush3.bf16.msra.mxu1 %v4194_v57 }
 0xc86   : > { %8339 = vmatprep.subr.bf16.mxu1 %v4193_v39 }
 0xc89   : > { %8340 = vmatpush3.bf16.msra.mxu1 %v4193_v39 }
 0xc8a   : > { %8341 = vmatprep.subr.bf16.mxu1 %v4192_v38 }
 0xc8d   : > { %8342 = vmatpush3.bf16.msra.mxu1 %v4192_v38 }
 0xc8e   : > { %4602 = vmatprep.subr.bf16.mxu1 %v8764_v29 }
 0xc90   : > { %8344 = vmatmul.mubr.bf16.vlgmr.msra.gmra.mxu1 %v11642_v44 }
 0xc91   : > { %8347 = vmatprep.mubr.bf16.mxu1 %v11647_v10  ;;  %4603 = vmatpush1.bf16.msra.mxu1 %v8762_v62  ;;  %v4430_v62 = vmul.f32 %v11763_v15, %v11614_v60 }
 0xc92   : > { %4604 = vmatprep.subr.bf16.mxu1 %v8767_v2 }
 0xc95   : > { %4605 = vmatpush1.bf16.msra.mxu1 %v8765_v9  ;;  %v11770_v9 = vpop.permute.xlu0 %4367 }
 0xc96   : > { %4606 = vmatprep.subr.bf16.mxu1 %v8770_v3  ;;  %v4429_v3 = vmul.f32 %v11770_v9, %v11612_v18 }
 0xc98   : > { %8348 = vmatmul.mubr.bf16.gmra.mxu1 %v11666_v46 }
 0xc99   : > { %8351 = vmatprep.mubr.bf16.mxu1 %v11671_v16  ;;  %4607 = vmatpush1.bf16.msra.mxu1 %v8768_v41 }
 0xc9a   : > { %4608 = vmatprep.subr.bf16.mxu1 %v8773_v0 }
 0xc9d   : > { %4609 = vmatpush1.bf16.msra.mxu1 %v8771_v17 }
 0xc9e   : > { %4610 = vmatprep.subr.bf16.mxu1 %v8776_v55 }
 0xca0   : > { %8352 = vmatmul.mubr.bf16.gmra.mxu1 %v11690_v50 }
 0xca1   : > { %8355 = vmatprep.mubr.bf16.mxu1 %v11695_v26  ;;  %4611 = vmatpush1.bf16.msra.mxu1 %v8774_v36 }
 0xca2   : > { %4612 = vmatprep.subr.bf16.mxu1 %v8779_v23 }
 0xca5   : > { %4613 = vmatpush1.bf16.msra.mxu1 %v8777_v52  ;;  %v11784_v52 = vpop.permute.xlu1 %4382 }
 0xca6   : > { %4614 = vmatprep.subr.bf16.mxu1 %v8782_v58  ;;  %v4432_v18 = vmul.f32 %v11784_v52, %v11618_v22 }
 0xca8   : > { %8356 = vmatmul.mubr.bf16.gmra.mxu1 %v11705_v27 }
 0xca9   : > { %4634 = vmatprep.mubr.bf16.mxu1 %v13623_v13  ;;  %4615 = vmatpush1.bf16.msra.mxu1 %v8780_v59 }
 0xcaa   : > { %4616 = vmatprep.subr.bf16.mxu1 %v8785_v8  ;;  %v11791_v8 = vpop.permute.xlu0 %4377 }
 0xcad   : > { %4617 = vmatpush1.bf16.msra.mxu1 %v8783_v21  ;;  %v4431_v21 = vmul.f32 %v11791_v8, %v11616_v40 }
 0xd50   : > { %v8345_v37 = vpop.f32.mrf.mxu1 }
 0xd51   : > { %v4443_v31 = vadd.f32 %v8345_v37, %v4427_v35 }
 0xd52   : > { %v4282_v51 = vpop.f32.mrf.mxu1 }
 0xd53   : > { %v4441_v48 = vadd.f32 %v4425_v11, %v4282_v51  ;;  %v11768_v2 = vadd.f32 %v11740_v56, %v4443_v31 }
 0xd54   : > { %v8346_v20 = vpop.f32.mrf.mxu1 }
 0xd55   : > { %v11745_v24 = vadd.f32 %v11740_v56, %v4441_v48  ;;  %v4444_v32 = vadd.f32 %v8346_v20, %v4428_v6  ;;  %13809 = vst [vmem:[#allocation82_spill] sm:$0xff] %v11768_v2  ;;  %v13281_v55 = vmax.f32 %v11768_v2, 0.0 }
 0xd56   : > { %v4285_v30 = vpop.f32.mrf.mxu1 }
 0xd57   : > { %13806 = vst [vmem:[#allocation27_spill] sm:$0xff] %v11745_v24  ;;  %v4442_v1 = vadd.f32 %v4426_v49, %v4285_v30  ;;  %v13279_v63 = vmax.f32 %v11745_v24, 0.0  ;;  %v11757_v39 = vadd.f32 %v11740_v56, %v4444_v32  ;;  %v11805_v30 = vpop.permute.xlu1 %4392 }
 0xd58   : > { %v8349_v28 = vpop.f32.mrf.mxu1  ;;  %v4434_v40 = vmul.f32 %v11805_v30, %v11622_v14 }
 0xd59   : > { %v11752_v25 = vadd.f32 %v11740_v56, %v4442_v1  ;;  %13808 = vst [vmem:[#allocation28_spill] sm:$0xff] %v11757_v39  ;;  %v13280_v41 = vmax.f32 %v11757_v39, 0.0  ;;  %v4447_v48 = vadd.f32 %v8349_v28, %v4431_v21  ;;  %v11812_v28 = vpop.permute.xlu0 %4387 }
 0xd5a   : > { %v4298_v47 = vpop.f32.mrf.mxu1  ;;  %v4433_v35 = vmul.f32 %v11812_v28, %v11620_v7 }
 0xd5b   : > { %13807 = vst [vmem:[#allocation81_spill] sm:$0xff] %v11752_v25  ;;  %v13278_v19 = vmax.f32 %v11752_v25, 0.0  ;;  %v4445_v36 = vadd.f32 %v4429_v3, %v4298_v47  ;;  %v4515_v60 = vpack.c.bf16 %v13280_v41, %v13281_v55  ;;  %v11810_v1 = vadd.f32 %v11740_v56, %v4447_v48 }
 0xd5c   : > { %v8350_v57 = vpop.f32.mrf.mxu1 }
 0xd5d   : > { %v4514_v38 = vpack.c.bf16 %v13278_v19, %v13279_v63  ;;  %v11789_v59 = vadd.f32 %v11740_v56, %v4445_v36  ;;  %v4448_v37 = vadd.f32 %v8350_v57, %v4432_v18  ;;  %13813 = vst [vmem:[#allocation84_spill] sm:$0xff] %v11810_v1  ;;  %v13277_v57 = vmax.f32 %v11810_v1, 0.0  ;;  %v11833_v36 = vpop.permute.xlu0 %4397 }
 0xd5e   : > { %v4301_v29 = vpop.f32.mrf.mxu1 }
 0xd5f   : > { %4635 = vmatmul.mubr.bf16.vlgmr.msra.gmra.mxu1 %v4514_v38  ;;  %v4446_v0 = vadd.f32 %v4430_v62, %v4301_v29  ;;  %13811 = vst [vmem:[#allocation83_spill] sm:$0xff] %v11789_v59  ;;  %v13275_v20 = vmax.f32 %v11789_v59, 0.0  ;;  %v11799_v22 = vadd.f32 %v11740_v56, %v4448_v37  ;;  %v11826_v62 = vpop.permute.xlu1 %4402 }
 0xd60   : > { %4644 = vmatprep.mubr.bf16.mxu1 %v13623_v13  ;;  %v8353_v17 = vpop.f32.mrf.mxu1  ;;  %v4436_v7 = vmul.f32 %v11826_v62, %v11626_v45 }
 0xd61   : > { %v11782_v23 = vadd.f32 %v11740_v56, %v4446_v0  ;;  %13812 = vst [vmem:[#allocation30_spill] sm:$0xff] %v11799_v22  ;;  %v13276_v32 = vmax.f32 %v11799_v22, 0.0 }
 0xd62   : > { %v4314_v58 = vpop.f32.mrf.mxu1 }
 0xd63   : > { %13810 = vst [vmem:[#allocation29_spill] sm:$0xff] %v11782_v23  ;;  %v13274_v11 = vmax.f32 %v11782_v23, 0.0  ;;  %v4449_v38 = vadd.f32 %v4433_v35, %v4314_v58  ;;  %v4517_v14 = vpack.c.bf16 %v13276_v32, %v13277_v57 }
 0xd64   : > { %v8354_v51 = vpop.f32.mrf.mxu1 }
 0xd65   : > { %v4516_v49 = vpack.c.bf16 %v13274_v11, %v13275_v20  ;;  %v11831_v0 = vadd.f32 %v11740_v56, %v4449_v38  ;;  %v4452_v58 = vadd.f32 %v8354_v51, %v4436_v7 }
 0xd66   : > { %v4317_v6 = vpop.f32.mrf.mxu1 }
 0xd67   : > { %4645 = vmatmul.mubr.bf16.gmra.mxu1 %v4515_v60  ;;  %v4450_v47 = vadd.f32 %v4434_v40, %v4317_v6  ;;  %13815 = vst [vmem:[#allocation85_spill] sm:$0xff] %v11831_v0  ;;  %v4435_v60 = vmul.f32 %v11833_v36, %v11624_v61  ;;  %v13269_v48 = vmax.f32 %v11831_v0, 0.0  ;;  %v11841_v45 = vadd.f32 %v11740_v56, %v4452_v58  ;;  %v11847_v6 = vpop.permute.xlu1 %4412 }
 0xd68   : > { %4654 = vmatprep.mubr.bf16.mxu1 %v13623_v13  ;;  %v8357_v31 = vpop.f32.mrf.mxu1  ;;  %v4438_v61 = vmul.f32 %v11847_v6, %v11630_v53 }
 0xd69   : > { %v11824_v29 = vadd.f32 %v11740_v56, %v4450_v47  ;;  %v4451_v37 = vadd.f32 %v8353_v17, %v4435_v60  ;;  %13816 = vst [vmem:[#allocation86_spill] sm:$0xff] %v11841_v45  ;;  %v11854_v17 = vpop.permute.xlu0 %4407  ;;  %v13270_v47 = vmax.f32 %v11841_v45, 0.0 }
 0xd6a   : > { %v4330_v3 = vpop.f32.mrf.mxu1  ;;  %v4437_v35 = vmul.f32 %v11854_v17, %v11628_v34 }
 0xd6b   : > { %13814 = vst [vmem:[#allocation31_spill] sm:$0xff] %v11824_v29  ;;  %v13266_v18 = vmax.f32 %v11824_v29, 0.0  ;;  %v11852_v51 = vadd.f32 %v11740_v56, %v4451_v37  ;;  %v11868_v58 = vpop.permute.xlu1 %4422 }
 0xd6c   : > { %v8358_v21 = vpop.f32.mrf.mxu1  ;;  %v4453_v7 = vadd.f32 %v4437_v35, %v4330_v3  ;;  %v4440_v37 = vmul.f32 %v11868_v58, %v11634_v43 }
 0xd6d   : > { %13817 = vst [vmem:[#allocation87_spill] sm:$0xff] %v11852_v51 }
 0xd6e   : > { %v4333_v40 = vpop.f32.mrf.mxu1  ;;  %v11873_v34 = vadd.f32 %v11740_v56, %v4453_v7 }
 0xd6f   : > { %4655 = vmatmul.mubr.bf16.gmra.mxu1 %v4516_v49  ;;  %v4518_v49 = vpack.c.bf16 %v13266_v18, %v13269_v48  ;;  %v4454_v38 = vadd.f32 %v4438_v61, %v4333_v40  ;;  %v4456_v40 = vadd.f32 %v8358_v21, %v4440_v37 }
 0xd70   : > { %4664 = vmatprep.mubr.bf16.mxu1 %v13623_v13  ;;  %13819 = vst [vmem:[#allocation89_spill] sm:$0xff] %v11873_v34 }
 0xd71   : > { %v11866_v60 = vadd.f32 %v11740_v56, %v4454_v38  ;;  %v13268_v38 = vmax.f32 %v11873_v34, 0.0  ;;  %v11883_v18 = vadd.f32 %v11740_v56, %v4456_v40 }
 0xd73   : > { %13818 = vst [vmem:[#allocation88_spill] sm:$0xff] %v11866_v60  ;;  %v13267_v61 = vmax.f32 %v11866_v60, 0.0  ;;  %13820 = vst [vmem:[#allocation90_spill] sm:$0xff] %v11883_v18 }
 0xd75   : > { %v4520_v43 = vpack.c.bf16 %v13267_v61, %v13268_v38 }
 0xd77   : > { %4665 = vmatmul.mubr.bf16.gmra.mxu1 %v4517_v14  ;;  %v13273_v14 = vmax.f32 %v11852_v51, 0.0 }
 0xd78   : > { %4674 = vmatprep.mubr.bf16.mxu1 %v13623_v13 }
 0xd79   : > { %v4519_v53 = vpack.c.bf16 %v13270_v47, %v13273_v14 }
 0xd7f   : > { %4675 = vmatmul.mubr.bf16.gmra.mxu1 %v4518_v49  ;;  %v11875_v49 = vpop.permute.xlu0 %4417 }
 0xd80   : > { %4684 = vmatprep.mubr.bf16.mxu1 %v13623_v13  ;;  %v4439_v3 = vmul.f32 %v11875_v49, %v11632_v12  ;;  %v13271_v12 = vmax.f32 %v11883_v18, 0.0 }
 0xd82   : > { %v4455_v35 = vadd.f32 %v8357_v31, %v4439_v3 }
 0xd84   : > { %v11890_v7 = vadd.f32 %v11740_v56, %v4455_v35 }
 0xd86   : > { %13821 = vst [vmem:[#allocation91_spill] sm:$0xff] %v11890_v7  ;;  %v13272_v31 = vmax.f32 %v11890_v7, 0.0 }
 0xd87   : > { %4685 = vmatmul.mubr.bf16.gmra.mxu1 %v4519_v53 }
 0xd88   : > { %4694 = vmatprep.mubr.bf16.mxu1 %v13623_v13  ;;  %v4521_v21 = vpack.c.bf16 %v13271_v12, %v13272_v31 }
 0xd8f   : > { %4695 = vmatmul.mubr.bf16.gmra.mxu1 %v4520_v43 }
 0xd90   : > { %4704 = vmatprep.mubr.bf16.mxu1 %v13623_v13 }
 0xd97   : > { %4705 = vmatmul.mubr.bf16.gmra.mxu1 %v4521_v21 }
 0xd98   : > { %8407 = vmatprep.mubr.bf16.mxu1 %v11604_v54 }
 0xe1f   : > { %v11900_v53 = vpop.f32.mrf.mxu1 }
 0xe21   : > { %v4638_v37 = vpop.f32.mrf.mxu1 }
 0xe23   : > { %v11902_v56 = vpop.f32.mrf.mxu1 }
 0xe25   : > { %v4642_v3 = vpop.f32.mrf.mxu1 }
 0xe27   : > { %v11904_v40 = vpop.f32.mrf.mxu1 }
 0xe29   : > { %v4648_v35 = vpop.f32.mrf.mxu1 }
 0xe2b   : > { %v11906_v43 = vpop.f32.mrf.mxu1 }
 0xe2d   : > { %v4652_v61 = vpop.f32.mrf.mxu1 }
 0xe2e   : > { %v4716_v2 = vpack.c.bf16 %v4652_v61, %v4648_v35  ;;  %v4822_v61 = vmul.f32 %v11904_v40, %v11747_v33  ;;  %v11995_v35 = vld [vmem:[%s13101_s6 + $0x6] ss:$0 sm:$0xff] }
 0xe2f   : > { %v11908_v38 = vpop.f32.mrf.mxu1 }
 0xe31   : > { %v4658_v48 = vpop.f32.mrf.mxu1 }
 0xe33   : > { %v11910_v47 = vpop.f32.mrf.mxu1 }
 0xe35   : > { %v4662_v21 = vpop.f32.mrf.mxu1 }
 0xe36   : > { %v4717_v39 = vpack.c.bf16 %v4662_v21, %v4658_v48  ;;  %v8804_v48 = vld [vmem:[%s13100_s5 + $0x390] ss:$8 sps:$4 sm:$0xff]  }
 0xe37   : > { %v11912_v12 = vpop.f32.mrf.mxu1 }
 0xe39   : > { %v4668_v31 = vpop.f32.mrf.mxu1 }
 0xe3b   : > { %v11914_v14 = vpop.f32.mrf.mxu1 }
 0xe3d   : > { %v4672_v11 = vpop.f32.mrf.mxu1 }
 0xe3e   : > { %v4718_v24 = vpack.c.bf16 %v4672_v11, %v4668_v31  ;;  %v8795_v11 = vld [vmem:[%s13100_s5 + $0x3c0] ss:$8 sps:$4 sm:$0xff]  }
 0xe3f   : > { %v11916_v20 = vpop.f32.mrf.mxu1 }
 0xe41   : > { %v4678_v32 = vpop.f32.mrf.mxu1 }
 0xe43   : > { %v11918_v57 = vpop.f32.mrf.mxu1 }
 0xe45   : > { %v4682_v19 = vpop.f32.mrf.mxu1 }
 0xe46   : > { %v4719_v25 = vpack.c.bf16 %v4682_v19, %v4678_v32  ;;  %v8786_v19 = vld [vmem:[%s13100_s5 + $0x3f0] ss:$8 sps:$4 sm:$0xff]   ;;  %v8803_v32 = vld [vmem:[%s13100_s5 + $0x3a4] ss:$8 sps:$4 sm:$0xff]  }
 0xe47   : > { %v11920_v63 = vpop.f32.mrf.mxu1 }
 0xe49   : > { %v4688_v41 = vpop.f32.mrf.mxu1 }
 0xe4b   : > { %v11922_v55 = vpop.f32.mrf.mxu1 }
 0xe4d   : > { %v4692_v60 = vpop.f32.mrf.mxu1 }
 0xe4e   : > { %v4720_v1 = vpack.c.bf16 %v4692_v60, %v4688_v41  ;;  %v8788_v41 = vld [vmem:[%s13100_s5 + $0x3f4] ss:$8 sps:$4 sm:$0xff]   ;;  %v8807_v60 = vld [vmem:[%s13100_s5 + $0x380] ss:$8 sps:$4 sm:$0xff]  }
 0xe4f   : > { %v11924_v34 = vpop.f32.mrf.mxu1 }
 0xe51   : > { %v4698_v18 = vpop.f32.mrf.mxu1 }
 0xe53   : > { %v11926_v7 = vpop.f32.mrf.mxu1 }
 0xe55   : > { %v4702_v29 = vpop.f32.mrf.mxu1 }
 0xe56   : > { %v4721_v22 = vpack.c.bf16 %v4702_v29, %v4698_v18  ;;  %v8801_v29 = vld [vmem:[%s13100_s5 + $0x3a0] ss:$8 sps:$4 sm:$0xff]   ;;  %v8806_v18 = vld [vmem:[%s13100_s5 + $0x394] ss:$8 sps:$4 sm:$0xff]  }
 0xe57   : > { %v11928_v0 = vpop.f32.mrf.mxu1 }
 0xe59   : > { %v4708_v45 = vpop.f32.mrf.mxu1 }
 0xe5b   : > { %v11930_v51 = vpop.f32.mrf.mxu1 }
 0xe5d   : > { %v4712_v23 = vpop.f32.mrf.mxu1 }
 0xe5e   : > { %v4722_v59 = vpack.c.bf16 %v4712_v23, %v4708_v45  ;;  %v4715_v23 = vpack.c.bf16 %v4642_v3, %v4638_v37  ;;  %v8809_v45 = vld [vmem:[%s13100_s5 + $0x384] ss:$8 sps:$4 sm:$0xff]   ;;  %v4820_v37 = vmul.f32 %v11900_v53, %v11727_v42  ;;  %v4826_v53 = vmul.f32 %v11912_v12, %v11791_v8 }
 0xe60   : > { %8359 = vmatprep.subr.bf16.mxu0 %v4722_v59 }
 0xe61   : > { %8360 = vmatpush3.bf16.msra.mxu0 %v4722_v59  ;;  %v8797_v59 = vld [vmem:[%s13100_s5 + $0x3c4] ss:$8 sps:$4 sm:$0xff]  }
 0xe62   : > { %8361 = vmatprep.subr.bf16.mxu0 %v4721_v22 }
 0xe65   : > { %8362 = vmatpush3.bf16.msra.mxu0 %v4721_v22  ;;  %v8800_v22 = vld [vmem:[%s13100_s5 + $0x3b4] ss:$8 sps:$4 sm:$0xff]  }
 0xe66   : > { %8363 = vmatprep.subr.bf16.mxu0 %v4720_v1 }
 0xe69   : > { %8364 = vmatpush3.bf16.msra.mxu0 %v4720_v1  ;;  %v8798_v1 = vld [vmem:[%s13100_s5 + $0x3b0] ss:$8 sps:$4 sm:$0xff]  }
 0xe6a   : > { %8365 = vmatprep.subr.bf16.mxu0 %v4719_v25 }
 0xe6d   : > { %8366 = vmatpush3.bf16.msra.mxu0 %v4719_v25  ;;  %v8789_v25 = vld [vmem:[%s13100_s5 + $0x3e0] ss:$8 sps:$4 sm:$0xff]  }
 0xe6e   : > { %8367 = vmatprep.subr.bf16.mxu0 %v4718_v24 }
 0xe71   : > { %8368 = vmatpush3.bf16.msra.mxu0 %v4718_v24  ;;  %v8791_v24 = vld [vmem:[%s13100_s5 + $0x3e4] ss:$8 sps:$4 sm:$0xff]  }
 0xe72   : > { %8369 = vmatprep.subr.bf16.mxu0 %v4717_v39 }
 0xe75   : > { %8370 = vmatpush3.bf16.msra.mxu0 %v4717_v39  ;;  %v8794_v39 = vld [vmem:[%s13100_s5 + $0x3d4] ss:$8 sps:$4 sm:$0xff]  }
 0xe76   : > { %8371 = vmatprep.subr.bf16.mxu0 %v4716_v2 }
 0xe79   : > { %8372 = vmatpush3.bf16.msra.mxu0 %v4716_v2  ;;  %v8792_v2 = vld [vmem:[%s13100_s5 + $0x3d0] ss:$8 sps:$4 sm:$0xff]  }
 0xe7a   : > { %8373 = vmatprep.subr.bf16.mxu0 %v4715_v23 }
 0xe7d   : > { %8374 = vmatpush3.bf16.msra.mxu0 %v4715_v23  ;;  %v4823_v23 = vmul.f32 %v11906_v43, %v11735_v5  ;;  %v4824_v43 = vmul.f32 %v11908_v38, %v11770_v9 }
 0xe7e   : > { %4997 = vmatprep.subr.bf16.mxu0 %v8788_v41 }
 0xe80   : > { %8376 = vmatmul.mubr.bf16.vlgmr.msra.gmra.mxu0 %v11642_v44 }
 0xe81   : > { %8379 = vmatprep.mubr.bf16.mxu0 %v11647_v10  ;;  %4998 = vmatpush1.bf16.msra.mxu0 %v8786_v19 }
 0xe82   : > { %4999 = vmatprep.subr.bf16.mxu0 %v8791_v24  ;;  %v4821_v24 = vmul.f32 %v11902_v56, %v11729_v4 }
 0xe85   : > { %5000 = vmatpush1.bf16.msra.mxu0 %v8789_v25 }
 0xe86   : > { %5001 = vmatprep.subr.bf16.mxu0 %v8794_v39 }
 0xe88   : > { %8380 = vmatmul.mubr.bf16.gmra.mxu0 %v11666_v46 }
 0xe89   : > { %8383 = vmatprep.mubr.bf16.mxu0 %v11671_v16  ;;  %5002 = vmatpush1.bf16.msra.mxu0 %v8792_v2 }
 0xe8a   : > { %5003 = vmatprep.subr.bf16.mxu0 %v8797_v59 }
 0xe8d   : > { %5004 = vmatpush1.bf16.msra.mxu0 %v8795_v11 }
 0xe8e   : > { %5005 = vmatprep.subr.bf16.mxu0 %v8800_v22 }
 0xe90   : > { %8384 = vmatmul.mubr.bf16.gmra.mxu0 %v11690_v50 }
 0xe91   : > { %8387 = vmatprep.mubr.bf16.mxu0 %v11695_v26  ;;  %5006 = vmatpush1.bf16.msra.mxu0 %v8798_v1 }
 0xe92   : > { %5007 = vmatprep.subr.bf16.mxu0 %v8803_v32 }
 0xe95   : > { %5008 = vmatpush1.bf16.msra.mxu0 %v8801_v29 }
 0xe96   : > { %5009 = vmatprep.subr.bf16.mxu0 %v8806_v18  ;;  %v4827_v18 = vmul.f32 %v11914_v14, %v11784_v52 }
 0xe98   : > { %8388 = vmatmul.mubr.bf16.gmra.mxu0 %v11705_v27 }
 0xe99   : > { %5029 = vmatprep.mubr.bf16.mxu0 %v13623_v13  ;;  %5010 = vmatpush1.bf16.msra.mxu0 %v8804_v48 }
 0xe9a   : > { %5011 = vmatprep.subr.bf16.mxu0 %v8809_v45 }
 0xe9d   : > { %5012 = vmatpush1.bf16.msra.mxu0 %v8807_v60 }
 0xf40   : > { %v8377_v31 = vpop.f32.mrf.mxu0 }
 0xf41   : > { %v4838_v3 = vadd.f32 %v8377_v31, %v4822_v61 }
 0xf42   : > { %v4757_v21 = vpop.f32.mrf.mxu0 }
 0xf43   : > { %v4836_v41 = vadd.f32 %v4820_v37, %v4757_v21  ;;  %v4862_v40 = vadd.f32 %v11995_v35, %v4838_v3  ;;  %v4825_v37 = vmul.f32 %v11910_v47, %v11763_v15 }
 0xf44   : > { %v8378_v19 = vpop.f32.mrf.mxu0 }
 0xf45   : > { %v4839_v25 = vadd.f32 %v8378_v19, %v4823_v23  ;;  %v4860_v2 = vadd.f32 %v11995_v35, %v4836_v41  ;;  %v4878_v1 = vmax.f32 %v4862_v40, 0.0  ;;  %v4830_v41 = vmul.f32 %v11920_v63, %v11833_v36 }
 0xf46   : > { %v4760_v39 = vpop.f32.mrf.mxu0  ;;  %v4828_v40 = vmul.f32 %v11916_v20, %v11812_v28  ;;  %v4831_v63 = vmul.f32 %v11922_v55, %v11826_v62  ;;  %v4829_v20 = vmul.f32 %v11918_v57, %v11805_v30 }
 0xf47   : > { %v4863_v59 = vadd.f32 %v11995_v35, %v4839_v25  ;;  %v4837_v11 = vadd.f32 %v4821_v24, %v4760_v39  ;;  %v4876_v45 = vmax.f32 %v4860_v2, 0.0 }
 0xf48   : > { %v8381_v22 = vpop.f32.mrf.mxu0 }
 0xf49   : > { %v4879_v32 = vmax.f32 %v4863_v59, 0.0  ;;  %v4861_v56 = vadd.f32 %v11995_v35, %v4837_v11  ;;  %v4842_v29 = vadd.f32 %v8381_v22, %v4826_v53 }
 0xf4a   : > { %v4773_v48 = vpop.f32.mrf.mxu0 }
 0xf4b   : > { %v4910_v12 = vpack.c.bf16 %v4879_v32, %v4878_v1  ;;  %v4877_v60 = vmax.f32 %v4861_v56, 0.0  ;;  %v4840_v61 = vadd.f32 %v4824_v43, %v4773_v48  ;;  %v4866_v38 = vadd.f32 %v11995_v35, %v4842_v29 }
 0xf4c   : > { %v8382_v31 = vpop.f32.mrf.mxu0 }
 0xf4d   : > { %v4909_v3 = vpack.c.bf16 %v4877_v60, %v4876_v45  ;;  %v4843_v21 = vadd.f32 %v8382_v31, %v4827_v18  ;;  %v4864_v19 = vadd.f32 %v11995_v35, %v4840_v61  ;;  %v4882_v47 = vmax.f32 %v4866_v38, 0.0 }
 0xf4e   : > { %v4776_v23 = vpop.f32.mrf.mxu0  ;;  %v4834_v45 = vmul.f32 %v11928_v0, %v11875_v49  ;;  %v4832_v31 = vmul.f32 %v11924_v34, %v11854_v17  ;;  %v4835_v0 = vmul.f32 %v11930_v51, %v11868_v58  ;;  %v4833_v34 = vmul.f32 %v11926_v7, %v11847_v6 }
 0xf4f   : > { %v4867_v14 = vadd.f32 %v11995_v35, %v4843_v21  ;;  %v4841_v24 = vadd.f32 %v4825_v37, %v4776_v23  ;;  %5030 = vmatmul.mubr.bf16.vlgmr.msra.gmra.mxu0 %v4909_v3  ;;  %v4880_v11 = vmax.f32 %v4864_v19, 0.0 }
 0xf50   : > { %v8385_v25 = vpop.f32.mrf.mxu0  ;;  %5039 = vmatprep.mubr.bf16.mxu0 %v13623_v13 }
 0xf51   : > { %v4883_v39 = vmax.f32 %v4867_v14, 0.0  ;;  %v4865_v53 = vadd.f32 %v11995_v35, %v4841_v24  ;;  %v4846_v2 = vadd.f32 %v8385_v25, %v4830_v41 }
 0xf52   : > { %v4789_v59 = vpop.f32.mrf.mxu0 }
 0xf53   : > { %v4912_v43 = vpack.c.bf16 %v4883_v39, %v4882_v47  ;;  %v4881_v22 = vmax.f32 %v4865_v53, 0.0  ;;  %v4844_v1 = vadd.f32 %v4828_v40, %v4789_v59  ;;  %v4870_v29 = vadd.f32 %v11995_v35, %v4846_v2 }
 0xf54   : > { %v8386_v32 = vpop.f32.mrf.mxu0 }
 0xf55   : > { %v4911_v56 = vpack.c.bf16 %v4881_v22, %v4880_v11  ;;  %v4847_v18 = vadd.f32 %v8386_v32, %v4831_v63  ;;  %v4868_v60 = vadd.f32 %v11995_v35, %v4844_v1  ;;  %v4886_v57 = vmax.f32 %v4870_v29, 0.0 }
 0xf56   : > { %v4792_v48 = vpop.f32.mrf.mxu0 }
 0xf57   : > { %v4871_v55 = vadd.f32 %v11995_v35, %v4847_v18  ;;  %v4845_v61 = vadd.f32 %v4829_v20, %v4792_v48  ;;  %5040 = vmatmul.mubr.bf16.gmra.mxu0 %v4910_v12  ;;  %v4884_v41 = vmax.f32 %v4868_v60, 0.0 }
 0xf58   : > { %v8389_v37 = vpop.f32.mrf.mxu0  ;;  %5049 = vmatprep.mubr.bf16.mxu0 %v13623_v13 }
 0xf59   : > { %v4887_v3 = vmax.f32 %v4871_v55, 0.0  ;;  %v4869_v38 = vadd.f32 %v11995_v35, %v4845_v61  ;;  %v4850_v21 = vadd.f32 %v8389_v37, %v4834_v45 }
 0xf5a   : > { %v4805_v23 = vpop.f32.mrf.mxu0 }
 0xf5b   : > { %v4914_v19 = vpack.c.bf16 %v4887_v3, %v4886_v57  ;;  %v4885_v14 = vmax.f32 %v4869_v38, 0.0  ;;  %v4848_v24 = vadd.f32 %v4832_v31, %v4805_v23  ;;  %v4874_v25 = vadd.f32 %v11995_v35, %v4850_v21 }
 0xf5c   : > { %v8390_v12 = vpop.f32.mrf.mxu0 }
 0xf5d   : > { %v4913_v40 = vpack.c.bf16 %v4885_v14, %v4884_v41  ;;  %v4851_v47 = vadd.f32 %v8390_v12, %v4835_v0  ;;  %v4872_v53 = vadd.f32 %v11995_v35, %v4848_v24  ;;  %v4890_v51 = vmax.f32 %v4874_v25, 0.0 }
 0xf5e   : > { %v4808_v39 = vpop.f32.mrf.mxu0 }
 0xf5f   : > { %v4875_v2 = vadd.f32 %v11995_v35, %v4851_v47  ;;  %v4849_v63 = vadd.f32 %v4833_v34, %v4808_v39  ;;  %5050 = vmatmul.mubr.bf16.gmra.mxu0 %v4911_v56  ;;  %v4888_v22 = vmax.f32 %v4872_v53, 0.0 }
 0xf60   : > { %5059 = vmatprep.mubr.bf16.mxu0 %v13623_v13 }
 0xf61   : > { %v4891_v59 = vmax.f32 %v4875_v2, 0.0  ;;  %v4873_v11 = vadd.f32 %v11995_v35, %v4849_v63 }
 0xf63   : > { %v4916_v1 = vpack.c.bf16 %v4891_v59, %v4890_v51  ;;  %v4889_v7 = vmax.f32 %v4873_v11, 0.0 }
 0xf65   : > { %v4915_v32 = vpack.c.bf16 %v4889_v7, %v4888_v22 }
 0xf67   : > { %5060 = vmatmul.mubr.bf16.gmra.mxu0 %v4912_v43 }
 0xf68   : > { %5069 = vmatprep.mubr.bf16.mxu0 %v13623_v13 }
 0xf6f   : > { %5070 = vmatmul.mubr.bf16.gmra.mxu0 %v4913_v40 }
 0xf70   : > { %5079 = vmatprep.mubr.bf16.mxu0 %v13623_v13 }
 0xf77   : > { %5080 = vmatmul.mubr.bf16.gmra.mxu0 %v4914_v19 }
 0xf78   : > { %5089 = vmatprep.mubr.bf16.mxu0 %v13623_v13 }
 0xf7f   : > { %5090 = vmatmul.mubr.bf16.gmra.mxu0 %v4915_v32 }
 0xf80   : > { %5099 = vmatprep.mubr.bf16.mxu0 %v13623_v13 }
 0xf87   : > { %5100 = vmatmul.mubr.bf16.gmra.mxu0 %v4916_v1 }
 0xf88   : > { %8439 = vmatprep.mubr.bf16.mxu0 %v11604_v54 }
0x100f   : > { %v12049_v35 = vpop.f32.mrf.mxu0 }
0x1011   : > { %v5033_v20 = vpop.f32.mrf.mxu0 }
0x1013   : > { %v12051_v56 = vpop.f32.mrf.mxu0 }
0x1015   : > { %v5037_v43 = vpop.f32.mrf.mxu0 }
0x1016   : > { %v5110_v32 = vpack.c.bf16 %v5037_v43, %v5033_v20  ;;  %v8813_v20 = vld [vmem:[%s13100_s5 + $0x460] ss:$8 sps:$4 sm:$0xff]   ;;  %v8818_v43 = vld [vmem:[%s13100_s5 + $0x454] ss:$8 sps:$4 sm:$0xff]  }
0x1017   : > { %v12053_v29 = vpop.f32.mrf.mxu0 }
0x1019   : > { %v5043_v18 = vpop.f32.mrf.mxu0 }
0x101b   : > { %v12055_v48 = vpop.f32.mrf.mxu0 }
0x101d   : > { %v5047_v45 = vpop.f32.mrf.mxu0 }
0x101e   : > { %v5111_v7 = vpack.c.bf16 %v5047_v45, %v5043_v18  ;;  %v8816_v18 = vld [vmem:[%s13100_s5 + $0x450] ss:$8 sps:$4 sm:$0xff]  }
0x101f   : > { %v12057_v60 = vpop.f32.mrf.mxu0  ;;  %v8828_v45 = vld [vmem:[%s13100_s5 + $0x410] ss:$8 sps:$4 sm:$0xff]  }
0x1021   : > { %v5053_v55 = vpop.f32.mrf.mxu0 }
0x1023   : > { %v12059_v61 = vpop.f32.mrf.mxu0 }
0x1025   : > { %v5057_v31 = vpop.f32.mrf.mxu0 }
0x1026   : > { %v5112_v1 = vpack.c.bf16 %v5057_v31, %v5053_v55  ;;  %v8815_v55 = vld [vmem:[%s13100_s5 + $0x464] ss:$8 sps:$4 sm:$0xff]  }
0x1027   : > { %v12061_v37 = vpop.f32.mrf.mxu0  ;;  %v8833_v31 = vld [vmem:[%s13100_s5 + $0x404] ss:$8 sps:$4 sm:$0xff]  }
0x1029   : > { %v5063_v54 = vpop.f32.mrf.mxu0 }
0x102b   : > { %v12063_v57 = vpop.f32.mrf.mxu0 }
0x102d   : > { %v5067_v3 = vpop.f32.mrf.mxu0 }
0x102e   : > { %v5113_v22 = vpack.c.bf16 %v5067_v3, %v5063_v54  ;;  %v8810_v54 = vld [vmem:[%s13100_s5 + $0x470] ss:$8 sps:$4 sm:$0xff]   ;;  %v8831_v3 = vld [vmem:[%s13100_s5 + $0x400] ss:$8 sps:$4 sm:$0xff]  }
0x102f   : > { %v12065_v38 = vpop.f32.mrf.mxu0 }
0x1031   : > { %v5073_v21 = vpop.f32.mrf.mxu0 }
0x1033   : > { %v12067_v0 = vpop.f32.mrf.mxu0 }
0x1035   : > { %v5077_v23 = vpop.f32.mrf.mxu0 }
0x1036   : > { %v5114_v11 = vpack.c.bf16 %v5077_v23, %v5073_v21  ;;  %v5217_v21 = vmul.f32 %v12053_v29, %v11747_v33  ;;  %v5216_v29 = vmul.f32 %v12051_v56, %v11729_v4 }
0x1037   : > { %v12069_v41 = vpop.f32.mrf.mxu0 }
0x1039   : > { %v5083_v19 = vpop.f32.mrf.mxu0 }
0x103b   : > { %v12071_v14 = vpop.f32.mrf.mxu0 }
0x103d   : > { %v5087_v24 = vpop.f32.mrf.mxu0 }
0x103e   : > { %v5115_v59 = vpack.c.bf16 %v5087_v24, %v5083_v19  ;;  %v8812_v19 = vld [vmem:[%s13100_s5 + $0x474] ss:$8 sps:$4 sm:$0xff]   ;;  %v12142_v24 = vld [vmem:[%s13101_s6 + $0x7] ss:$0 sm:$0xff] }
0x103f   : > { %v12073_v12 = vpop.f32.mrf.mxu0 }
0x1041   : > { %v5093_v34 = vpop.f32.mrf.mxu0 }
0x1043   : > { %v12075_v40 = vpop.f32.mrf.mxu0 }
0x1045   : > { %v5097_v25 = vpop.f32.mrf.mxu0 }
0x1046   : > { %v5116_v51 = vpack.c.bf16 %v5097_v25, %v5093_v34  ;;  %v5215_v34 = vmul.f32 %v12049_v35, %v11727_v42 }
0x1047   : > { %v12077_v47 = vpop.f32.mrf.mxu0 }
0x1049   : > { %v5103_v39 = vpop.f32.mrf.mxu0 }
0x104b   : > { %v12079_v53 = vpop.f32.mrf.mxu0 }
0x104d   : > { %v5107_v2 = vpop.f32.mrf.mxu0 }
0x104e   : > { %v5117_v63 = vpack.c.bf16 %v5107_v2, %v5103_v39  ;;  %v5218_v2 = vmul.f32 %v12055_v48, %v11735_v5  ;;  %v5219_v48 = vmul.f32 %v12057_v60, %v11770_v9  ;;  %v5222_v60 = vmul.f32 %v12063_v57, %v11784_v52 }
0x1050   : > { %8391 = vmatprep.subr.bf16.mxu1 %v5117_v63 }
0x1051   : > { %8392 = vmatpush3.bf16.msra.mxu1 %v5117_v63 }
0x1052   : > { %8393 = vmatprep.subr.bf16.mxu1 %v5116_v51 }
0x1055   : > { %8394 = vmatpush3.bf16.msra.mxu1 %v5116_v51 }
0x1056   : > { %8395 = vmatprep.subr.bf16.mxu1 %v5115_v59 }
0x1059   : > { %8396 = vmatpush3.bf16.msra.mxu1 %v5115_v59 }
0x105a   : > { %8397 = vmatprep.subr.bf16.mxu1 %v5114_v11 }
0x105d   : > { %8398 = vmatpush3.bf16.msra.mxu1 %v5114_v11 }
0x105e   : > { %8399 = vmatprep.subr.bf16.mxu1 %v5113_v22 }
0x1061   : > { %8400 = vmatpush3.bf16.msra.mxu1 %v5113_v22 }
0x1062   : > { %8401 = vmatprep.subr.bf16.mxu1 %v5112_v1 }
0x1065   : > { %8402 = vmatpush3.bf16.msra.mxu1 %v5112_v1 }
0x1066   : > { %8403 = vmatprep.subr.bf16.mxu1 %v5111_v7 }
0x1069   : > { %8404 = vmatpush3.bf16.msra.mxu1 %v5111_v7  ;;  %v5221_v7 = vmul.f32 %v12061_v37, %v11791_v8 }
0x106a   : > { %8405 = vmatprep.subr.bf16.mxu1 %v5110_v32 }
0x106d   : > { %8406 = vmatpush3.bf16.msra.mxu1 %v5110_v32 }
0x106e   : > { %5408 = vmatprep.subr.bf16.mxu1 %v8812_v19 }
0x1070   : > { %8408 = vmatmul.mubr.bf16.vlgmr.msra.gmra.mxu1 %v11642_v44  ;;  %v8821_v44 = vld [vmem:[%s13100_s5 + $0x444] ss:$8 sps:$4 sm:$0xff]  }
0x1071   : > { %8411 = vmatprep.mubr.bf16.mxu1 %v11647_v10  ;;  %5409 = vmatpush1.bf16.msra.mxu1 %v8810_v54  ;;  %v8819_v10 = vld [vmem:[%s13100_s5 + $0x440] ss:$8 sps:$4 sm:$0xff]  }
0x1072   : > { %5410 = vmatprep.subr.bf16.mxu1 %v8815_v55 }
0x1075   : > { %5411 = vmatpush1.bf16.msra.mxu1 %v8813_v20 }
0x1076   : > { %5412 = vmatprep.subr.bf16.mxu1 %v8818_v43 }
0x1078   : > { %8412 = vmatmul.mubr.bf16.gmra.mxu1 %v11666_v46  ;;  %v8824_v46 = vld [vmem:[%s13100_s5 + $0x434] ss:$8 sps:$4 sm:$0xff]  }
0x1079   : > { %8415 = vmatprep.mubr.bf16.mxu1 %v11671_v16  ;;  %5413 = vmatpush1.bf16.msra.mxu1 %v8816_v18  ;;  %v8822_v16 = vld [vmem:[%s13100_s5 + $0x430] ss:$8 sps:$4 sm:$0xff]  }
0x107a   : > { %5414 = vmatprep.subr.bf16.mxu1 %v8821_v44  ;;  %v13822_v44 = vld [vmem:[#allocation82_spill] sm:$0xff] }
0x107d   : > { %5415 = vmatpush1.bf16.msra.mxu1 %v8819_v10  ;;  %v13823_v10 = vmax.f32 %v13822_v44, 0.0 }
0x107e   : > { %5416 = vmatprep.subr.bf16.mxu1 %v8824_v46 }
0x1080   : > { %8416 = vmatmul.mubr.bf16.gmra.mxu1 %v11690_v50  ;;  %v8827_v50 = vld [vmem:[%s13100_s5 + $0x424] ss:$8 sps:$4 sm:$0xff]  }
0x1081   : > { %8419 = vmatprep.mubr.bf16.mxu1 %v11695_v26  ;;  %5417 = vmatpush1.bf16.msra.mxu1 %v8822_v16  ;;  %v8825_v26 = vld [vmem:[%s13100_s5 + $0x420] ss:$8 sps:$4 sm:$0xff]   ;;  %v13824_v16 = vld [vmem:[#allocation28_spill] sm:$0xff] }
0x1082   : > { %5418 = vmatprep.subr.bf16.mxu1 %v8827_v50  ;;  %v13825_v50 = vmax.f32 %v13824_v16, 0.0 }
0x1085   : > { %5419 = vmatpush1.bf16.msra.mxu1 %v8825_v26 }
0x1088   : > { %8420 = vmatmul.mubr.bf16.gmra.mxu1 %v11705_v27  ;;  %v8830_v27 = vld [vmem:[%s13100_s5 + $0x414] ss:$8 sps:$4 sm:$0xff]  }
0x1089   : > { %5440 = vmatprep.mubr.bf16.mxu1 %v13623_v13  ;;  %5420 = vmatprep.subr.bf16.mxu1 %v8830_v27 }
0x108a   : > { %5421 = vmatpush1.bf16.msra.mxu1 %v8828_v45  ;;  %v5220_v45 = vmul.f32 %v12059_v61, %v11763_v15  ;;  %v5225_v61 = vmul.f32 %v12069_v41, %v11833_v36  ;;  %v5226_v41 = vmul.f32 %v12071_v14, %v11826_v62  ;;  %v5224_v14 = vmul.f32 %v12067_v0, %v11805_v30 }
0x108b   : > { %5422 = vmatprep.subr.bf16.mxu1 %v8833_v31  ;;  %v5230_v0 = vmul.f32 %v12079_v53, %v11868_v58  ;;  %v5228_v53 = vmul.f32 %v12075_v40, %v11847_v6 }
0x108e   : > { %5423 = vmatpush1.bf16.msra.mxu1 %v8831_v3 }
0x1130   : > { %v8409_v23 = vpop.f32.mrf.mxu1 }
0x1131   : > { %v5233_v25 = vadd.f32 %v8409_v23, %v5217_v21  ;;  %v13826_v21 = vld [vmem:[#allocation27_spill] sm:$0xff] }
0x1132   : > { %v5152_v39 = vpop.f32.mrf.mxu1  ;;  %v13827_v23 = vmax.f32 %v13826_v21, 0.0 }
0x1133   : > { %v5257_v63 = vadd.f32 %v12142_v24, %v5233_v25  ;;  %v5231_v51 = vadd.f32 %v5215_v34, %v5152_v39  ;;  %v13828_v39 = vld [vmem:[#allocation81_spill] sm:$0xff] }
0x1134   : > { %v8410_v59 = vpop.f32.mrf.mxu1 }
0x1135   : > { %v5255_v11 = vadd.f32 %v12142_v24, %v5231_v51  ;;  %v5234_v22 = vadd.f32 %v8410_v59, %v5218_v2  ;;  %v5273_v35 = vmax.f32 %v5257_v63, 0.0  ;;  %v13829_v2 = vmax.f32 %v13828_v39, 0.0 }
0x1136   : > { %v5155_v1 = vpop.f32.mrf.mxu1  ;;  %v5229_v39 = vmul.f32 %v12077_v47, %v11875_v49  ;;  %v13838_v47 = vld [vmem:[#allocation87_spill] sm:$0xff] }
0x1137   : > { %v5258_v32 = vadd.f32 %v12142_v24, %v5234_v22  ;;  %v5232_v19 = vadd.f32 %v5216_v29, %v5155_v1  ;;  %v5271_v55 = vmax.f32 %v5255_v11, 0.0  ;;  %v5289_v46 = vadd.f32 %v5273_v35, %v13823_v10 }
0x1138   : > { %v8413_v54 = vpop.f32.mrf.mxu1  ;;  %v5223_v35 = vmul.f32 %v12065_v38, %v11812_v28  ;;  %v13832_v38 = vld [vmem:[#allocation30_spill] sm:$0xff] }
0x1139   : > { %v5274_v20 = vmax.f32 %v5258_v32, 0.0  ;;  %v5256_v43 = vadd.f32 %v12142_v24, %v5232_v19  ;;  %v5237_v56 = vadd.f32 %v8413_v54, %v5221_v7  ;;  %v5287_v34 = vadd.f32 %v5271_v55, %v13827_v23 }
0x113a   : > { %v5168_v18 = vpop.f32.mrf.mxu1 }
0x113b   : > { %v5290_v37 = vadd.f32 %v5274_v20, %v13825_v50  ;;  %v5272_v26 = vmax.f32 %v5256_v43, 0.0  ;;  %v5235_v27 = vadd.f32 %v5219_v48, %v5168_v18  ;;  %v5261_v31 = vadd.f32 %v12142_v24, %v5237_v56  ;;  %v13830_v18 = vld [vmem:[#allocation84_spill] sm:$0xff] }
0x113c   : > { %v8414_v3 = vpop.f32.mrf.mxu1  ;;  %v13831_v44 = vmax.f32 %v13830_v18, 0.0  ;;  %v13842_v18 = vld [vmem:[#allocation85_spill] sm:$0xff] }
0x113d   : > { %v5321_v25 = vpack.c.bf16 %v5290_v37, %v5289_v46  ;;  %v5288_v63 = vadd.f32 %v5272_v26, %v13829_v2  ;;  %v5259_v51 = vadd.f32 %v12142_v24, %v5235_v27  ;;  %v5238_v59 = vadd.f32 %v8414_v3, %v5222_v60  ;;  %v13834_v37 = vld [vmem:[#allocation83_spill] sm:$0xff] }
0x113e   : > { %v5171_v29 = vpop.f32.mrf.mxu1  ;;  %v5277_v57 = vmax.f32 %v5261_v31, 0.0  ;;  %v13833_v46 = vmax.f32 %v13832_v38, 0.0  ;;  %v13835_v26 = vmax.f32 %v13834_v37, 0.0  ;;  %v13844_v38 = vld [vmem:[#allocation31_spill] sm:$0xff] }
0x113f   : > { %v5320_v11 = vpack.c.bf16 %v5288_v63, %v5287_v34  ;;  %v5236_v22 = vadd.f32 %v5220_v45, %v5171_v29  ;;  %v5262_v1 = vadd.f32 %v12142_v24, %v5238_v59  ;;  %v5275_v32 = vmax.f32 %v5259_v51, 0.0  ;;  %v13836_v45 = vld [vmem:[#allocation29_spill] sm:$0xff] }
0x1140   : > { %v8417_v7 = vpop.f32.mrf.mxu1  ;;  %v5293_v10 = vadd.f32 %v5277_v57, %v13831_v44  ;;  %v13837_v60 = vmax.f32 %v13836_v45, 0.0  ;;  %v13843_v44 = vmax.f32 %v13842_v18, 0.0 }
0x1141   : > { %v5260_v19 = vadd.f32 %v12142_v24, %v5236_v22  ;;  %v5241_v48 = vadd.f32 %v8417_v7, %v5225_v61  ;;  %5441 = vmatmul.mubr.bf16.vlgmr.msra.gmra.mxu1 %v5320_v11  ;;  %v5278_v54 = vmax.f32 %v5262_v1, 0.0  ;;  %v5291_v27 = vadd.f32 %v5275_v32, %v13835_v26 }
0x1142   : > { %v5184_v55 = vpop.f32.mrf.mxu1  ;;  %5450 = vmatprep.mubr.bf16.mxu1 %v13623_v13  ;;  %v5227_v61 = vmul.f32 %v12073_v12, %v11854_v17 }
0x1143   : > { %v5276_v20 = vmax.f32 %v5260_v19, 0.0  ;;  %v5265_v43 = vadd.f32 %v12142_v24, %v5241_v48  ;;  %v5239_v56 = vadd.f32 %v5223_v35, %v5184_v55  ;;  %v5294_v16 = vadd.f32 %v5278_v54, %v13833_v46  ;;  %v13840_v19 = vld [vmem:[#allocation86_spill] sm:$0xff] }
0x1144   : > { %v8418_v50 = vpop.f32.mrf.mxu1  ;;  %v13839_v35 = vmax.f32 %v13838_v47, 0.0  ;;  %v13841_v48 = vmax.f32 %v13840_v19, 0.0  ;;  %v13845_v46 = vmax.f32 %v13844_v38, 0.0 }
0x1145   : > { %v5292_v31 = vadd.f32 %v5276_v20, %v13837_v60  ;;  %v5242_v3 = vadd.f32 %v8418_v50, %v5226_v41  ;;  %v5323_v21 = vpack.c.bf16 %v5294_v16, %v5293_v10  ;;  %v5263_v23 = vadd.f32 %v12142_v24, %v5239_v56 }
0x1146   : > { %v5187_v34 = vpop.f32.mrf.mxu1  ;;  %v5281_v63 = vmax.f32 %v5265_v43, 0.0 }
0x1147   : > { %v5322_v2 = vpack.c.bf16 %v5292_v31, %v5291_v27  ;;  %v5266_v51 = vadd.f32 %v12142_v24, %v5242_v3  ;;  %v5240_v59 = vadd.f32 %v5224_v14, %v5187_v34  ;;  %v5279_v57 = vmax.f32 %v5263_v23, 0.0  ;;  %v13846_v3 = vld [vmem:[#allocation91_spill] sm:$0xff]  ;;  %v13848_v34 = vld [vmem:[#allocation90_spill] sm:$0xff] }
0x1148   : > { %v8421_v29 = vpop.f32.mrf.mxu1  ;;  %v5297_v32 = vadd.f32 %v5281_v63, %v13839_v35  ;;  %v13847_v14 = vmax.f32 %v13846_v3, 0.0 }
0x1149   : > { %v5282_v11 = vmax.f32 %v5266_v51, 0.0  ;;  %v5245_v22 = vadd.f32 %v8421_v29, %v5229_v39  ;;  %5451 = vmatmul.mubr.bf16.gmra.mxu1 %v5321_v25  ;;  %v5264_v1 = vadd.f32 %v12142_v24, %v5240_v59  ;;  %v5295_v10 = vadd.f32 %v5279_v57, %v13843_v44  ;;  %v13850_v59 = vld [vmem:[#allocation89_spill] sm:$0xff] }
0x114a   : > { %v5200_v7 = vpop.f32.mrf.mxu1  ;;  %5460 = vmatprep.mubr.bf16.mxu1 %v13623_v13  ;;  %v13849_v39 = vmax.f32 %v13848_v34, 0.0  ;;  %v13851_v29 = vmax.f32 %v13850_v59, 0.0 }
0x114b   : > { %v5298_v54 = vadd.f32 %v5282_v11, %v13841_v48  ;;  %v5269_v12 = vadd.f32 %v12142_v24, %v5245_v22  ;;  %v5243_v55 = vadd.f32 %v5227_v61, %v5200_v7  ;;  %v5280_v41 = vmax.f32 %v5264_v1, 0.0  ;;  %v13852_v22 = vld [vmem:[#allocation88_spill] sm:$0xff] }
0x114c   : > { %v8422_v25 = vpop.f32.mrf.mxu1 }
0x114d   : > { %v5325_v20 = vpack.c.bf16 %v5298_v54, %v5297_v32  ;;  %v5267_v43 = vadd.f32 %v12142_v24, %v5243_v55  ;;  %v5246_v56 = vadd.f32 %v8422_v25, %v5230_v0  ;;  %v5296_v16 = vadd.f32 %v5280_v41, %v13845_v46 }
0x114e   : > { %v5203_v50 = vpop.f32.mrf.mxu1  ;;  %v5285_v37 = vmax.f32 %v5269_v12, 0.0  ;;  %v13853_v0 = vmax.f32 %v13852_v22, 0.0  ;;  %v8839_v22 = vld [vmem:[%s13100_s5 + $0x4e4] ss:$8 sps:$4 sm:$0xff]  }
0x114f   : > { %v5270_v26 = vadd.f32 %v12142_v24, %v5246_v56  ;;  %v5244_v27 = vadd.f32 %v5228_v53, %v5203_v50  ;;  %v5324_v45 = vpack.c.bf16 %v5296_v16, %v5295_v10  ;;  %v5283_v60 = vmax.f32 %v5267_v43, 0.0 }
0x1150   : > { %v5301_v23 = vadd.f32 %v5285_v37, %v13847_v14 }
0x1151   : > { %v5286_v31 = vmax.f32 %v5270_v26, 0.0  ;;  %v5268_v40 = vadd.f32 %v12142_v24, %v5244_v27  ;;  %5461 = vmatmul.mubr.bf16.gmra.mxu1 %v5322_v2  ;;  %v5299_v61 = vadd.f32 %v5283_v60, %v13851_v29  ;;  %v12232_v24 = vld [vmem:[%s13099_s4] sm:$0xff]  }
0x1152   : > { %5470 = vmatprep.mubr.bf16.mxu1 %v13623_v13 }
0x1153   : > { %v5302_v63 = vadd.f32 %v5286_v31, %v13849_v39  ;;  %v5284_v51 = vmax.f32 %v5268_v40, 0.0 }
0x1155   : > { %v5327_v11 = vpack.c.bf16 %v5302_v63, %v5301_v23  ;;  %v5300_v57 = vadd.f32 %v5284_v51, %v13853_v0  ;;  %v12279_v0 = vld [vmem:[%s13099_s4 + $0x8] sm:$0xff]  }
0x1157   : > { %v5326_v1 = vpack.c.bf16 %v5300_v57, %v5299_v61  ;;  %v8836_v61 = vld [vmem:[%s13100_s5 + $0x4f4] ss:$8 sps:$4 sm:$0xff]  }
0x1158   : > { %v12285_v57 = vld [vmem:[%s13099_s4 + $0x10] sm:$0xff]  }
0x1159   : > { %5471 = vmatmul.mubr.bf16.gmra.mxu1 %v5323_v21 }
0x115a   : > { %5480 = vmatprep.mubr.bf16.mxu1 %v13623_v13 }
0x1161   : > { %5481 = vmatmul.mubr.bf16.gmra.mxu1 %v5324_v45 }
0x1162   : > { %5490 = vmatprep.mubr.bf16.mxu1 %v13623_v13 }
0x1169   : > { %5491 = vmatmul.mubr.bf16.gmra.mxu1 %v5325_v20 }
0x116a   : > { %5500 = vmatprep.mubr.bf16.mxu1 %v13623_v13 }
0x1171   : > { %5501 = vmatmul.mubr.bf16.gmra.mxu1 %v5326_v1  ;;  %v8837_v1 = vld [vmem:[%s13100_s5 + $0x4e0] ss:$8 sps:$4 sm:$0xff]  }
0x1172   : > { %5510 = vmatprep.mubr.bf16.mxu1 %v13623_v13 }
0x1179   : > { %5511 = vmatmul.mubr.bf16.gmra.mxu1 %v5327_v11  ;;  %v8834_v11 = vld [vmem:[%s13100_s5 + $0x4f0] ss:$8 sps:$4 sm:$0xff]  }
0x117a   : > { %8471 = vmatprep.mubr.bf16.mxu1 %v12232_v24 }
0x1201   : > { %v12235_v21 = vpop.f32.mrf.mxu1 }
0x1203   : > { %v5444_v2 = vpop.f32.mrf.mxu1 }
0x1205   : > { %v12237_v7 = vpop.f32.mrf.mxu1 }
0x1207   : > { %v5448_v47 = vpop.f32.mrf.mxu1 }
0x1208   : > { %v5521_v35 = vpack.c.bf16 %v5448_v47, %v5444_v2  ;;  %v8842_v2 = vld [vmem:[%s13100_s5 + $0x4d4] ss:$8 sps:$4 sm:$0xff]   ;;  %v8840_v47 = vld [vmem:[%s13100_s5 + $0x4d0] ss:$8 sps:$4 sm:$0xff]  }
0x1209   : > { %v12239_v32 = vpop.f32.mrf.mxu1 }
0x120b   : > { %v5454_v19 = vpop.f32.mrf.mxu1 }
0x120d   : > { %v12241_v48 = vpop.f32.mrf.mxu1 }
0x120f   : > { %v5458_v54 = vpop.f32.mrf.mxu1 }
0x1210   : > { %v5522_v12 = vpack.c.bf16 %v5458_v54, %v5454_v19  ;;  %v12303_v19 = vld [vmem:[%s13099_s4 + $0x18] sm:$0xff]   ;;  %v12309_v54 = vld [vmem:[%s13099_s4 + $0x20] sm:$0xff]  }
0x1211   : > { %v12243_v55 = vpop.f32.mrf.mxu1 }
0x1213   : > { %v5464_v41 = vpop.f32.mrf.mxu1 }
0x1215   : > { %v12245_v25 = vpop.f32.mrf.mxu1 }
0x1217   : > { %v5468_v53 = vpop.f32.mrf.mxu1 }
0x1218   : > { %v5523_v29 = vpack.c.bf16 %v5468_v53, %v5464_v41  ;;  %v8848_v41 = vld [vmem:[%s13100_s5 + $0x4b4] ss:$8 sps:$4 sm:$0xff]   ;;  %v8846_v53 = vld [vmem:[%s13100_s5 + $0x4b0] ss:$8 sps:$4 sm:$0xff]  }
0x1219   : > { %v12247_v20 = vpop.f32.mrf.mxu1 }
0x121b   : > { %v5474_v43 = vpop.f32.mrf.mxu1 }
0x121d   : > { %v12249_v56 = vpop.f32.mrf.mxu1 }
0x121f   : > { %v5478_v18 = vpop.f32.mrf.mxu1 }
0x1220   : > { %v5524_v59 = vpack.c.bf16 %v5478_v18, %v5474_v43  ;;  %v12324_v43 = vld [vmem:[%s13099_s4 + $0x28] sm:$0xff]   ;;  %v12330_v18 = vld [vmem:[%s13099_s4 + $0x30] sm:$0xff]  }
0x1221   : > { %v12251_v44 = vpop.f32.mrf.mxu1 }
0x1223   : > { %v5484_v10 = vpop.f32.mrf.mxu1 }
0x1225   : > { %v12253_v38 = vpop.f32.mrf.mxu1 }
0x1227   : > { %v5488_v46 = vpop.f32.mrf.mxu1 }
0x1228   : > { %v5525_v51 = vpack.c.bf16 %v5488_v46, %v5484_v10  ;;  %v12336_v10 = vld [vmem:[%s13099_s4 + $0x38] sm:$0xff]   ;;  %v8851_v46 = vld [vmem:[%s13100_s5 + $0x4a4] ss:$8 sps:$4 sm:$0xff]  }
0x1229   : > { %v12255_v16 = vpop.f32.mrf.mxu1 }
0x122b   : > { %v5494_v50 = vpop.f32.mrf.mxu1 }
0x122d   : > { %v12257_v37 = vpop.f32.mrf.mxu1 }
0x122f   : > { %v5498_v26 = vpop.f32.mrf.mxu1 }
0x1230   : > { %v5526_v63 = vpack.c.bf16 %v5498_v26, %v5494_v50  ;;  %v8849_v50 = vld [vmem:[%s13100_s5 + $0x4a0] ss:$8 sps:$4 sm:$0xff]   ;;  %v8854_v26 = vld [vmem:[%s13100_s5 + $0x494] ss:$8 sps:$4 sm:$0xff]  }
0x1231   : > { %v12259_v27 = vpop.f32.mrf.mxu1 }
0x1233   : > { %v5504_v45 = vpop.f32.mrf.mxu1 }
0x1235   : > { %v12261_v60 = vpop.f32.mrf.mxu1 }
0x1237   : > { %v5508_v31 = vpop.f32.mrf.mxu1 }
0x1238   : > { %v5527_v39 = vpack.c.bf16 %v5508_v31, %v5504_v45  ;;  %v8852_v45 = vld [vmem:[%s13100_s5 + $0x490] ss:$8 sps:$4 sm:$0xff]   ;;  %v8857_v31 = vld [vmem:[%s13100_s5 + $0x484] ss:$8 sps:$4 sm:$0xff]  }
0x1239   : > { %v12263_v40 = vpop.f32.mrf.mxu1 }
0x123b   : > { %v5514_v3 = vpop.f32.mrf.mxu1 }
0x123d   : > { %v12265_v14 = vpop.f32.mrf.mxu1 }
0x123f   : > { %v5518_v23 = vpop.f32.mrf.mxu1 }
0x1240   : > { %v5528_v34 = vpack.c.bf16 %v5518_v23, %v5514_v3  ;;  %v8855_v3 = vld [vmem:[%s13100_s5 + $0x480] ss:$8 sps:$4 sm:$0xff]   ;;  %v5628_v23 = vmul.f32 %v12239_v32, %v11747_v33 }
0x1242   : > { %8423 = vmatprep.subr.bf16.mxu0 %v5528_v34 }
0x1243   : > { %8424 = vmatpush3.bf16.msra.mxu0 %v5528_v34 }
0x1244   : > { %8425 = vmatprep.subr.bf16.mxu0 %v5527_v39 }
0x1247   : > { %8426 = vmatpush3.bf16.msra.mxu0 %v5527_v39  ;;  %v5626_v39 = vmul.f32 %v12235_v21, %v11727_v42  ;;  %v5632_v21 = vmul.f32 %v12247_v20, %v11791_v8 }
0x1248   : > { %8427 = vmatprep.subr.bf16.mxu0 %v5526_v63 }
0x124b   : > { %8428 = vmatpush3.bf16.msra.mxu0 %v5526_v63 }
0x124c   : > { %8429 = vmatprep.subr.bf16.mxu0 %v5525_v51 }
0x124f   : > { %8430 = vmatpush3.bf16.msra.mxu0 %v5525_v51  ;;  %v12365_v51 = vld [vmem:[%s13101_s6 + $0x8] ss:$0 sm:$0xff] }
0x1250   : > { %8431 = vmatprep.subr.bf16.mxu0 %v5524_v59 }
0x1253   : > { %8432 = vmatpush3.bf16.msra.mxu0 %v5524_v59 }
0x1254   : > { %8433 = vmatprep.subr.bf16.mxu0 %v5523_v29 }
0x1257   : > { %8434 = vmatpush3.bf16.msra.mxu0 %v5523_v29  ;;  %v5629_v29 = vmul.f32 %v12241_v48, %v11735_v5  ;;  %v5630_v48 = vmul.f32 %v12243_v55, %v11770_v9 }
0x1258   : > { %8435 = vmatprep.subr.bf16.mxu0 %v5522_v12 }
0x125b   : > { %8436 = vmatpush3.bf16.msra.mxu0 %v5522_v12  ;;  %v8843_v12 = vld [vmem:[%s13100_s5 + $0x4c0] ss:$8 sps:$4 sm:$0xff]  }
0x125c   : > { %8437 = vmatprep.subr.bf16.mxu0 %v5521_v35 }
0x125f   : > { %8438 = vmatpush3.bf16.msra.mxu0 %v5521_v35  ;;  %v8845_v35 = vld [vmem:[%s13100_s5 + $0x4c4] ss:$8 sps:$4 sm:$0xff]  }
0x1260   : > { %5803 = vmatprep.subr.bf16.mxu0 %v8836_v61 }
0x1262   : > { %8440 = vmatmul.mubr.bf16.vlgmr.msra.gmra.mxu0 %v12279_v0 }
0x1263   : > { %8443 = vmatprep.mubr.bf16.mxu0 %v12285_v57  ;;  %5804 = vmatpush1.bf16.msra.mxu0 %v8834_v11 }
0x1264   : > { %5805 = vmatprep.subr.bf16.mxu0 %v8839_v22  ;;  %v5627_v22 = vmul.f32 %v12237_v7, %v11729_v4 }
0x1267   : > { %5806 = vmatpush1.bf16.msra.mxu0 %v8837_v1 }
0x1268   : > { %5807 = vmatprep.subr.bf16.mxu0 %v8842_v2 }
0x126a   : > { %8444 = vmatmul.mubr.bf16.gmra.mxu0 %v12303_v19 }
0x126b   : > { %8447 = vmatprep.mubr.bf16.mxu0 %v12309_v54  ;;  %5808 = vmatpush1.bf16.msra.mxu0 %v8840_v47 }
0x126c   : > { %5809 = vmatprep.subr.bf16.mxu0 %v8845_v35 }
0x126f   : > { %5810 = vmatpush1.bf16.msra.mxu0 %v8843_v12 }
0x1270   : > { %5811 = vmatprep.subr.bf16.mxu0 %v8848_v41 }
0x1272   : > { %8448 = vmatmul.mubr.bf16.gmra.mxu0 %v12324_v43 }
0x1273   : > { %8451 = vmatprep.mubr.bf16.mxu0 %v12330_v18  ;;  %5812 = vmatpush1.bf16.msra.mxu0 %v8846_v53 }
0x1274   : > { %5813 = vmatprep.subr.bf16.mxu0 %v8851_v46 }
0x1277   : > { %5814 = vmatpush1.bf16.msra.mxu0 %v8849_v50 }
0x1278   : > { %5815 = vmatprep.subr.bf16.mxu0 %v8854_v26  ;;  %v5633_v26 = vmul.f32 %v12249_v56, %v11784_v52 }
0x127a   : > { %8452 = vmatmul.mubr.bf16.gmra.mxu0 %v12336_v10 }
0x127b   : > { %5835 = vmatprep.mubr.bf16.mxu0 %v13623_v13  ;;  %5816 = vmatpush1.bf16.msra.mxu0 %v8852_v45 }
0x127c   : > { %5817 = vmatprep.subr.bf16.mxu0 %v8857_v31 }
0x127f   : > { %5818 = vmatpush1.bf16.msra.mxu0 %v8855_v3 }
0x1322   : > { %v8441_v34 = vpop.f32.mrf.mxu0 }
0x1323   : > { %v5644_v63 = vadd.f32 %v8441_v34, %v5628_v23 }
0x1324   : > { %v5563_v59 = vpop.f32.mrf.mxu0 }
0x1325   : > { %v5642_v61 = vadd.f32 %v5626_v39, %v5563_v59  ;;  %v5668_v32 = vadd.f32 %v12365_v51, %v5644_v63  ;;  %v5631_v39 = vmul.f32 %v12245_v25, %v11763_v15 }
0x1326   : > { %v8442_v11 = vpop.f32.mrf.mxu0 }
0x1327   : > { %v5645_v1 = vadd.f32 %v8442_v11, %v5629_v29  ;;  %v5666_v47 = vadd.f32 %v12365_v51, %v5642_v61  ;;  %v5684_v53 = vmax.f32 %v5668_v32, 0.0  ;;  %v5636_v61 = vmul.f32 %v12255_v16, %v11833_v36 }
0x1328   : > { %v5566_v2 = vpop.f32.mrf.mxu0  ;;  %v5634_v32 = vmul.f32 %v12251_v44, %v11812_v28  ;;  %v5637_v16 = vmul.f32 %v12257_v37, %v11826_v62  ;;  %v5635_v44 = vmul.f32 %v12253_v38, %v11805_v30 }
0x1329   : > { %v5669_v35 = vadd.f32 %v12365_v51, %v5645_v1  ;;  %v5643_v12 = vadd.f32 %v5627_v22, %v5566_v2  ;;  %v5682_v31 = vmax.f32 %v5666_v47, 0.0 }
0x132a   : > { %v8445_v41 = vpop.f32.mrf.mxu0 }
0x132b   : > { %v5685_v46 = vmax.f32 %v5669_v35, 0.0  ;;  %v5667_v7 = vadd.f32 %v12365_v51, %v5643_v12  ;;  %v5648_v50 = vadd.f32 %v8445_v41, %v5632_v21 }
0x132c   : > { %v5579_v45 = vpop.f32.mrf.mxu0 }
0x132d   : > { %v12381_v20 = vpack.c.bf16 %v5685_v46, %v5684_v53  ;;  %v5683_v3 = vmax.f32 %v5667_v7, 0.0  ;;  %v5646_v23 = vadd.f32 %v5630_v48, %v5579_v45  ;;  %v5672_v63 = vadd.f32 %v12365_v51, %v5648_v50 }
0x132e   : > { %v8446_v34 = vpop.f32.mrf.mxu0 }
0x132f   : > { %v12385_v55 = vpack.c.bf16 %v5683_v3, %v5682_v31  ;;  %v5649_v59 = vadd.f32 %v8446_v34, %v5633_v26  ;;  %v5670_v56 = vadd.f32 %v12365_v51, %v5646_v23  ;;  %v5688_v1 = vmax.f32 %v5672_v63, 0.0 }
0x1330   : > { %v5582_v29 = vpop.f32.mrf.mxu0  ;;  %v5640_v31 = vmul.f32 %v12263_v40, %v11875_v49  ;;  %v5638_v34 = vmul.f32 %v12259_v27, %v11854_v17  ;;  %v5641_v40 = vmul.f32 %v12265_v14, %v11868_v58  ;;  %v5639_v27 = vmul.f32 %v12261_v60, %v11847_v6 }
0x1331   : > { %v5673_v11 = vadd.f32 %v12365_v51, %v5649_v59  ;;  %v5647_v22 = vadd.f32 %v5631_v39, %v5582_v29  ;;  %5836 = vmatmul.mubr.bf16.vlgmr.msra.gmra.mxu0 %v12385_v55  ;;  %v5686_v12 = vmax.f32 %v5670_v56, 0.0 }
0x1332   : > { %v8449_v25 = vpop.f32.mrf.mxu0  ;;  %5845 = vmatprep.mubr.bf16.mxu0 %v13623_v13 }
0x1333   : > { %v5689_v2 = vmax.f32 %v5673_v11, 0.0  ;;  %v5671_v21 = vadd.f32 %v12365_v51, %v5647_v22  ;;  %v5652_v47 = vadd.f32 %v8449_v25, %v5636_v61 }
0x1334   : > { %v5595_v35 = vpop.f32.mrf.mxu0 }
0x1335   : > { %v12399_v48 = vpack.c.bf16 %v5689_v2, %v5688_v1  ;;  %v5687_v41 = vmax.f32 %v5671_v21, 0.0  ;;  %v5650_v53 = vadd.f32 %v5634_v32, %v5595_v35  ;;  %v5676_v50 = vadd.f32 %v12365_v51, %v5652_v47 }
0x1336   : > { %v8450_v46 = vpop.f32.mrf.mxu0 }
0x1337   : > { %13854 = vst [vmem:[#allocation92_spill] sm:$0xff] %v12399_v48  ;;  %v12403_v7 = vpack.c.bf16 %v5687_v41, %v5686_v12  ;;  %v5653_v26 = vadd.f32 %v8450_v46, %v5637_v16  ;;  %v5674_v37 = vadd.f32 %v12365_v51, %v5650_v53  ;;  %v5692_v39 = vmax.f32 %v5676_v50, 0.0 }
0x1338   : > { %v5598_v45 = vpop.f32.mrf.mxu0 }
0x1339   : > { %v5677_v3 = vadd.f32 %v12365_v51, %v5653_v26  ;;  %v5651_v23 = vadd.f32 %v5635_v44, %v5598_v45  ;;  %5846 = vmatmul.mubr.bf16.gmra.mxu0 %v12381_v20  ;;  %v5690_v56 = vmax.f32 %v5674_v37, 0.0 }
0x133a   : > { %v8453_v38 = vpop.f32.mrf.mxu0  ;;  %5855 = vmatprep.mubr.bf16.mxu0 %v13623_v13 }
0x133b   : > { %v5693_v63 = vmax.f32 %v5677_v3, 0.0  ;;  %v5675_v59 = vadd.f32 %v12365_v51, %v5651_v23  ;;  %v5656_v29 = vadd.f32 %v8453_v38, %v5640_v31 }
0x133c   : > { %v5611_v61 = vpop.f32.mrf.mxu0 }
0x133d   : > { %v12417_v11 = vpack.c.bf16 %v5693_v63, %v5692_v39  ;;  %v5691_v22 = vmax.f32 %v5675_v59, 0.0  ;;  %v5654_v32 = vadd.f32 %v5638_v34, %v5611_v61  ;;  %v5680_v2 = vadd.f32 %v12365_v51, %v5656_v29 }
0x133e   : > { %v8454_v25 = vpop.f32.mrf.mxu0 }
0x133f   : > { %13855 = vst [vmem:[#allocation93_spill] sm:$0xff] %v12417_v11  ;;  %v12421_v1 = vpack.c.bf16 %v5691_v22, %v5690_v56  ;;  %v5657_v21 = vadd.f32 %v8454_v25, %v5641_v40  ;;  %v5678_v16 = vadd.f32 %v12365_v51, %v5654_v32  ;;  %v5696_v12 = vmax.f32 %v5680_v2, 0.0 }
0x1340   : > { %v5614_v47 = vpop.f32.mrf.mxu0 }
0x1341   : > { %13856 = vst [vmem:[#allocation94_spill] sm:$0xff] %v12421_v1  ;;  %v5681_v14 = vadd.f32 %v12365_v51, %v5657_v21  ;;  %v5655_v35 = vadd.f32 %v5639_v27, %v5614_v47  ;;  %5856 = vmatmul.mubr.bf16.gmra.mxu0 %v12403_v7  ;;  %v5694_v60 = vmax.f32 %v5678_v16, 0.0 }
0x1342   : > { %5865 = vmatprep.mubr.bf16.mxu0 %v13623_v13 }
0x1343   : > { %v5697_v41 = vmax.f32 %v5681_v14, 0.0  ;;  %v5679_v53 = vadd.f32 %v12365_v51, %v5655_v35 }
0x1345   : > { %v12429_v46 = vpack.c.bf16 %v5697_v41, %v5696_v12  ;;  %v5695_v44 = vmax.f32 %v5679_v53, 0.0 }
0x1347   : > { %13857 = vst [vmem:[#allocation95_spill] sm:$0xff] %v12429_v46  ;;  %v12431_v50 = vpack.c.bf16 %v5695_v44, %v5694_v60 }
0x1349   : > { %13858 = vst [vmem:[#allocation96_spill] sm:$0xff] %v12431_v50  ;;  %5866 = vmatmul.mubr.bf16.gmra.mxu0 %v12399_v48 }
0x134a   : > { %5875 = vmatprep.mubr.bf16.mxu0 %v13623_v13 }
0x1351   : > { %5876 = vmatmul.mubr.bf16.gmra.mxu0 %v12421_v1 }
0x1352   : > { %5885 = vmatprep.mubr.bf16.mxu0 %v13623_v13 }
0x1359   : > { %5886 = vmatmul.mubr.bf16.gmra.mxu0 %v12417_v11 }
0x135a   : > { %5895 = vmatprep.mubr.bf16.mxu0 %v13623_v13 }
0x1361   : > { %5896 = vmatmul.mubr.bf16.gmra.mxu0 %v12431_v50 }
0x1362   : > { %5905 = vmatprep.mubr.bf16.mxu0 %v13623_v13 }
0x1369   : > { %5906 = vmatmul.mubr.bf16.gmra.mxu0 %v12429_v46 }
0x136a   : > { %8503 = vmatprep.mubr.bf16.mxu0 %v12232_v24 }
0x13f1   : > { %v12443_v51 = vpop.f32.mrf.mxu0 }
0x13f3   : > { %v5839_v26 = vpop.f32.mrf.mxu0 }
0x13f5   : > { %v12445_v45 = vpop.f32.mrf.mxu0 }
0x13f7   : > { %v5843_v31 = vpop.f32.mrf.mxu0 }
0x13f8   : > { %v5916_v37 = vpack.c.bf16 %v5843_v31, %v5839_v26 }
0x13f9   : > { %v12447_v3 = vpop.f32.mrf.mxu0 }
0x13fb   : > { %v5849_v23 = vpop.f32.mrf.mxu0 }
0x13fd   : > { %v12449_v34 = vpop.f32.mrf.mxu0 }
0x13ff   : > { %v5853_v38 = vpop.f32.mrf.mxu0 }
0x1400   : > { %v5917_v39 = vpack.c.bf16 %v5853_v38, %v5849_v23 }
0x1401   : > { %v12451_v63 = vpop.f32.mrf.mxu0 }
0x1403   : > { %v5859_v59 = vpop.f32.mrf.mxu0 }
0x1405   : > { %v12453_v29 = vpop.f32.mrf.mxu0 }
0x1407   : > { %v5863_v40 = vpop.f32.mrf.mxu0 }
0x1408   : > { %v5918_v48 = vpack.c.bf16 %v5863_v40, %v5859_v59  ;;  %v8872_v59 = vld [vmem:[%s13102_s7 + $0x34] ss:$8 sps:$4 sm:$0xff]   ;;  %v8870_v40 = vld [vmem:[%s13102_s7 + $0x30] ss:$8 sps:$4 sm:$0xff]  }
0x1409   : > { %v12455_v61 = vpop.f32.mrf.mxu0 }
0x140b   : > { %v5869_v56 = vpop.f32.mrf.mxu0 }
0x140d   : > { %v12457_v22 = vpop.f32.mrf.mxu0 }
0x140f   : > { %v5873_v32 = vpop.f32.mrf.mxu0 }
0x1410   : > { %v5919_v1 = vpack.c.bf16 %v5873_v32, %v5869_v56  ;;  %v8875_v56 = vld [vmem:[%s13102_s7 + $0x24] ss:$8 sps:$4 sm:$0xff]   ;;  %v8873_v32 = vld [vmem:[%s13102_s7 + $0x20] ss:$8 sps:$4 sm:$0xff]  }
0x1411   : > { %v12459_v25 = vpop.f32.mrf.mxu0 }
0x1413   : > { %v5879_v27 = vpop.f32.mrf.mxu0 }
0x1415   : > { %v12461_v2 = vpop.f32.mrf.mxu0 }
0x1417   : > { %v5883_v21 = vpop.f32.mrf.mxu0 }
0x1418   : > { %v5920_v11 = vpack.c.bf16 %v5883_v21, %v5879_v27  ;;  %v8878_v27 = vld [vmem:[%s13102_s7 + $0x14] ss:$8 sps:$4 sm:$0xff]   ;;  %v8876_v21 = vld [vmem:[%s13102_s7 + $0x10] ss:$8 sps:$4 sm:$0xff]  }
0x1419   : > { %v12463_v47 = vpop.f32.mrf.mxu0 }
0x141b   : > { %v5889_v16 = vpop.f32.mrf.mxu0 }
0x141d   : > { %v12465_v14 = vpop.f32.mrf.mxu0 }
0x141f   : > { %v5893_v35 = vpop.f32.mrf.mxu0 }
0x1420   : > { %v5921_v50 = vpack.c.bf16 %v5893_v35, %v5889_v16  ;;  %v8881_v16 = vld [vmem:[%s13102_s7 + $0x4] ss:$8 sps:$4 sm:$0xff]   ;;  %v8879_v35 = vld [vmem:[%s13102_s7] ss:$8 sps:$4 sm:$0xff]  }
0x1421   : > { %v12467_v12 = vpop.f32.mrf.mxu0 }
0x1423   : > { %v5899_v41 = vpop.f32.mrf.mxu0 }
0x1425   : > { %v12469_v53 = vpop.f32.mrf.mxu0 }
0x1427   : > { %v5903_v60 = vpop.f32.mrf.mxu0 }
0x1428   : > { %v5922_v46 = vpack.c.bf16 %v5903_v60, %v5899_v41  ;;  %v8860_v41 = vld [vmem:[%s13102_s7 + $0x74] ss:$8 sps:$4 sm:$0xff]   ;;  %v6023_v60 = vmul.f32 %v12447_v3, %v11747_v33 }
0x1429   : > { %v12471_v44 = vpop.f32.mrf.mxu0 }
0x142b   : > { %v5909_v26 = vpop.f32.mrf.mxu0 }
0x142d   : > { %v12473_v31 = vpop.f32.mrf.mxu0 }
0x142f   : > { %v5913_v23 = vpop.f32.mrf.mxu0 }
0x1430   : > { %v5923_v38 = vpack.c.bf16 %v5913_v23, %v5909_v26  ;;  %v6021_v23 = vmul.f32 %v12443_v51, %v11727_v42  ;;  %v6027_v51 = vmul.f32 %v12455_v61, %v11791_v8 }
0x1432   : > { %8455 = vmatprep.subr.bf16.mxu1 %v5923_v38 }
0x1433   : > { %8456 = vmatpush3.bf16.msra.mxu1 %v5923_v38 }
0x1434   : > { %8457 = vmatprep.subr.bf16.mxu1 %v5922_v46 }
0x1437   : > { %8458 = vmatpush3.bf16.msra.mxu1 %v5922_v46  ;;  %v8858_v46 = vld [vmem:[%s13102_s7 + $0x70] ss:$8 sps:$4 sm:$0xff]  }
0x1438   : > { %8459 = vmatprep.subr.bf16.mxu1 %v5921_v50 }
0x143b   : > { %8460 = vmatpush3.bf16.msra.mxu1 %v5921_v50  ;;  %v8864_v50 = vld [vmem:[%s13102_s7 + $0x50] ss:$8 sps:$4 sm:$0xff]  }
0x143c   : > { %8461 = vmatprep.subr.bf16.mxu1 %v5920_v11 }
0x143f   : > { %8462 = vmatpush3.bf16.msra.mxu1 %v5920_v11  ;;  %v8863_v11 = vld [vmem:[%s13102_s7 + $0x64] ss:$8 sps:$4 sm:$0xff]  }
0x1440   : > { %8463 = vmatprep.subr.bf16.mxu1 %v5919_v1 }
0x1443   : > { %8464 = vmatpush3.bf16.msra.mxu1 %v5919_v1  ;;  %v8866_v1 = vld [vmem:[%s13102_s7 + $0x54] ss:$8 sps:$4 sm:$0xff]  }
0x1444   : > { %8465 = vmatprep.subr.bf16.mxu1 %v5918_v48 }
0x1447   : > { %8466 = vmatpush3.bf16.msra.mxu1 %v5918_v48  ;;  %v8861_v48 = vld [vmem:[%s13102_s7 + $0x60] ss:$8 sps:$4 sm:$0xff]  }
0x1448   : > { %8467 = vmatprep.subr.bf16.mxu1 %v5917_v39 }
0x144b   : > { %8468 = vmatpush3.bf16.msra.mxu1 %v5917_v39  ;;  %v8867_v39 = vld [vmem:[%s13102_s7 + $0x40] ss:$8 sps:$4 sm:$0xff]  }
0x144c   : > { %8469 = vmatprep.subr.bf16.mxu1 %v5916_v37 }
0x144f   : > { %8470 = vmatpush3.bf16.msra.mxu1 %v5916_v37  ;;  %v8869_v37 = vld [vmem:[%s13102_s7 + $0x44] ss:$8 sps:$4 sm:$0xff]  }
0x1450   : > { %6197 = vmatprep.subr.bf16.mxu1 %v8860_v41  ;;  %v12538_v41 = vld [vmem:[%s13101_s6 + $0x9] ss:$0 sm:$0xff] }
0x1452   : > { %8472 = vmatmul.mubr.bf16.vlgmr.msra.gmra.mxu1 %v12279_v0 }
0x1453   : > { %8475 = vmatprep.mubr.bf16.mxu1 %v12285_v57  ;;  %6198 = vmatpush1.bf16.msra.mxu1 %v8858_v46 }
0x1454   : > { %6199 = vmatprep.subr.bf16.mxu1 %v8863_v11  ;;  %v6024_v11 = vmul.f32 %v12449_v34, %v11735_v5  ;;  %v6025_v34 = vmul.f32 %v12451_v63, %v11770_v9 }
0x1457   : > { %6200 = vmatpush1.bf16.msra.mxu1 %v8861_v48 }
0x1458   : > { %6201 = vmatprep.subr.bf16.mxu1 %v8866_v1 }
0x145a   : > { %8476 = vmatmul.mubr.bf16.gmra.mxu1 %v12303_v19 }
0x145b   : > { %8479 = vmatprep.mubr.bf16.mxu1 %v12309_v54  ;;  %6202 = vmatpush1.bf16.msra.mxu1 %v8864_v50  ;;  %v6022_v50 = vmul.f32 %v12445_v45, %v11729_v4 }
0x145c   : > { %6203 = vmatprep.subr.bf16.mxu1 %v8869_v37 }
0x145f   : > { %6204 = vmatpush1.bf16.msra.mxu1 %v8867_v39 }
0x1460   : > { %6205 = vmatprep.subr.bf16.mxu1 %v8872_v59 }
0x1462   : > { %8480 = vmatmul.mubr.bf16.gmra.mxu1 %v12324_v43 }
0x1463   : > { %8483 = vmatprep.mubr.bf16.mxu1 %v12330_v18  ;;  %6206 = vmatpush1.bf16.msra.mxu1 %v8870_v40 }
0x1464   : > { %6207 = vmatprep.subr.bf16.mxu1 %v8875_v56 }
0x1467   : > { %6208 = vmatpush1.bf16.msra.mxu1 %v8873_v32 }
0x1468   : > { %6209 = vmatprep.subr.bf16.mxu1 %v8878_v27 }
0x146a   : > { %8484 = vmatmul.mubr.bf16.gmra.mxu1 %v12336_v10 }
0x146b   : > { %6229 = vmatprep.mubr.bf16.mxu1 %v13623_v13  ;;  %6210 = vmatpush1.bf16.msra.mxu1 %v8876_v21 }
0x146c   : > { %6211 = vmatprep.subr.bf16.mxu1 %v8881_v16 }
0x146f   : > { %6212 = vmatpush1.bf16.msra.mxu1 %v8879_v35  ;;  %v6028_v35 = vmul.f32 %v12457_v22, %v11784_v52 }
0x1512   : > { %v8473_v26 = vpop.f32.mrf.mxu1 }
0x1513   : > { %v6039_v38 = vadd.f32 %v8473_v26, %v6023_v60 }
0x1514   : > { %v5958_v46 = vpop.f32.mrf.mxu1 }
0x1515   : > { %v6037_v48 = vadd.f32 %v6021_v23, %v5958_v46  ;;  %v6063_v3 = vadd.f32 %v12538_v41, %v6039_v38 }
0x1516   : > { %v8474_v1 = vpop.f32.mrf.mxu1 }
0x1517   : > { %v6040_v37 = vadd.f32 %v8474_v1, %v6024_v11  ;;  %v6061_v59 = vadd.f32 %v12538_v41, %v6037_v48  ;;  %v6079_v27 = vmax.f32 %v6063_v3, 0.0  ;;  %v6026_v11 = vmul.f32 %v12453_v29, %v11763_v15 }
0x1518   : > { %v5961_v39 = vpop.f32.mrf.mxu1  ;;  %v6031_v3 = vmul.f32 %v12463_v47, %v11833_v36  ;;  %v6032_v47 = vmul.f32 %v12465_v14, %v11826_v62 }
0x1519   : > { %v6064_v40 = vadd.f32 %v12538_v41, %v6040_v37  ;;  %v6038_v56 = vadd.f32 %v6022_v50, %v5961_v39  ;;  %v6077_v26 = vmax.f32 %v6061_v59, 0.0 }
0x151a   : > { %v8477_v32 = vpop.f32.mrf.mxu1 }
0x151b   : > { %v6080_v21 = vmax.f32 %v6064_v40, 0.0  ;;  %v6062_v45 = vadd.f32 %v12538_v41, %v6038_v56  ;;  %v6043_v16 = vadd.f32 %v8477_v32, %v6027_v51  ;;  %v6029_v51 = vmul.f32 %v12459_v25, %v11812_v28 }
0x151c   : > { %v5974_v60 = vpop.f32.mrf.mxu1  ;;  %v6030_v25 = vmul.f32 %v12461_v2, %v11805_v30 }
0x151d   : > { %v6110_v61 = vpack.c.bf16 %v6080_v21, %v6079_v27  ;;  %v6078_v23 = vmax.f32 %v6062_v45, 0.0  ;;  %v6041_v38 = vadd.f32 %v6025_v34, %v5974_v60  ;;  %v6067_v63 = vadd.f32 %v12538_v41, %v6043_v16 }
0x151e   : > { %v8478_v46 = vpop.f32.mrf.mxu1 }
0x151f   : > { %v6109_v48 = vpack.c.bf16 %v6078_v23, %v6077_v26  ;;  %v6044_v1 = vadd.f32 %v8478_v46, %v6028_v35  ;;  %v6065_v37 = vadd.f32 %v12538_v41, %v6041_v38  ;;  %v6083_v29 = vmax.f32 %v6067_v63, 0.0 }
0x1520   : > { %v5977_v50 = vpop.f32.mrf.mxu1  ;;  %v6035_v46 = vmul.f32 %v12471_v44, %v11875_v49  ;;  %v6033_v63 = vmul.f32 %v12467_v12, %v11854_v17  ;;  %v6036_v44 = vmul.f32 %v12473_v31, %v11868_v58  ;;  %v6034_v12 = vmul.f32 %v12469_v53, %v11847_v6 }
0x1521   : > { %v6068_v22 = vadd.f32 %v12538_v41, %v6044_v1  ;;  %v6042_v39 = vadd.f32 %v6026_v11, %v5977_v50  ;;  %6230 = vmatmul.mubr.bf16.vlgmr.msra.gmra.mxu1 %v6109_v48  ;;  %v6081_v27 = vmax.f32 %v6065_v37, 0.0 }
0x1522   : > { %v8481_v59 = vpop.f32.mrf.mxu1  ;;  %6239 = vmatprep.mubr.bf16.mxu1 %v13623_v13 }
0x1523   : > { %v6084_v40 = vmax.f32 %v6068_v22, 0.0  ;;  %v6066_v56 = vadd.f32 %v12538_v41, %v6042_v39  ;;  %v6047_v34 = vadd.f32 %v8481_v59, %v6031_v3 }
0x1524   : > { %v5990_v32 = vpop.f32.mrf.mxu1 }
0x1525   : > { %v6112_v21 = vpack.c.bf16 %v6084_v40, %v6083_v29  ;;  %v6082_v45 = vmax.f32 %v6066_v56, 0.0  ;;  %v6045_v16 = vadd.f32 %v6029_v51, %v5990_v32  ;;  %v6071_v26 = vadd.f32 %v12538_v41, %v6047_v34 }
0x1526   : > { %v8482_v35 = vpop.f32.mrf.mxu1 }
0x1527   : > { %v6111_v60 = vpack.c.bf16 %v6082_v45, %v6081_v27  ;;  %v6048_v23 = vadd.f32 %v8482_v35, %v6032_v47  ;;  %v6069_v11 = vadd.f32 %v12538_v41, %v6045_v16  ;;  %v6087_v2 = vmax.f32 %v6071_v26, 0.0 }
0x1528   : > { %v5993_v38 = vpop.f32.mrf.mxu1 }
0x1529   : > { %v6072_v14 = vadd.f32 %v12538_v41, %v6048_v23  ;;  %v6046_v48 = vadd.f32 %v6030_v25, %v5993_v38  ;;  %6240 = vmatmul.mubr.bf16.gmra.mxu1 %v6110_v61  ;;  %v6085_v39 = vmax.f32 %v6069_v11, 0.0 }
0x152a   : > { %v8485_v1 = vpop.f32.mrf.mxu1  ;;  %6249 = vmatprep.mubr.bf16.mxu1 %v13623_v13 }
0x152b   : > { %v6088_v50 = vmax.f32 %v6072_v14, 0.0  ;;  %v6070_v3 = vadd.f32 %v12538_v41, %v6046_v48  ;;  %v6051_v37 = vadd.f32 %v8485_v1, %v6035_v46 }
0x152c   : > { %v6006_v22 = vpop.f32.mrf.mxu1 }
0x152d   : > { %v6114_v51 = vpack.c.bf16 %v6088_v50, %v6087_v2  ;;  %v6086_v59 = vmax.f32 %v6070_v3, 0.0  ;;  %v6049_v29 = vadd.f32 %v6033_v63, %v6006_v22  ;;  %v6075_v56 = vadd.f32 %v12538_v41, %v6051_v37 }
0x152e   : > { %v8486_v61 = vpop.f32.mrf.mxu1 }
0x152f   : > { %v6113_v40 = vpack.c.bf16 %v6086_v59, %v6085_v39  ;;  %v6052_v34 = vadd.f32 %v8486_v61, %v6036_v44  ;;  %v6073_v32 = vadd.f32 %v12538_v41, %v6049_v29  ;;  %v6091_v31 = vmax.f32 %v6075_v56, 0.0 }
0x1530   : > { %v6009_v47 = vpop.f32.mrf.mxu1 }
0x1531   : > { %v6076_v27 = vadd.f32 %v12538_v41, %v6052_v34  ;;  %v6050_v45 = vadd.f32 %v6034_v12, %v6009_v47  ;;  %6250 = vmatmul.mubr.bf16.gmra.mxu1 %v6111_v60  ;;  %v6089_v25 = vmax.f32 %v6073_v32, 0.0 }
0x1532   : > { %6259 = vmatprep.mubr.bf16.mxu1 %v13623_v13 }
0x1533   : > { %v6092_v16 = vmax.f32 %v6076_v27, 0.0  ;;  %v6074_v35 = vadd.f32 %v12538_v41, %v6050_v45 }
0x1535   : > { %v6116_v26 = vpack.c.bf16 %v6092_v16, %v6091_v31  ;;  %v6090_v53 = vmax.f32 %v6074_v35, 0.0 }
0x1537   : > { %v6115_v23 = vpack.c.bf16 %v6090_v53, %v6089_v25 }
0x1539   : > { %6260 = vmatmul.mubr.bf16.gmra.mxu1 %v6112_v21 }
0x153a   : > { %6269 = vmatprep.mubr.bf16.mxu1 %v13623_v13 }
0x1541   : > { %6270 = vmatmul.mubr.bf16.gmra.mxu1 %v6113_v40 }
0x1542   : > { %6279 = vmatprep.mubr.bf16.mxu1 %v13623_v13 }
0x1549   : > { %6280 = vmatmul.mubr.bf16.gmra.mxu1 %v6114_v51 }
0x154a   : > { %6289 = vmatprep.mubr.bf16.mxu1 %v13623_v13 }
0x1551   : > { %6290 = vmatmul.mubr.bf16.gmra.mxu1 %v6115_v23 }
0x1552   : > { %6299 = vmatprep.mubr.bf16.mxu1 %v13623_v13 }
0x1559   : > { %6300 = vmatmul.mubr.bf16.gmra.mxu1 %v6116_v26 }
0x155a   : > { %8535 = vmatprep.mubr.bf16.mxu1 %v12232_v24 }
0x15e1   : > { %v12592_v41 = vpop.f32.mrf.mxu1 }
0x15e3   : > { %v6233_v60 = vpop.f32.mrf.mxu1 }
0x15e5   : > { %v12594_v38 = vpop.f32.mrf.mxu1 }
0x15e7   : > { %v6237_v21 = vpop.f32.mrf.mxu1 }
0x15e8   : > { %v6310_v46 = vpack.c.bf16 %v6237_v21, %v6233_v60 }
0x15e9   : > { %v12596_v11 = vpop.f32.mrf.mxu1 }
0x15eb   : > { %v6243_v14 = vpop.f32.mrf.mxu1 }
0x15ed   : > { %v12598_v48 = vpop.f32.mrf.mxu1 }
0x15ef   : > { %v6247_v63 = vpop.f32.mrf.mxu1 }
0x15f0   : > { %v6311_v1 = vpack.c.bf16 %v6247_v63, %v6243_v14  ;;  %v8884_v63 = vld [vmem:[%s13103_s8 + $0x74] ss:$8 sps:$4 sm:$0xff]  }
0x15f1   : > { %v12600_v2 = vpop.f32.mrf.mxu1 }
0x15f3   : > { %v6253_v50 = vpop.f32.mrf.mxu1 }
0x15f5   : > { %v12602_v3 = vpop.f32.mrf.mxu1 }
0x15f7   : > { %v6257_v24 = vpop.f32.mrf.mxu1 }
0x15f8   : > { %v6312_v14 = vpack.c.bf16 %v6257_v24, %v6253_v50  ;;  %v8887_v50 = vld [vmem:[%s13103_s8 + $0x64] ss:$8 sps:$4 sm:$0xff]   ;;  %v8888_v24 = vld [vmem:[%s13103_s8 + $0x50] ss:$8 sps:$4 sm:$0xff]  }
0x15f9   : > { %v12604_v37 = vpop.f32.mrf.mxu1 }
0x15fb   : > { %v6263_v44 = vpop.f32.mrf.mxu1 }
0x15fd   : > { %v12606_v22 = vpop.f32.mrf.mxu1 }
0x15ff   : > { %v6267_v39 = vpop.f32.mrf.mxu1 }
0x1600   : > { %v6313_v21 = vpack.c.bf16 %v6267_v39, %v6263_v44  ;;  %v8896_v44 = vld [vmem:[%s13103_s8 + $0x34] ss:$8 sps:$4 sm:$0xff]   ;;  %v8894_v39 = vld [vmem:[%s13103_s8 + $0x30] ss:$8 sps:$4 sm:$0xff]  }
0x1601   : > { %v12608_v51 = vpop.f32.mrf.mxu1 }
0x1603   : > { %v6273_v59 = vpop.f32.mrf.mxu1 }
0x1605   : > { %v12610_v29 = vpop.f32.mrf.mxu1 }
0x1607   : > { %v6277_v61 = vpop.f32.mrf.mxu1 }
0x1608   : > { %v6314_v60 = vpack.c.bf16 %v6277_v61, %v6273_v59  ;;  %v8882_v59 = vld [vmem:[%s13103_s8 + $0x70] ss:$8 sps:$4 sm:$0xff]   ;;  %v8902_v61 = vld [vmem:[%s13103_s8 + $0x14] ss:$8 sps:$4 sm:$0xff]  }
0x1609   : > { %v12612_v12 = vpop.f32.mrf.mxu1 }
0x160b   : > { %v6283_v40 = vpop.f32.mrf.mxu1 }
0x160d   : > { %v12614_v56 = vpop.f32.mrf.mxu1 }
0x160f   : > { %v6287_v34 = vpop.f32.mrf.mxu1 }
0x1610   : > { %v6315_v23 = vpack.c.bf16 %v6287_v34, %v6283_v40  ;;  %v8900_v40 = vld [vmem:[%s13103_s8 + $0x10] ss:$8 sps:$4 sm:$0xff]   ;;  %v13860_v34 = vld [vmem:[#allocation94_spill] sm:$0xff] }
0x1611   : > { %v12616_v47 = vpop.f32.mrf.mxu1 }
0x1613   : > { %v6293_v32 = vpop.f32.mrf.mxu1 }
0x1615   : > { %v12618_v27 = vpop.f32.mrf.mxu1 }
0x1617   : > { %v6297_v45 = vpop.f32.mrf.mxu1 }
0x1618   : > { %v6316_v53 = vpack.c.bf16 %v6297_v45, %v6293_v32  ;;  %v13861_v32 = vld [vmem:[#allocation93_spill] sm:$0xff] }
0x1619   : > { %v12620_v31 = vpop.f32.mrf.mxu1 }
0x161b   : > { %v6303_v16 = vpop.f32.mrf.mxu1 }
0x161d   : > { %v12622_v35 = vpop.f32.mrf.mxu1 }
0x161f   : > { %v6307_v25 = vpop.f32.mrf.mxu1 }
0x1620   : > { %v6317_v26 = vpack.c.bf16 %v6307_v25, %v6303_v16  ;;  %v6415_v16 = vmul.f32 %v12592_v41, %v11727_v42 }
0x1622   : > { %8487 = vmatprep.subr.bf16.mxu0 %v6317_v26 }
0x1623   : > { %8488 = vmatpush3.bf16.msra.mxu0 %v6317_v26 }
0x1624   : > { %8489 = vmatprep.subr.bf16.mxu0 %v6316_v53 }
0x1627   : > { %8490 = vmatpush3.bf16.msra.mxu0 %v6316_v53  ;;  %v6418_v53 = vmul.f32 %v12598_v48, %v11735_v5 }
0x1628   : > { %8491 = vmatprep.subr.bf16.mxu0 %v6315_v23 }
0x162b   : > { %8492 = vmatpush3.bf16.msra.mxu0 %v6315_v23 }
0x162c   : > { %8493 = vmatprep.subr.bf16.mxu0 %v6314_v60 }
0x162f   : > { %8494 = vmatpush3.bf16.msra.mxu0 %v6314_v60 }
0x1630   : > { %8495 = vmatprep.subr.bf16.mxu0 %v6313_v21 }
0x1633   : > { %8496 = vmatpush3.bf16.msra.mxu0 %v6313_v21 }
0x1634   : > { %8497 = vmatprep.subr.bf16.mxu0 %v6312_v14 }
0x1637   : > { %8498 = vmatpush3.bf16.msra.mxu0 %v6312_v14 }
0x1638   : > { %8499 = vmatprep.subr.bf16.mxu0 %v6311_v1 }
0x163b   : > { %8500 = vmatpush3.bf16.msra.mxu0 %v6311_v1  ;;  %v8885_v1 = vld [vmem:[%s13103_s8 + $0x60] ss:$8 sps:$4 sm:$0xff]  }
0x163c   : > { %8501 = vmatprep.subr.bf16.mxu0 %v6310_v46 }
0x163f   : > { %8502 = vmatpush3.bf16.msra.mxu0 %v6310_v46  ;;  %v8890_v46 = vld [vmem:[%s13103_s8 + $0x54] ss:$8 sps:$4 sm:$0xff]  }
0x1640   : > { %6639 = vmatprep.subr.bf16.mxu0 %v8884_v63 }
0x1642   : > { %8504 = vmatmul.mubr.bf16.vlgmr.msra.gmra.mxu0 %v12279_v0  ;;  %v8893_v0 = vld [vmem:[%s13103_s8 + $0x44] ss:$8 sps:$4 sm:$0xff]  }
0x1643   : > { %6640 = vmatpush1.bf16.msra.mxu0 %v8882_v59  ;;  %8507 = vmatprep.mubr.bf16.mxu0 %v12285_v57  ;;  %v8891_v57 = vld [vmem:[%s13103_s8 + $0x40] ss:$8 sps:$4 sm:$0xff]   ;;  %v6419_v59 = vmul.f32 %v12600_v2, %v11770_v9 }
0x1644   : > { %6641 = vmatprep.subr.bf16.mxu0 %v8887_v50 }
0x1647   : > { %6642 = vmatpush1.bf16.msra.mxu0 %v8885_v1  ;;  %v6422_v1 = vmul.f32 %v12606_v22, %v11784_v52 }
0x1648   : > { %6643 = vmatprep.subr.bf16.mxu0 %v8890_v46 }
0x164a   : > { %8508 = vmatmul.mubr.bf16.gmra.mxu0 %v12303_v19  ;;  %v8899_v19 = vld [vmem:[%s13103_s8 + $0x24] ss:$8 sps:$4 sm:$0xff]  }
0x164b   : > { %6644 = vmatpush1.bf16.msra.mxu0 %v8888_v24  ;;  %8511 = vmatprep.mubr.bf16.mxu0 %v12309_v54  ;;  %v8897_v54 = vld [vmem:[%s13103_s8 + $0x20] ss:$8 sps:$4 sm:$0xff]   ;;  %v6420_v24 = vmul.f32 %v12602_v3, %v11763_v15 }
0x164c   : > { %6645 = vmatprep.subr.bf16.mxu0 %v8893_v0 }
0x164f   : > { %6646 = vmatpush1.bf16.msra.mxu0 %v8891_v57  ;;  %v6425_v57 = vmul.f32 %v12612_v12, %v11833_v36 }
0x1650   : > { %6647 = vmatprep.subr.bf16.mxu0 %v8896_v44 }
0x1652   : > { %8512 = vmatmul.mubr.bf16.gmra.mxu0 %v12324_v43  ;;  %v8905_v43 = vld [vmem:[%s13103_s8 + $0x4] ss:$8 sps:$4 sm:$0xff]  }
0x1653   : > { %6648 = vmatpush1.bf16.msra.mxu0 %v8894_v39  ;;  %8515 = vmatprep.mubr.bf16.mxu0 %v12330_v18  ;;  %v8903_v18 = vld [vmem:[%s13103_s8] ss:$8 sps:$4 sm:$0xff]   ;;  %v6423_v39 = vmul.f32 %v12608_v51, %v11812_v28 }
0x1654   : > { %6649 = vmatprep.subr.bf16.mxu0 %v8899_v19 }
0x1657   : > { %6650 = vmatpush1.bf16.msra.mxu0 %v8897_v54  ;;  %v6426_v54 = vmul.f32 %v12614_v56, %v11826_v62 }
0x1658   : > { %6651 = vmatprep.subr.bf16.mxu0 %v8902_v61 }
0x165a   : > { %8516 = vmatmul.mubr.bf16.gmra.mxu0 %v12336_v10  ;;  %v13859_v10 = vld [vmem:[#allocation92_spill] sm:$0xff] }
0x165b   : > { %6652 = vmatpush1.bf16.msra.mxu0 %v8900_v40  ;;  %6671 = vmatprep.mubr.bf16.mxu0 %v13623_v13  ;;  %v6424_v40 = vmul.f32 %v12610_v29, %v11805_v30 }
0x165c   : > { %6653 = vmatprep.subr.bf16.mxu0 %v8905_v43 }
0x165f   : > { %6654 = vmatpush1.bf16.msra.mxu0 %v8903_v18  ;;  %v6429_v18 = vmul.f32 %v12620_v31, %v11875_v49 }
0x1662   : > { %6672 = vmatmul.mubr.bf16.vlgmr.msra.gmra.mxu0 %v12385_v55  ;;  %v13862_v55 = vld [vmem:[#allocation96_spill] sm:$0xff] }
0x1663   : > { %6681 = vmatprep.mubr.bf16.mxu0 %v13623_v13 }
0x166a   : > { %6682 = vmatmul.mubr.bf16.gmra.mxu0 %v12381_v20  ;;  %v13863_v20 = vld [vmem:[#allocation95_spill] sm:$0xff] }
0x166b   : > { %6691 = vmatprep.mubr.bf16.mxu0 %v13623_v13 }
0x1672   : > { %6692 = vmatmul.mubr.bf16.gmra.mxu0 %v12403_v7  ;;  %v6417_v7 = vmul.f32 %v12596_v11, %v11747_v33  ;;  %v6421_v11 = vmul.f32 %v12604_v37, %v11791_v8 }
0x1673   : > { %6701 = vmatprep.mubr.bf16.mxu0 %v13623_v13 }
0x167a   : > { %6702 = vmatmul.mubr.bf16.gmra.mxu0 %v13859_v10 }
0x167b   : > { %6711 = vmatprep.mubr.bf16.mxu0 %v13623_v13 }
0x1682   : > { %6712 = vmatmul.mubr.bf16.gmra.mxu0 %v13860_v34  ;;  %v6427_v34 = vmul.f32 %v12616_v47, %v11854_v17 }
0x1683   : > { %6721 = vmatprep.mubr.bf16.mxu0 %v13623_v13 }
0x168a   : > { %6722 = vmatmul.mubr.bf16.gmra.mxu0 %v13861_v32 }
0x168b   : > { %6731 = vmatprep.mubr.bf16.mxu0 %v13623_v13 }
0x1692   : > { %6732 = vmatmul.mubr.bf16.gmra.mxu0 %v13862_v55  ;;  %v6430_v55 = vmul.f32 %v12622_v35, %v11868_v58 }
0x1693   : > { %6741 = vmatprep.mubr.bf16.mxu0 %v13623_v13  ;;  %v6416_v13 = vmul.f32 %v12594_v38, %v11729_v4 }
0x169a   : > { %6742 = vmatmul.mubr.bf16.gmra.mxu0 %v13863_v20 }
0x1702   : > { %v8505_v45 = vpop.f32.mrf.mxu0 }
0x1703   : > { %v12699_v25 = vadd.f32 %v8505_v45, %v6417_v7  ;;  %v6428_v7 = vmul.f32 %v12618_v27, %v11847_v6 }
0x1704   : > { %v6352_v26 = vpop.f32.mrf.mxu0 }
0x1705   : > { %v12703_v23 = vadd.f32 %v6415_v16, %v6352_v26 }
0x1706   : > { %v8506_v60 = vpop.f32.mrf.mxu0 }
0x1707   : > { %v12707_v21 = vadd.f32 %v8506_v60, %v6418_v53 }
0x1708   : > { %v6355_v14 = vpop.f32.mrf.mxu0 }
0x1709   : > { %v12711_v63 = vadd.f32 %v6416_v13, %v6355_v14 }
0x170a   : > { %v8509_v41 = vpop.f32.mrf.mxu0 }
0x170b   : > { %v12715_v50 = vadd.f32 %v8509_v41, %v6421_v11 }
0x170c   : > { %v6368_v48 = vpop.f32.mrf.mxu0 }
0x170d   : > { %v12719_v46 = vadd.f32 %v6419_v59, %v6368_v48 }
0x170e   : > { %v8510_v38 = vpop.f32.mrf.mxu0 }
0x170f   : > { %v12723_v0 = vadd.f32 %v8510_v38, %v6422_v1 }
0x1710   : > { %v6371_v37 = vpop.f32.mrf.mxu0 }
0x1711   : > { %v12727_v44 = vadd.f32 %v6420_v24, %v6371_v37 }
0x1712   : > { %v8513_v2 = vpop.f32.mrf.mxu0 }
0x1713   : > { %v12731_v19 = vadd.f32 %v8513_v2, %v6425_v57 }
0x1714   : > { %v6384_v22 = vpop.f32.mrf.mxu0 }
0x1715   : > { %v12735_v61 = vadd.f32 %v6423_v39, %v6384_v22 }
0x1716   : > { %v8514_v3 = vpop.f32.mrf.mxu0 }
0x1717   : > { %v12739_v43 = vadd.f32 %v8514_v3, %v6426_v54 }
0x1718   : > { %v6387_v12 = vpop.f32.mrf.mxu0 }
0x1719   : > { %v12743_v10 = vadd.f32 %v6424_v40, %v6387_v12 }
0x171a   : > { %v8517_v51 = vpop.f32.mrf.mxu0 }
0x171b   : > { %v12747_v32 = vadd.f32 %v8517_v51, %v6429_v18 }
0x171c   : > { %v6400_v56 = vpop.f32.mrf.mxu0 }
0x171d   : > { %13864 = vst [vmem:[#allocation97_spill] sm:$0xff] %v12747_v32  ;;  %v12751_v20 = vadd.f32 %v6427_v34, %v6400_v56 }
0x171e   : > { %v8518_v29 = vpop.f32.mrf.mxu0 }
0x171f   : > { %13865 = vst [vmem:[#allocation98_spill] sm:$0xff] %v12751_v20  ;;  %v12755_v45 = vadd.f32 %v8518_v29, %v6430_v55 }
0x1720   : > { %v6403_v31 = vpop.f32.mrf.mxu0 }
0x1721   : > { %13866 = vst [vmem:[#allocation99_spill] sm:$0xff] %v12755_v45  ;;  %v12757_v16 = vadd.f32 %v6428_v7, %v6403_v31 }
0x1722   : > { %v12759_v26 = vpop.f32.mrf.mxu0 }
0x1723   : > { %13867 = vst [vmem:[#allocation100_spill] sm:$0xff] %v12757_v16 }
0x1724   : > { %v6675_v47 = vpop.f32.mrf.mxu0 }
0x1726   : > { %v12761_v53 = vpop.f32.mrf.mxu0 }
0x1728   : > { %v6679_v60 = vpop.f32.mrf.mxu0 }
0x1729   : > { %v6752_v13 = vpack.c.bf16 %v6679_v60, %v6675_v47 }
0x172a   : > { %v12763_v14 = vpop.f32.mrf.mxu0 }
0x172c   : > { %v6685_v35 = vpop.f32.mrf.mxu0 }
0x172e   : > { %v12765_v11 = vpop.f32.mrf.mxu0 }
0x1730   : > { %v6689_v41 = vpop.f32.mrf.mxu0 }
0x1731   : > { %v6753_v59 = vpack.c.bf16 %v6689_v41, %v6685_v35 }
0x1732   : > { %v12767_v27 = vpop.f32.mrf.mxu0 }
0x1734   : > { %v6695_v48 = vpop.f32.mrf.mxu0 }
0x1736   : > { %v12769_v1 = vpop.f32.mrf.mxu0 }
0x1738   : > { %v6699_v38 = vpop.f32.mrf.mxu0 }
0x1739   : > { %v6754_v20 = vpack.c.bf16 %v6699_v38, %v6695_v48  ;;  %v6859_v48 = vmul.f32 %v12763_v14, %v11747_v33  ;;  %v6861_v14 = vmul.f32 %v12767_v27, %v11770_v9  ;;  %v6862_v9 = vmul.f32 %v12769_v1, %v11763_v15 }
0x173a   : > { %v12771_v24 = vpop.f32.mrf.mxu0 }
0x173c   : > { %v6705_v37 = vpop.f32.mrf.mxu0 }
0x173e   : > { %v12773_v57 = vpop.f32.mrf.mxu0 }
0x1740   : > { %v6709_v2 = vpop.f32.mrf.mxu0 }
0x1741   : > { %v6755_v16 = vpack.c.bf16 %v6709_v2, %v6705_v37  ;;  %v6857_v37 = vmul.f32 %v12759_v26, %v11727_v42  ;;  %v6863_v42 = vmul.f32 %v12771_v24, %v11791_v8 }
0x1742   : > { %v12775_v39 = vpop.f32.mrf.mxu0 }
0x1743   : > { %v6865_v8 = vmul.f32 %v12775_v39, %v11812_v28 }
0x1744   : > { %v6715_v22 = vpop.f32.mrf.mxu0 }
0x1746   : > { %v12777_v54 = vpop.f32.mrf.mxu0 }
0x1748   : > { %v6719_v3 = vpop.f32.mrf.mxu0 }
0x1749   : > { %v6756_v32 = vpack.c.bf16 %v6719_v3, %v6715_v22 }
0x174a   : > { %v12779_v40 = vpop.f32.mrf.mxu0 }
0x174c   : > { %v6725_v12 = vpop.f32.mrf.mxu0 }
0x174e   : > { %v12781_v18 = vpop.f32.mrf.mxu0 }
0x174f   : > { %v6868_v28 = vmul.f32 %v12781_v18, %v11826_v62 }
0x1750   : > { %v6729_v51 = vpop.f32.mrf.mxu0 }
0x1751   : > { %v6757_v45 = vpack.c.bf16 %v6729_v51, %v6725_v12  ;;  %v9090_v12 = vld [vmem:[%s13099_s4 + $0x8] sm:$0xff]  }
0x1752   : > { %v12783_v34 = vpop.f32.mrf.mxu0 }
0x1754   : > { %v6735_v56 = vpop.f32.mrf.mxu0 }
0x1756   : > { %v12785_v55 = vpop.f32.mrf.mxu0 }
0x1758   : > { %v6739_v29 = vpop.f32.mrf.mxu0 }
0x1759   : > { %v6758_v41 = vpack.c.bf16 %v6739_v29, %v6735_v56  ;;  %v6858_v56 = vmul.f32 %v12761_v53, %v11729_v4  ;;  %v6860_v29 = vmul.f32 %v12765_v11, %v11735_v5  ;;  %v6864_v5 = vmul.f32 %v12773_v57, %v11784_v52 }
0x175a   : > { %v12787_v7 = vpop.f32.mrf.mxu0  ;;  %v6867_v52 = vmul.f32 %v12779_v40, %v11833_v36 }
0x175b   : > { %v6871_v62 = vmul.f32 %v12787_v7, %v11875_v49  ;;  %v6449_v49 = vmul.f32 %v12699_v25, %v12699_v25  ;;  %v6454_v7 = vmul.f32 %v12723_v0, %v12723_v0 }
0x175c   : > { %v6745_v31 = vpop.f32.mrf.mxu0 }
0x175e   : > { %v12789_v47 = vpop.f32.mrf.mxu0 }
0x175f   : > { %v6872_v36 = vmul.f32 %v12789_v47, %v11868_v58  ;;  %v6447_v58 = vmul.f32 %v12703_v23, %v12703_v23  ;;  %v6453_v47 = vmul.f32 %v12715_v50, %v12715_v50 }
0x1760   : > { %v6749_v60 = vpop.f32.mrf.mxu0 }
0x1761   : > { %v6759_v35 = vpack.c.bf16 %v6749_v60, %v6745_v31 }
0x1763   : > { %8519 = vmatprep.subr.bf16.mxu1 %v6759_v35 }
0x1764   : > { %8520 = vmatpush3.bf16.msra.mxu1 %v6759_v35 }
0x1765   : > { %8521 = vmatprep.subr.bf16.mxu1 %v6758_v41 }
0x1768   : > { %8522 = vmatpush3.bf16.msra.mxu1 %v6758_v41 }
0x1769   : > { %8523 = vmatprep.subr.bf16.mxu1 %v6757_v45 }
0x176c   : > { %8524 = vmatpush3.bf16.msra.mxu1 %v6757_v45  ;;  %v9091_v45 = vld [vmem:[%s13099_s4 + $0x10] sm:$0xff]  }
0x176d   : > { %8525 = vmatprep.subr.bf16.mxu1 %v6756_v32 }
0x1770   : > { %8526 = vmatpush3.bf16.msra.mxu1 %v6756_v32  ;;  %v9092_v32 = vld [vmem:[%s13099_s4 + $0x18] sm:$0xff]  }
0x1771   : > { %8527 = vmatprep.subr.bf16.mxu1 %v6755_v16 }
0x1774   : > { %8528 = vmatpush3.bf16.msra.mxu1 %v6755_v16  ;;  %v9094_v16 = vld [vmem:[%s13099_s4 + $0x28] sm:$0xff]  }
0x1775   : > { %8529 = vmatprep.subr.bf16.mxu1 %v6754_v20 }
0x1778   : > { %8530 = vmatpush3.bf16.msra.mxu1 %v6754_v20  ;;  %v9093_v20 = vld [vmem:[%s13099_s4 + $0x20] sm:$0xff]  }
0x1779   : > { %8531 = vmatprep.subr.bf16.mxu1 %v6753_v59 }
0x177c   : > { %8532 = vmatpush3.bf16.msra.mxu1 %v6753_v59  ;;  %v9096_v59 = vld [vmem:[%s13099_s4 + $0x38] sm:$0xff]  }
0x177d   : > { %8533 = vmatprep.subr.bf16.mxu1 %v6752_v13 }
0x1780   : > { %8534 = vmatpush3.bf16.msra.mxu1 %v6752_v13  ;;  %v9095_v13 = vld [vmem:[%s13099_s4 + $0x30] sm:$0xff]  }
0x1783   : > { %8536 = vmatmul.mubr.bf16.vlgmr.msra.gmra.mxu1 %v9090_v12 }
0x1784   : > { %8539 = vmatprep.mubr.bf16.mxu1 %v9091_v45 }
0x178b   : > { %8540 = vmatmul.mubr.bf16.gmra.mxu1 %v9092_v32 }
0x178c   : > { %8543 = vmatprep.mubr.bf16.mxu1 %v9093_v20 }
0x1793   : > { %8544 = vmatmul.mubr.bf16.gmra.mxu1 %v9094_v16  ;;  %v6866_v16 = vmul.f32 %v12777_v54, %v11805_v30  ;;  %v6870_v30 = vmul.f32 %v12785_v55, %v11847_v6  ;;  %v6448_v6 = vmul.f32 %v12711_v63, %v12711_v63  ;;  %v6451_v55 = vmul.f32 %v12719_v46, %v12719_v46 }
0x1794   : > { %8547 = vmatprep.mubr.bf16.mxu1 %v9095_v13 }
0x179b   : > { %8548 = vmatmul.mubr.bf16.gmra.mxu1 %v9096_v59 }
0x1843   : > { %v8537_v38 = vpop.f32.mrf.mxu1 }
0x1844   : > { %v6875_v2 = vadd.f32 %v8537_v38, %v6859_v48 }
0x1845   : > { %v6794_v22 = vpop.f32.mrf.mxu1 }
0x1846   : > { %v6873_v3 = vadd.f32 %v6857_v37, %v6794_v22  ;;  %6893 = vadd.xlane.f32.xlu0 %v6875_v2  ;;  %v6869_v37 = vmul.f32 %v12783_v34, %v11854_v17  ;;  %v6450_v17 = vmul.f32 %v12707_v21, %v12707_v21  ;;  %v6452_v34 = vmul.f32 %v12727_v44, %v12727_v44 }
0x1847   : > { %v8538_v51 = vpop.f32.mrf.mxu1  ;;  %v6456_v22 = vmul.f32 %v12743_v10, %v12743_v10 }
0x1848   : > { %6889 = vadd.xlane.f32.xlu1 %v6873_v3  ;;  %v6876_v60 = vadd.f32 %v8538_v51, %v6860_v29  ;;  %v6455_v3 = vmul.f32 %v12735_v61, %v12735_v61  ;;  %v6458_v51 = vmul.f32 %v12739_v43, %v12739_v43  ;;  %v13868_v29 = vld [vmem:[#allocation98_spill] sm:$0xff] }
0x1849   : > { %v6797_v31 = vpop.f32.mrf.mxu1 }
0x184a   : > { %v6874_v35 = vadd.f32 %v6858_v56, %v6797_v31  ;;  %v6457_v56 = vmul.f32 %v12731_v19, %v12731_v19  ;;  %v6459_v31 = vmul.f32 %v13868_v29, %v13868_v29 }
0x184b   : > { %v8541_v33 = vpop.f32.mrf.mxu1 }
0x184c   : > { %6895 = vadd.xlane.f32.xlu1 %v6876_v60  ;;  %6891 = vadd.xlane.f32.xlu0 %v6874_v35  ;;  %v6879_v41 = vadd.f32 %v8541_v33, %v6863_v42  ;;  %v13869_v60 = vld [vmem:[#allocation100_spill] sm:$0xff]  ;;  %v13870_v33 = vld [vmem:[#allocation97_spill] sm:$0xff]  ;;  %v13871_v42 = vld [vmem:[#allocation99_spill] sm:$0xff] }
0x184d   : > { %v6810_v26 = vpop.f32.mrf.mxu1  ;;  %v6460_v35 = vmul.f32 %v13869_v60, %v13869_v60 }
0x184e   : > { %v6877_v12 = vadd.f32 %v6861_v14, %v6810_v26  ;;  %v6461_v14 = vmul.f32 %v13870_v33, %v13870_v33  ;;  %v6462_v26 = vmul.f32 %v13871_v42, %v13871_v42 }
0x184f   : > { %v8542_v4 = vpop.f32.mrf.mxu1 }
0x1850   : > { %6901 = vadd.xlane.f32.xlu0 %v6879_v41  ;;  %6897 = vadd.xlane.f32.xlu1 %v6877_v12  ;;  %v6880_v11 = vadd.f32 %v8542_v4, %v6864_v5  ;;  %v6921_v41 = vlaneseq }
0x1851   : > { %v6813_v53 = vpop.f32.mrf.mxu1 }
0x1852   : > { %v6878_v24 = vadd.f32 %v6862_v9, %v6813_v53  ;;  %v6922_v12 = vshrl.u32 %v6921_v41, 7 }
0x1853   : > { %v8545_v45 = vpop.f32.mrf.mxu1 }
0x1854   : > { %6903 = vadd.xlane.f32.xlu0 %v6880_v11  ;;  %v6883_v13 = vadd.f32 %v8545_v45, %v6867_v52  ;;  %v12877_v4 = vadd.s32 8, %v6922_v12 }
0x1855   : > { %v6826_v27 = vpop.f32.mrf.mxu1 }
0x1856   : > { %v6881_v32 = vadd.f32 %v6865_v8, %v6826_v27  ;;  %vm6925_vm0 = vcmp.lt.s32.totalorder %v12877_v4, 15 }
0x1857   : > { %v8546_v20 = vpop.f32.mrf.mxu1 }
0x1858   : > { %6899 = vadd.xlane.f32.xlu0 %v6878_v24  ;;  %6905 = vadd.xlane.f32.xlu1 %v6881_v32  ;;  %v6884_v39 = vadd.f32 %v8546_v20, %v6868_v28 }
0x1859   : > { %v6829_v57 = vpop.f32.mrf.mxu1 }
0x185a   : > { %v6882_v59 = vadd.f32 %v6866_v16, %v6829_v57 }
0x185b   : > { %v8549_v15 = vpop.f32.mrf.mxu1 }
0x185c   : > { %6909 = vadd.xlane.f32.xlu0 %v6883_v13  ;;  %6907 = vadd.xlane.f32.xlu1 %v6882_v59  ;;  %v6887_v18 = vadd.f32 %v8549_v15, %v6871_v62 }
0x185d   : > { %v6842_v1 = vpop.f32.mrf.mxu1 }
0x185e   : > { %v6885_v2 = vadd.f32 %v6869_v37, %v6842_v1 }
0x185f   : > { %v8550_v48 = vpop.f32.mrf.mxu1 }
0x1860   : > { %6911 = vadd.xlane.f32.xlu0 %v6884_v39  ;;  %v6888_v40 = vadd.f32 %v8550_v48, %v6872_v36 }
0x1861   : > { %v6845_v54 = vpop.f32.mrf.mxu1 }
0x1862   : > { %v6886_v38 = vadd.f32 %v6870_v30, %v6845_v54 }
0x1864   : > { %6919 = vadd.xlane.f32.xlu0 %v6888_v40  ;;  %6915 = vadd.xlane.f32.xlu1 %v6886_v38 }
0x1868   : > { %6917 = vadd.xlane.f32.xlu0 %v6887_v18  ;;  %6913 = vadd.xlane.f32.xlu1 %v6885_v2 }
0x186c   : > { %6465 = vadd.xlane.f32.xlu0 %v6448_v6  ;;  %6463 = vadd.xlane.f32.xlu1 %v6447_v58 }
0x1870   : > { %6469 = vadd.xlane.f32.xlu0 %v6450_v17  ;;  %6467 = vadd.xlane.f32.xlu1 %v6449_v49 }
0x1874   : > { %6473 = vadd.xlane.f32.xlu0 %v6452_v34  ;;  %6471 = vadd.xlane.f32.xlu1 %v6451_v55 }
0x1878   : > { %6477 = vadd.xlane.f32.xlu0 %v6454_v7  ;;  %6475 = vadd.xlane.f32.xlu1 %v6453_v47 }
0x187c   : > { %6481 = vadd.xlane.f32.xlu0 %v6456_v22  ;;  %6479 = vadd.xlane.f32.xlu1 %v6455_v3 }
0x1880   : > { %6485 = vadd.xlane.f32.xlu0 %v6458_v51  ;;  %6483 = vadd.xlane.f32.xlu1 %v6457_v56 }
0x1884   : > { %6487 = vadd.xlane.f32.xlu1 %v6459_v31  ;;  %6489 = vadd.xlane.f32.xlu0 %v6460_v35 }
0x1888   : > { %6491 = vadd.xlane.f32.xlu1 %v6461_v14  ;;  %6493 = vadd.xlane.f32.xlu0 %v6462_v26 }
0x18cf   : > { %v6894_v5 = vpop.xlane.xlu0 %6893 }
0x18d1   : > { %v6890_v53 = vpop.xlane.xlu1 %6889 }
0x18d5   : > { %v6896_v11 = vpop.xlane.xlu1 %6895  ;;  %v6892_v45 = vpop.xlane.xlu0 %6891 }
0x18d6   : > { %v6929_v9 = vsel %vm6925_vm0, %v6896_v11, -1e+30  ;;  %v6927_v8 = vsel %vm6925_vm0, %v6892_v45, -1e+30 }
0x18d7   : > { %v6949_v27 = vmax.f32 %v6894_v5, %v6929_v9  ;;  %v6942_v24 = vmax.f32 %v6890_v53, %v6927_v8 }
0x18d9   : > { %v6950_v32 = vrot.slane %v6949_v27, 4  ;;  %v6943_v20 = vrot.slane %v6942_v24, 4  ;;  %v6902_v16 = vpop.xlane.xlu0 %6901  ;;  %v12884_v15 = vpop.xlane.xlu1 %6897 }
0x18db   : > { %v6951_v52 = vmax.f32 %v6949_v27, %v6950_v32  ;;  %v6944_v57 = vmax.f32 %v6942_v24, %v6943_v20 }
0x18dd   : > { %v6952_v13 = vrot.slane %v6951_v52, 2  ;;  %v6945_v59 = vrot.slane %v6944_v57, 2  ;;  %v6904_v28 = vpop.xlane.xlu0 %6903 }
0x18de   : > { %v6933_v1 = vsel %vm6925_vm0, %v6904_v28, -1e+30 }
0x18df   : > { %v6953_v39 = vmax.f32 %v6951_v52, %v6952_v13  ;;  %v6946_v48 = vmax.f32 %v6944_v57, %v6945_v59  ;;  %v6963_v30 = vmax.f32 %v6902_v16, %v6933_v1 }
0x18e1   : > { %v6954_v36 = vrot.slane %v6953_v39, 1  ;;  %v6947_v54 = vrot.slane %v6946_v48, 1  ;;  %v6964_v40 = vrot.slane %v6963_v30, 4  ;;  %v6900_v38 = vpop.xlane.xlu0 %6899  ;;  %v12888_v37 = vpop.xlane.xlu1 %6905 }
0x18e2   : > { %v6931_v62 = vsel %vm6925_vm0, %v6900_v38, -1e+30 }
0x18e3   : > { %v6955_v18 = vmax.f32 %v6953_v39, %v6954_v36  ;;  %v6948_v2 = vmax.f32 %v6946_v48, %v6947_v54  ;;  %v6965_v6 = vmax.f32 %v6963_v30, %v6964_v40  ;;  %v6956_v58 = vmax.f32 %v12884_v15, %v6931_v62 }
0x18e5   : > { %v7000_v17 = vsub.f32 %v6894_v5, %v6955_v18  ;;  %v7001_v49 = vsub.f32 %v6929_v9, %v6955_v18  ;;  %v6998_v34 = vsub.f32 %v6890_v53, %v6948_v2  ;;  %v6999_v55 = vsub.f32 %v6927_v8, %v6948_v2  ;;  %v12893_v7 = vpop.xlane.xlu0 %6909  ;;  %v6908_v47 = vpop.xlane.xlu1 %6907 }
0x18e6   : > { %v6966_v22 = vrot.slane %v6965_v6, 2  ;;  %v6957_v3 = vrot.slane %v6956_v58, 4  ;;  %v6935_v51 = vsel %vm6925_vm0, %v6908_v47, -1e+30 }
0x18e7   : > { %v7018_v56 = vmul.f32 1.442695, %v7000_v17  ;;  %v7020_v31 = vmul.f32 1.442695, %v7001_v49  ;;  %v7014_v35 = vmul.f32 1.442695, %v6998_v34  ;;  %v6970_v14 = vmax.f32 %v12888_v37, %v6935_v51 }
0x18e8   : > { %v7016_v26 = vmul.f32 1.442695, %v6999_v55  ;;  %v6967_v12 = vmax.f32 %v6965_v6, %v6966_v22  ;;  %v6958_v11 = vmax.f32 %v6956_v58, %v6957_v3 }
0x18e9   : > { %8906 = vpow2.f32 %v7018_v56  ;;  %v6971_v5 = vrot.slane %v6970_v14, 4  ;;  %v6912_v53 = vpop.xlane.xlu0 %6911 }
0x18ea   : > { %8908 = vpow2.f32 %v7020_v31  ;;  %v6968_v45 = vrot.slane %v6967_v12, 1  ;;  %v6959_v9 = vrot.slane %v6958_v11, 2  ;;  %v12900_v8 = vsel %vm6925_vm0, %v6912_v53, -1e+30 }
0x18eb   : > { %8910 = vpow2.f32 %v7014_v35  ;;  %v6972_v27 = vmax.f32 %v6970_v14, %v6971_v5  ;;  %v6977_v24 = vmax.f32 %v12893_v7, %v12900_v8 }
0x18ec   : > { %8912 = vpow2.f32 %v7016_v26  ;;  %v6969_v32 = vmax.f32 %v6967_v12, %v6968_v45  ;;  %v6960_v20 = vmax.f32 %v6958_v11, %v6959_v9 }
0x18ed   : > { %v6973_v52 = vrot.slane %v6972_v27, 2  ;;  %v6978_v57 = vrot.slane %v6977_v24, 4  ;;  %v6920_v13 = vpop.xlane.xlu0 %6919  ;;  %v6916_v59 = vpop.xlane.xlu1 %6915 }
0x18ee   : > { %v7004_v28 = vsub.f32 %v6902_v16, %v6969_v32  ;;  %v7005_v39 = vsub.f32 %v6933_v1, %v6969_v32  ;;  %v6961_v48 = vrot.slane %v6960_v20, 1  ;;  %v12906_v6 = vsel %vm6925_vm0, %v6920_v13, -1e+30 }
0x18ef   : > { %v6974_v30 = vmax.f32 %v6972_v27, %v6973_v52  ;;  %v6979_v36 = vmax.f32 %v6977_v24, %v6978_v57  ;;  %v12910_v58 = vsel %vm6925_vm0, %v6916_v59, -1e+30 }
0x18f0   : > { %v7026_v54 = vmul.f32 1.442695, %v7004_v28  ;;  %v7028_v40 = vmul.f32 1.442695, %v7005_v39  ;;  %v6962_v38 = vmax.f32 %v6960_v20, %v6961_v48 }
0x18f1   : > { %v6975_v18 = vrot.slane %v6974_v30, 1  ;;  %v6980_v2 = vrot.slane %v6979_v36, 2  ;;  %v12912_v17 = vpop.xlane.xlu0 %6917  ;;  %v12914_v16 = vpop.xlane.xlu1 %6913 }
0x18f2   : > { %8914 = vpow2.f32 %v7026_v54  ;;  %v7002_v1 = vsub.f32 %v12884_v15, %v6962_v38  ;;  %v7003_v49 = vsub.f32 %v6931_v62, %v6962_v38  ;;  %v6991_v34 = vmax.f32 %v12912_v17, %v12906_v6 }
0x18f3   : > { %8916 = vpow2.f32 %v7028_v40  ;;  %v6976_v55 = vmax.f32 %v6974_v30, %v6975_v18  ;;  %v6981_v47 = vmax.f32 %v6979_v36, %v6980_v2  ;;  %v6984_v22 = vmax.f32 %v12914_v16, %v12910_v58 }
0x18f4   : > { %v7022_v3 = vmul.f32 1.442695, %v7002_v1  ;;  %v7024_v56 = vmul.f32 1.442695, %v7003_v49  ;;  %v6992_v31 = vrot.slane %v6991_v34, 4 }
0x18f5   : > { %v7006_v35 = vsub.f32 %v12888_v37, %v6976_v55  ;;  %v7007_v14 = vsub.f32 %v6935_v51, %v6976_v55  ;;  %v6982_v26 = vrot.slane %v6981_v47, 1  ;;  %v6985_v12 = vrot.slane %v6984_v22, 4  ;;  %v6466_v11 = vpop.xlane.xlu0 %6465  ;;  %v6464_v15 = vpop.xlane.xlu1 %6463 }
0x18f6   : > { %v12922_v62 = vpop.eup %8906  ;;  %8918 = vpow2.f32 %v7022_v3  ;;  %v6993_v5 = vmax.f32 %v6991_v34, %v6992_v31  ;;  %v6496_v20 = vadd.f32 1e-12, %v6466_v11 }
0x18f7   : > { %v8909_v53 = vpop.eup %8908  ;;  %8920 = vpow2.f32 %v7024_v56  ;;  %v7030_v45 = vmul.f32 1.442695, %v7006_v35  ;;  %v7032_v9 = vmul.f32 1.442695, %v7007_v14  ;;  %v6983_v27 = vmax.f32 %v6981_v47, %v6982_v26 }
0x18f8   : > { %v12924_v24 = vpop.eup %8910  ;;  %v12928_v32 = vsel %vm6925_vm0, %v8909_v53, 0.0  ;;  %v6994_v37 = vrot.slane %v6993_v5, 2  ;;  %v6986_v51 = vmax.f32 %v6984_v22, %v6985_v12 }
0x18f9   : > { %v8913_v52 = vpop.eup %8912  ;;  %v7069_v57 = vadd.f32 %v12922_v62, %v12928_v32  ;;  %8922 = vpow2.f32 %v7030_v45  ;;  %v7008_v13 = vsub.f32 %v12893_v7, %v6983_v27  ;;  %v7009_v59 = vsub.f32 %v12900_v8, %v6983_v27  ;;  %v6470_v28 = vpop.xlane.xlu0 %6469 }
0x18fa   : > { %v6468_v39 = vpop.xlane.xlu1 %6467  ;;  %v12936_v48 = vsel %vm6925_vm0, %v8913_v52, 0.0  ;;  %8924 = vpow2.f32 %v7032_v9  ;;  %v6995_v30 = vmax.f32 %v6993_v5, %v6994_v37  ;;  %v6987_v36 = vrot.slane %v6986_v51, 2 }
0x18fb   : > { %v7070_v54 = vrot.slane %v7069_v57, 4  ;;  %v7062_v40 = vadd.f32 %v12924_v24, %v12936_v48  ;;  %v7034_v38 = vmul.f32 1.442695, %v7008_v13  ;;  %v7036_v18 = vmul.f32 1.442695, %v7009_v59 }
0x18fc   : > { %v6996_v2 = vrot.slane %v6995_v30, 1  ;;  %v6988_v1 = vmax.f32 %v6986_v51, %v6987_v36  ;;  %v6495_v7 = vadd.f32 1e-12, %v6464_v15  ;;  %v6498_v34 = vadd.f32 1e-12, %v6470_v28 }
0x18fd   : > { %v7071_v49 = vadd.f32 %v7070_v54, %v7069_v57  ;;  %v7063_v8 = vrot.slane %v7062_v40, 4  ;;  %8926 = vpow2.f32 %v7034_v38  ;;  %v6474_v55 = vpop.xlane.xlu0 %6473  ;;  %v6497_v14 = vadd.f32 1e-12, %v6468_v39 }
0x18fe   : > { %v6472_v47 = vpop.xlane.xlu1 %6471  ;;  %8928 = vpow2.f32 %v7036_v18  ;;  %v6997_v22 = vmax.f32 %v6995_v30, %v6996_v2  ;;  %v6989_v3 = vrot.slane %v6988_v1, 1 }
0x18ff   : > { %v12940_v56 = vpop.eup %8914  ;;  %v7072_v31 = vrot.slane %v7071_v49, 2  ;;  %v7064_v35 = vadd.f32 %v7063_v8, %v7062_v40  ;;  %8930 = vrsqrt.f32 %v6496_v20 }
0x1900   : > { %v8917_v26 = vpop.eup %8916  ;;  %v7012_v12 = vsub.f32 %v12912_v17, %v6997_v22  ;;  %v7013_v11 = vsub.f32 %v12906_v6, %v6997_v22  ;;  %v6990_v15 = vmax.f32 %v6988_v1, %v6989_v3  ;;  %8932 = vrsqrt.f32 %v6495_v7 }
0x1901   : > { %v7073_v5 = vadd.f32 %v7072_v31, %v7071_v49  ;;  %v7065_v53 = vrot.slane %v7064_v35, 2  ;;  %v12946_v45 = vsel %vm6925_vm0, %v8917_v26, 0.0  ;;  %8934 = vrsqrt.f32 %v6498_v34  ;;  %v6478_v17 = vpop.xlane.xlu0 %6477 }
0x1902   : > { %v6476_v9 = vpop.xlane.xlu1 %6475  ;;  %v7083_v27 = vadd.f32 %v12940_v56, %v12946_v45  ;;  %v7042_v37 = vmul.f32 1.442695, %v7012_v12  ;;  %v7044_v51 = vmul.f32 1.442695, %v7013_v11  ;;  %v7010_v20 = vsub.f32 %v12914_v16, %v6990_v15 }
0x1903   : > { %v12951_v52 = vpop.eup %8918  ;;  %v7074_v6 = vrot.slane %v7073_v5, 1  ;;  %v7066_v57 = vadd.f32 %v7065_v53, %v7064_v35  ;;  %v7011_v13 = vsub.f32 %v12910_v58, %v6990_v15  ;;  %8936 = vrsqrt.f32 %v6497_v14 }
0x1904   : > { %v8921_v59 = vpop.eup %8920  ;;  %v7084_v28 = vrot.slane %v7083_v27, 4  ;;  %8938 = vpow2.f32 %v7042_v37  ;;  %v7038_v39 = vmul.f32 1.442695, %v7010_v20  ;;  %v6500_v3 = vadd.f32 1e-12, %v6474_v55 }
0x1905   : > { %v7075_v30 = vadd.f32 %v7074_v6, %v7073_v5  ;;  %v7067_v36 = vrot.slane %v7066_v57, 1  ;;  %v12956_v54 = vsel %vm6925_vm0, %v8921_v59, 0.0  ;;  %8940 = vpow2.f32 %v7044_v51  ;;  %v6482_v34 = vpop.xlane.xlu0 %6481 }
0x1906   : > { %v12958_v16 = vpop.eup %8922  ;;  %v7085_v40 = vadd.f32 %v7084_v28, %v7083_v27  ;;  %v7076_v38 = vadd.f32 %v12951_v52, %v12956_v54  ;;  %8942 = vpow2.f32 %v7038_v39  ;;  %v7040_v58 = vmul.f32 1.442695, %v7011_v13  ;;  %v6480_v18 = vpop.xlane.xlu1 %6479 }
0x1907   : > { %v8925_v2 = vpop.eup %8924  ;;  %8944 = vrcp.f32 %v7075_v30  ;;  %v7068_v1 = vadd.f32 %v7067_v36, %v7066_v57  ;;  %v6499_v26 = vadd.f32 1e-12, %v6472_v47  ;;  %v6502_v15 = vadd.f32 1e-12, %v6478_v17 }
0x1908   : > { %v7086_v7 = vrot.slane %v7085_v40, 2  ;;  %v7077_v49 = vrot.slane %v7076_v38, 4  ;;  %v12964_v8 = vsel %vm6925_vm0, %v8925_v2, 0.0  ;;  %8946 = vpow2.f32 %v7040_v58 }
0x1909   : > { %8948 = vrcp.f32 %v7068_v1  ;;  %v7090_v22 = vadd.f32 %v12958_v16, %v12964_v8  ;;  %v12975_v53 = vand.u32 127, %v6921_v41  ;;  %v6501_v17 = vadd.f32 1e-12, %v6476_v9  ;;  %v6486_v59 = vpop.xlane.xlu0 %6485 }
0x190a   : > { %v12972_v31 = vpop.eup %8926  ;;  %v7087_v35 = vadd.f32 %v7086_v7, %v7085_v40  ;;  %v7078_v14 = vadd.f32 %v7077_v49, %v7076_v38  ;;  %v6484_v55 = vpop.xlane.xlu1 %6483  ;;  %8950 = vrsqrt.f32 %v6500_v3  ;;  %v6504_v30 = vadd.f32 1e-12, %v6482_v34 }
0x190b   : > { %v8929_v12 = vpop.eup %8928  ;;  %v7091_v11 = vrot.slane %v7090_v22, 4  ;;  %8952 = vrsqrt.f32 %v6499_v26  ;;  %vm7160_vm1 = vcmp.eq.s32.totalorder %v12975_v53, 4  ;;  %v6503_v34 = vadd.f32 1e-12, %v6480_v18 }
0x190c   : > { %v8931_v5 = vpop.eup %8930  ;;  %v7088_v27 = vrot.slane %v7087_v35, 1  ;;  %v7079_v37 = vrot.slane %v7078_v14, 2  ;;  %v12979_v51 = vsel %vm6925_vm0, %v8929_v12, 0.0  ;;  %8954 = vrsqrt.f32 %v6502_v15 }
0x190d   : > { %v8933_v20 = vpop.eup %8932  ;;  %v7092_v6 = vadd.f32 %v7091_v11, %v7090_v22  ;;  %v7097_v47 = vadd.f32 %v12972_v31, %v12979_v51  ;;  %v6528_v2 = vmul.f32 %v8931_v5, %v12711_v63  ;;  %v6506_v22 = vadd.f32 1e-12, %v6486_v59  ;;  %v6490_v15 = vpop.xlane.xlu0 %6489 }
0x190e   : > { %v8935_v57 = vpop.eup %8934  ;;  %v7089_v41 = vadd.f32 %v7088_v27, %v7087_v35  ;;  %v7080_v13 = vadd.f32 %v7079_v37, %v7078_v14  ;;  %v6527_v49 = vmul.f32 %v8933_v20, %v12703_v23  ;;  %v6488_v3 = vpop.xlane.xlu1 %6487  ;;  %v6505_v18 = vadd.f32 1e-12, %v6484_v55 }
0x190f   : > { %v7093_v28 = vrot.slane %v7092_v6, 2  ;;  %v7098_v39 = vrot.slane %v7097_v47, 4  ;;  %v6530_v23 = vmul.f32 %v8935_v57, %v12707_v21 }
0x1910   : > { %v8937_v36 = vpop.eup %8936  ;;  %8956 = vrcp.f32 %v7089_v41  ;;  %v7081_v40 = vrot.slane %v7080_v13, 1 }
0x1911   : > { %v12990_v38 = vpop.eup %8938  ;;  %v7094_v9 = vadd.f32 %v7093_v28, %v7092_v6  ;;  %v7099_v58 = vadd.f32 %v7098_v39, %v7097_v47  ;;  %8958 = vrsqrt.f32 %v6501_v17 }
0x1912   : > { %v8941_v1 = vpop.eup %8940  ;;  %v7082_v7 = vadd.f32 %v7081_v40, %v7080_v13  ;;  %8960 = vrsqrt.f32 %v6504_v30  ;;  %v6529_v13 = vmul.f32 %v8937_v36, %v12699_v25 }
0x1913   : > { %v12994_v35 = vpop.eup %8942  ;;  %v7095_v14 = vrot.slane %v7094_v9, 1  ;;  %v7100_v26 = vrot.slane %v7099_v58, 2  ;;  %v12998_v12 = vsel %vm6925_vm0, %v8941_v1, 0.0 }
0x1914   : > { %v8945_v11 = vpop.eup %8944  ;;  %8962 = vrcp.f32 %v7082_v7  ;;  %v7111_v63 = vadd.f32 %v12990_v38, %v12998_v12 }
0x1915   : > { %v8947_v5 = vpop.eup %8946  ;;  %v7122_v27 = vmul.f32 %v8945_v11, %v12922_v62  ;;  %v7123_v37 = vmul.f32 %v8945_v11, %v12928_v32  ;;  %v7096_v20 = vadd.f32 %v7095_v14, %v7094_v9  ;;  %v7101_v6 = vadd.f32 %v7100_v26, %v7099_v58  ;;  %v6492_v32 = vpop.xlane.xlu1 %6491 }
0x1916   : > { %v8949_v47 = vpop.eup %8948  ;;  %v7112_v17 = vrot.slane %v7111_v63, 4  ;;  %v13008_v41 = vsel %vm6925_vm0, %v8947_v5, 0.0  ;;  %8964 = vrsqrt.f32 %v6503_v34  ;;  %v6494_v58 = vpop.xlane.xlu0 %6493  ;;  %v6509_v14 = vadd.f32 1e-12, %v6492_v32 }
0x1917   : > { %v7144_v59 = vmul.f32 15.0, %v7122_v27  ;;  %v7145_v21 = vmul.f32 15.0, %v7123_v37  ;;  %v7119_v55 = vmul.f32 %v8949_v47, %v12924_v24  ;;  %v7120_v57 = vmul.f32 %v8949_v47, %v12936_v48  ;;  %v8951_v30 = vpop.eup %8950 }
0x1918   : > { %8966 = vrcp.f32 %v7096_v20  ;;  %v7102_v4 = vrot.slane %v7101_v6, 1  ;;  %v7113_v62 = vadd.f32 %v7112_v17, %v7111_v63  ;;  %v7104_v25 = vadd.f32 %v12994_v35, %v13008_v41  ;;  %v8953_v1 = vpop.eup %8952 }
0x1919   : > { %v7142_v28 = vmul.f32 15.0, %v7119_v55  ;;  %v7143_v39 = vmul.f32 15.0, %v7120_v57  ;;  %v7164_v24 = vsel %vm7160_vm1, %v7145_v21, %v6530_v23  ;;  %v7163_v48 = vsel %vm7160_vm1, %v7144_v59, %v6529_v13  ;;  %v8955_v26 = vpop.eup %8954 }
0x191a   : > { %v7103_v36 = vadd.f32 %v7102_v4, %v7101_v6  ;;  %v7114_v40 = vrot.slane %v7113_v62, 2  ;;  %v7105_v9 = vrot.slane %v7104_v25, 4  ;;  %7180 = vst [vmem:[%s13016_s28 + $0x18] sm:$0xff] %v7164_v24  ;;  %7179 = vst [vmem:[%s13016_s28 + $0x10] sm:$0xff] %v7163_v48  ;;  %8968 = vrsqrt.f32 %v6506_v22 }
0x191b   : > { %v7162_v7 = vsel %vm7160_vm1, %v7143_v39, %v6528_v2  ;;  %v7161_v34 = vsel %vm7160_vm1, %v7142_v28, %v6527_v49  ;;  %8970 = vrsqrt.f32 %v6505_v18  ;;  %v6510_v5 = vadd.f32 1e-12, %v6494_v58 }
0x191c   : > { %8972 = vrcp.f32 %v7103_v36  ;;  %v7115_v11 = vadd.f32 %v7114_v40, %v7113_v62  ;;  %v7106_v63 = vadd.f32 %v7105_v9, %v7104_v25  ;;  %7178 = vst [vmem:[%s13016_s28 + $0x8] sm:$0xff] %v7162_v7  ;;  %7177 = vst [vmem:[%s13016_s28] sm:$0xff] %v7161_v34  ;;  %v6507_v6 = vadd.f32 1e-12, %v6488_v3 }
0x191d   : > { %v8957_v23 = vpop.eup %8956  ;;  %8974 = vrsqrt.f32 %v6509_v14  ;;  %v6534_v21 = vmul.f32 %v8955_v26, %v12723_v0  ;;  %v6508_v57 = vadd.f32 1e-12, %v6490_v15  ;;  %v6532_v62 = vmul.f32 %v8951_v30, %v12727_v44 }
0x191e   : > { %v8959_v27 = vpop.eup %8958  ;;  %v7128_v22 = vmul.f32 %v8957_v23, %v12940_v56  ;;  %v7129_v37 = vmul.f32 %v8957_v23, %v12946_v45  ;;  %v7116_v20 = vrot.slane %v7115_v11, 1  ;;  %v7107_v2 = vrot.slane %v7106_v63, 2 }
0x191f   : > { %v8961_v49 = vpop.eup %8960  ;;  %v6533_v55 = vmul.f32 %v8959_v27, %v12715_v50  ;;  %8976 = vrsqrt.f32 %v6510_v5 }
0x1920   : > { %v7148_v18 = vmul.f32 15.0, %v7128_v22  ;;  %v7149_v47 = vmul.f32 15.0, %v7129_v37  ;;  %v7117_v17 = vadd.f32 %v7116_v20, %v7115_v11  ;;  %v7108_v13 = vadd.f32 %v7107_v2, %v7106_v63 }
0x1921   : > { %v8963_v59 = vpop.eup %8962 }
0x1922   : > { %v7125_v56 = vmul.f32 %v8963_v59, %v12951_v52  ;;  %v7126_v45 = vmul.f32 %v8963_v59, %v12956_v54  ;;  %8978 = vrcp.f32 %v7117_v17  ;;  %v7109_v3 = vrot.slane %v7108_v13, 1 }
0x1923   : > { %v8965_v4 = vpop.eup %8964  ;;  %v7168_v25 = vsel %vm7160_vm1, %v7149_v47, %v6534_v21  ;;  %v7167_v0 = vsel %vm7160_vm1, %v7148_v18, %v6533_v55  ;;  %8980 = vrsqrt.f32 %v6507_v6  ;;  %v6531_v54 = vmul.f32 %v8953_v1, %v12719_v46 }
0x1924   : > { %v7146_v32 = vmul.f32 15.0, %v7125_v56  ;;  %v7147_v50 = vmul.f32 15.0, %v7126_v45  ;;  %v7110_v15 = vadd.f32 %v7109_v3, %v7108_v13  ;;  %7184 = vst [vmem:[%s13016_s28 + $0x38] sm:$0xff] %v7168_v25  ;;  %7183 = vst [vmem:[%s13016_s28 + $0x30] sm:$0xff] %v7167_v0  ;;  %8982 = vrsqrt.f32 %v6508_v57 }
0x1925   : > { %v8967_v52 = vpop.eup %8966  ;;  %v6536_v46 = vmul.f32 %v8961_v49, %v12743_v10 }
0x1926   : > { %v7131_v44 = vmul.f32 %v8967_v52, %v12958_v16  ;;  %v7132_v28 = vmul.f32 %v8967_v52, %v12964_v8  ;;  %8984 = vrcp.f32 %v7110_v15  ;;  %v7166_v39 = vsel %vm7160_vm1, %v7147_v50, %v6532_v62 }
0x1927   : > { %v8969_v24 = vpop.eup %8968  ;;  %7182 = vst [vmem:[%s13016_s28 + $0x28] sm:$0xff] %v7166_v39  ;;  %v7165_v48 = vsel %vm7160_vm1, %v7146_v32, %v6531_v54  ;;  %v6535_v16 = vmul.f32 %v8965_v4, %v12735_v61 }
0x1928   : > { %v8971_v30 = vpop.eup %8970  ;;  %v7150_v36 = vmul.f32 15.0, %v7131_v44  ;;  %v7151_v40 = vmul.f32 15.0, %v7132_v28  ;;  %7181 = vst [vmem:[%s13016_s28 + $0x20] sm:$0xff] %v7165_v48  ;;  %v6538_v61 = vmul.f32 %v8969_v24, %v12739_v43 }
0x1929   : > { %v8973_v8 = vpop.eup %8972  ;;  %v6537_v26 = vmul.f32 %v8971_v30, %v12731_v19 }
0x192a   : > { %v7134_v9 = vmul.f32 %v8973_v8, %v12972_v31  ;;  %v7135_v58 = vmul.f32 %v8973_v8, %v12979_v51  ;;  %v7170_v1 = vsel %vm7160_vm1, %v7151_v40, %v6536_v46  ;;  %v7169_v7 = vsel %vm7160_vm1, %v7150_v36, %v6535_v16  ;;  %v8975_v34 = vpop.eup %8974 }
0x192b   : > { %7186 = vst [vmem:[%s13016_s28 + $0x48] sm:$0xff] %v7170_v1  ;;  %7185 = vst [vmem:[%s13016_s28 + $0x40] sm:$0xff] %v7169_v7  ;;  %v6541_v37 = vmul.f32 %v8975_v34, %v13870_v33 }
0x192c   : > { %v7152_v14 = vmul.f32 15.0, %v7134_v9  ;;  %v7153_v10 = vmul.f32 15.0, %v7135_v58  ;;  %v8977_v11 = vpop.eup %8976 }
0x192d   : > { %v6542_v20 = vmul.f32 %v8977_v11, %v13871_v42 }
0x192e   : > { %v7172_v31 = vsel %vm7160_vm1, %v7153_v10, %v6538_v61  ;;  %v7171_v51 = vsel %vm7160_vm1, %v7152_v14, %v6537_v26 }
0x192f   : > { %v8979_v63 = vpop.eup %8978  ;;  %7188 = vst [vmem:[%s13016_s28 + $0x58] sm:$0xff] %v7172_v31  ;;  %7187 = vst [vmem:[%s13016_s28 + $0x50] sm:$0xff] %v7171_v51 }
0x1930   : > { %v7140_v23 = vmul.f32 %v8979_v63, %v12990_v38  ;;  %v7141_v5 = vmul.f32 %v8979_v63, %v12998_v12  ;;  %v8981_v27 = vpop.eup %8980 }
0x1931   : > { %v8983_v43 = vpop.eup %8982  ;;  %v6539_v33 = vmul.f32 %v8981_v27, %v13868_v29 }
0x1932   : > { %v7156_v22 = vmul.f32 15.0, %v7140_v23  ;;  %v7157_v19 = vmul.f32 15.0, %v7141_v5  ;;  %v6540_v17 = vmul.f32 %v8983_v43, %v13869_v60 }
0x1933   : > { %v8985_v2 = vpop.eup %8984 }
0x1934   : > { %v7137_v6 = vmul.f32 %v8985_v2, %v12994_v35  ;;  %v7138_v49 = vmul.f32 %v8985_v2, %v13008_v41  ;;  %v7175_v38 = vsel %vm7160_vm1, %v7156_v22, %v6541_v37  ;;  %v7176_v12 = vsel %vm7160_vm1, %v7157_v19, %v6542_v20 }
0x1935   : > { %7191 = vst [vmem:[%s13016_s28 + $0x70] sm:$0xff] %v7175_v38  ;;  %7192 = vst [vmem:[%s13016_s28 + $0x78] sm:$0xff] %v7176_v12 }
0x1936   : > { %v7154_v18 = vmul.f32 15.0, %v7137_v6  ;;  %v7155_v47 = vmul.f32 15.0, %v7138_v49 }
0x1938   : > { %v7173_v42 = vsel %vm7160_vm1, %v7154_v18, %v6539_v33  ;;  %v7174_v35 = vsel %vm7160_vm1, %v7155_v47, %v6540_v17 }
0x1939   : > { %7189 = vst [vmem:[%s13016_s28 + $0x60] sm:$0xff] %v7173_v42  ;;  %7190 = vst [vmem:[%s13016_s28 + $0x68] sm:$0xff] %v7174_v35 }
0x193a PF: > { %s19_s30 = sadd.s32 1, %s9103_s30  }
0x193b   : > { %p16_p5 = scmp.ge.s32.totalorder %s19_s30, 4  }
0x193d   :  { %18 = sbr.rel (!%p16_p5) target bundleno = 1 (0x1), region = 104 }

</bundles_post_ra>
